<compile_context>
chip_gen: v5e
topology: v5e:2x2
jax: 0.10.0
libtpu: 0.0.40
codegen_flags: <defaults>
</compile_context>

<pallas_src>
import functools

import jax
import jax.numpy as jnp
from jax.experimental import pallas as pl
from jax.experimental.pallas import tpu as pltpu

SA_EPS = 1e-8    # slot-attention eps
LN_EPS = 1e-5    # torch.nn.LayerNorm default eps


def _layernorm(x, g, b):
    mu = jnp.mean(x, axis=-1, keepdims=True)
    var = jnp.mean((x - mu) ** 2, axis=-1, keepdims=True)
    return (x - mu) * jax.lax.rsqrt(var + LN_EPS) * g + b


def _slot_attention_kernel(
    feat_ref, slots_ref,
    wkv_ref, wq_ref,
    ln_in_ref, ln_sl_ref,
    wi_ref, wh_ref, bi_ref, bh_ref,
    slots_out_ref, attn_out_ref,
    *, iters, scale, Dk, D,
):
    # block of `Bb` batch elements per grid step
    x = feat_ref[...].astype(jnp.float32)                       # (Bb, N, Df)
    Bb, N, Df = x.shape

    # Shared LayerNorm + fused k/v projection over all tokens of the block.
    x2 = x.reshape(Bb * N, Df)
    xn = _layernorm(x2, ln_in_ref[0:1, :], ln_in_ref[1:2, :])
    kv = jnp.dot(xn, wkv_ref[...], preferred_element_type=jnp.float32)   # (Bb*N, 2*Dk)
    k = kv[:, :Dk].reshape(Bb, N, Dk)
    v = kv[:, Dk:].reshape(Bb, N, Dk)

    slots = slots_ref[...].astype(jnp.float32)                  # (Bb, K, D)
    K = slots.shape[1]
    attn = jnp.zeros((Bb, K, N), jnp.float32)                   # only used if iters == 0

    bi = bi_ref[...]                                            # (1, 3*D)
    bh = bh_ref[...]                                            # (1, 3*D)

    for _ in range(iters):                                      # static unroll (small iters)
        slots_prev = slots                                       # (Bb, K, D)
        s2 = slots.reshape(Bb * K, D)
        sn = _layernorm(s2, ln_sl_ref[0:1, :], ln_sl_ref[1:2, :])
        q = jnp.dot(sn, wq_ref[...], preferred_element_type=jnp.float32)     # (Bb*K, Dk)
        q = q.reshape(Bb, K, Dk)

        # q k^T without materializing a transpose (contract last dims of both).
        dots = jnp.einsum("bkd,bnd->bkn", q, k,
                          preferred_element_type=jnp.float32) * scale        # (Bb, K, N)

        # softmax over SLOTS (axis=1), as in slot attention
        dots = dots - jnp.max(dots, axis=1, keepdims=True)
        e = jnp.exp(dots)
        inv_col = pl.reciprocal(jnp.sum(e, axis=1, keepdims=True))           # (Bb, 1, N), exact
        attn = e * inv_col + SA_EPS                                          # returned attention
        inv_row = pl.reciprocal(jnp.sum(attn, axis=-1, keepdims=True))       # (Bb, K, 1), exact
        attn_w = attn * inv_row                                              # reweight over inputs

        updates = jnp.einsum("bkn,bnd->bkd", attn_w, v,
                             preferred_element_type=jnp.float32)             # (Bb, K, Dk)

        # GRUCell(input=updates, hidden=slots_prev); gates fused into 2 matmuls.
        u2 = updates.reshape(Bb * K, Dk)
        sp2 = slots_prev.reshape(Bb * K, D)
        gi = jnp.dot(u2, wi_ref[...], preferred_element_type=jnp.float32) + bi    # (Bb*K, 3D)
        gh = jnp.dot(sp2, wh_ref[...], preferred_element_type=jnp.float32) + bh   # (Bb*K, 3D)
        r = jax.nn.sigmoid(gi[:, :D] + gh[:, :D])
        z = jax.nn.sigmoid(gi[:, D:2 * D] + gh[:, D:2 * D])
        n = jnp.tanh(gi[:, 2 * D:] + r * gh[:, 2 * D:])
        slots = ((1.0 - z) * n + z * sp2).reshape(Bb, K, D)
        # ff_mlp is None in this configuration.

    slots_out_ref[...] = slots.astype(slots_out_ref.dtype)
    attn_out_ref[...] = attn.astype(attn_out_ref.dtype)


def slot_attention_grouping_disent(feat, conditioning, params, *,
                                   object_dim, position_dim, iters=3,
                                   block_b=None):
    """Returns (object_slots, position_slots, attn)."""
    B, N, Df = feat.shape
    _, K, D = conditioning.shape
    Dk = params["wq"].shape[1]
    scale = float(Dk) ** -0.5

    # Batches per grid step: amortize per-step overhead (~0.35us/step) but keep
    # >= 2 grid steps when possible (v7x has 2 TensorCores).
    if block_b is None:
        block_b = B if B < 2 else max(1, B // 2)
    block_b = min(block_b, B)
    while B % block_b != 0:
        block_b -= 1
    n_steps = B // block_b

    # Concatenate parameters into a few wide arrays (fewer DMAs, wider matmuls).
    wkv = jnp.concatenate([params["wk"], params["wv"]], axis=1)                    # (Df, 2*Dk)
    wi = jnp.concatenate([params["wir"], params["wiz"], params["win"]], axis=1)    # (Dk, 3*D)
    wh = jnp.concatenate([params["whr"], params["whz"], params["whn"]], axis=1)    # (D, 3*D)
    bi = jnp.concatenate([params["bir"], params["biz"], params["bin"]], axis=1)    # (1, 3*D)
    bh = jnp.concatenate([params["bhr"], params["bhz"], params["bhn"]], axis=1)    # (1, 3*D)
    ln_in = jnp.concatenate([params["ln_in_g"], params["ln_in_b"]], axis=0)        # (2, Df)
    ln_sl = jnp.concatenate([params["ln_sl_g"], params["ln_sl_b"]], axis=0)        # (2, D)

    kern = functools.partial(_slot_attention_kernel, iters=iters, scale=scale,
                             Dk=Dk, D=D)

    def full(shape):
        return pl.BlockSpec(shape, lambda b: (0,) * len(shape))

    in_specs = [
        pl.BlockSpec((block_b, N, Df), lambda b: (b, 0, 0)),   # features
        pl.BlockSpec((block_b, K, D), lambda b: (b, 0, 0)),    # conditioning slots
        full((Df, 2 * Dk)),                                    # wkv
        full((D, Dk)),                                         # wq
        full((2, Df)), full((2, D)),                           # layernorm params
        full((Dk, 3 * D)), full((D, 3 * D)),                   # GRU input/hidden weights
        full((1, 3 * D)), full((1, 3 * D)),                    # GRU input/hidden biases
    ]
    out_specs = (
        pl.BlockSpec((block_b, K, D), lambda b: (b, 0, 0)),
        pl.BlockSpec((block_b, K, N), lambda b: (b, 0, 0)),
    )
    out_shape = (
        jax.ShapeDtypeStruct((B, K, D), feat.dtype),
        jax.ShapeDtypeStruct((B, K, N), feat.dtype),
    )

    slots, attn = pl.pallas_call(
        kern,
        grid=(n_steps,),
        in_specs=in_specs,
        out_specs=out_specs,
        out_shape=out_shape,
        compiler_params=pltpu.CompilerParams(
            dimension_semantics=("parallel",)),
    )(
        feat, conditioning,
        wkv, params["wq"],
        ln_in, ln_sl,
        wi, wh, bi, bh,
    )

    # Glue: split slots into disentangled object / position parts (plain JAX).
    object_slots = slots[..., :object_dim]
    position_slots = slots[..., -position_dim:]
    return object_slots, position_slots, attn


def _reference(feat, conditioning, p, iters=3):
    """Pure-JAX reference mirroring the PyTorch semantics."""
    def ln(x, g, b):
        mu = x.mean(-1, keepdims=True)
        var = ((x - mu) ** 2).mean(-1, keepdims=True)
        return (x - mu) / jnp.sqrt(var + LN_EPS) * g + b

    Dk = p["wq"].shape[1]
    scale = float(Dk) ** -0.5
    xn = ln(feat, p["ln_in_g"][0], p["ln_in_b"][0])
    k = xn @ p["wk"]
    v = xn @ p["wv"]
    slots = conditioning
    attn = None
    for _ in range(iters):
        slots_prev = slots
        q = ln(slots, p["ln_sl_g"][0], p["ln_sl_b"][0]) @ p["wq"]
        dots = jnp.einsum("bid,bjd->bij", q, k) * scale
        attn = jax.nn.softmax(dots, axis=1) + SA_EPS
        attn_w = attn / attn.sum(-1, keepdims=True)
        updates = jnp.einsum("bij,bjd->bid", attn_w, v)
        r = jax.nn.sigmoid(updates @ p["wir"] + p["bir"] + slots_prev @ p["whr"] + p["bhr"])
        z = jax.nn.sigmoid(updates @ p["wiz"] + p["biz"] + slots_prev @ p["whz"] + p["bhz"])
        n = jnp.tanh(updates @ p["win"] + p["bin"] + r * (slots_prev @ p["whn"] + p["bhn"]))
        slots = (1.0 - z) * n + z * slots_prev
    return slots, attn


def _init_params(key, feature_dim, dim, kvq_dim):
    ks = jax.random.split(key, 12)
    s_f = feature_dim ** -0.5
    s_d = dim ** -0.5
    s_k = kvq_dim ** -0.5
    return {
        "wk": jax.random.normal(ks[0], (feature_dim, kvq_dim), jnp.float32) * s_f,
        "wv": jax.random.normal(ks[1], (feature_dim, kvq_dim), jnp.float32) * s_f,
        "wq": jax.random.normal(ks[2], (dim, kvq_dim), jnp.float32) * s_d,
        "ln_in_g": jnp.ones((1, feature_dim), jnp.float32),
        "ln_in_b": jnp.zeros((1, feature_dim), jnp.float32),
        "ln_sl_g": jnp.ones((1, dim), jnp.float32),
        "ln_sl_b": jnp.zeros((1, dim), jnp.float32),
        "wir": jax.random.normal(ks[3], (kvq_dim, dim), jnp.float32) * s_k,
        "wiz": jax.random.normal(ks[4], (kvq_dim, dim), jnp.float32) * s_k,
        "win": jax.random.normal(ks[5], (kvq_dim, dim), jnp.float32) * s_k,
        "whr": jax.random.normal(ks[6], (dim, dim), jnp.float32) * s_d,
        "whz": jax.random.normal(ks[7], (dim, dim), jnp.float32) * s_d,
        "whn": jax.random.normal(ks[8], (dim, dim), jnp.float32) * s_d,
        "bir": jax.random.normal(ks[9], (1, dim), jnp.float32) * 0.1,
        "biz": jax.random.normal(ks[10], (1, dim), jnp.float32) * 0.1,
        "bin": jax.random.normal(ks[11], (1, dim), jnp.float32) * 0.1,
        "bhr": jnp.zeros((1, dim), jnp.float32),
        "bhz": jnp.zeros((1, dim), jnp.float32),
        "bhn": jnp.zeros((1, dim), jnp.float32),
    }


if __name__ == "__main__":
    # Small but lane-dense shapes (N=128 so the attn output slab fills lanes).
    B, N = 8, 128           # batch, number of feature tokens
    feature_dim = 64
    object_dim, position_dim = 24, 8
    dim = object_dim + position_dim   # 32
    kvq_dim = dim                     # default kvq_dim=None -> dim
    K = 8                             # number of slots
    iters = 3
    block_b = 4                       # 2 grid steps -> both v7x TensorCores busy

    key = jax.random.PRNGKey(0)
    k_feat, k_cond, k_par = jax.random.split(key, 3)
    feat = jax.random.normal(k_feat, (B, N, feature_dim), jnp.float32)
    conditioning = jax.random.normal(k_cond, (B, K, dim), jnp.float32)
    params = _init_params(k_par, feature_dim, dim, kvq_dim)

    obj, pos, attn = slot_attention_grouping_disent(
        feat, conditioning, params,
        object_dim=object_dim, position_dim=position_dim, iters=iters,
        block_b=block_b)
    jax.block_until_ready((obj, pos, attn))

    # Self-check against a pure-JAX reference of the same math.
    slots_ref, attn_ref = _reference(feat, conditioning, params, iters=iters)
    assert jnp.allclose(obj, slots_ref[..., :object_dim], atol=1e-4, rtol=1e-4)
    assert jnp.allclose(pos, slots_ref[..., -position_dim:], atol=1e-4, rtol=1e-4)
    assert jnp.allclose(attn, attn_ref, atol=1e-4, rtol=1e-4)

    print("KERNEL_OK")
</pallas_src>

<mosaic_0001>
module attributes {stable_mosaic.version = 11 : i64} {
  func.func @_slot_attention_kernel(%arg0: i32, %arg1: memref<4x128x64xf32, #tpu.memory_space<vmem>>, %arg2: memref<4x8x32xf32, #tpu.memory_space<vmem>>, %arg3: memref<64x64xf32, #tpu.memory_space<vmem>>, %arg4: memref<32x32xf32, #tpu.memory_space<vmem>>, %arg5: memref<2x64xf32, #tpu.memory_space<vmem>>, %arg6: memref<2x32xf32, #tpu.memory_space<vmem>>, %arg7: memref<32x96xf32, #tpu.memory_space<vmem>>, %arg8: memref<32x96xf32, #tpu.memory_space<vmem>>, %arg9: memref<1x96xf32, #tpu.memory_space<vmem>>, %arg10: memref<1x96xf32, #tpu.memory_space<vmem>>, %arg11: memref<4x8x32xf32, #tpu.memory_space<vmem>>, %arg12: memref<4x8x128xf32, #tpu.memory_space<vmem>>) attributes {dimension_semantics = [#tpu.dimension_semantics<parallel>], iteration_bounds = array<i64: 2>, scalar_prefetch = 0 : i64, scratch_operands = 0 : i64, tpu.core_type = #tpu.core_type<tc>, window_params = [{transform_indices = @transform_0, window_bounds = array<i64: 4, 128, 64>}, {transform_indices = @transform_1, window_bounds = array<i64: 4, 8, 32>}, {pipeline_mode = #tpu.pipeline_mode<synchronous>, transform_indices = @transform_2, window_bounds = array<i64: 64, 64>}, {pipeline_mode = #tpu.pipeline_mode<synchronous>, transform_indices = @transform_3, window_bounds = array<i64: 32, 32>}, {pipeline_mode = #tpu.pipeline_mode<synchronous>, transform_indices = @transform_4, window_bounds = array<i64: 2, 64>}, {pipeline_mode = #tpu.pipeline_mode<synchronous>, transform_indices = @transform_5, window_bounds = array<i64: 2, 32>}, {pipeline_mode = #tpu.pipeline_mode<synchronous>, transform_indices = @transform_6, window_bounds = array<i64: 32, 96>}, {pipeline_mode = #tpu.pipeline_mode<synchronous>, transform_indices = @transform_7, window_bounds = array<i64: 32, 96>}, {pipeline_mode = #tpu.pipeline_mode<synchronous>, transform_indices = @transform_8, window_bounds = array<i64: 1, 96>}, {pipeline_mode = #tpu.pipeline_mode<synchronous>, transform_indices = @transform_9, window_bounds = array<i64: 1, 96>}, {transform_indices = @transform_10, window_bounds = array<i64: 4, 8, 32>}, {transform_indices = @transform_11, window_bounds = array<i64: 4, 8, 128>}]} {
    %c0 = arith.constant 0 : index
    %c0_0 = arith.constant 0 : index
    %c0_1 = arith.constant 0 : index
    %0 = vector.load %arg1[%c0, %c0_0, %c0_1] : memref<4x128x64xf32, #tpu.memory_space<vmem>>, vector<4x128x64xf32>
    %1 = vector.shape_cast %0 : vector<4x128x64xf32> to vector<512x64xf32>
    %c0_2 = arith.constant 0 : index
    %c0_3 = arith.constant 0 : index
    %2 = vector.load %arg5[%c0_2, %c0_3] : memref<2x64xf32, #tpu.memory_space<vmem>>, vector<1x64xf32>
    %c1 = arith.constant 1 : index
    %c0_4 = arith.constant 0 : index
    %3 = vector.load %arg5[%c1, %c0_4] : memref<2x64xf32, #tpu.memory_space<vmem>>, vector<1x64xf32>
    %cst = arith.constant dense<0.000000e+00> : vector<512xf32>
    %4 = vector.multi_reduction <add>, %1, %cst [1] : vector<512x64xf32> to vector<512xf32>
    %5 = vector.shape_cast %4 : vector<512xf32> to vector<512x1xf32>
    %cst_5 = arith.constant 6.400000e+01 : f32
    %6 = vector.broadcast %cst_5 : f32 to vector<512x1xf32>
    %7 = arith.divf %5, %6 : vector<512x1xf32>
    %8 = vector.broadcast %7 : vector<512x1xf32> to vector<512x64xf32>
    %9 = arith.subf %1, %8 : vector<512x64xf32>
    %10 = arith.mulf %9, %9 : vector<512x64xf32>
    %cst_6 = arith.constant dense<0.000000e+00> : vector<512xf32>
    %11 = vector.multi_reduction <add>, %10, %cst_6 [1] : vector<512x64xf32> to vector<512xf32>
    %12 = vector.shape_cast %11 : vector<512xf32> to vector<512x1xf32>
    %cst_7 = arith.constant 6.400000e+01 : f32
    %13 = vector.broadcast %cst_7 : f32 to vector<512x1xf32>
    %14 = arith.divf %12, %13 : vector<512x1xf32>
    %15 = vector.broadcast %7 : vector<512x1xf32> to vector<512x64xf32>
    %16 = arith.subf %1, %15 : vector<512x64xf32>
    %cst_8 = arith.constant 9.99999974E-6 : f32
    %17 = vector.broadcast %cst_8 : f32 to vector<512x1xf32>
    %18 = arith.addf %14, %17 : vector<512x1xf32>
    %19 = math.rsqrt %18 : vector<512x1xf32>
    %20 = vector.broadcast %19 : vector<512x1xf32> to vector<512x64xf32>
    %21 = arith.mulf %16, %20 : vector<512x64xf32>
    %22 = vector.broadcast %2 : vector<1x64xf32> to vector<512x64xf32>
    %23 = arith.mulf %21, %22 : vector<512x64xf32>
    %24 = vector.broadcast %3 : vector<1x64xf32> to vector<512x64xf32>
    %25 = arith.addf %23, %24 : vector<512x64xf32>
    %c0_9 = arith.constant 0 : index
    %c0_10 = arith.constant 0 : index
    %26 = vector.load %arg3[%c0_9, %c0_10] : memref<64x64xf32, #tpu.memory_space<vmem>>, vector<64x64xf32>
    %cst_11 = arith.constant dense<0.000000e+00> : vector<512x64xf32>
    %27 = tpu.matmul %25, %26, %cst_11 {dimension_numbers = #tpu.dot_dimension_numbers<[1], [0], [0], [1], [0, 0, 1, 1], [], []>} : vector<512x64xf32>, vector<64x64xf32>, vector<512x64xf32> -> vector<512x64xf32>
    %28 = vector.extract_strided_slice %27 {offsets = [0, 0], sizes = [512, 32], strides = [1, 1]} : vector<512x64xf32> to vector<512x32xf32>
    %29 = vector.shape_cast %28 : vector<512x32xf32> to vector<4x128x32xf32>
    %30 = vector.extract_strided_slice %27 {offsets = [0, 32], sizes = [512, 32], strides = [1, 1]} : vector<512x64xf32> to vector<512x32xf32>
    %31 = vector.shape_cast %30 : vector<512x32xf32> to vector<4x128x32xf32>
    %c0_12 = arith.constant 0 : index
    %c0_13 = arith.constant 0 : index
    %c0_14 = arith.constant 0 : index
    %32 = vector.load %arg2[%c0_12, %c0_13, %c0_14] : memref<4x8x32xf32, #tpu.memory_space<vmem>>, vector<4x8x32xf32>
    %c0_15 = arith.constant 0 : index
    %c0_16 = arith.constant 0 : index
    %33 = vector.load %arg9[%c0_15, %c0_16] : memref<1x96xf32, #tpu.memory_space<vmem>>, vector<1x96xf32>
    %c0_17 = arith.constant 0 : index
    %c0_18 = arith.constant 0 : index
    %34 = vector.load %arg10[%c0_17, %c0_18] : memref<1x96xf32, #tpu.memory_space<vmem>>, vector<1x96xf32>
    %35 = vector.shape_cast %32 : vector<4x8x32xf32> to vector<32x32xf32>
    %c0_19 = arith.constant 0 : index
    %c0_20 = arith.constant 0 : index
    %36 = vector.load %arg6[%c0_19, %c0_20] : memref<2x32xf32, #tpu.memory_space<vmem>>, vector<1x32xf32>
    %c1_21 = arith.constant 1 : index
    %c0_22 = arith.constant 0 : index
    %37 = vector.load %arg6[%c1_21, %c0_22] : memref<2x32xf32, #tpu.memory_space<vmem>>, vector<1x32xf32>
    %cst_23 = arith.constant dense<0.000000e+00> : vector<32xf32>
    %38 = vector.multi_reduction <add>, %35, %cst_23 [1] : vector<32x32xf32> to vector<32xf32>
    %39 = vector.shape_cast %38 : vector<32xf32> to vector<32x1xf32>
    %cst_24 = arith.constant 3.200000e+01 : f32
    %40 = vector.broadcast %cst_24 : f32 to vector<32x1xf32>
    %41 = arith.divf %39, %40 : vector<32x1xf32>
    %42 = vector.broadcast %41 : vector<32x1xf32> to vector<32x32xf32>
    %43 = arith.subf %35, %42 : vector<32x32xf32>
    %44 = arith.mulf %43, %43 : vector<32x32xf32>
    %cst_25 = arith.constant dense<0.000000e+00> : vector<32xf32>
    %45 = vector.multi_reduction <add>, %44, %cst_25 [1] : vector<32x32xf32> to vector<32xf32>
    %46 = vector.shape_cast %45 : vector<32xf32> to vector<32x1xf32>
    %cst_26 = arith.constant 3.200000e+01 : f32
    %47 = vector.broadcast %cst_26 : f32 to vector<32x1xf32>
    %48 = arith.divf %46, %47 : vector<32x1xf32>
    %49 = vector.broadcast %41 : vector<32x1xf32> to vector<32x32xf32>
    %50 = arith.subf %35, %49 : vector<32x32xf32>
    %cst_27 = arith.constant 9.99999974E-6 : f32
    %51 = vector.broadcast %cst_27 : f32 to vector<32x1xf32>
    %52 = arith.addf %48, %51 : vector<32x1xf32>
    %53 = math.rsqrt %52 : vector<32x1xf32>
    %54 = vector.broadcast %53 : vector<32x1xf32> to vector<32x32xf32>
    %55 = arith.mulf %50, %54 : vector<32x32xf32>
    %56 = vector.broadcast %36 : vector<1x32xf32> to vector<32x32xf32>
    %57 = arith.mulf %55, %56 : vector<32x32xf32>
    %58 = vector.broadcast %37 : vector<1x32xf32> to vector<32x32xf32>
    %59 = arith.addf %57, %58 : vector<32x32xf32>
    %c0_28 = arith.constant 0 : index
    %c0_29 = arith.constant 0 : index
    %60 = vector.load %arg4[%c0_28, %c0_29] : memref<32x32xf32, #tpu.memory_space<vmem>>, vector<32x32xf32>
    %cst_30 = arith.constant dense<0.000000e+00> : vector<32x32xf32>
    %61 = tpu.matmul %59, %60, %cst_30 {dimension_numbers = #tpu.dot_dimension_numbers<[1], [0], [0], [1], [0, 0, 1, 1], [], []>} : vector<32x32xf32>, vector<32x32xf32>, vector<32x32xf32> -> vector<32x32xf32>
    %62 = vector.shape_cast %61 : vector<32x32xf32> to vector<4x8x32xf32>
    "tpu.trace_start"() <{level = 10 : i32, message = "bkd,bnd->bkn"}> : () -> ()
    %cst_31 = arith.constant dense<0.000000e+00> : vector<4x8x128xf32>
    %63 = tpu.matmul %62, %29, %cst_31 {dimension_numbers = #tpu.dot_dimension_numbers<[2], [2], [1], [1], [0, 0, 0, 1, 1, 1], [0], [0]>} : vector<4x8x32xf32>, vector<4x128x32xf32>, vector<4x8x128xf32> -> vector<4x8x128xf32>
    "tpu.trace_stop"() : () -> ()
    %cst_32 = arith.constant 0.176776692 : f32
    %64 = vector.broadcast %cst_32 : f32 to vector<4x8x128xf32>
    %65 = arith.mulf %63, %64 : vector<4x8x128xf32>
    %cst_33 = arith.constant dense<0xFF800000> : vector<4x128xf32>
    %66 = vector.multi_reduction <maximumf>, %65, %cst_33 [1] : vector<4x8x128xf32> to vector<4x128xf32>
    %67 = vector.shape_cast %66 : vector<4x128xf32> to vector<4x1x128xf32>
    %68 = vector.broadcast %67 : vector<4x1x128xf32> to vector<4x8x128xf32>
    %69 = arith.subf %65, %68 : vector<4x8x128xf32>
    %70 = math.exp %69 : vector<4x8x128xf32>
    %cst_34 = arith.constant dense<0.000000e+00> : vector<4x128xf32>
    %71 = vector.multi_reduction <add>, %70, %cst_34 [1] : vector<4x8x128xf32> to vector<4x128xf32>
    %72 = vector.shape_cast %71 : vector<4x128xf32> to vector<4x1x128xf32>
    %73 = tpu.reciprocal %72 : vector<4x1x128xf32> -> vector<4x1x128xf32>
    %74 = vector.broadcast %73 : vector<4x1x128xf32> to vector<4x8x128xf32>
    %75 = arith.mulf %70, %74 : vector<4x8x128xf32>
    %cst_35 = arith.constant 9.99999993E-9 : f32
    %76 = vector.broadcast %cst_35 : f32 to vector<4x8x128xf32>
    %77 = arith.addf %75, %76 : vector<4x8x128xf32>
    %cst_36 = arith.constant dense<0.000000e+00> : vector<4x8xf32>
    %78 = vector.multi_reduction <add>, %77, %cst_36 [2] : vector<4x8x128xf32> to vector<4x8xf32>
    %79 = vector.shape_cast %78 : vector<4x8xf32> to vector<4x8x1xf32>
    %80 = tpu.reciprocal %79 : vector<4x8x1xf32> -> vector<4x8x1xf32>
    %81 = vector.broadcast %80 : vector<4x8x1xf32> to vector<4x8x128xf32>
    %82 = arith.mulf %77, %81 : vector<4x8x128xf32>
    "tpu.trace_start"() <{level = 10 : i32, message = "bkn,bnd->bkd"}> : () -> ()
    %cst_37 = arith.constant dense<0.000000e+00> : vector<4x8x32xf32>
    %83 = tpu.matmul %82, %31, %cst_37 {dimension_numbers = #tpu.dot_dimension_numbers<[2], [1], [1], [2], [0, 0, 0, 1, 1, 2], [0], [0]>} : vector<4x8x128xf32>, vector<4x128x32xf32>, vector<4x8x32xf32> -> vector<4x8x32xf32>
    "tpu.trace_stop"() : () -> ()
    %84 = vector.shape_cast %83 : vector<4x8x32xf32> to vector<32x32xf32>
    %85 = vector.shape_cast %32 : vector<4x8x32xf32> to vector<32x32xf32>
    %c0_38 = arith.constant 0 : index
    %c0_39 = arith.constant 0 : index
    %86 = vector.load %arg7[%c0_38, %c0_39] : memref<32x96xf32, #tpu.memory_space<vmem>>, vector<32x96xf32>
    %cst_40 = arith.constant dense<0.000000e+00> : vector<32x96xf32>
    %87 = tpu.matmul %84, %86, %cst_40 {dimension_numbers = #tpu.dot_dimension_numbers<[1], [0], [0], [1], [0, 0, 1, 1], [], []>} : vector<32x32xf32>, vector<32x96xf32>, vector<32x96xf32> -> vector<32x96xf32>
    %88 = vector.broadcast %33 : vector<1x96xf32> to vector<32x96xf32>
    %89 = arith.addf %87, %88 : vector<32x96xf32>
    %c0_41 = arith.constant 0 : index
    %c0_42 = arith.constant 0 : index
    %90 = vector.load %arg8[%c0_41, %c0_42] : memref<32x96xf32, #tpu.memory_space<vmem>>, vector<32x96xf32>
    %cst_43 = arith.constant dense<0.000000e+00> : vector<32x96xf32>
    %91 = tpu.matmul %85, %90, %cst_43 {dimension_numbers = #tpu.dot_dimension_numbers<[1], [0], [0], [1], [0, 0, 1, 1], [], []>} : vector<32x32xf32>, vector<32x96xf32>, vector<32x96xf32> -> vector<32x96xf32>
    %92 = vector.broadcast %34 : vector<1x96xf32> to vector<32x96xf32>
    %93 = arith.addf %91, %92 : vector<32x96xf32>
    %94 = vector.extract_strided_slice %89 {offsets = [0, 0], sizes = [32, 32], strides = [1, 1]} : vector<32x96xf32> to vector<32x32xf32>
    %95 = vector.extract_strided_slice %93 {offsets = [0, 0], sizes = [32, 32], strides = [1, 1]} : vector<32x96xf32> to vector<32x32xf32>
    %96 = arith.addf %94, %95 : vector<32x32xf32>
    %97 = arith.negf %96 : vector<32x32xf32>
    %98 = math.exp %97 : vector<32x32xf32>
    %cst_44 = arith.constant 1.000000e+00 : f32
    %99 = vector.broadcast %cst_44 : f32 to vector<32x32xf32>
    %100 = arith.addf %99, %98 : vector<32x32xf32>
    %101 = arith.divf %99, %100 : vector<32x32xf32>
    %102 = vector.extract_strided_slice %89 {offsets = [0, 32], sizes = [32, 32], strides = [1, 1]} : vector<32x96xf32> to vector<32x32xf32>
    %103 = vector.extract_strided_slice %93 {offsets = [0, 32], sizes = [32, 32], strides = [1, 1]} : vector<32x96xf32> to vector<32x32xf32>
    %104 = arith.addf %102, %103 : vector<32x32xf32>
    %105 = arith.negf %104 : vector<32x32xf32>
    %106 = math.exp %105 : vector<32x32xf32>
    %cst_45 = arith.constant 1.000000e+00 : f32
    %107 = vector.broadcast %cst_45 : f32 to vector<32x32xf32>
    %108 = arith.addf %107, %106 : vector<32x32xf32>
    %109 = arith.divf %107, %108 : vector<32x32xf32>
    %110 = vector.extract_strided_slice %89 {offsets = [0, 64], sizes = [32, 32], strides = [1, 1]} : vector<32x96xf32> to vector<32x32xf32>
    %111 = vector.extract_strided_slice %93 {offsets = [0, 64], sizes = [32, 32], strides = [1, 1]} : vector<32x96xf32> to vector<32x32xf32>
    %112 = arith.mulf %101, %111 : vector<32x32xf32>
    %113 = arith.addf %110, %112 : vector<32x32xf32>
    %114 = math.tanh %113 : vector<32x32xf32>
    %cst_46 = arith.constant 1.000000e+00 : f32
    %115 = vector.broadcast %cst_46 : f32 to vector<32x32xf32>
    %116 = arith.subf %115, %109 : vector<32x32xf32>
    %117 = arith.mulf %116, %114 : vector<32x32xf32>
    %118 = arith.mulf %109, %85 : vector<32x32xf32>
    %119 = arith.addf %117, %118 : vector<32x32xf32>
    %120 = vector.shape_cast %119 : vector<32x32xf32> to vector<4x8x32xf32>
    %121 = vector.shape_cast %120 : vector<4x8x32xf32> to vector<32x32xf32>
    %c0_47 = arith.constant 0 : index
    %c0_48 = arith.constant 0 : index
    %122 = vector.load %arg6[%c0_47, %c0_48] : memref<2x32xf32, #tpu.memory_space<vmem>>, vector<1x32xf32>
    %c1_49 = arith.constant 1 : index
    %c0_50 = arith.constant 0 : index
    %123 = vector.load %arg6[%c1_49, %c0_50] : memref<2x32xf32, #tpu.memory_space<vmem>>, vector<1x32xf32>
    %cst_51 = arith.constant dense<0.000000e+00> : vector<32xf32>
    %124 = vector.multi_reduction <add>, %121, %cst_51 [1] : vector<32x32xf32> to vector<32xf32>
    %125 = vector.shape_cast %124 : vector<32xf32> to vector<32x1xf32>
    %cst_52 = arith.constant 3.200000e+01 : f32
    %126 = vector.broadcast %cst_52 : f32 to vector<32x1xf32>
    %127 = arith.divf %125, %126 : vector<32x1xf32>
    %128 = vector.broadcast %127 : vector<32x1xf32> to vector<32x32xf32>
    %129 = arith.subf %121, %128 : vector<32x32xf32>
    %130 = arith.mulf %129, %129 : vector<32x32xf32>
    %cst_53 = arith.constant dense<0.000000e+00> : vector<32xf32>
    %131 = vector.multi_reduction <add>, %130, %cst_53 [1] : vector<32x32xf32> to vector<32xf32>
    %132 = vector.shape_cast %131 : vector<32xf32> to vector<32x1xf32>
    %cst_54 = arith.constant 3.200000e+01 : f32
    %133 = vector.broadcast %cst_54 : f32 to vector<32x1xf32>
    %134 = arith.divf %132, %133 : vector<32x1xf32>
    %135 = vector.broadcast %127 : vector<32x1xf32> to vector<32x32xf32>
    %136 = arith.subf %121, %135 : vector<32x32xf32>
    %cst_55 = arith.constant 9.99999974E-6 : f32
    %137 = vector.broadcast %cst_55 : f32 to vector<32x1xf32>
    %138 = arith.addf %134, %137 : vector<32x1xf32>
    %139 = math.rsqrt %138 : vector<32x1xf32>
    %140 = vector.broadcast %139 : vector<32x1xf32> to vector<32x32xf32>
    %141 = arith.mulf %136, %140 : vector<32x32xf32>
    %142 = vector.broadcast %122 : vector<1x32xf32> to vector<32x32xf32>
    %143 = arith.mulf %141, %142 : vector<32x32xf32>
    %144 = vector.broadcast %123 : vector<1x32xf32> to vector<32x32xf32>
    %145 = arith.addf %143, %144 : vector<32x32xf32>
    %c0_56 = arith.constant 0 : index
    %c0_57 = arith.constant 0 : index
    %146 = vector.load %arg4[%c0_56, %c0_57] : memref<32x32xf32, #tpu.memory_space<vmem>>, vector<32x32xf32>
    %cst_58 = arith.constant dense<0.000000e+00> : vector<32x32xf32>
    %147 = tpu.matmul %145, %146, %cst_58 {dimension_numbers = #tpu.dot_dimension_numbers<[1], [0], [0], [1], [0, 0, 1, 1], [], []>} : vector<32x32xf32>, vector<32x32xf32>, vector<32x32xf32> -> vector<32x32xf32>
    %148 = vector.shape_cast %147 : vector<32x32xf32> to vector<4x8x32xf32>
    "tpu.trace_start"() <{level = 10 : i32, message = "bkd,bnd->bkn"}> : () -> ()
    %cst_59 = arith.constant dense<0.000000e+00> : vector<4x8x128xf32>
    %149 = tpu.matmul %148, %29, %cst_59 {dimension_numbers = #tpu.dot_dimension_numbers<[2], [2], [1], [1], [0, 0, 0, 1, 1, 1], [0], [0]>} : vector<4x8x32xf32>, vector<4x128x32xf32>, vector<4x8x128xf32> -> vector<4x8x128xf32>
    "tpu.trace_stop"() : () -> ()
    %cst_60 = arith.constant 0.176776692 : f32
    %150 = vector.broadcast %cst_60 : f32 to vector<4x8x128xf32>
    %151 = arith.mulf %149, %150 : vector<4x8x128xf32>
    %cst_61 = arith.constant dense<0xFF800000> : vector<4x128xf32>
    %152 = vector.multi_reduction <maximumf>, %151, %cst_61 [1] : vector<4x8x128xf32> to vector<4x128xf32>
    %153 = vector.shape_cast %152 : vector<4x128xf32> to vector<4x1x128xf32>
    %154 = vector.broadcast %153 : vector<4x1x128xf32> to vector<4x8x128xf32>
    %155 = arith.subf %151, %154 : vector<4x8x128xf32>
    %156 = math.exp %155 : vector<4x8x128xf32>
    %cst_62 = arith.constant dense<0.000000e+00> : vector<4x128xf32>
    %157 = vector.multi_reduction <add>, %156, %cst_62 [1] : vector<4x8x128xf32> to vector<4x128xf32>
    %158 = vector.shape_cast %157 : vector<4x128xf32> to vector<4x1x128xf32>
    %159 = tpu.reciprocal %158 : vector<4x1x128xf32> -> vector<4x1x128xf32>
    %160 = vector.broadcast %159 : vector<4x1x128xf32> to vector<4x8x128xf32>
    %161 = arith.mulf %156, %160 : vector<4x8x128xf32>
    %cst_63 = arith.constant 9.99999993E-9 : f32
    %162 = vector.broadcast %cst_63 : f32 to vector<4x8x128xf32>
    %163 = arith.addf %161, %162 : vector<4x8x128xf32>
    %cst_64 = arith.constant dense<0.000000e+00> : vector<4x8xf32>
    %164 = vector.multi_reduction <add>, %163, %cst_64 [2] : vector<4x8x128xf32> to vector<4x8xf32>
    %165 = vector.shape_cast %164 : vector<4x8xf32> to vector<4x8x1xf32>
    %166 = tpu.reciprocal %165 : vector<4x8x1xf32> -> vector<4x8x1xf32>
    %167 = vector.broadcast %166 : vector<4x8x1xf32> to vector<4x8x128xf32>
    %168 = arith.mulf %163, %167 : vector<4x8x128xf32>
    "tpu.trace_start"() <{level = 10 : i32, message = "bkn,bnd->bkd"}> : () -> ()
    %cst_65 = arith.constant dense<0.000000e+00> : vector<4x8x32xf32>
    %169 = tpu.matmul %168, %31, %cst_65 {dimension_numbers = #tpu.dot_dimension_numbers<[2], [1], [1], [2], [0, 0, 0, 1, 1, 2], [0], [0]>} : vector<4x8x128xf32>, vector<4x128x32xf32>, vector<4x8x32xf32> -> vector<4x8x32xf32>
    "tpu.trace_stop"() : () -> ()
    %170 = vector.shape_cast %169 : vector<4x8x32xf32> to vector<32x32xf32>
    %171 = vector.shape_cast %120 : vector<4x8x32xf32> to vector<32x32xf32>
    %c0_66 = arith.constant 0 : index
    %c0_67 = arith.constant 0 : index
    %172 = vector.load %arg7[%c0_66, %c0_67] : memref<32x96xf32, #tpu.memory_space<vmem>>, vector<32x96xf32>
    %cst_68 = arith.constant dense<0.000000e+00> : vector<32x96xf32>
    %173 = tpu.matmul %170, %172, %cst_68 {dimension_numbers = #tpu.dot_dimension_numbers<[1], [0], [0], [1], [0, 0, 1, 1], [], []>} : vector<32x32xf32>, vector<32x96xf32>, vector<32x96xf32> -> vector<32x96xf32>
    %174 = vector.broadcast %33 : vector<1x96xf32> to vector<32x96xf32>
    %175 = arith.addf %173, %174 : vector<32x96xf32>
    %c0_69 = arith.constant 0 : index
    %c0_70 = arith.constant 0 : index
    %176 = vector.load %arg8[%c0_69, %c0_70] : memref<32x96xf32, #tpu.memory_space<vmem>>, vector<32x96xf32>
    %cst_71 = arith.constant dense<0.000000e+00> : vector<32x96xf32>
    %177 = tpu.matmul %171, %176, %cst_71 {dimension_numbers = #tpu.dot_dimension_numbers<[1], [0], [0], [1], [0, 0, 1, 1], [], []>} : vector<32x32xf32>, vector<32x96xf32>, vector<32x96xf32> -> vector<32x96xf32>
    %178 = vector.broadcast %34 : vector<1x96xf32> to vector<32x96xf32>
    %179 = arith.addf %177, %178 : vector<32x96xf32>
    %180 = vector.extract_strided_slice %175 {offsets = [0, 0], sizes = [32, 32], strides = [1, 1]} : vector<32x96xf32> to vector<32x32xf32>
    %181 = vector.extract_strided_slice %179 {offsets = [0, 0], sizes = [32, 32], strides = [1, 1]} : vector<32x96xf32> to vector<32x32xf32>
    %182 = arith.addf %180, %181 : vector<32x32xf32>
    %183 = arith.negf %182 : vector<32x32xf32>
    %184 = math.exp %183 : vector<32x32xf32>
    %cst_72 = arith.constant 1.000000e+00 : f32
    %185 = vector.broadcast %cst_72 : f32 to vector<32x32xf32>
    %186 = arith.addf %185, %184 : vector<32x32xf32>
    %187 = arith.divf %185, %186 : vector<32x32xf32>
    %188 = vector.extract_strided_slice %175 {offsets = [0, 32], sizes = [32, 32], strides = [1, 1]} : vector<32x96xf32> to vector<32x32xf32>
    %189 = vector.extract_strided_slice %179 {offsets = [0, 32], sizes = [32, 32], strides = [1, 1]} : vector<32x96xf32> to vector<32x32xf32>
    %190 = arith.addf %188, %189 : vector<32x32xf32>
    %191 = arith.negf %190 : vector<32x32xf32>
    %192 = math.exp %191 : vector<32x32xf32>
    %cst_73 = arith.constant 1.000000e+00 : f32
    %193 = vector.broadcast %cst_73 : f32 to vector<32x32xf32>
    %194 = arith.addf %193, %192 : vector<32x32xf32>
    %195 = arith.divf %193, %194 : vector<32x32xf32>
    %196 = vector.extract_strided_slice %175 {offsets = [0, 64], sizes = [32, 32], strides = [1, 1]} : vector<32x96xf32> to vector<32x32xf32>
    %197 = vector.extract_strided_slice %179 {offsets = [0, 64], sizes = [32, 32], strides = [1, 1]} : vector<32x96xf32> to vector<32x32xf32>
    %198 = arith.mulf %187, %197 : vector<32x32xf32>
    %199 = arith.addf %196, %198 : vector<32x32xf32>
    %200 = math.tanh %199 : vector<32x32xf32>
    %cst_74 = arith.constant 1.000000e+00 : f32
    %201 = vector.broadcast %cst_74 : f32 to vector<32x32xf32>
    %202 = arith.subf %201, %195 : vector<32x32xf32>
    %203 = arith.mulf %202, %200 : vector<32x32xf32>
    %204 = arith.mulf %195, %171 : vector<32x32xf32>
    %205 = arith.addf %203, %204 : vector<32x32xf32>
    %206 = vector.shape_cast %205 : vector<32x32xf32> to vector<4x8x32xf32>
    %207 = vector.shape_cast %206 : vector<4x8x32xf32> to vector<32x32xf32>
    %c0_75 = arith.constant 0 : index
    %c0_76 = arith.constant 0 : index
    %208 = vector.load %arg6[%c0_75, %c0_76] : memref<2x32xf32, #tpu.memory_space<vmem>>, vector<1x32xf32>
    %c1_77 = arith.constant 1 : index
    %c0_78 = arith.constant 0 : index
    %209 = vector.load %arg6[%c1_77, %c0_78] : memref<2x32xf32, #tpu.memory_space<vmem>>, vector<1x32xf32>
    %cst_79 = arith.constant dense<0.000000e+00> : vector<32xf32>
    %210 = vector.multi_reduction <add>, %207, %cst_79 [1] : vector<32x32xf32> to vector<32xf32>
    %211 = vector.shape_cast %210 : vector<32xf32> to vector<32x1xf32>
    %cst_80 = arith.constant 3.200000e+01 : f32
    %212 = vector.broadcast %cst_80 : f32 to vector<32x1xf32>
    %213 = arith.divf %211, %212 : vector<32x1xf32>
    %214 = vector.broadcast %213 : vector<32x1xf32> to vector<32x32xf32>
    %215 = arith.subf %207, %214 : vector<32x32xf32>
    %216 = arith.mulf %215, %215 : vector<32x32xf32>
    %cst_81 = arith.constant dense<0.000000e+00> : vector<32xf32>
    %217 = vector.multi_reduction <add>, %216, %cst_81 [1] : vector<32x32xf32> to vector<32xf32>
    %218 = vector.shape_cast %217 : vector<32xf32> to vector<32x1xf32>
    %cst_82 = arith.constant 3.200000e+01 : f32
    %219 = vector.broadcast %cst_82 : f32 to vector<32x1xf32>
    %220 = arith.divf %218, %219 : vector<32x1xf32>
    %221 = vector.broadcast %213 : vector<32x1xf32> to vector<32x32xf32>
    %222 = arith.subf %207, %221 : vector<32x32xf32>
    %cst_83 = arith.constant 9.99999974E-6 : f32
    %223 = vector.broadcast %cst_83 : f32 to vector<32x1xf32>
    %224 = arith.addf %220, %223 : vector<32x1xf32>
    %225 = math.rsqrt %224 : vector<32x1xf32>
    %226 = vector.broadcast %225 : vector<32x1xf32> to vector<32x32xf32>
    %227 = arith.mulf %222, %226 : vector<32x32xf32>
    %228 = vector.broadcast %208 : vector<1x32xf32> to vector<32x32xf32>
    %229 = arith.mulf %227, %228 : vector<32x32xf32>
    %230 = vector.broadcast %209 : vector<1x32xf32> to vector<32x32xf32>
    %231 = arith.addf %229, %230 : vector<32x32xf32>
    %c0_84 = arith.constant 0 : index
    %c0_85 = arith.constant 0 : index
    %232 = vector.load %arg4[%c0_84, %c0_85] : memref<32x32xf32, #tpu.memory_space<vmem>>, vector<32x32xf32>
    %cst_86 = arith.constant dense<0.000000e+00> : vector<32x32xf32>
    %233 = tpu.matmul %231, %232, %cst_86 {dimension_numbers = #tpu.dot_dimension_numbers<[1], [0], [0], [1], [0, 0, 1, 1], [], []>} : vector<32x32xf32>, vector<32x32xf32>, vector<32x32xf32> -> vector<32x32xf32>
    %234 = vector.shape_cast %233 : vector<32x32xf32> to vector<4x8x32xf32>
    "tpu.trace_start"() <{level = 10 : i32, message = "bkd,bnd->bkn"}> : () -> ()
    %cst_87 = arith.constant dense<0.000000e+00> : vector<4x8x128xf32>
    %235 = tpu.matmul %234, %29, %cst_87 {dimension_numbers = #tpu.dot_dimension_numbers<[2], [2], [1], [1], [0, 0, 0, 1, 1, 1], [0], [0]>} : vector<4x8x32xf32>, vector<4x128x32xf32>, vector<4x8x128xf32> -> vector<4x8x128xf32>
    "tpu.trace_stop"() : () -> ()
    %cst_88 = arith.constant 0.176776692 : f32
    %236 = vector.broadcast %cst_88 : f32 to vector<4x8x128xf32>
    %237 = arith.mulf %235, %236 : vector<4x8x128xf32>
    %cst_89 = arith.constant dense<0xFF800000> : vector<4x128xf32>
    %238 = vector.multi_reduction <maximumf>, %237, %cst_89 [1] : vector<4x8x128xf32> to vector<4x128xf32>
    %239 = vector.shape_cast %238 : vector<4x128xf32> to vector<4x1x128xf32>
    %240 = vector.broadcast %239 : vector<4x1x128xf32> to vector<4x8x128xf32>
    %241 = arith.subf %237, %240 : vector<4x8x128xf32>
    %242 = math.exp %241 : vector<4x8x128xf32>
    %cst_90 = arith.constant dense<0.000000e+00> : vector<4x128xf32>
    %243 = vector.multi_reduction <add>, %242, %cst_90 [1] : vector<4x8x128xf32> to vector<4x128xf32>
    %244 = vector.shape_cast %243 : vector<4x128xf32> to vector<4x1x128xf32>
    %245 = tpu.reciprocal %244 : vector<4x1x128xf32> -> vector<4x1x128xf32>
    %246 = vector.broadcast %245 : vector<4x1x128xf32> to vector<4x8x128xf32>
    %247 = arith.mulf %242, %246 : vector<4x8x128xf32>
    %cst_91 = arith.constant 9.99999993E-9 : f32
    %248 = vector.broadcast %cst_91 : f32 to vector<4x8x128xf32>
    %249 = arith.addf %247, %248 : vector<4x8x128xf32>
    %cst_92 = arith.constant dense<0.000000e+00> : vector<4x8xf32>
    %250 = vector.multi_reduction <add>, %249, %cst_92 [2] : vector<4x8x128xf32> to vector<4x8xf32>
    %251 = vector.shape_cast %250 : vector<4x8xf32> to vector<4x8x1xf32>
    %252 = tpu.reciprocal %251 : vector<4x8x1xf32> -> vector<4x8x1xf32>
    %253 = vector.broadcast %252 : vector<4x8x1xf32> to vector<4x8x128xf32>
    %254 = arith.mulf %249, %253 : vector<4x8x128xf32>
    "tpu.trace_start"() <{level = 10 : i32, message = "bkn,bnd->bkd"}> : () -> ()
    %cst_93 = arith.constant dense<0.000000e+00> : vector<4x8x32xf32>
    %255 = tpu.matmul %254, %31, %cst_93 {dimension_numbers = #tpu.dot_dimension_numbers<[2], [1], [1], [2], [0, 0, 0, 1, 1, 2], [0], [0]>} : vector<4x8x128xf32>, vector<4x128x32xf32>, vector<4x8x32xf32> -> vector<4x8x32xf32>
    "tpu.trace_stop"() : () -> ()
    %256 = vector.shape_cast %255 : vector<4x8x32xf32> to vector<32x32xf32>
    %257 = vector.shape_cast %206 : vector<4x8x32xf32> to vector<32x32xf32>
    %c0_94 = arith.constant 0 : index
    %c0_95 = arith.constant 0 : index
    %258 = vector.load %arg7[%c0_94, %c0_95] : memref<32x96xf32, #tpu.memory_space<vmem>>, vector<32x96xf32>
    %cst_96 = arith.constant dense<0.000000e+00> : vector<32x96xf32>
    %259 = tpu.matmul %256, %258, %cst_96 {dimension_numbers = #tpu.dot_dimension_numbers<[1], [0], [0], [1], [0, 0, 1, 1], [], []>} : vector<32x32xf32>, vector<32x96xf32>, vector<32x96xf32> -> vector<32x96xf32>
    %260 = vector.broadcast %33 : vector<1x96xf32> to vector<32x96xf32>
    %261 = arith.addf %259, %260 : vector<32x96xf32>
    %c0_97 = arith.constant 0 : index
    %c0_98 = arith.constant 0 : index
    %262 = vector.load %arg8[%c0_97, %c0_98] : memref<32x96xf32, #tpu.memory_space<vmem>>, vector<32x96xf32>
    %cst_99 = arith.constant dense<0.000000e+00> : vector<32x96xf32>
    %263 = tpu.matmul %257, %262, %cst_99 {dimension_numbers = #tpu.dot_dimension_numbers<[1], [0], [0], [1], [0, 0, 1, 1], [], []>} : vector<32x32xf32>, vector<32x96xf32>, vector<32x96xf32> -> vector<32x96xf32>
    %264 = vector.broadcast %34 : vector<1x96xf32> to vector<32x96xf32>
    %265 = arith.addf %263, %264 : vector<32x96xf32>
    %266 = vector.extract_strided_slice %261 {offsets = [0, 0], sizes = [32, 32], strides = [1, 1]} : vector<32x96xf32> to vector<32x32xf32>
    %267 = vector.extract_strided_slice %265 {offsets = [0, 0], sizes = [32, 32], strides = [1, 1]} : vector<32x96xf32> to vector<32x32xf32>
    %268 = arith.addf %266, %267 : vector<32x32xf32>
    %269 = arith.negf %268 : vector<32x32xf32>
    %270 = math.exp %269 : vector<32x32xf32>
    %cst_100 = arith.constant 1.000000e+00 : f32
    %271 = vector.broadcast %cst_100 : f32 to vector<32x32xf32>
    %272 = arith.addf %271, %270 : vector<32x32xf32>
    %273 = arith.divf %271, %272 : vector<32x32xf32>
    %274 = vector.extract_strided_slice %261 {offsets = [0, 32], sizes = [32, 32], strides = [1, 1]} : vector<32x96xf32> to vector<32x32xf32>
    %275 = vector.extract_strided_slice %265 {offsets = [0, 32], sizes = [32, 32], strides = [1, 1]} : vector<32x96xf32> to vector<32x32xf32>
    %276 = arith.addf %274, %275 : vector<32x32xf32>
    %277 = arith.negf %276 : vector<32x32xf32>
    %278 = math.exp %277 : vector<32x32xf32>
    %cst_101 = arith.constant 1.000000e+00 : f32
    %279 = vector.broadcast %cst_101 : f32 to vector<32x32xf32>
    %280 = arith.addf %279, %278 : vector<32x32xf32>
    %281 = arith.divf %279, %280 : vector<32x32xf32>
    %282 = vector.extract_strided_slice %261 {offsets = [0, 64], sizes = [32, 32], strides = [1, 1]} : vector<32x96xf32> to vector<32x32xf32>
    %283 = vector.extract_strided_slice %265 {offsets = [0, 64], sizes = [32, 32], strides = [1, 1]} : vector<32x96xf32> to vector<32x32xf32>
    %284 = arith.mulf %273, %283 : vector<32x32xf32>
    %285 = arith.addf %282, %284 : vector<32x32xf32>
    %286 = math.tanh %285 : vector<32x32xf32>
    %cst_102 = arith.constant 1.000000e+00 : f32
    %287 = vector.broadcast %cst_102 : f32 to vector<32x32xf32>
    %288 = arith.subf %287, %281 : vector<32x32xf32>
    %289 = arith.mulf %288, %286 : vector<32x32xf32>
    %290 = arith.mulf %281, %257 : vector<32x32xf32>
    %291 = arith.addf %289, %290 : vector<32x32xf32>
    %292 = vector.shape_cast %291 : vector<32x32xf32> to vector<4x8x32xf32>
    %c0_103 = arith.constant 0 : index
    %c0_104 = arith.constant 0 : index
    %c0_105 = arith.constant 0 : index
    %293 = vector.load %arg11[%c0_103, %c0_104, %c0_105] : memref<4x8x32xf32, #tpu.memory_space<vmem>>, vector<4x8x32xf32>
    tpu.vector_store %arg11[%c0_103, %c0_104, %c0_105], %292 {strides = array<i32>} : memref<4x8x32xf32, #tpu.memory_space<vmem>>, vector<4x8x32xf32>,
    %c0_106 = arith.constant 0 : index
    %c0_107 = arith.constant 0 : index
    %c0_108 = arith.constant 0 : index
    %294 = vector.load %arg12[%c0_106, %c0_107, %c0_108] : memref<4x8x128xf32, #tpu.memory_space<vmem>>, vector<4x8x128xf32>
    tpu.vector_store %arg12[%c0_106, %c0_107, %c0_108], %249 {strides = array<i32>} : memref<4x8x128xf32, #tpu.memory_space<vmem>>, vector<4x8x128xf32>,
    return
  }
  func.func @transform_0(%arg0: i32) -> (i32, i32, i32) {
    %c0_i32 = arith.constant 0 : i32
    %c0_i32_0 = arith.constant 0 : i32
    %c0_i32_1 = arith.constant 0 : i32
    return %arg0, %c0_i32, %c0_i32_0 : i32, i32, i32
  }
  func.func @transform_1(%arg0: i32) -> (i32, i32, i32) {
    %c0_i32 = arith.constant 0 : i32
    %c0_i32_0 = arith.constant 0 : i32
    %c0_i32_1 = arith.constant 0 : i32
    return %arg0, %c0_i32, %c0_i32_0 : i32, i32, i32
  }
  func.func @transform_2(%arg0: i32) -> (i32, i32) {
    %c0_i32 = arith.constant 0 : i32
    %c0_i32_0 = arith.constant 0 : i32
    %c0_i32_1 = arith.constant 0 : i32
    return %c0_i32, %c0_i32_0 : i32, i32
  }
  func.func @transform_3(%arg0: i32) -> (i32, i32) {
    %c0_i32 = arith.constant 0 : i32
    %c0_i32_0 = arith.constant 0 : i32
    %c0_i32_1 = arith.constant 0 : i32
    return %c0_i32, %c0_i32_0 : i32, i32
  }
  func.func @transform_4(%arg0: i32) -> (i32, i32) {
    %c0_i32 = arith.constant 0 : i32
    %c0_i32_0 = arith.constant 0 : i32
    %c0_i32_1 = arith.constant 0 : i32
    return %c0_i32, %c0_i32_0 : i32, i32
  }
  func.func @transform_5(%arg0: i32) -> (i32, i32) {
    %c0_i32 = arith.constant 0 : i32
    %c0_i32_0 = arith.constant 0 : i32
    %c0_i32_1 = arith.constant 0 : i32
    return %c0_i32, %c0_i32_0 : i32, i32
  }
  func.func @transform_6(%arg0: i32) -> (i32, i32) {
    %c0_i32 = arith.constant 0 : i32
    %c0_i32_0 = arith.constant 0 : i32
    %c0_i32_1 = arith.constant 0 : i32
    return %c0_i32, %c0_i32_0 : i32, i32
  }
  func.func @transform_7(%arg0: i32) -> (i32, i32) {
    %c0_i32 = arith.constant 0 : i32
    %c0_i32_0 = arith.constant 0 : i32
    %c0_i32_1 = arith.constant 0 : i32
    return %c0_i32, %c0_i32_0 : i32, i32
  }
  func.func @transform_8(%arg0: i32) -> (i32, i32) {
    %c0_i32 = arith.constant 0 : i32
    %c0_i32_0 = arith.constant 0 : i32
    %c0_i32_1 = arith.constant 0 : i32
    return %c0_i32, %c0_i32_0 : i32, i32
  }
  func.func @transform_9(%arg0: i32) -> (i32, i32) {
    %c0_i32 = arith.constant 0 : i32
    %c0_i32_0 = arith.constant 0 : i32
    %c0_i32_1 = arith.constant 0 : i32
    return %c0_i32, %c0_i32_0 : i32, i32
  }
  func.func @transform_10(%arg0: i32) -> (i32, i32, i32) {
    %c0_i32 = arith.constant 0 : i32
    %c0_i32_0 = arith.constant 0 : i32
    %c0_i32_1 = arith.constant 0 : i32
    return %arg0, %c0_i32, %c0_i32_0 : i32, i32, i32
  }
  func.func @transform_11(%arg0: i32) -> (i32, i32, i32) {
    %c0_i32 = arith.constant 0 : i32
    %c0_i32_0 = arith.constant 0 : i32
    %c0_i32_1 = arith.constant 0 : i32
    return %arg0, %c0_i32, %c0_i32_0 : i32, i32, i32
  }
}

</mosaic_0001>

<bundles_post_ra>
// kernel: tpu_custom_call.1
= control target key start
LH: loop header
LB: loop body
LE: loop exit
PB: predicated region body
PF: predicated region fallthrough
CT: control target
= control target key end

     0   :  { %s9964_s0 = inlined_call_operand.vmem [shape: f32[8,128,64], index: 0, kind: input, shape index: {}]   ;;  %s9965_s1 = inlined_call_operand.vmem [shape: f32[8,8,32], index: 1, kind: input, shape index: {}]   ;;  %s9966_s2 = inlined_call_operand.vmem [shape: f32[64,64], index: 2, kind: input, shape index: {}]   ;;  %s9967_s3 = inlined_call_operand.vmem [shape: f32[32,32], index: 3, kind: input, shape index: {}]   ;;  %s9968_s4 = inlined_call_operand.vmem [shape: f32[2,64], index: 4, kind: input, shape index: {}]   ;;  %s9969_s5 = inlined_call_operand.vmem [shape: f32[2,32], index: 5, kind: input, shape index: {}]   ;;  %s9970_s6 = inlined_call_operand.vmem [shape: f32[32,96], index: 6, kind: input, shape index: {}]   ;;  %s9971_s7 = inlined_call_operand.vmem [shape: f32[32,96], index: 7, kind: input, shape index: {}]   ;;  %s9972_s8 = inlined_call_operand.vmem [shape: f32[1,96], index: 8, kind: input, shape index: {}]   ;;  %s9973_s9 = inlined_call_operand.vmem [shape: f32[1,96], index: 9, kind: input, shape index: {}]   ;;  %s9974_s10 = inlined_call_operand.hbm [shape: f32[8,8,32], index: 10, kind: output, shape index: {0}]   ;;  %s9975_s11 = inlined_call_operand.hbm [shape: f32[8,8,128], index: 11, kind: output, shape index: {1}]  }
   0x1   :  { %10199 = sst [smem:[#allocation124_spill]] %s9964_s0 }
   0x2   :  { %10200 = sst [smem:[#allocation125_spill]] %s9965_s1 }
   0x3   :  { %10201 = sst [smem:[#allocation126_spill]] %s9966_s2 }
   0x4   :  { %10202 = sst [smem:[#allocation127_spill]] %s9967_s3 }
   0x5   :  { %10203 = sst [smem:[#allocation128_spill]] %s9968_s4 }
   0x6   :  { %10204 = sst [smem:[#allocation129_spill]] %s9969_s5 }
   0x7   :  { %17 = vsyncpa [#allocation3], 0 }
   0x8   :  { %19 = vsyncpa [#allocation3 + $0x1], 0 }
   0x9   :  { %20 = vsyncpa [#allocation5], 0 }
   0xa   :  { %22 = vsyncpa [#allocation5 + $0x1], 0  ;;  %s6440_s17 = smov 0   ;;  %s6442_s18 = smov 0  }
   0xb   :  { %s6444_s19 = smov 0   ;;  %s6446_s20 = smov 0  }
   0xc LB: > { %s6461_s21 = sadd.s32 4294967295, %s6371_s20   ;;  %s5396_s22 = sadd.s32 4294967294, %s6371_s20   ;;  %s6371_s20 = sphi %s6446_s20, %s10574_s20   ;;  %s6367_s19 = sphi %s6444_s19, %s10573_s19   ;;  %s6363_s18 = sphi %s6442_s18, %s10572_s18   ;;  %s6359_s17 = sphi %s6440_s17, %s10571_s17  }
   0xd   : > { %s6465_s23 = sadd.s32 1, %s6371_s20   ;;  %s255_s24 = sadd.s32 1, %s6367_s19 }
   0xe   : > { %s252_s25 = ssub.s32 %s6371_s20, %s6465_s23  ;;  %p265_p0 = scmp.ne.s32.totalorder %s6367_s19, %s6363_s18 }
   0xf   : > { %p253_p1 = scmp.eq.s32.totalorder %s252_s25, 0  ;;  %p266_p2 = scmp.eq.s32.totalorder %s6461_s21, 1 }
  0x10   : > { %p271_p3 = scmp.ne.s32.totalorder %s6363_s18, %s6359_s17  ;;  %p272_p4 = scmp.eq.s32.totalorder %s5396_s22, 1 }
  0x11   : > { %s6476_s26 = scalar_select %p253_p1, %s6367_s19, %s255_s24  }
  0x12   : > { %p6478_p5 = por %p266_p2, %p265_p0  ;;  %p6482_p6 = por %p272_p4, %p271_p3 }
  0x13   : > { %p5399_p7 = scmp.ge.s32.totalorder %s6371_s20, 1  ;;  %p359_p8 = scmp.lt.s32.totalorder %s6371_s20, 3 }
  0x15   : > { %p360_p9 = pnand %p5399_p7, %p359_p8 }
  0x17   : > { %363 = sbr.rel (%p360_p9) target bundleno = 5638 (0x1606), region = 60 }
  0x1c   : > { %s5402_s29 = sshll.u32 %s6461_s21, 2  ;;  %vm491_vm0 = vcmask 523264   ;;  %s10207_s0 = sld [smem:[#allocation124_spill]]  ;;  %v6373_v14 = vmov 64.0  }
  0x1d   : > { %p411_p10 = scmp.lt.s32.totalorder %s5402_s29, 7  ;;  %5963 = vrcp.f32 %v6373_v14  ;;  %s10208_s2 = sld [smem:[#allocation126_spill]] }
  0x1e   : > { %s10209_s4 = sld [smem:[#allocation128_spill]]  ;;  %s10198_s15 = smov 96  }
  0x1f   : > { %s10576_s29 = smov (!%p411_p10, %s5402_s29), 7  ;;  %s10234_s3 = sld [smem:[#allocation127_spill]] }
  0x20   : > { %s5731_s30 = sshll.u32 %s10576_s29, 7  ;;  %s5406_s25 = sshll.u32 %s10576_s29, 3 }
  0x21   : > { %s10273_s1 = sld [smem:[#allocation125_spill]]  ;;  %s6376_s13 = smov 64  }
  0x22   : > { %s6495_s14 = scalar_lea.vmem %s10207_s0, %s5731_s30  ;;  %s10317_s5 = sld [smem:[#allocation129_spill]] }
  0x23   : > { %v427_v0 = vld [vmem:[%s6495_s14 + $0x10] sm:$0xff]  ;;  %v425_v1 = vld [vmem:[%s6495_s14] sm:$0xff]  ;;  %v426_v6 = vld [vmem:[%s6495_s14 + $0x8] sm:$0xff]  ;;  %v5964_v15 = vpop.eup %5963  ;;  %s10195_s24 = smov 32   ;;  %s9769_s16 = sand.u32 1, %s6363_s18  }
  0x24   : > { %v6500_v2 = vld [vmem:[%s6495_s14 + $0x20] sm:$0xff]  ;;  %v498_v3 = vsel %vm491_vm0, %v427_v0, 0.0  ;;  %v492_v4 = vsel %vm491_vm0, %v425_v1, 0.0  ;;  %v428_v7 = vld [vmem:[%s6495_s14 + $0x18] sm:$0xff]  ;;  %v430_v8 = vld [vmem:[%s6495_s14 + $0x28] sm:$0xff]  ;;  %v495_v9 = vsel %vm491_vm0, %v426_v6, 0.0  ;;  %vm689_vm1 = vweird.f32 %v5964_v15 }
  0x25   : > { %v504_v5 = vsel %vm491_vm0, %v6500_v2, 0.0  ;;  %499 = vadd.xlane.f32.xlu1 %v498_v3  ;;  %493 = vadd.xlane.f32.xlu0 %v492_v4  ;;  %v501_v10 = vsel %vm491_vm0, %v428_v7, 0.0  ;;  %v507_v11 = vsel %vm491_vm0, %v430_v8, 0.0  ;;  %v431_v12 = vld [vmem:[%s6495_s14 + $0x30] sm:$0xff]  ;;  %v685_v16 = vmul.f32 64.0, %v5964_v15  ;;  %v6530_v36 = vld [vmem:[%s6495_s14 + $0x48] sm:$0xff] }
  0x26   : > { %505 = vadd.xlane.f32.xlu2 %v504_v5  ;;  %v510_v13 = vsel %vm491_vm0, %v431_v12, 0.0  ;;  %v6535_v39 = vld [vmem:[%s6495_s14 + $0x38] sm:$0xff]  ;;  %v519_v41 = vsel %vm491_vm0, %v6530_v36, 0.0  ;;  %v6556_v50 = vld [vmem:[%s6495_s14 + $0x40] sm:$0xff]  ;;  %v6570_v58 = vld [vmem:[%s6495_s14 + $0x50] sm:$0xff]  ;;  %s10197_s22 = sshll.u32 %s9769_s16, 5 }
  0x27   : > { %v686_v17 = vsub.f32 1.0, %v685_v16  ;;  %v513_v44 = vsel %vm491_vm0, %v6535_v39, 0.0  ;;  %v516_v54 = vsel %vm491_vm0, %v6556_v50, 0.0  ;;  %v6567_v57 = vld [vmem:[%s6495_s14 + $0x60] sm:$0xff]  ;;  %v522_v62 = vsel %vm491_vm0, %v6570_v58, 0.0  ;;  %v6590_v4 = vld [vmem:[%s6495_s14 + $0x68] sm:$0xff]  ;;  %s7928_s29 = scalar_lea.vmem %s10273_s1, %s5406_s25 }
  0x28   : > { %v528_v60 = vsel %vm491_vm0, %v6567_v57, 0.0  ;;  %v531_v5 = vsel %vm491_vm0, %v6590_v4, 0.0  ;;  %s9777_s25 = scalar_lea.vmem [#allocation4], %s10197_s22  ;;  %s5257_s12 = scalar_lea.sflag [#allocation5], %s9769_s16 }
  0x29   : > { %v687_v18 = vmul.f32 %v5964_v15, %v686_v17 }
  0x2b   : > { %v688_v19 = vadd.f32 %v5964_v15, %v687_v18 }
  0x2d   : > { %496 = vadd.xlane.f32.xlu0 %v495_v9  ;;  %502 = vadd.xlane.f32.xlu1 %v501_v10  ;;  %v6514_v20 = vsel %vm689_vm1, %v5964_v15, %v688_v19  ;;  %v2041_v9 = vld [vmem:[%s10208_s2 + $0x20] sm:$0xff]  ;;  %v2040_v10 = vld [vmem:[%s10208_s2 + $0x18] sm:$0xff] }
  0x2e   : > { %508 = vadd.xlane.f32.xlu2 %v507_v11  ;;  %v2039_v11 = vld [vmem:[%s10208_s2 + $0x10] sm:$0xff] }
  0x35   : > { %511 = vadd.xlane.f32.xlu1 %v510_v13  ;;  %v2037_v13 = vld [vmem:[%s10208_s2] sm:$0xff] }
  0x98   : > { %v500_v21 = vpop.xlane.xlu1 %499  ;;  %v494_v22 = vpop.xlane.xlu0 %493 }
  0x99   : > { %v693_v23 = vmul.f32 %v6514_v20, %v500_v21  ;;  %v691_v24 = vmul.f32 %v6514_v20, %v494_v22  ;;  %v506_v25 = vpop.xlane.xlu2 %505 }
  0x9a   : > { %v695_v49 = vmul.f32 %v6514_v20, %v506_v25 }
  0x9b   : > { %v6518_v26 = vsub.f32 %v427_v0, %v693_v23  ;;  %v6520_v27 = vsub.f32 %v425_v1, %v691_v24  ;;  %v6584_v1 = vld [vmem:[%s6495_s14 + $0x58] sm:$0xff] }
  0x9c   : > { %v6561_v53 = vsub.f32 %v6500_v2, %v695_v49  ;;  %v525_v3 = vsel %vm491_vm0, %v6584_v1, 0.0 }
  0x9d   : > { %v821_v28 = vmul.f32 %v6518_v26, %v6518_v26  ;;  %v819_v29 = vmul.f32 %v6520_v27, %v6520_v27 }
  0x9e   : > { %v823_v59 = vmul.f32 %v6561_v53, %v6561_v53 }
  0x9f   : > { %v889_v30 = vsel %vm491_vm0, %v821_v28, 0.0  ;;  %v883_v31 = vsel %vm491_vm0, %v819_v29, 0.0 }
  0xa0   : > { %890 = vadd.xlane.f32.xlu1 %v889_v30  ;;  %884 = vadd.xlane.f32.xlu0 %v883_v31  ;;  %v497_v32 = vpop.xlane.xlu0 %496  ;;  %v503_v33 = vpop.xlane.xlu1 %502  ;;  %v895_v63 = vsel %vm491_vm0, %v823_v59, 0.0 }
  0xa1   : > { %v692_v34 = vmul.f32 %v6514_v20, %v497_v32  ;;  %v509_v35 = vpop.xlane.xlu2 %508  ;;  %v694_v37 = vmul.f32 %v6514_v20, %v503_v33 }
  0xa2   : > { %v696_v38 = vmul.f32 %v6514_v20, %v509_v35 }
  0xa3   : > { %v6537_v40 = vsub.f32 %v426_v6, %v692_v34  ;;  %v6543_v43 = vsub.f32 %v428_v7, %v694_v37  ;;  %v2044_v6 = vld [vmem:[%s10208_s2 + $0x38] sm:$0xff]  ;;  %v2043_v7 = vld [vmem:[%s10208_s2 + $0x30] sm:$0xff] }
  0xa4   : > { %v6541_v42 = vsub.f32 %v430_v8, %v696_v38  ;;  %2245 = vmatpush.msra.mxu0 %v2044_v6  ;;  %5734 = vmatpush.msra.mxu1 %v2044_v6  ;;  %v2042_v8 = vld [vmem:[%s10208_s2 + $0x28] sm:$0xff] }
  0xa5   : > { %v820_v45 = vmul.f32 %v6537_v40, %v6537_v40  ;;  %v822_v48 = vmul.f32 %v6543_v43, %v6543_v43 }
  0xa6   : > { %v824_v47 = vmul.f32 %v6541_v42, %v6541_v42  ;;  %2246 = vmatpush.msra.mxu0 %v2043_v7  ;;  %5735 = vmatpush.msra.mxu1 %v2043_v7 }
  0xa7   : > { %v886_v46 = vsel %vm491_vm0, %v820_v45, 0.0  ;;  %v892_v52 = vsel %vm491_vm0, %v822_v48, 0.0 }
  0xa8   : > { %520 = vadd.xlane.f32.xlu1 %v519_v41  ;;  %514 = vadd.xlane.f32.xlu0 %v513_v44  ;;  %v898_v51 = vsel %vm491_vm0, %v824_v47, 0.0  ;;  %v512_v55 = vpop.xlane.xlu1 %511 }
  0xa9   : > { %887 = vadd.xlane.f32.xlu2 %v886_v46  ;;  %v697_v56 = vmul.f32 %v6514_v20, %v512_v55  ;;  %2247 = vmatpush.msra.mxu0 %v2042_v8 }
  0xaa   : > { %5736 = vmatpush.msra.mxu1 %v2042_v8 }
  0xab   : > { %v6576_v61 = vsub.f32 %v431_v12, %v697_v56  ;;  %2248 = vmatpush.msra.mxu0 %v2041_v9  ;;  %v2038_v12 = vld [vmem:[%s10208_s2 + $0x8] sm:$0xff] }
  0xac   : > { %5737 = vmatpush.msra.mxu1 %v2041_v9 }
  0xad   : > { %v825_v0 = vmul.f32 %v6576_v61, %v6576_v61  ;;  %2249 = vmatpush.msra.mxu0 %v2040_v10 }
  0xae   : > { %5738 = vmatpush.msra.mxu1 %v2040_v10 }
  0xaf   : > { %v901_v2 = vsel %vm491_vm0, %v825_v0, 0.0  ;;  %2250 = vmatpush.msra.mxu0 %v2039_v11 }
  0xb0   : > { %899 = vadd.xlane.f32.xlu1 %v898_v51  ;;  %893 = vadd.xlane.f32.xlu0 %v892_v52  ;;  %v6648_v51 = vld [vmem:[%s6495_s14 + $0x80] sm:$0xff]  ;;  %v6651_v52 = vld [vmem:[%s6495_s14 + $0x70] sm:$0xff] }
  0xb1   : > { %517 = vadd.xlane.f32.xlu2 %v516_v54  ;;  %5739 = vmatpush.msra.mxu1 %v2039_v11  ;;  %v534_v0 = vsel %vm491_vm0, %v6651_v52, 0.0 }
  0xb2   : > { %2251 = vmatpush.msra.mxu0 %v2038_v12 }
  0xb3   : > { %5740 = vmatpush.msra.mxu1 %v2038_v12 }
  0xb4   : > { %2252 = vmatpush.msra.mxu0 %v2037_v13 }
  0xb5   : > { %5741 = vmatpush.msra.mxu1 %v2037_v13 }
  0xb8   : > { %529 = vadd.xlane.f32.xlu1 %v528_v60  ;;  %523 = vadd.xlane.f32.xlu0 %v522_v62 }
  0xb9   : > { %896 = vadd.xlane.f32.xlu2 %v895_v63  ;;  %v540_v63 = vsel %vm491_vm0, %v6648_v51, 0.0 }
  0xc0   : > { %902 = vadd.xlane.f32.xlu0 %v901_v2 }
  0xc1   : > { %526 = vadd.xlane.f32.xlu2 %v525_v3 }
  0xc8   : > { %532 = vadd.xlane.f32.xlu0 %v531_v5 }
 0x113   : > { %v891_v14 = vpop.xlane.xlu1 %890  ;;  %v885_v15 = vpop.xlane.xlu0 %884 }
 0x114   : > { %v1077_v16 = vmul.f32 %v891_v14, %v6514_v20  ;;  %v1075_v17 = vmul.f32 %v885_v15, %v6514_v20  ;;  %v6680_v14 = vld [vmem:[%s10209_s4 + $0x1] ss:$0 sm:$0xff] }
 0x116   : > { %v6620_v18 = vadd.f32 1e-05, %v1077_v16  ;;  %v1139_v19 = vadd.f32 1e-05, %v1075_v17 }
 0x118   : > { %5965 = vrsqrt.f32 %v6620_v18  ;;  %vm1209_vm3 = vweird.f32 %v1139_v19  ;;  %vm1229_vm5 = vweird.f32 %v6620_v18 }
 0x119   : > { %5967 = vrsqrt.f32 %v1139_v19 }
 0x11b   : > { %v521_v21 = vpop.xlane.xlu1 %520  ;;  %v515_v22 = vpop.xlane.xlu0 %514 }
 0x11c   : > { %v700_v23 = vmul.f32 %v6514_v20, %v521_v21  ;;  %v888_v24 = vpop.xlane.xlu2 %887  ;;  %v698_v25 = vmul.f32 %v6514_v20, %v515_v22 }
 0x11d   : > { %v1076_v28 = vmul.f32 %v888_v24, %v6514_v20 }
 0x11e   : > { %v6626_v29 = vpop.eup %5965  ;;  %v6629_v30 = vsub.f32 %v6530_v36, %v700_v23  ;;  %v6632_v31 = vsub.f32 %v6535_v39, %v698_v25 }
 0x11f   : > { %v5968_v32 = vpop.eup %5967  ;;  %v6634_v33 = vadd.f32 1e-05, %v1076_v28  ;;  %v1224_v34 = vmul.f32 %v6626_v29, %v6620_v18  ;;  %vm1230_vm6 = vweird.f32 %v6626_v29  ;;  %v6695_v28 = vld [vmem:[%s6495_s14 + $0x78] sm:$0xff] }
 0x120   : > { %v1204_v35 = vmul.f32 %v5968_v32, %v1139_v19  ;;  %v828_v37 = vmul.f32 %v6629_v30, %v6629_v30  ;;  %v826_v38 = vmul.f32 %v6632_v31, %v6632_v31  ;;  %vm1210_vm2 = vweird.f32 %v5968_v32  ;;  %vm6707_vm9 = vmor %vm1229_vm5, %vm1230_vm6 }
 0x121   : > { %5969 = vrsqrt.f32 %v6634_v33  ;;  %v1225_v46 = vmul.f32 %v6626_v29, %v1224_v34  ;;  %vm1211_vm4 = vmor %vm1209_vm3, %vm1210_vm2  ;;  %vm1219_vm8 = vweird.f32 %v6634_v33  ;;  %v537_v18 = vsel %vm491_vm0, %v6695_v28, 0.0 }
 0x122   : > { %v1205_v36 = vmul.f32 %v5968_v32, %v1204_v35  ;;  %v910_v39 = vsel %vm491_vm0, %v828_v37, 0.0  ;;  %v904_v41 = vsel %vm491_vm0, %v826_v38, 0.0 }
 0x123   : > { %v900_v44 = vpop.xlane.xlu1 %899  ;;  %911 = vadd.xlane.f32.xlu0 %v910_v39  ;;  %905 = vadd.xlane.f32.xlu2 %v904_v41  ;;  %v894_v45 = vpop.xlane.xlu0 %893  ;;  %v1226_v2 = vmul.f32 0.5, %v1225_v46 }
 0x124   : > { %v1206_v47 = vmul.f32 0.5, %v1205_v36  ;;  %v518_v48 = vpop.xlane.xlu2 %517  ;;  %v1078_v49 = vmul.f32 %v894_v45, %v6514_v20  ;;  %v1080_v60 = vmul.f32 %v900_v44, %v6514_v20 }
 0x125   : > { %v699_v54 = vmul.f32 %v6514_v20, %v518_v48  ;;  %v1227_v15 = vsub.f32 1.5, %v1226_v2 }
 0x126   : > { %v1207_v55 = vsub.f32 1.5, %v1206_v47  ;;  %v6654_v56 = vadd.f32 1e-05, %v1078_v49  ;;  %v6673_v9 = vadd.f32 1e-05, %v1080_v60 }
 0x127   : > { %v5970_v59 = vpop.eup %5969  ;;  %v6658_v62 = vsub.f32 %v6556_v50, %v699_v54  ;;  %v6671_v50 = vld [vmem:[%s10209_s4] ss:$0 sm:$0xff]  ;;  %v1228_v37 = vmul.f32 %v6626_v29, %v1227_v15 }
 0x128   : > { %v1208_v3 = vmul.f32 %v5968_v32, %v1207_v55  ;;  %v1214_v5 = vmul.f32 %v5970_v59, %v6634_v33  ;;  %5971 = vrsqrt.f32 %v6654_v56  ;;  %vm1220_vm7 = vweird.f32 %v5970_v59  ;;  %v6727_v55 = vld [vmem:[%s6495_s14 + $0x98] sm:$0xff] }
 0x129   : > { %v827_v6 = vmul.f32 %v6658_v62, %v6658_v62  ;;  %5973 = vrsqrt.f32 %v6673_v9  ;;  %vm1221_vm10 = vmor %vm1219_vm8, %vm1220_vm7  ;;  %v1232_v60 = vsel %vm6707_vm9, %v6626_v29, %v1228_v37  ;;  %vm1239_vm11 = vweird.f32 %v6654_v56 }
 0x12a   : > { %v1215_v7 = vmul.f32 %v5970_v59, %v1214_v5  ;;  %v1212_v8 = vsel %vm1211_vm4, %v5968_v32, %v1208_v3  ;;  %v6741_v3 = vld [vmem:[%s6495_s14 + $0x88] sm:$0xff]  ;;  %vm1259_vm2 = vweird.f32 %v6673_v9 }
 0x12b   : > { %v530_v10 = vpop.xlane.xlu1 %529  ;;  %541 = vadd.xlane.f32.xlu0 %v540_v63  ;;  %v907_v11 = vsel %vm491_vm0, %v827_v6, 0.0  ;;  %535 = vadd.xlane.f32.xlu2 %v534_v0  ;;  %v524_v12 = vpop.xlane.xlu0 %523  ;;  %v1843_v13 = vmul.f32 %v1212_v8, %v6520_v27  ;;  %v1845_v8 = vmul.f32 %v1232_v60, %v6518_v26  ;;  %v543_v26 = vsel %vm491_vm0, %v6741_v3, 0.0 }
 0x12c   : > { %v1216_v16 = vmul.f32 0.5, %v1215_v7  ;;  %v703_v17 = vmul.f32 %v6514_v20, %v530_v10  ;;  %908 = vadd.xlane.f32.xlu1 %v907_v11  ;;  %v897_v19 = vpop.xlane.xlu2 %896  ;;  %v701_v21 = vmul.f32 %v6514_v20, %v524_v12  ;;  %v549_v7 = vsel %vm491_vm0, %v6727_v55, 0.0 }
 0x12d   : > { %v1079_v27 = vmul.f32 %v897_v19, %v6514_v20  ;;  %v1908_v22 = vmul.f32 %v6671_v50, %v1843_v13 }
 0x12e   : > { %v1217_v23 = vsub.f32 1.5, %v1216_v16  ;;  %v6689_v24 = vsub.f32 %v6567_v57, %v703_v17  ;;  %v6692_v25 = vsub.f32 %v6570_v58, %v701_v21  ;;  %v6697_v32 = vpop.eup %5971  ;;  %v1910_v17 = vmul.f32 %v6671_v50, %v1845_v8  ;;  %v6776_v57 = vld [vmem:[%s6495_s14 + $0x90] sm:$0xff] }
 0x12f   : > { %v6701_v34 = vadd.f32 1e-05, %v1079_v27  ;;  %v1973_v35 = vadd.f32 %v6680_v14, %v1908_v22  ;;  %v1234_v38 = vmul.f32 %v6697_v32, %v6654_v56  ;;  %vm1240_vm12 = vweird.f32 %v6697_v32 }
 0x130   : > { %v1218_v58 = vmul.f32 %v5970_v59, %v1217_v23  ;;  %v831_v33 = vmul.f32 %v6689_v24, %v6689_v24  ;;  %v829_v36 = vmul.f32 %v6692_v25, %v6692_v25  ;;  %vm6755_vm13 = vmor %vm1239_vm11, %vm1240_vm12 }
 0x131   : > { %5975 = vrsqrt.f32 %v6701_v34  ;;  %5407 = vmatmul.msk.f32.vlgmr.msra.gmra.mxu0 %vm491_vm0, %v1973_v35  ;;  %v1235_v39 = vmul.f32 %v6697_v32, %v1234_v38  ;;  %vm1249_vm14 = vweird.f32 %v6701_v34 }
 0x132   : > { %v919_v41 = vsel %vm491_vm0, %v831_v33, 0.0  ;;  %v1222_v44 = vsel %vm1221_vm10, %v5970_v59, %v1218_v58  ;;  %v913_v45 = vsel %vm491_vm0, %v829_v36, 0.0  ;;  %v6732_v59 = vpop.eup %5973  ;;  %v1975_v58 = vadd.f32 %v6680_v14, %v1910_v17 }
 0x133   : > { %920 = vadd.xlane.f32.xlu0 %v919_v41  ;;  %v903_v46 = vpop.xlane.xlu0 %902  ;;  %v1844_v47 = vmul.f32 %v1222_v44, %v6537_v40  ;;  %v1236_v48 = vmul.f32 0.5, %v1235_v39  ;;  %914 = vadd.xlane.f32.xlu2 %v913_v45  ;;  %v1254_v56 = vmul.f32 %v6732_v59, %v6673_v9  ;;  %vm1260_vm3 = vweird.f32 %v6732_v59  ;;  %v6791_v45 = vld [vmem:[%s6495_s14 + $0xa0] sm:$0xff] }
 0x134   : > { %538 = vadd.xlane.f32.xlu1 %v537_v18  ;;  %v527_v49 = vpop.xlane.xlu2 %526  ;;  %v1081_v54 = vmul.f32 %v903_v46, %v6514_v20  ;;  %vm1261_vm4 = vmor %vm1259_vm2, %vm1260_vm3 }
 0x135   : > { %v702_v63 = vmul.f32 %v6514_v20, %v527_v49  ;;  %v1909_v0 = vmul.f32 %v6671_v50, %v1844_v47  ;;  %v1237_v2 = vsub.f32 1.5, %v1236_v48  ;;  %v1255_v19 = vmul.f32 %v6732_v59, %v1254_v56 }
 0x136   : > { %v6738_v40 = vadd.f32 1e-05, %v1081_v54  ;;  %v552_v54 = vsel %vm491_vm0, %v6791_v45, 0.0 }
 0x137   : > { %v5976_v5 = vpop.eup %5975  ;;  %v6744_v6 = vsub.f32 %v6584_v1, %v702_v63  ;;  %v1974_v29 = vadd.f32 %v6680_v14, %v1909_v0  ;;  %v1238_v10 = vmul.f32 %v6697_v32, %v1237_v2  ;;  %v1256_v33 = vmul.f32 0.5, %v1255_v19 }
 0x138   : > { %v1244_v11 = vmul.f32 %v5976_v5, %v6701_v34  ;;  %5977 = vrsqrt.f32 %v6738_v40  ;;  %vm1250_vm15 = vweird.f32 %v5976_v5  ;;  %vm1269_vm5 = vweird.f32 %v6738_v40 }
 0x139   : > { %5408 = vmatmul.msk.f32.gmra.mxu0 %vm491_vm0, %v1974_v29  ;;  %v830_v1 = vmul.f32 %v6744_v6, %v6744_v6  ;;  %v1242_v22 = vsel %vm6755_vm13, %v6697_v32, %v1238_v10  ;;  %vm1251_vm1 = vmor %vm1249_vm14, %vm1250_vm15  ;;  %v1257_v41 = vsub.f32 1.5, %v1256_v33 }
 0x13a   : > { %v1245_v13 = vmul.f32 %v5976_v5, %v1244_v11  ;;  %v1846_v38 = vmul.f32 %v1242_v22, %v6543_v43 }
 0x13b   : > { %550 = vadd.xlane.f32.xlu0 %v549_v7  ;;  %v916_v15 = vsel %vm491_vm0, %v830_v1, 0.0  ;;  %v533_v16 = vpop.xlane.xlu0 %532  ;;  %544 = vadd.xlane.f32.xlu2 %v543_v26  ;;  %v1258_v48 = vmul.f32 %v6732_v59, %v1257_v41 }
 0x13c   : > { %v1246_v21 = vmul.f32 0.5, %v1245_v13  ;;  %917 = vadd.xlane.f32.xlu1 %v916_v15  ;;  %v704_v27 = vmul.f32 %v6514_v20, %v533_v16  ;;  %v1911_v39 = vmul.f32 %v6671_v50, %v1846_v38 }
 0x13d   : > { %v1262_v63 = vsel %vm1261_vm4, %v6732_v59, %v1258_v48 }
 0x13e   : > { %v5978_v23 = vpop.eup %5977  ;;  %v1247_v35 = vsub.f32 1.5, %v1246_v21  ;;  %v6773_v37 = vsub.f32 %v6590_v4, %v704_v27  ;;  %v546_v4 = vsel %vm491_vm0, %v6776_v57, 0.0  ;;  %v1976_v46 = vadd.f32 %v6680_v14, %v1911_v39  ;;  %v6840_v39 = vld [vmem:[%s6495_s14 + $0xa8] sm:$0xff] }
 0x13f   : > { %v1264_v36 = vmul.f32 %v5978_v23, %v6738_v40  ;;  %vm1270_vm6 = vweird.f32 %v5978_v23  ;;  %v1848_v0 = vmul.f32 %v1262_v63, %v6541_v42 }
 0x140   : > { %v1248_v18 = vmul.f32 %v5976_v5, %v1247_v35  ;;  %v832_v32 = vmul.f32 %v6773_v37, %v6773_v37  ;;  %vm1271_vm7 = vmor %vm1269_vm5, %vm1270_vm6 }
 0x141   : > { %5409 = vmatmul.msk.f32.gmra.mxu0 %vm491_vm0, %v1975_v58  ;;  %v1265_v43 = vmul.f32 %v5978_v23, %v1264_v36 }
 0x142   : > { %v922_v34 = vsel %vm491_vm0, %v832_v32, 0.0  ;;  %v1252_v44 = vsel %vm1251_vm1, %v5976_v5, %v1248_v18  ;;  %v1913_v5 = vmul.f32 %v6671_v50, %v1848_v0 }
 0x143   : > { %923 = vadd.xlane.f32.xlu2 %v922_v34  ;;  %v1847_v47 = vmul.f32 %v1252_v44, %v6561_v53  ;;  %v1266_v49 = vmul.f32 0.5, %v1265_v43 }
 0x144   : > { %547 = vadd.xlane.f32.xlu1 %v546_v4  ;;  %v1978_v7 = vadd.f32 %v6680_v14, %v1913_v5 }
 0x145   : > { %v1912_v60 = vmul.f32 %v6671_v50, %v1847_v47  ;;  %v1267_v9 = vsub.f32 1.5, %v1266_v49  ;;  %v6846_v47 = vld [vmem:[%s6495_s14 + $0xb8] sm:$0xff] }
 0x146   : > { %v561_v0 = vsel %vm491_vm0, %v6846_v47, 0.0 }
 0x147   : > { %v1977_v53 = vadd.f32 %v6680_v14, %v1912_v60  ;;  %v1268_v2 = vmul.f32 %v5978_v23, %v1267_v9  ;;  %v555_v9 = vsel %vm491_vm0, %v6840_v39, 0.0 }
 0x149   : > { %5410 = vmatmul.msk.f32.gmra.mxu0 %vm491_vm0, %v1976_v46  ;;  %v1272_v29 = vsel %vm1271_vm7, %v5978_v23, %v1268_v2 }
 0x14a   : > { %v1849_v8 = vmul.f32 %v1272_v29, %v6576_v61 }
 0x14b   : > { %553 = vadd.xlane.f32.xlu2 %v552_v54 }
 0x14c   : > { %v1914_v59 = vmul.f32 %v6671_v50, %v1849_v8 }
 0x14e   : > { %v1979_v40 = vadd.f32 %v6680_v14, %v1914_v59 }
 0x151   : > { %5411 = vmatmul.msk.f32.gmra.mxu0 %vm491_vm0, %v1977_v53 }
 0x159   : > { %5412 = vmatmul.msk.f32.gmra.mxu0 %vm491_vm0, %v1978_v7 }
 0x161   : > { %5413 = vmatmul.msk.f32.gmra.mxu0 %vm491_vm0, %v1979_v40 }
 0x196   : > { %v906_v42 = vpop.xlane.xlu2 %905  ;;  %v912_v56 = vpop.xlane.xlu0 %911 }
 0x197   : > { %v1082_v10 = vmul.f32 %v906_v42, %v6514_v20  ;;  %v1084_v11 = vmul.f32 %v912_v56, %v6514_v20 }
 0x199   : > { %v1146_v12 = vadd.f32 1e-05, %v1082_v10  ;;  %v6814_v1 = vadd.f32 1e-05, %v1084_v11 }
 0x19b   : > { %5979 = vrsqrt.f32 %v1146_v12  ;;  %vm1279_vm9 = vweird.f32 %v1146_v12  ;;  %vm1299_vm11 = vweird.f32 %v6814_v1 }
 0x19c   : > { %5981 = vrsqrt.f32 %v6814_v1 }
 0x19e   : > { %v536_v61 = vpop.xlane.xlu2 %535  ;;  %v542_v26 = vpop.xlane.xlu0 %541 }
 0x19f   : > { %v909_v13 = vpop.xlane.xlu1 %908  ;;  %v705_v15 = vmul.f32 %v6514_v20, %v536_v61  ;;  %v707_v16 = vmul.f32 %v6514_v20, %v542_v26 }
 0x1a0   : > { %v1083_v17 = vmul.f32 %v909_v13, %v6514_v20 }
 0x1a1   : > { %v5980_v19 = vpop.eup %5979  ;;  %v6821_v21 = vsub.f32 %v6651_v52, %v705_v15  ;;  %v6824_v27 = vsub.f32 %v6648_v51, %v707_v16  ;;  %v6875_v16 = vld [vmem:[%s6495_s14 + $0xb0] sm:$0xff] }
 0x1a2   : > { %v6826_v22 = vpop.eup %5981  ;;  %v1274_v23 = vmul.f32 %v5980_v19, %v1146_v12  ;;  %v6828_v35 = vadd.f32 1e-05, %v1083_v17  ;;  %vm1280_vm8 = vweird.f32 %v5980_v19 }
 0x1a3   : > { %v833_v58 = vmul.f32 %v6821_v21, %v6821_v21  ;;  %v835_v38 = vmul.f32 %v6824_v27, %v6824_v27  ;;  %v1294_v52 = vmul.f32 %v6826_v22, %v6814_v1  ;;  %vm1281_vm10 = vmor %vm1279_vm9, %vm1280_vm8  ;;  %vm1300_vm13 = vweird.f32 %v6826_v22 }
 0x1a4   : > { %v1275_v33 = vmul.f32 %v5980_v19, %v1274_v23  ;;  %5983 = vrsqrt.f32 %v6828_v35  ;;  %vm1289_vm14 = vweird.f32 %v6828_v35  ;;  %vm6898_vm1 = vmor %vm1299_vm11, %vm1300_vm13 }
 0x1a5   : > { %v925_v51 = vsel %vm491_vm0, %v833_v58, 0.0  ;;  %v931_v18 = vsel %vm491_vm0, %v835_v38, 0.0  ;;  %v1295_v43 = vmul.f32 %v6826_v22, %v1294_v52 }
 0x1a6   : > { %v1276_v36 = vmul.f32 0.5, %v1275_v33  ;;  %926 = vadd.xlane.f32.xlu1 %v925_v51  ;;  %932 = vadd.xlane.f32.xlu2 %v931_v18  ;;  %v921_v32 = vpop.xlane.xlu0 %920  ;;  %v915_v34 = vpop.xlane.xlu2 %914 }
 0x1a7   : > { %v539_v4 = vpop.xlane.xlu1 %538  ;;  %v1085_v46 = vmul.f32 %v915_v34, %v6514_v20  ;;  %v1087_v53 = vmul.f32 %v921_v32, %v6514_v20  ;;  %v1296_v2 = vmul.f32 0.5, %v1295_v43 }
 0x1a8   : > { %v1277_v41 = vsub.f32 1.5, %v1276_v36  ;;  %v706_v44 = vmul.f32 %v6514_v20, %v539_v4 }
 0x1a9   : > { %v6851_v60 = vadd.f32 1e-05, %v1085_v46  ;;  %v6864_v42 = vadd.f32 1e-05, %v1087_v53  ;;  %v1297_v12 = vsub.f32 1.5, %v1296_v2 }
 0x1aa   : > { %v5984_v48 = vpop.eup %5983  ;;  %v1278_v49 = vmul.f32 %v5980_v19, %v1277_v41  ;;  %v6849_v54 = vsub.f32 %v6695_v28, %v706_v44 }
 0x1ab   : > { %v1284_v63 = vmul.f32 %v5984_v48, %v6828_v35  ;;  %5985 = vrsqrt.f32 %v6851_v60  ;;  %vm1290_vm12 = vweird.f32 %v5984_v48  ;;  %v1298_v33 = vmul.f32 %v6826_v22, %v1297_v12 }
 0x1ac   : > { %v834_v28 = vmul.f32 %v6849_v54, %v6849_v54  ;;  %v1282_v29 = vsel %vm1281_vm10, %v5980_v19, %v1278_v49  ;;  %5987 = vrsqrt.f32 %v6864_v42  ;;  %vm1291_vm15 = vmor %vm1289_vm14, %vm1290_vm12  ;;  %v558_v35 = vsel %vm491_vm0, %v6875_v16, 0.0 }
 0x1ad   : > { %v1285_v5 = vmul.f32 %v5984_v48, %v1284_v63  ;;  %v1850_v59 = vmul.f32 %v1282_v29, %v6632_v31  ;;  %vm1309_vm2 = vweird.f32 %v6851_v60  ;;  %vm1329_vm8 = vweird.f32 %v6864_v42 }
 0x1ae   : > { %v928_v7 = vsel %vm491_vm0, %v834_v28, 0.0  ;;  %556 = vadd.xlane.f32.xlu1 %v555_v9  ;;  %562 = vadd.xlane.f32.xlu2 %v561_v0  ;;  %v551_v8 = vpop.xlane.xlu0 %550  ;;  %v545_v10 = vpop.xlane.xlu2 %544 }
 0x1af   : > { %v1286_v40 = vmul.f32 0.5, %v1285_v5  ;;  %929 = vadd.xlane.f32.xlu0 %v928_v7  ;;  %v918_v56 = vpop.xlane.xlu1 %917  ;;  %v710_v11 = vmul.f32 %v6514_v20, %v551_v8  ;;  %v708_v26 = vmul.f32 %v6514_v20, %v545_v10  ;;  %v1915_v13 = vmul.f32 %v6671_v50, %v1850_v59  ;;  %v6929_v5 = vld [vmem:[%s6495_s14 + $0xd0] sm:$0xff] }
 0x1b0   : > { %v1086_v61 = vmul.f32 %v918_v56, %v6514_v20 }
 0x1b1   : > { %v1287_v15 = vsub.f32 1.5, %v1286_v40  ;;  %v6872_v31 = vsub.f32 %v6727_v55, %v710_v11  ;;  %v6877_v17 = vpop.eup %5985  ;;  %v6884_v23 = vsub.f32 %v6741_v3, %v708_v26  ;;  %v1980_v55 = vadd.f32 %v6680_v14, %v1915_v13  ;;  %v6953_v13 = vld [vmem:[%s6495_s14 + $0xc8] sm:$0xff] }
 0x1b2   : > { %v6881_v19 = vadd.f32 1e-05, %v1086_v61  ;;  %v1304_v38 = vmul.f32 %v6877_v17, %v6851_v60  ;;  %v6918_v9 = vpop.eup %5987  ;;  %vm1310_vm3 = vweird.f32 %v6877_v17 }
 0x1b3   : > { %v1288_v58 = vmul.f32 %v5984_v48, %v1287_v15  ;;  %v836_v3 = vmul.f32 %v6884_v23, %v6884_v23  ;;  %5414 = vmatmul.msk.f32.gmra.mxu0 %vm491_vm0, %v1980_v55  ;;  %v838_v18 = vmul.f32 %v6872_v31, %v6872_v31  ;;  %v1324_v8 = vmul.f32 %v6918_v9, %v6864_v42  ;;  %vm6941_vm4 = vmor %vm1309_vm2, %vm1310_vm3 }
 0x1b4   : > { %5989 = vrsqrt.f32 %v6881_v19  ;;  %v1305_v51 = vmul.f32 %v6877_v17, %v1304_v38  ;;  %vm1319_vm5 = vweird.f32 %v6881_v19  ;;  %vm1330_vm9 = vweird.f32 %v6918_v9 }
 0x1b5   : > { %v1292_v36 = vsel %vm1291_vm15, %v5984_v48, %v1288_v58  ;;  %v934_v32 = vsel %vm491_vm0, %v836_v3, 0.0  ;;  %v940_v43 = vsel %vm491_vm0, %v838_v18, 0.0  ;;  %v6913_v48 = vld [vmem:[%s6495_s14 + $0xc0] sm:$0xff]  ;;  %v1325_v61 = vmul.f32 %v6918_v9, %v1324_v8  ;;  %vm1331_vm10 = vmor %vm1329_vm8, %vm1330_vm9 }
 0x1b6   : > { %v1851_v4 = vmul.f32 %v1292_v36, %v6658_v62  ;;  %v1306_v34 = vmul.f32 0.5, %v1305_v51  ;;  %935 = vadd.xlane.f32.xlu1 %v934_v32  ;;  %v924_v41 = vpop.xlane.xlu2 %923  ;;  %941 = vadd.xlane.f32.xlu2 %v940_v43  ;;  %v1302_v62 = vsel %vm6898_vm1, %v6826_v22, %v1298_v33  ;;  %v564_v22 = vsel %vm491_vm0, %v6913_v48, 0.0 }
 0x1b7   : > { %559 = vadd.xlane.f32.xlu0 %v558_v35  ;;  %v548_v1 = vpop.xlane.xlu1 %547  ;;  %v1088_v46 = vmul.f32 %v924_v41, %v6514_v20  ;;  %v1852_v7 = vmul.f32 %v1302_v62, %v6629_v30  ;;  %v570_v30 = vsel %vm491_vm0, %v6929_v5, 0.0  ;;  %v567_v35 = vsel %vm491_vm0, %v6953_v13, 0.0 }
 0x1b8   : > { %v709_v44 = vmul.f32 %v6514_v20, %v548_v1  ;;  %v1916_v49 = vmul.f32 %v6671_v50, %v1851_v4  ;;  %v1307_v63 = vsub.f32 1.5, %v1306_v34  ;;  %v1326_v52 = vmul.f32 0.5, %v1325_v61 }
 0x1b9   : > { %v6925_v2 = vadd.f32 1e-05, %v1088_v46  ;;  %v1917_v12 = vmul.f32 %v6671_v50, %v1852_v7 }
 0x1ba   : > { %v5990_v53 = vpop.eup %5989  ;;  %v6923_v0 = vsub.f32 %v6776_v57, %v709_v44  ;;  %v1981_v28 = vadd.f32 %v6680_v14, %v1916_v49  ;;  %v1308_v60 = vmul.f32 %v6877_v17, %v1307_v63  ;;  %v1327_v36 = vsub.f32 1.5, %v1326_v52 }
 0x1bb   : > { %v1314_v29 = vmul.f32 %v5990_v53, %v6881_v19  ;;  %5991 = vrsqrt.f32 %v6925_v2  ;;  %vm1320_vm6 = vweird.f32 %v5990_v53  ;;  %v1982_v33 = vadd.f32 %v6680_v14, %v1917_v12 }
 0x1bc   : > { %v837_v57 = vmul.f32 %v6923_v0, %v6923_v0  ;;  %5415 = vmatmul.msk.f32.gmra.mxu0 %vm491_vm0, %v1981_v28  ;;  %v1312_v15 = vsel %vm6941_vm4, %v6877_v17, %v1308_v60  ;;  %vm1321_vm7 = vmor %vm1319_vm5, %vm1320_vm6  ;;  %v1328_v41 = vmul.f32 %v6918_v9, %v1327_v36  ;;  %vm1339_vm11 = vweird.f32 %v6925_v2 }
 0x1bd   : > { %v1315_v40 = vmul.f32 %v5990_v53, %v1314_v29  ;;  %v1853_v3 = vmul.f32 %v1312_v15, %v6692_v25  ;;  %v6973_v25 = vld [vmem:[%s6495_s14 + $0xd8] sm:$0xff] }
 0x1be   : > { %v937_v56 = vsel %vm491_vm0, %v837_v57, 0.0  ;;  %565 = vadd.xlane.f32.xlu1 %v564_v22  ;;  %v554_v11 = vpop.xlane.xlu2 %553  ;;  %571 = vadd.xlane.f32.xlu2 %v570_v30  ;;  %v573_v44 = vsel %vm491_vm0, %v6973_v25, 0.0  ;;  %v1332_v42 = vsel %vm1331_vm10, %v6918_v9, %v1328_v41  ;;  %v7032_v41 = vld [vmem:[%s6495_s14 + $0xf0] sm:$0xff] }
 0x1bf   : > { %v1316_v10 = vmul.f32 0.5, %v1315_v40  ;;  %938 = vadd.xlane.f32.xlu0 %v937_v56  ;;  %v711_v26 = vmul.f32 %v6514_v20, %v554_v11  ;;  %v1918_v19 = vmul.f32 %v6671_v50, %v1853_v3  ;;  %v1855_v62 = vmul.f32 %v1332_v42, %v6689_v24 }
 0x1c1   : > { %v1317_v58 = vsub.f32 1.5, %v1316_v10  ;;  %v5992_v38 = vpop.eup %5991  ;;  %v6960_v55 = vsub.f32 %v6791_v45, %v711_v26  ;;  %v1983_v34 = vadd.f32 %v6680_v14, %v1918_v19 }
 0x1c2   : > { %v1334_v17 = vmul.f32 %v5992_v38, %v6925_v2  ;;  %vm1340_vm12 = vweird.f32 %v5992_v38 }
 0x1c3   : > { %v1318_v51 = vmul.f32 %v5990_v53, %v1317_v58  ;;  %v839_v18 = vmul.f32 %v6960_v55, %v6960_v55  ;;  %vm1341_vm13 = vmor %vm1339_vm11, %vm1340_vm12 }
 0x1c4   : > { %5416 = vmatmul.msk.f32.gmra.mxu0 %vm491_vm0, %v1982_v33  ;;  %v1335_v32 = vmul.f32 %v5992_v38, %v1334_v17 }
 0x1c5   : > { %v943_v45 = vsel %vm491_vm0, %v839_v18, 0.0  ;;  %v1322_v4 = vsel %vm1321_vm7, %v5990_v53, %v1318_v51  ;;  %v1920_v53 = vmul.f32 %v6671_v50, %v1855_v62 }
 0x1c6   : > { %944 = vadd.xlane.f32.xlu1 %v943_v45  ;;  %v1854_v1 = vmul.f32 %v1322_v4, %v6744_v6  ;;  %v1336_v43 = vmul.f32 0.5, %v1335_v32  ;;  %v7023_v45 = vpop.f32.mrf.mxu0 }
 0x1c7   : > { %568 = vadd.xlane.f32.xlu0 %v567_v35  ;;  %v1985_v29 = vadd.f32 %v6680_v14, %v1920_v53  ;;  %10218 = vst [vmem:[#allocation8_spill] sm:$0xff] %v7023_v45 }
 0x1c8   : > { %v1919_v46 = vmul.f32 %v6671_v50, %v1854_v1  ;;  %v1337_v49 = vsub.f32 1.5, %v1336_v43  ;;  %v7029_v1 = vld [vmem:[%s6495_s14 + $0xe0] sm:$0xff] }
 0x1c9   : > { %v576_v62 = vsel %vm491_vm0, %v7029_v1, 0.0 }
 0x1ca   : > { %v1984_v6 = vadd.f32 %v6680_v14, %v1919_v46  ;;  %v1338_v63 = vmul.f32 %v5992_v38, %v1337_v49 }
 0x1cc   : > { %5417 = vmatmul.msk.f32.gmra.mxu0 %vm491_vm0, %v1983_v34  ;;  %v1342_v28 = vsel %vm1341_vm13, %v5992_v38, %v1338_v63  ;;  %v582_v63 = vsel %vm491_vm0, %v7032_v41, 0.0 }
 0x1cd   : > { %v1856_v22 = vmul.f32 %v1342_v28, %v6773_v37 }
 0x1ce   : > { %574 = vadd.xlane.f32.xlu1 %v573_v44 }
 0x1cf   : > { %v1921_v9 = vmul.f32 %v6671_v50, %v1856_v22 }
 0x1d1   : > { %v1986_v2 = vadd.f32 %v6680_v14, %v1921_v9 }
 0x1d4   : > { %5418 = vmatmul.msk.f32.gmra.mxu0 %vm491_vm0, %v1984_v6 }
 0x1dc   : > { %5419 = vmatmul.msk.f32.gmra.mxu0 %vm491_vm0, %v1985_v29 }
 0x1e4   : > { %5420 = vmatmul.msk.f32.gmra.mxu0 %vm491_vm0, %v1986_v2 }
 0x219   : > { %v927_v24 = vpop.xlane.xlu1 %926  ;;  %v933_v7 = vpop.xlane.xlu2 %932 }
 0x21a   : > { %v1089_v60 = vmul.f32 %v927_v24, %v6514_v20  ;;  %v1091_v8 = vmul.f32 %v933_v7, %v6514_v20 }
 0x21c   : > { %v1153_v57 = vadd.f32 1e-05, %v1089_v60  ;;  %v6998_v59 = vadd.f32 1e-05, %v1091_v8 }
 0x21e   : > { %5993 = vrsqrt.f32 %v1153_v57  ;;  %vm1349_vm15 = vweird.f32 %v1153_v57  ;;  %vm1369_vm3 = vweird.f32 %v6998_v59 }
 0x21f   : > { %5995 = vrsqrt.f32 %v6998_v59 }
 0x221   : > { %v557_v37 = vpop.xlane.xlu1 %556  ;;  %v563_v40 = vpop.xlane.xlu2 %562 }
 0x222   : > { %v712_v30 = vmul.f32 %v6514_v20, %v557_v37  ;;  %v714_v56 = vmul.f32 %v6514_v20, %v563_v40  ;;  %v930_v10 = vpop.xlane.xlu0 %929 }
 0x223   : > { %v1090_v11 = vmul.f32 %v930_v10, %v6514_v20 }
 0x224   : > { %v5994_v12 = vpop.eup %5993  ;;  %v7005_v61 = vsub.f32 %v6840_v39, %v712_v30  ;;  %v7008_v26 = vsub.f32 %v6846_v47, %v714_v56 }
 0x225   : > { %v7010_v15 = vpop.eup %5995  ;;  %v1344_v58 = vmul.f32 %v5994_v12, %v1153_v57  ;;  %v7012_v38 = vadd.f32 1e-05, %v1090_v11  ;;  %vm1350_vm14 = vweird.f32 %v5994_v12  ;;  %v7059_v11 = vld [vmem:[%s6495_s14 + $0xe8] sm:$0xff] }
 0x226   : > { %v840_v33 = vmul.f32 %v7005_v61, %v7005_v61  ;;  %v842_v35 = vmul.f32 %v7008_v26, %v7008_v26  ;;  %v1364_v52 = vmul.f32 %v7010_v15, %v6998_v59  ;;  %vm1351_vm1 = vmor %vm1349_vm15, %vm1350_vm14  ;;  %vm1370_vm4 = vweird.f32 %v7010_v15 }
 0x227   : > { %v1345_v3 = vmul.f32 %v5994_v12, %v1344_v58  ;;  %5997 = vrsqrt.f32 %v7012_v38  ;;  %v7063_v58 = vpop.f32.mrf.mxu0  ;;  %vm1359_vm5 = vweird.f32 %v7012_v38  ;;  %vm7086_vm7 = vmor %vm1369_vm3, %vm1370_vm4 }
 0x228   : > { %v946_v39 = vsel %vm491_vm0, %v840_v33, 0.0  ;;  %v952_v47 = vsel %vm491_vm0, %v842_v35, 0.0  ;;  %v1365_v36 = vmul.f32 %v7010_v15, %v1364_v52  ;;  %10219 = vst [vmem:[#allocation9_spill] sm:$0xff] %v7063_v58 }
 0x229   : > { %v1346_v51 = vmul.f32 0.5, %v1345_v3  ;;  %947 = vadd.xlane.f32.xlu0 %v946_v39  ;;  %953 = vadd.xlane.f32.xlu1 %v952_v47  ;;  %v936_v17 = vpop.xlane.xlu1 %935  ;;  %v942_v4 = vpop.xlane.xlu2 %941 }
 0x22a   : > { %v560_v18 = vpop.xlane.xlu0 %559  ;;  %v1092_v32 = vmul.f32 %v936_v17, %v6514_v20  ;;  %v1094_v6 = vmul.f32 %v942_v4, %v6514_v20  ;;  %v1366_v53 = vmul.f32 0.5, %v1365_v36 }
 0x22b   : > { %v1347_v19 = vsub.f32 1.5, %v1346_v51  ;;  %v713_v34 = vmul.f32 %v6514_v20, %v560_v18 }
 0x22c   : > { %v7034_v46 = vadd.f32 1e-05, %v1092_v32  ;;  %v7051_v24 = vadd.f32 1e-05, %v1094_v6  ;;  %v1367_v8 = vsub.f32 1.5, %v1366_v53  ;;  %v7106_v53 = vld [vmem:[%s6495_s14 + $0xf8] sm:$0xff] }
 0x22d   : > { %v5998_v43 = vpop.eup %5997  ;;  %v1348_v44 = vmul.f32 %v5994_v12, %v1347_v19  ;;  %v7037_v49 = vsub.f32 %v6875_v16, %v713_v34 }
 0x22e   : > { %v1354_v42 = vmul.f32 %v5998_v43, %v7012_v38  ;;  %5999 = vrsqrt.f32 %v7034_v46  ;;  %vm1360_vm2 = vweird.f32 %v5998_v43  ;;  %v1368_v59 = vmul.f32 %v7010_v15, %v1367_v8 }
 0x22f   : > { %v841_v28 = vmul.f32 %v7037_v49, %v7037_v49  ;;  %v1352_v16 = vsel %vm1351_vm1, %v5994_v12, %v1348_v44  ;;  %6001 = vrsqrt.f32 %v7051_v24  ;;  %vm1361_vm6 = vmor %vm1359_vm5, %vm1360_vm2  ;;  %v579_v38 = vsel %vm491_vm0, %v7059_v11, 0.0 }
 0x230   : > { %v1355_v29 = vmul.f32 %v5998_v43, %v1354_v42  ;;  %v1857_v22 = vmul.f32 %v1352_v16, %v6821_v21  ;;  %vm1379_vm8 = vweird.f32 %v7034_v46  ;;  %vm1399_vm14 = vweird.f32 %v7051_v24 }
 0x231   : > { %577 = vadd.xlane.f32.xlu0 %v576_v62  ;;  %583 = vadd.xlane.f32.xlu1 %v582_v63  ;;  %v949_v9 = vsel %vm491_vm0, %v841_v28, 0.0  ;;  %v566_v7 = vpop.xlane.xlu1 %565  ;;  %v572_v37 = vpop.xlane.xlu2 %571  ;;  %v7113_v28 = vld [vmem:[%s6495_s14 + $0x108] sm:$0xff] }
 0x232   : > { %v1356_v2 = vmul.f32 0.5, %v1355_v29  ;;  %950 = vadd.xlane.f32.xlu2 %v949_v9  ;;  %v1922_v60 = vmul.f32 %v6671_v50, %v1857_v22  ;;  %v715_v57 = vmul.f32 %v6514_v20, %v566_v7  ;;  %v939_v40 = vpop.xlane.xlu0 %938  ;;  %v717_v21 = vmul.f32 %v6514_v20, %v572_v37  ;;  %v7120_v9 = vpop.f32.mrf.mxu0 }
 0x233   : > { %v1093_v56 = vmul.f32 %v939_v40, %v6514_v20  ;;  %10222 = vst [vmem:[#allocation10_spill] sm:$0xff] %v7120_v9  ;;  %v585_v7 = vsel %vm491_vm0, %v7106_v53, 0.0 }
 0x234   : > { %v1357_v30 = vsub.f32 1.5, %v1356_v2  ;;  %v1987_v10 = vadd.f32 %v6680_v14, %v1922_v60  ;;  %v7061_v12 = vpop.eup %5999  ;;  %v7069_v33 = vsub.f32 %v6913_v48, %v715_v57  ;;  %v7075_v52 = vsub.f32 %v6929_v5, %v717_v21 }
 0x235   : > { %v1374_v3 = vmul.f32 %v7061_v12, %v7034_v46  ;;  %v7080_v39 = vadd.f32 1e-05, %v1093_v56  ;;  %v7101_v42 = vpop.eup %6001  ;;  %vm1380_vm9 = vweird.f32 %v7061_v12 }
 0x236   : > { %v1358_v35 = vmul.f32 %v5998_v43, %v1357_v30  ;;  %5421 = vmatmul.msk.f32.gmra.mxu0 %vm491_vm0, %v1987_v10  ;;  %v843_v48 = vmul.f32 %v7069_v33, %v7069_v33  ;;  %v845_v51 = vmul.f32 %v7075_v52, %v7075_v52  ;;  %v1394_v46 = vmul.f32 %v7101_v42, %v7051_v24  ;;  %vm7128_vm10 = vmor %vm1379_vm8, %vm1380_vm9 }
 0x237   : > { %v1375_v5 = vmul.f32 %v7061_v12, %v1374_v3  ;;  %6003 = vrsqrt.f32 %v7080_v39  ;;  %vm1389_vm11 = vweird.f32 %v7080_v39  ;;  %vm1400_vm15 = vweird.f32 %v7101_v42 }
 0x238   : > { %v1362_v17 = vsel %vm1361_vm6, %v5998_v43, %v1358_v35  ;;  %v955_v18 = vsel %vm491_vm0, %v843_v48, 0.0  ;;  %v961_v32 = vsel %vm491_vm0, %v845_v51, 0.0  ;;  %v1372_v43 = vsel %vm7086_vm7, %v7010_v15, %v1368_v59  ;;  %v7150_v48 = vld [vmem:[%s6495_s14 + $0x100] sm:$0xff]  ;;  %vm1401_vm1 = vmor %vm1399_vm14, %vm1400_vm15 }
 0x239   : > { %v1376_v19 = vmul.f32 0.5, %v1375_v5  ;;  %956 = vadd.xlane.f32.xlu0 %v955_v18  ;;  %v945_v36 = vpop.xlane.xlu1 %944  ;;  %v1858_v4 = vmul.f32 %v1362_v17, %v6849_v54  ;;  %962 = vadd.xlane.f32.xlu1 %v961_v32  ;;  %v1859_v29 = vmul.f32 %v1372_v43, %v6824_v27  ;;  %v591_v27 = vsel %vm491_vm0, %v7113_v28, 0.0 }
 0x23a   : > { %580 = vadd.xlane.f32.xlu2 %v579_v38  ;;  %v1095_v34 = vmul.f32 %v945_v36, %v6514_v20  ;;  %v569_v44 = vpop.xlane.xlu0 %568  ;;  %v1395_v21 = vmul.f32 %v7101_v42, %v1394_v46  ;;  %vm2454_vm14 = vcmask 261120  }
 0x23b   : > { %v1377_v6 = vsub.f32 1.5, %v1376_v19  ;;  %v716_v62 = vmul.f32 %v6514_v20, %v569_v44  ;;  %v1923_v63 = vmul.f32 %v6671_v50, %v1858_v4  ;;  %v1924_v30 = vmul.f32 %v6671_v50, %v1859_v29 }
 0x23c   : > { %v7110_v54 = vadd.f32 1e-05, %v1095_v34  ;;  %v1396_v51 = vmul.f32 0.5, %v1395_v21  ;;  %v7165_v34 = vld [vmem:[%s6495_s14 + $0x110] sm:$0xff] }
 0x23d   : > { %v7116_v16 = vsub.f32 %v6953_v13, %v716_v62  ;;  %v1988_v15 = vadd.f32 %v6680_v14, %v1923_v63  ;;  %v6004_v22 = vpop.eup %6003  ;;  %v1378_v2 = vmul.f32 %v7061_v12, %v1377_v6  ;;  %v1989_v47 = vadd.f32 %v6680_v14, %v1924_v30 }
 0x23e   : > { %6005 = vrsqrt.f32 %v7110_v54  ;;  %v1384_v60 = vmul.f32 %v6004_v22, %v7080_v39  ;;  %vm1390_vm12 = vweird.f32 %v6004_v22  ;;  %v7160_v39 = vpop.f32.mrf.mxu0  ;;  %v1397_v36 = vsub.f32 1.5, %v1396_v51 }
 0x23f   : > { %5422 = vmatmul.msk.f32.gmra.mxu0 %vm491_vm0, %v1988_v15  ;;  %v844_v8 = vmul.f32 %v7116_v16, %v7116_v16  ;;  %v1382_v10 = vsel %vm7128_vm10, %v7061_v12, %v1378_v2  ;;  %vm1391_vm13 = vmor %vm1389_vm11, %vm1390_vm12  ;;  %10225 = vst [vmem:[#allocation11_spill] sm:$0xff] %v7160_v39  ;;  %v594_v63 = vsel %vm491_vm0, %v7165_v34, 0.0  ;;  %vm1409_vm2 = vweird.f32 %v7110_v54 }
 0x240   : > { %v1385_v57 = vmul.f32 %v6004_v22, %v1384_v60  ;;  %v1860_v5 = vmul.f32 %v1382_v10, %v6884_v23  ;;  %v1398_v6 = vmul.f32 %v7101_v42, %v1397_v36 }
 0x241   : > { %586 = vadd.xlane.f32.xlu0 %v585_v7  ;;  %v575_v37 = vpop.xlane.xlu1 %574  ;;  %v958_v40 = vsel %vm491_vm0, %v844_v8, 0.0  ;;  %592 = vadd.xlane.f32.xlu1 %v591_v27 }
 0x242   : > { %v718_v56 = vmul.f32 %v6514_v20, %v575_v37  ;;  %959 = vadd.xlane.f32.xlu2 %v958_v40  ;;  %v1386_v35 = vmul.f32 0.5, %v1385_v57  ;;  %v1925_v23 = vmul.f32 %v6671_v50, %v1860_v5 }
 0x244   : > { %v6006_v3 = vpop.eup %6005  ;;  %v7147_v59 = vsub.f32 %v6973_v25, %v718_v56  ;;  %v1387_v38 = vsub.f32 1.5, %v1386_v35  ;;  %v588_v25 = vsel %vm491_vm0, %v7150_v48, 0.0  ;;  %v1990_v44 = vadd.f32 %v6680_v14, %v1925_v23  ;;  %v2561_v35 = vld [vmem:[%s10234_s3 + $0x8] sm:$0xff] }
 0x245   : > { %v1404_v17 = vmul.f32 %v6006_v3, %v7110_v54  ;;  %vm1410_vm3 = vweird.f32 %v6006_v3 }
 0x246   : > { %v846_v12 = vmul.f32 %v7147_v59, %v7147_v59  ;;  %v1388_v18 = vmul.f32 %v6004_v22, %v1387_v38  ;;  %v7176_v29 = vpop.f32.mrf.mxu0  ;;  %vm1411_vm4 = vmor %vm1409_vm2, %vm1410_vm3 }
 0x247   : > { %5423 = vmatmul.msk.f32.gmra.mxu0 %vm491_vm0, %v1989_v47  ;;  %v1405_v32 = vmul.f32 %v6006_v3, %v1404_v17  ;;  %10226 = vst [vmem:[#allocation12_spill] sm:$0xff] %v7176_v29  ;;  %v2560_v47 = vld [vmem:[%s10234_s3] sm:$0xff] }
 0x248   : > { %v964_v19 = vsel %vm491_vm0, %v846_v12, 0.0  ;;  %v1392_v4 = vsel %vm1391_vm13, %v6004_v22, %v1388_v18  ;;  %v1402_v22 = vsel %vm1401_vm1, %v7101_v42, %v1398_v6 }
 0x249   : > { %965 = vadd.xlane.f32.xlu0 %v964_v19  ;;  %v1861_v43 = vmul.f32 %v1392_v4, %v6923_v0  ;;  %v1406_v62 = vmul.f32 0.5, %v1405_v32  ;;  %v1862_v2 = vmul.f32 %v1402_v22, %v6872_v31 }
 0x24a   : > { %589 = vadd.xlane.f32.xlu2 %v588_v25 }
 0x24b   : > { %v1926_v15 = vmul.f32 %v6671_v50, %v1861_v43  ;;  %v1407_v24 = vsub.f32 1.5, %v1406_v62  ;;  %v7186_v50 = vld [vmem:[%s10209_s4] ss:$0 sm:$0xff] }
 0x24c   : > { %v1927_v7 = vmul.f32 %v7186_v50, %v1862_v2 }
 0x24d   : > { %v1991_v0 = vadd.f32 %v6680_v14, %v1926_v15  ;;  %v1408_v46 = vmul.f32 %v6006_v3, %v1407_v24 }
 0x24e   : > { %v7189_v42 = vpop.f32.mrf.mxu0  ;;  %v1992_v54 = vadd.f32 %v6680_v14, %v1927_v7 }
 0x24f   : > { %5424 = vmatmul.msk.f32.gmra.mxu0 %vm491_vm0, %v1990_v44  ;;  %v1412_v13 = vsel %vm1411_vm4, %v6006_v3, %v1408_v46  ;;  %10227 = vst [vmem:[#allocation13_spill] sm:$0xff] %v7189_v42 }
 0x250   : > { %v1863_v60 = vmul.f32 %v1412_v13, %v6960_v55  ;;  %v2563_v55 = vld [vmem:[%s10234_s3 + $0x18] sm:$0xff]  ;;  %v7253_v13 = vld [vmem:[%s6495_s14 + $0x128] sm:$0xff] }
 0x251   : > { %595 = vadd.xlane.f32.xlu0 %v594_v63  ;;  %2588 = vmatpush.msra.mxu2 %v2563_v55 }
 0x252   : > { %v1928_v31 = vmul.f32 %v7186_v50, %v1863_v60 }
 0x254   : > { %v1993_v27 = vadd.f32 %v6680_v14, %v1928_v31  ;;  %v2562_v14 = vld [vmem:[%s10234_s3 + $0x10] sm:$0xff] }
 0x255   : > { %2589 = vmatpush.msra.mxu2 %v2562_v14 }
 0x256   : > { %v7196_v8 = vpop.f32.mrf.mxu0 }
 0x257   : > { %5425 = vmatmul.msk.f32.gmra.mxu0 %vm491_vm0, %v1991_v0  ;;  %10228 = vst [vmem:[#allocation14_spill] sm:$0xff] %v7196_v8  ;;  %2590 = vmatpush.msra.mxu2 %v2561_v35 }
 0x259   : > { %2591 = vmatpush.msra.mxu2 %v2560_v47 }
 0x25e   : > { %v7199_v57 = vpop.f32.mrf.mxu0 }
 0x25f   : > { %5426 = vmatmul.msk.f32.gmra.mxu0 %vm491_vm0, %v1992_v54  ;;  %10229 = vst [vmem:[#allocation15_spill] sm:$0xff] %v7199_v57  ;;  %v7256_v54 = vld [vmem:[%s6495_s14 + $0x118] sm:$0xff] }
 0x266   : > { %v7201_v37 = vpop.f32.mrf.mxu0 }
 0x267   : > { %5427 = vmatmul.msk.f32.gmra.mxu0 %vm491_vm0, %v1993_v27  ;;  %10230 = vst [vmem:[#allocation16_spill] sm:$0xff] %v7201_v37 }
 0x26e   : > { %v7203_v40 = vpop.f32.mrf.mxu0 }
 0x26f   : > { %10231 = vst [vmem:[#allocation17_spill] sm:$0xff] %v7203_v40 }
 0x276   : > { %v7205_v30 = vpop.f32.mrf.mxu0 }
 0x277   : > { %10232 = vst [vmem:[#allocation18_spill] sm:$0xff] %v7205_v30 }
 0x27e   : > { %v7207_v21 = vpop.f32.mrf.mxu0 }
 0x27f   : > { %10233 = vst [vmem:[#allocation19_spill] sm:$0xff] %v7207_v21 }
 0x286   : > { %v7225_v17 = vpop.f32.mrf.mxu0 }
 0x287   : > { %10235 = vst [vmem:[#allocation20_spill] sm:$0xff] %v7225_v17 }
 0x29c   : > { %v954_v56 = vpop.xlane.xlu1 %953  ;;  %v948_v10 = vpop.xlane.xlu0 %947 }
 0x29d   : > { %v1098_v3 = vmul.f32 %v954_v56, %v6514_v20  ;;  %v1096_v38 = vmul.f32 %v948_v10, %v6514_v20 }
 0x29f   : > { %v7223_v5 = vadd.f32 1e-05, %v1098_v3  ;;  %v1160_v51 = vadd.f32 1e-05, %v1096_v38  ;;  %v603_v3 = vsel %vm491_vm0, %v7253_v13, 0.0  ;;  %v597_v38 = vsel %vm491_vm0, %v7256_v54, 0.0 }
 0x2a1   : > { %6007 = vrsqrt.f32 %v7223_v5  ;;  %vm1419_vm6 = vweird.f32 %v1160_v51  ;;  %vm1439_vm8 = vweird.f32 %v7223_v5 }
 0x2a2   : > { %6009 = vrsqrt.f32 %v1160_v51 }
 0x2a4   : > { %v584_v12 = vpop.xlane.xlu1 %583  ;;  %v578_v18 = vpop.xlane.xlu0 %577 }
 0x2a5   : > { %v721_v25 = vmul.f32 %v6514_v20, %v584_v12  ;;  %v951_v19 = vpop.xlane.xlu2 %950  ;;  %v719_v23 = vmul.f32 %v6514_v20, %v578_v18 }
 0x2a6   : > { %v1097_v36 = vmul.f32 %v951_v19, %v6514_v20 }
 0x2a7   : > { %v7231_v32 = vpop.eup %6007  ;;  %v7234_v4 = vsub.f32 %v7032_v41, %v721_v25  ;;  %v7237_v44 = vsub.f32 %v7029_v1, %v719_v23  ;;  %v7248_v41 = vpop.f32.mrf.mxu0 }
 0x2a8   : > { %v6010_v43 = vpop.eup %6009  ;;  %v7239_v6 = vadd.f32 1e-05, %v1097_v36  ;;  %v1434_v24 = vmul.f32 %v7231_v32, %v7223_v5  ;;  %10236 = vst [vmem:[#allocation21_spill] sm:$0xff] %v7248_v41  ;;  %vm1440_vm10 = vweird.f32 %v7231_v32 }
 0x2a9   : > { %v1414_v62 = vmul.f32 %v6010_v43, %v1160_v51  ;;  %v849_v63 = vmul.f32 %v7234_v4, %v7234_v4  ;;  %v847_v15 = vmul.f32 %v7237_v44, %v7237_v44  ;;  %vm1420_vm5 = vweird.f32 %v6010_v43  ;;  %vm7332_vm13 = vmor %vm1439_vm8, %vm1440_vm10 }
 0x2aa   : > { %6011 = vrsqrt.f32 %v7239_v6  ;;  %v1435_v60 = vmul.f32 %v7231_v32, %v1434_v24  ;;  %vm1421_vm7 = vmor %vm1419_vm6, %vm1420_vm5  ;;  %vm1429_vm11 = vweird.f32 %v7239_v6 }
 0x2ab   : > { %v1415_v1 = vmul.f32 %v6010_v43, %v1414_v62  ;;  %v973_v22 = vsel %vm491_vm0, %v849_v63, 0.0  ;;  %v967_v0 = vsel %vm491_vm0, %v847_v15, 0.0 }
 0x2ac   : > { %974 = vadd.xlane.f32.xlu0 %v973_v22  ;;  %968 = vadd.xlane.f32.xlu2 %v967_v0  ;;  %v957_v7 = vpop.xlane.xlu0 %956  ;;  %v963_v31 = vpop.xlane.xlu1 %962  ;;  %v1436_v25 = vmul.f32 0.5, %v1435_v60  ;;  %v7292_v60 = vld [vmem:[%s6495_s14 + $0x120] sm:$0xff] }
 0x2ad   : > { %v1416_v2 = vmul.f32 0.5, %v1415_v1  ;;  %v581_v46 = vpop.xlane.xlu2 %580  ;;  %v1099_v55 = vmul.f32 %v957_v7, %v6514_v20  ;;  %v1101_v18 = vmul.f32 %v963_v31, %v6514_v20 }
 0x2ae   : > { %v720_v27 = vmul.f32 %v6514_v20, %v581_v46  ;;  %v1437_v1 = vsub.f32 1.5, %v1436_v25 }
 0x2af   : > { %v1417_v14 = vsub.f32 1.5, %v1416_v2  ;;  %v7266_v35 = vadd.f32 1e-05, %v1099_v55  ;;  %v7283_v15 = vadd.f32 1e-05, %v1101_v18  ;;  %v600_v18 = vsel %vm491_vm0, %v7292_v60, 0.0 }
 0x2b0   : > { %v7261_v56 = vpop.eup %6011  ;;  %v7264_v10 = vsub.f32 %v7059_v11, %v720_v27  ;;  %v7304_v55 = vld [vmem:[%s10209_s4 + $0x1] ss:$0 sm:$0xff] }
 0x2b1   : > { %v1418_v47 = vmul.f32 %v6010_v43, %v1417_v14  ;;  %v1424_v12 = vmul.f32 %v7261_v56, %v7239_v6  ;;  %6013 = vrsqrt.f32 %v7266_v35  ;;  %vm1430_vm9 = vweird.f32 %v7261_v56 }
 0x2b2   : > { %v848_v11 = vmul.f32 %v7264_v10, %v7264_v10  ;;  %6015 = vrsqrt.f32 %v7283_v15  ;;  %vm7317_vm12 = vmor %vm1429_vm11, %vm1430_vm9  ;;  %vm1449_vm15 = vweird.f32 %v7266_v35  ;;  %vm1469_vm6 = vweird.f32 %v7283_v15 }
 0x2b3   : > { %v1425_v19 = vmul.f32 %v7261_v56, %v1424_v12  ;;  %v7279_v23 = vpop.f32.mrf.mxu0  ;;  %v1422_v36 = vsel %vm1421_vm7, %v6010_v43, %v1418_v47 }
 0x2b4   : > { %10237 = vst [vmem:[#allocation22_spill] sm:$0xff] %v7279_v23  ;;  %604 = vadd.xlane.f32.xlu0 %v603_v3  ;;  %v970_v51 = vsel %vm491_vm0, %v848_v11, 0.0  ;;  %598 = vadd.xlane.f32.xlu2 %v597_v38  ;;  %v1864_v62 = vmul.f32 %v1422_v36, %v7005_v61  ;;  %v587_v24 = vpop.xlane.xlu0 %586  ;;  %v593_v22 = vpop.xlane.xlu1 %592 }
 0x2b5   : > { %v1426_v63 = vmul.f32 0.5, %v1425_v19  ;;  %971 = vadd.xlane.f32.xlu1 %v970_v51  ;;  %v960_v0 = vpop.xlane.xlu2 %959  ;;  %v722_v2 = vmul.f32 %v6514_v20, %v587_v24  ;;  %v724_v7 = vmul.f32 %v6514_v20, %v593_v22 }
 0x2b6   : > { %v1929_v43 = vmul.f32 %v7186_v50, %v1864_v62  ;;  %v1100_v61 = vmul.f32 %v960_v0, %v6514_v20 }
 0x2b7   : > { %v1427_v46 = vsub.f32 1.5, %v1426_v63  ;;  %v7294_v31 = vpop.eup %6013  ;;  %v7299_v27 = vsub.f32 %v7106_v53, %v722_v2  ;;  %v7312_v47 = vsub.f32 %v7113_v28, %v724_v7  ;;  %v1438_v53 = vmul.f32 %v7231_v32, %v1437_v1 }
 0x2b8   : > { %v1994_v14 = vadd.f32 %v7304_v55, %v1929_v43  ;;  %v1444_v38 = vmul.f32 %v7294_v31, %v7266_v35  ;;  %v7321_v12 = vadd.f32 1e-05, %v1100_v61  ;;  %v7354_v2 = vpop.eup %6015  ;;  %vm1450_vm1 = vweird.f32 %v7294_v31 }
 0x2b9   : > { %v1428_v3 = vmul.f32 %v7261_v56, %v1427_v46  ;;  %v850_v25 = vmul.f32 %v7299_v27, %v7299_v27  ;;  %v852_v19 = vmul.f32 %v7312_v47, %v7312_v47  ;;  %v1442_v0 = vsel %vm7332_vm13, %v7231_v32, %v1438_v53  ;;  %vm7381_vm2 = vmor %vm1449_vm15, %vm1450_vm1 }
 0x2ba   : > { %5428 = vmatmul.msk.f32.gmra.mxu0 %vm491_vm0, %v1994_v14  ;;  %v1445_v11 = vmul.f32 %v7294_v31, %v1444_v38  ;;  %6017 = vrsqrt.f32 %v7321_v12  ;;  %v7371_v38 = vld [vmem:[%s6495_s14 + $0x140] sm:$0xff]  ;;  %v1464_v6 = vmul.f32 %v7354_v2, %v7283_v15  ;;  %vm1459_vm3 = vweird.f32 %v7321_v12 }
 0x2bb   : > { %v1432_v36 = vsel %vm7317_vm12, %v7261_v56, %v1428_v3  ;;  %v976_v51 = vsel %vm491_vm0, %v850_v25, 0.0  ;;  %v982_v63 = vsel %vm491_vm0, %v852_v19, 0.0  ;;  %v1866_v3 = vmul.f32 %v1442_v0, %v7008_v26  ;;  %v7405_v0 = vld [vmem:[%s6495_s14 + $0x138] sm:$0xff] }
 0x2bc   : > { %v1446_v62 = vmul.f32 0.5, %v1445_v11  ;;  %v7344_v5 = vpop.f32.mrf.mxu0  ;;  %977 = vadd.xlane.f32.xlu2 %v976_v51  ;;  %v966_v24 = vpop.xlane.xlu0 %965  ;;  %v1865_v1 = vmul.f32 %v1432_v36, %v7037_v49  ;;  %983 = vadd.xlane.f32.xlu0 %v982_v63  ;;  %v7359_v49 = vld [vmem:[%s6495_s14 + $0x130] sm:$0xff]  ;;  %v612_v28 = vsel %vm491_vm0, %v7371_v38, 0.0  ;;  %vm1470_vm7 = vweird.f32 %v7354_v2 }
 0x2bd   : > { %10242 = vst [vmem:[#allocation23_spill] sm:$0xff] %v7344_v5  ;;  %601 = vadd.xlane.f32.xlu1 %v600_v18  ;;  %5475 = vmatpush.xpose.msk.msrb.mxu2 %vm2454_vm14, %v7344_v5  ;;  %v590_v56 = vpop.xlane.xlu2 %589  ;;  %v1102_v22 = vmul.f32 %v966_v24, %v6514_v20  ;;  %v1931_v51 = vmul.f32 %v7186_v50, %v1866_v3  ;;  %vm1471_vm8 = vmor %vm1469_vm6, %vm1470_vm7 }
 0x2be   : > { %v1447_v43 = vsub.f32 1.5, %v1446_v62  ;;  %v723_v46 = vmul.f32 %v6514_v20, %v590_v56  ;;  %v1930_v7 = vmul.f32 %v7186_v50, %v1865_v1  ;;  %v1465_v62 = vmul.f32 %v7354_v2, %v1464_v6 }
 0x2bf   : > { %v7363_v61 = vadd.f32 1e-05, %v1102_v22 }
 0x2c0   : > { %v7366_v14 = vsub.f32 %v7150_v48, %v723_v46  ;;  %v1995_v32 = vadd.f32 %v7304_v55, %v1930_v7  ;;  %v6018_v53 = vpop.eup %6017  ;;  %v1448_v18 = vmul.f32 %v7294_v31, %v1447_v43  ;;  %v606_v48 = vsel %vm491_vm0, %v7359_v49, 0.0 }
 0x2c1   : > { %6019 = vrsqrt.f32 %v7363_v61  ;;  %5476 = vmatpush.xpose.msk.msrb.mxu2 %vm2454_vm14, %v7279_v23  ;;  %v1454_v26 = vmul.f32 %v6018_v53, %v7321_v12  ;;  %vm1460_vm4 = vweird.f32 %v6018_v53  ;;  %v1996_v46 = vadd.f32 %v7304_v55, %v1931_v51 }
 0x2c2   : > { %5429 = vmatmul.msk.f32.gmra.mxu0 %vm491_vm0, %v1995_v32  ;;  %v851_v25 = vmul.f32 %v7366_v14, %v7366_v14  ;;  %v1452_v63 = vsel %vm7381_vm2, %v7294_v31, %v1448_v18  ;;  %v1466_v7 = vmul.f32 0.5, %v1465_v62  ;;  %vm1461_vm5 = vmor %vm1459_vm3, %vm1460_vm4  ;;  %vm1479_vm9 = vweird.f32 %v7363_v61 }
 0x2c3   : > { %v1455_v11 = vmul.f32 %v6018_v53, %v1454_v26  ;;  %v1867_v43 = vmul.f32 %v1452_v63, %v7069_v33  ;;  %v609_v33 = vsel %vm491_vm0, %v7405_v0, 0.0  ;;  %v7422_v26 = vld [vmem:[%s6495_s14 + $0x148] sm:$0xff] }
 0x2c4   : > { %v979_v19 = vsel %vm491_vm0, %v851_v25, 0.0  ;;  %607 = vadd.xlane.f32.xlu2 %v606_v48  ;;  %v596_v36 = vpop.xlane.xlu0 %595  ;;  %613 = vadd.xlane.f32.xlu0 %v612_v28  ;;  %v1467_v18 = vsub.f32 1.5, %v1466_v7 }
 0x2c5   : > { %5477 = vmatpush.xpose.msk.msrb.mxu2 %vm2454_vm14, %v7248_v41  ;;  %980 = vadd.xlane.f32.xlu1 %v979_v19  ;;  %v725_v24 = vmul.f32 %v6514_v20, %v596_v36  ;;  %v1456_v1 = vmul.f32 0.5, %v1455_v11  ;;  %v1932_v6 = vmul.f32 %v7186_v50, %v1867_v43 }
 0x2c6   : > { %v1468_v11 = vmul.f32 %v7354_v2, %v1467_v18 }
 0x2c7   : > { %v6020_v56 = vpop.eup %6019  ;;  %v7402_v22 = vsub.f32 %v7165_v34, %v725_v24  ;;  %v1457_v31 = vsub.f32 1.5, %v1456_v1  ;;  %v1997_v28 = vadd.f32 %v7304_v55, %v1932_v6 }
 0x2c8   : > { %v1474_v32 = vmul.f32 %v6020_v56, %v7363_v61  ;;  %v1472_v36 = vsel %vm1471_vm8, %v7354_v2, %v1468_v11  ;;  %vm1480_vm10 = vweird.f32 %v6020_v56 }
 0x2c9   : > { %5478 = vmatpush.xpose.msk.msrb.mxu2 %vm2454_vm14, %v7225_v17  ;;  %v853_v12 = vmul.f32 %v7402_v22, %v7402_v22  ;;  %v1458_v3 = vmul.f32 %v6018_v53, %v1457_v31  ;;  %v1869_v51 = vmul.f32 %v1472_v36, %v7075_v52  ;;  %vm1481_vm11 = vmor %vm1479_vm9, %vm1480_vm10 }
 0x2ca   : > { %5430 = vmatmul.msk.f32.gmra.mxu0 %vm491_vm0, %v1996_v46  ;;  %v1475_v35 = vmul.f32 %v6020_v56, %v1474_v32 }
 0x2cb   : > { %v985_v34 = vsel %vm491_vm0, %v853_v12, 0.0  ;;  %v1462_v48 = vsel %vm1461_vm5, %v6018_v53, %v1458_v3  ;;  %v615_v53 = vsel %vm491_vm0, %v7422_v26, 0.0  ;;  %v1934_v2 = vmul.f32 %v7186_v50, %v1869_v51 }
 0x2cc   : > { %986 = vadd.xlane.f32.xlu2 %v985_v34  ;;  %v1868_v25 = vmul.f32 %v1462_v48, %v7116_v16  ;;  %v1476_v19 = vmul.f32 0.5, %v1475_v35 }
 0x2cd   : > { %5479 = vmatpush.xpose.msk.msrb.mxu2 %vm2454_vm14, %v7207_v21  ;;  %610 = vadd.xlane.f32.xlu1 %v609_v33  ;;  %v1999_v1 = vadd.f32 %v7304_v55, %v1934_v2 }
 0x2ce   : > { %v1933_v15 = vmul.f32 %v7186_v50, %v1868_v25  ;;  %v1477_v16 = vsub.f32 1.5, %v1476_v19 }
 0x2d0   : > { %v1998_v62 = vadd.f32 %v7304_v55, %v1933_v15  ;;  %v1478_v63 = vmul.f32 %v6020_v56, %v1477_v16 }
 0x2d1   : > { %5480 = vmatpush.xpose.msk.msrb.mxu2 %vm2454_vm14, %v7205_v30 }
 0x2d2   : > { %5431 = vmatmul.msk.f32.gmra.mxu0 %vm491_vm0, %v1997_v28  ;;  %v1482_v24 = vsel %vm1481_vm11, %v6020_v56, %v1478_v63 }
 0x2d3   : > { %v1870_v61 = vmul.f32 %v1482_v24, %v7147_v59 }
 0x2d4   : > { %616 = vadd.xlane.f32.xlu2 %v615_v53 }
 0x2d5   : > { %5481 = vmatpush.xpose.msk.msrb.mxu2 %vm2454_vm14, %v7203_v40  ;;  %v1935_v52 = vmul.f32 %v7186_v50, %v1870_v61 }
 0x2d7   : > { %v2000_v43 = vadd.f32 %v7304_v55, %v1935_v52 }
 0x2d9   : > { %5482 = vmatpush.xpose.msk.msrb.mxu2 %vm2454_vm14, %v7201_v37 }
 0x2da   : > { %5432 = vmatmul.msk.f32.gmra.mxu0 %vm491_vm0, %v1998_v62 }
 0x2dd   : > { %5483 = vmatpush.xpose.msk.msrb.mxu2 %vm2454_vm14, %v7199_v57 }
 0x2e1   : > { %5484 = vmatpush.xpose.msk.msrb.mxu2 %vm2454_vm14, %v7196_v8 }
 0x2e2   : > { %5433 = vmatmul.msk.f32.gmra.mxu0 %vm491_vm0, %v1999_v1 }
 0x2e5   : > { %5485 = vmatpush.xpose.msk.msrb.mxu2 %vm2454_vm14, %v7189_v42 }
 0x2e9   : > { %5486 = vmatpush.xpose.msk.msrb.mxu2 %vm2454_vm14, %v7176_v29 }
 0x2ea   : > { %5434 = vmatmul.msk.f32.gmra.mxu0 %vm491_vm0, %v2000_v43  ;;  %v7498_v43 = vld [vmem:[%s6495_s14 + $0x150] sm:$0xff] }
 0x2ed   : > { %5487 = vmatpush.xpose.msk.msrb.mxu2 %vm2454_vm14, %v7160_v39 }
 0x2f1   : > { %5488 = vmatpush.xpose.msk.msrb.mxu2 %vm2454_vm14, %v7120_v9 }
 0x2f5   : > { %5489 = vmatpush.xpose.msk.msrb.mxu2 %vm2454_vm14, %v7063_v58 }
 0x2f9   : > { %5490 = vmatpush.xpose.msk.msrb.mxu2 %vm2454_vm14, %v7023_v45 }
 0x31f   : > { %v969_v59 = vpop.xlane.xlu2 %968  ;;  %v975_v56 = vpop.xlane.xlu0 %974 }
 0x320   : > { %v1103_v31 = vmul.f32 %v969_v59, %v6514_v20  ;;  %v1105_v46 = vmul.f32 %v975_v56, %v6514_v20  ;;  %v7501_v59 = vld [vmem:[%s6495_s14 + $0x160] sm:$0xff] }
 0x322   : > { %v1167_v7 = vadd.f32 1e-05, %v1103_v31  ;;  %v7469_v32 = vadd.f32 1e-05, %v1105_v46 }
 0x324   : > { %6021 = vrsqrt.f32 %v1167_v7  ;;  %vm1489_vm13 = vweird.f32 %v1167_v7  ;;  %vm1509_vm1 = vweird.f32 %v7469_v32 }
 0x325   : > { %6023 = vrsqrt.f32 %v7469_v32 }
 0x327   : > { %v599_v12 = vpop.xlane.xlu2 %598  ;;  %v605_v3 = vpop.xlane.xlu0 %604 }
 0x328   : > { %v972_v33 = vpop.xlane.xlu1 %971  ;;  %v726_v34 = vmul.f32 %v6514_v20, %v599_v12  ;;  %v728_v6 = vmul.f32 %v6514_v20, %v605_v3 }
 0x329   : > { %v1104_v18 = vmul.f32 %v972_v33, %v6514_v20 }
 0x32a   : > { %v6022_v48 = vpop.eup %6021  ;;  %v7476_v35 = vsub.f32 %v7256_v54, %v726_v34  ;;  %v7479_v25 = vsub.f32 %v7253_v13, %v728_v6  ;;  %v618_v6 = vsel %vm491_vm0, %v7498_v43, 0.0 }
 0x32b   : > { %v7481_v28 = vpop.eup %6023  ;;  %v1484_v11 = vmul.f32 %v6022_v48, %v1167_v7  ;;  %v7483_v19 = vadd.f32 1e-05, %v1104_v18  ;;  %vm1490_vm12 = vweird.f32 %v6022_v48  ;;  %v624_v7 = vsel %vm491_vm0, %v7501_v59, 0.0 }
 0x32c   : > { %v1504_v53 = vmul.f32 %v7481_v28, %v7469_v32  ;;  %v854_v15 = vmul.f32 %v7476_v35, %v7476_v35  ;;  %v856_v36 = vmul.f32 %v7479_v25, %v7479_v25  ;;  %vm1491_vm15 = vmor %vm1489_vm13, %vm1490_vm12  ;;  %vm1510_vm2 = vweird.f32 %v7481_v28 }
 0x32d   : > { %v1485_v54 = vmul.f32 %v6022_v48, %v1484_v11  ;;  %6025 = vrsqrt.f32 %v7483_v19  ;;  %vm1499_vm4 = vweird.f32 %v7483_v19  ;;  %vm7545_vm5 = vmor %vm1509_vm1, %vm1510_vm2 }
 0x32e   : > { %v988_v13 = vsel %vm491_vm0, %v854_v15, 0.0  ;;  %v994_v16 = vsel %vm491_vm0, %v856_v36, 0.0  ;;  %v1505_v62 = vmul.f32 %v7481_v28, %v1504_v53 }
 0x32f   : > { %v1486_v51 = vmul.f32 0.5, %v1485_v54  ;;  %989 = vadd.xlane.f32.xlu1 %v988_v13  ;;  %995 = vadd.xlane.f32.xlu2 %v994_v16  ;;  %v978_v2 = vpop.xlane.xlu2 %977  ;;  %v984_v52 = vpop.xlane.xlu0 %983 }
 0x330   : > { %v602_v63 = vpop.xlane.xlu1 %601  ;;  %v1106_v1 = vmul.f32 %v978_v2, %v6514_v20  ;;  %v1108_v3 = vmul.f32 %v984_v52, %v6514_v20  ;;  %v1506_v33 = vmul.f32 0.5, %v1505_v62 }
 0x331   : > { %v1487_v24 = vsub.f32 1.5, %v1486_v51  ;;  %v727_v61 = vmul.f32 %v6514_v20, %v602_v63  ;;  %v7523_v51 = vld [vmem:[%s6495_s14 + $0x168] sm:$0xff] }
 0x332   : > { %v7506_v12 = vadd.f32 1e-05, %v1106_v1  ;;  %v7518_v15 = vadd.f32 1e-05, %v1108_v3  ;;  %v1507_v54 = vsub.f32 1.5, %v1506_v33 }
 0x333   : > { %v6026_v56 = vpop.eup %6025  ;;  %v1488_v31 = vmul.f32 %v6022_v48, %v1487_v24  ;;  %v7504_v46 = vsub.f32 %v7292_v60, %v727_v61  ;;  %v7531_v61 = vld [vmem:[%s6495_s14 + $0x158] sm:$0xff] }
 0x334   : > { %v1494_v34 = vmul.f32 %v6026_v56, %v7483_v19  ;;  %6027 = vrsqrt.f32 %v7506_v12  ;;  %vm1500_vm3 = vweird.f32 %v6026_v56  ;;  %v1508_v3 = vmul.f32 %v7481_v28, %v1507_v54 }
 0x335   : > { %v1492_v18 = vsel %vm1491_vm15, %v6022_v48, %v1488_v31  ;;  %v855_v60 = vmul.f32 %v7504_v46, %v7504_v46  ;;  %6029 = vrsqrt.f32 %v7518_v15  ;;  %v627_v31 = vsel %vm491_vm0, %v7523_v51, 0.0  ;;  %vm1501_vm6 = vmor %vm1499_vm4, %vm1500_vm3 }
 0x336   : > { %v1871_v11 = vmul.f32 %v1492_v18, %v7237_v44  ;;  %v1495_v53 = vmul.f32 %v6026_v56, %v1494_v34  ;;  %vm1519_vm7 = vweird.f32 %v7506_v12  ;;  %vm1539_vm13 = vweird.f32 %v7518_v15 }
 0x337   : > { %v991_v36 = vsel %vm491_vm0, %v855_v60, 0.0  ;;  %619 = vadd.xlane.f32.xlu1 %v618_v6  ;;  %625 = vadd.xlane.f32.xlu2 %v624_v7  ;;  %v608_v16 = vpop.xlane.xlu2 %607 }
 0x338   : > { %v1496_v13 = vmul.f32 0.5, %v1495_v53  ;;  %992 = vadd.xlane.f32.xlu0 %v991_v36  ;;  %v1936_v48 = vmul.f32 %v7186_v50, %v1871_v11  ;;  %v981_v44 = vpop.xlane.xlu1 %980  ;;  %v729_v62 = vmul.f32 %v6514_v20, %v608_v16  ;;  %v614_v53 = vpop.xlane.xlu0 %613  ;;  %v1512_v36 = vsel %vm7545_vm5, %v7481_v28, %v1508_v3 }
 0x339   : > { %v1107_v2 = vmul.f32 %v981_v44, %v6514_v20  ;;  %v7572_v44 = vld [vmem:[%s6495_s14 + $0x170] sm:$0xff] }
 0x33a   : > { %v1497_v63 = vsub.f32 1.5, %v1496_v13  ;;  %v2001_v24 = vadd.f32 %v7304_v55, %v1936_v48  ;;  %v7533_v1 = vpop.eup %6027  ;;  %v7538_v52 = vsub.f32 %v7359_v49, %v729_v62  ;;  %v621_v49 = vsel %vm491_vm0, %v7531_v61, 0.0 }
 0x33b   : > { %v1514_v19 = vmul.f32 %v7533_v1, %v7506_v12  ;;  %v7551_v6 = vadd.f32 1e-05, %v1107_v2  ;;  %v7566_v13 = vpop.eup %6029  ;;  %vm1520_vm8 = vweird.f32 %v7533_v1  ;;  %v731_v2 = vmul.f32 %v6514_v20, %v614_v53 }
 0x33c   : > { %v1498_v34 = vmul.f32 %v6026_v56, %v1497_v63  ;;  %5435 = vmatmul.msk.f32.gmra.mxu0 %vm491_vm0, %v2001_v24  ;;  %v857_v32 = vmul.f32 %v7538_v52, %v7538_v52  ;;  %v7577_v63 = vld [vmem:[%s6495_s14 + $0x1c0] sm:$0xff]  ;;  %v1873_v24 = vmul.f32 %v1512_v36, %v7234_v4  ;;  %vm7596_vm9 = vmor %vm1519_vm7, %vm1520_vm8  ;;  %vm1540_vm15 = vweird.f32 %v7566_v13 }
 0x33d   : > { %v1515_v18 = vmul.f32 %v7533_v1, %v1514_v19  ;;  %6031 = vrsqrt.f32 %v7551_v6  ;;  %v1534_v19 = vmul.f32 %v7566_v13, %v7518_v15  ;;  %v7608_v12 = vsub.f32 %v7371_v38, %v731_v2  ;;  %v7621_v38 = vld [vmem:[%s6495_s14 + $0x1c8] sm:$0xff]  ;;  %vm1541_vm1 = vmor %vm1539_vm13, %vm1540_vm15 }
 0x33e   : > { %v1502_v7 = vsel %vm1501_vm6, %v6026_v56, %v1498_v34  ;;  %v997_v11 = vsel %vm491_vm0, %v857_v32, 0.0  ;;  %v630_v32 = vsel %vm491_vm0, %v7572_v44, 0.0  ;;  %v1938_v53 = vmul.f32 %v7186_v50, %v1873_v24 }
 0x33f   : > { %v1872_v60 = vmul.f32 %v1502_v7, %v7264_v10  ;;  %628 = vadd.xlane.f32.xlu2 %v627_v31  ;;  %v1516_v54 = vmul.f32 0.5, %v1515_v18  ;;  %998 = vadd.xlane.f32.xlu1 %v997_v11  ;;  %v987_v56 = vpop.xlane.xlu2 %986  ;;  %v7592_v7 = vpop.f32.mrf.mxu0  ;;  %vm1529_vm10 = vweird.f32 %v7551_v6 }
 0x340   : > { %622 = vadd.xlane.f32.xlu0 %v621_v49  ;;  %v611_v16 = vpop.xlane.xlu1 %610  ;;  %v1109_v10 = vmul.f32 %v987_v56, %v6514_v20  ;;  %10247 = vst [vmem:[#allocation24_spill] sm:$0xff] %v7592_v7 }
 0x341   : > { %v1937_v48 = vmul.f32 %v7186_v50, %v1872_v60  ;;  %v1517_v62 = vsub.f32 1.5, %v1516_v54  ;;  %v730_v28 = vmul.f32 %v6514_v20, %v611_v16  ;;  %v1535_v54 = vmul.f32 %v7566_v13, %v1534_v19 }
 0x342   : > { %v7581_v31 = vadd.f32 1e-05, %v1109_v10 }
 0x343   : > { %v2002_v3 = vadd.f32 %v7304_v55, %v1937_v48  ;;  %v6032_v33 = vpop.eup %6031  ;;  %v1518_v34 = vmul.f32 %v7533_v1, %v1517_v62  ;;  %v7588_v49 = vsub.f32 %v7405_v0, %v730_v28  ;;  %v660_v0 = vsel %vm491_vm0, %v7577_v63, 0.0  ;;  %v7617_v48 = vld [vmem:[%s6495_s14 + $0x178] sm:$0xff] }
 0x344   : > { %v1524_v18 = vmul.f32 %v6032_v33, %v7551_v6  ;;  %6033 = vrsqrt.f32 %v7581_v31  ;;  %vm1530_vm11 = vweird.f32 %v6032_v33  ;;  %v633_v6 = vsel %vm491_vm0, %v7617_v48, 0.0 }
 0x345   : > { %5436 = vmatmul.msk.f32.gmra.mxu0 %vm491_vm0, %v2002_v3  ;;  %v858_v60 = vmul.f32 %v7588_v49, %v7588_v49  ;;  %v1522_v36 = vsel %vm7596_vm9, %v7533_v1, %v1518_v34  ;;  %v859_v1 = vmul.f32 %v7608_v12, %v7608_v12  ;;  %v2003_v3 = vadd.f32 %v7304_v55, %v1938_v53  ;;  %vm7631_vm12 = vmor %vm1529_vm10, %vm1530_vm11 }
 0x346   : > { %v1525_v11 = vmul.f32 %v6032_v33, %v1524_v18  ;;  %v1874_v2 = vmul.f32 %v1522_v36, %v7299_v27  ;;  %v1536_v34 = vmul.f32 0.5, %v1535_v54  ;;  %v663_v27 = vsel %vm491_vm0, %v7621_v38, 0.0 }
 0x347   : > { %631 = vadd.xlane.f32.xlu2 %v630_v32  ;;  %v1000_v56 = vsel %vm491_vm0, %v858_v60, 0.0  ;;  %v617_v16 = vpop.xlane.xlu2 %616  ;;  %v7642_v60 = vpop.f32.mrf.mxu0  ;;  %vm1549_vm2 = vweird.f32 %v7581_v31 }
 0x348   : > { %661 = vadd.xlane.f32.xlu0 %v660_v0  ;;  %v1526_v10 = vmul.f32 0.5, %v1525_v11  ;;  %1001 = vadd.xlane.f32.xlu1 %v1000_v56  ;;  %v732_v62 = vmul.f32 %v6514_v20, %v617_v16  ;;  %v1003_v0 = vsel %vm491_vm0, %v859_v1, 0.0  ;;  %10252 = vst [vmem:[#allocation25_spill] sm:$0xff] %v7642_v60  ;;  %v1939_v11 = vmul.f32 %v7186_v50, %v1874_v2  ;;  %v7648_v56 = vld [vmem:[%s6495_s14 + $0x180] sm:$0xff]  ;;  %v7655_v16 = vld [vmem:[%s6495_s14 + $0x1d0] sm:$0xff] }
 0x349   : > { %v1537_v53 = vsub.f32 1.5, %v1536_v34  ;;  %v636_v2 = vsel %vm491_vm0, %v7648_v56, 0.0  ;;  %v666_v15 = vsel %vm491_vm0, %v7655_v16, 0.0 }
 0x34a   : > { %v6034_v28 = vpop.eup %6033  ;;  %v1527_v24 = vsub.f32 1.5, %v1526_v10  ;;  %v7639_v18 = vsub.f32 %v7422_v26, %v732_v62  ;;  %v2004_v62 = vadd.f32 %v7304_v55, %v1939_v11 }
 0x34b   : > { %v1544_v19 = vmul.f32 %v6034_v28, %v7581_v31  ;;  %vm1550_vm3 = vweird.f32 %v6034_v28 }
 0x34c   : > { %v1528_v32 = vmul.f32 %v6032_v33, %v1527_v24  ;;  %v860_v26 = vmul.f32 %v7639_v18, %v7639_v18  ;;  %vm1551_vm4 = vmor %vm1549_vm2, %vm1550_vm3 }
 0x34d   : > { %5437 = vmatmul.msk.f32.gmra.mxu0 %vm491_vm0, %v2003_v3  ;;  %v1545_v54 = vmul.f32 %v6034_v28, %v1544_v19 }
 0x34e   : > { %v1532_v36 = vsel %vm7631_vm12, %v6032_v33, %v1528_v32  ;;  %v1538_v33 = vmul.f32 %v7566_v13, %v1537_v53  ;;  %v1006_v24 = vsel %vm491_vm0, %v860_v26, 0.0  ;;  %v7675_v32 = vld [vmem:[%s6495_s14 + $0x1d8] sm:$0xff] }
 0x34f   : > { %634 = vadd.xlane.f32.xlu2 %v633_v6  ;;  %v1875_v10 = vmul.f32 %v1532_v36, %v7366_v14  ;;  %v1546_v1 = vmul.f32 0.5, %v1545_v54  ;;  %v7668_v19 = vpop.f32.mrf.mxu0  ;;  %v7671_v6 = vld [vmem:[%s6495_s14 + $0x188] sm:$0xff]  ;;  %v669_v11 = vsel %vm491_vm0, %v7675_v32, 0.0 }
 0x350   : > { %664 = vadd.xlane.f32.xlu0 %v663_v27  ;;  %1004 = vadd.xlane.f32.xlu1 %v1003_v0  ;;  %v1542_v3 = vsel %vm1541_vm1, %v7566_v13, %v1538_v33  ;;  %10253 = vst [vmem:[#allocation26_spill] sm:$0xff] %v7668_v19  ;;  %v639_v13 = vsel %vm491_vm0, %v7671_v6, 0.0  ;;  %v7697_v33 = vld [vmem:[%s6495_s14 + $0x1e8] sm:$0xff] }
 0x351   : > { %v1940_v14 = vmul.f32 %v7186_v50, %v1875_v10  ;;  %v1547_v34 = vsub.f32 1.5, %v1546_v1  ;;  %v1876_v4 = vmul.f32 %v1542_v3, %v7312_v47  ;;  %v7686_v47 = vld [vmem:[%s6495_s14 + $0x1e0] sm:$0xff] }
 0x352   : > { %v672_v10 = vsel %vm491_vm0, %v7686_v47, 0.0 }
 0x353   : > { %v2005_v27 = vadd.f32 %v7304_v55, %v1940_v14  ;;  %v1548_v0 = vmul.f32 %v6034_v28, %v1547_v34  ;;  %v1941_v31 = vmul.f32 %v7186_v50, %v1876_v4 }
 0x355   : > { %5438 = vmatmul.msk.f32.gmra.mxu0 %vm491_vm0, %v2004_v62  ;;  %v1552_v53 = vsel %vm1551_vm4, %v6034_v28, %v1548_v0  ;;  %v2006_v26 = vadd.f32 %v7304_v55, %v1941_v31 }
 0x356   : > { %v1877_v54 = vmul.f32 %v1552_v53, %v7402_v22  ;;  %v675_v22 = vsel %vm491_vm0, %v7697_v33, 0.0 }
 0x357   : > { %637 = vadd.xlane.f32.xlu2 %v636_v2  ;;  %v7688_v36 = vpop.f32.mrf.mxu0  ;;  %v7706_v2 = vld [vmem:[%s6495_s14 + $0x190] sm:$0xff] }
 0x358   : > { %667 = vadd.xlane.f32.xlu0 %v666_v15  ;;  %1007 = vadd.xlane.f32.xlu1 %v1006_v24  ;;  %v1942_v62 = vmul.f32 %v7186_v50, %v1877_v54  ;;  %v642_v50 = vsel %vm491_vm0, %v7706_v2, 0.0 }
 0x35a   : > { %v2007_v28 = vadd.f32 %v7304_v55, %v1942_v62 }
 0x35d   : > { %5439 = vmatmul.msk.f32.gmra.mxu0 %vm491_vm0, %v2005_v27 }
 0x35f   : > { %640 = vadd.xlane.f32.xlu2 %v639_v13  ;;  %v7700_v1 = vpop.f32.mrf.mxu0 }
 0x360   : > { %670 = vadd.xlane.f32.xlu0 %v669_v11  ;;  %10254 = vst [vmem:[#allocation27_spill] sm:$0xff] %v7700_v1 }
 0x365   : > { %5440 = vmatmul.msk.f32.gmra.mxu0 %vm491_vm0, %v2006_v26 }
 0x367   : > { %v7708_v15 = vpop.f32.mrf.mxu0 }
 0x368   : > { %673 = vadd.xlane.f32.xlu0 %v672_v10  ;;  %10255 = vst [vmem:[#allocation28_spill] sm:$0xff] %v7708_v15 }
 0x36d   : > { %5441 = vmatmul.msk.f32.gmra.mxu0 %vm491_vm0, %v2007_v28 }
 0x36f   : > { %v7712_v24 = vpop.f32.mrf.mxu0 }
 0x370   : > { %676 = vadd.xlane.f32.xlu0 %v675_v22  ;;  %10256 = vst [vmem:[#allocation29_spill] sm:$0xff] %v7712_v24 }
 0x377   : > { %v7714_v14 = vpop.f32.mrf.mxu0 }
 0x378   : > { %643 = vadd.xlane.f32.xlu0 %v642_v50 }
 0x37f   : > { %v7716_v3 = vpop.f32.mrf.mxu0 }
 0x380   : > { %10257 = vst [vmem:[#allocation30_spill] sm:$0xff] %v7716_v3 }
 0x387   : > { %v7718_v34 = vpop.f32.mrf.mxu0 }
 0x388   : > { %10258 = vst [vmem:[#allocation31_spill] sm:$0xff] %v7718_v34 }
 0x38f   : > { %v7724_v53 = vpop.f32.mrf.mxu0 }
 0x390   : > { %10259 = vst [vmem:[#allocation32_spill] sm:$0xff] %v7724_v53 }
 0x3a2   : > { %v990_v4 = vpop.xlane.xlu1 %989  ;;  %v996_v27 = vpop.xlane.xlu2 %995 }
 0x3a3   : > { %v1110_v0 = vmul.f32 %v990_v4, %v6514_v20  ;;  %v1112_v13 = vmul.f32 %v996_v27, %v6514_v20 }
 0x3a5   : > { %v1174_v11 = vadd.f32 1e-05, %v1110_v0  ;;  %v7722_v31 = vadd.f32 1e-05, %v1112_v13 }
 0x3a7   : > { %6035 = vrsqrt.f32 %v1174_v11  ;;  %vm1559_vm6 = vweird.f32 %v1174_v11  ;;  %vm1579_vm8 = vweird.f32 %v7722_v31 }
 0x3a8   : > { %6037 = vrsqrt.f32 %v7722_v31 }
 0x3aa   : > { %v620_v54 = vpop.xlane.xlu1 %619  ;;  %v626_v28 = vpop.xlane.xlu2 %625 }
 0x3ab   : > { %v733_v26 = vmul.f32 %v6514_v20, %v620_v54  ;;  %v993_v10 = vpop.xlane.xlu0 %992  ;;  %v7738_v54 = vpop.f32.mrf.mxu0 }
 0x3ac   : > { %v1111_v62 = vmul.f32 %v993_v10, %v6514_v20  ;;  %10260 = vst [vmem:[#allocation33_spill] sm:$0xff] %v7738_v54 }
 0x3ad   : > { %v6036_v22 = vpop.eup %6035  ;;  %v7730_v50 = vsub.f32 %v7498_v43, %v733_v26 }
 0x3ae   : > { %v7732_v4 = vpop.eup %6037  ;;  %v1554_v27 = vmul.f32 %v6036_v22, %v1174_v11  ;;  %v1175_v0 = vadd.f32 1e-05, %v1111_v62  ;;  %v735_v62 = vmul.f32 %v6514_v20, %v626_v28  ;;  %vm1560_vm5 = vweird.f32 %v6036_v22 }
 0x3af   : > { %v1574_v13 = vmul.f32 %v7732_v4, %v7722_v31  ;;  %v861_v30 = vmul.f32 %v7730_v50, %v7730_v50  ;;  %vm1561_vm7 = vmor %vm1559_vm6, %vm1560_vm5  ;;  %vm1580_vm9 = vweird.f32 %v7732_v4 }
 0x3b0   : > { %v1555_v21 = vmul.f32 %v6036_v22, %v1554_v27  ;;  %6039 = vrsqrt.f32 %v1175_v0  ;;  %vm1569_vm11 = vweird.f32 %v1175_v0  ;;  %vm7782_vm12 = vmor %vm1579_vm8, %vm1580_vm9 }
 0x3b1   : > { %v1009_v10 = vsel %vm491_vm0, %v861_v30, 0.0  ;;  %v1575_v43 = vmul.f32 %v7732_v4, %v1574_v13 }
 0x3b2   : > { %v1556_v8 = vmul.f32 0.5, %v1555_v21  ;;  %1010 = vadd.xlane.f32.xlu1 %v1009_v10  ;;  %v999_v26 = vpop.xlane.xlu1 %998  ;;  %v629_v21 = vpop.xlane.xlu2 %628 }
 0x3b3   : > { %v623_v57 = vpop.xlane.xlu0 %622  ;;  %v1113_v39 = vmul.f32 %v999_v26, %v6514_v20  ;;  %v1576_v13 = vmul.f32 0.5, %v1575_v43  ;;  %v736_v43 = vmul.f32 %v6514_v20, %v629_v21 }
 0x3b4   : > { %v1557_v9 = vsub.f32 1.5, %v1556_v8  ;;  %v734_v58 = vmul.f32 %v6514_v20, %v623_v57  ;;  %v7752_v8 = vsub.f32 %v7501_v59, %v735_v62  ;;  %v7764_v59 = vld [vmem:[%s10209_s4] ss:$0 sm:$0xff] }
 0x3b5   : > { %v7745_v23 = vadd.f32 1e-05, %v1113_v39 }
 0x3b6   : > { %v6040_v27 = vpop.eup %6039  ;;  %v1558_v45 = vmul.f32 %v6036_v22, %v1557_v9  ;;  %v7748_v30 = vsub.f32 %v7531_v61, %v734_v58  ;;  %v1577_v61 = vsub.f32 1.5, %v1576_v13  ;;  %v863_v26 = vmul.f32 %v7752_v8, %v7752_v8 }
 0x3b7   : > { %v1564_v10 = vmul.f32 %v6040_v27, %v1175_v0  ;;  %6041 = vrsqrt.f32 %v7745_v23  ;;  %vm1570_vm10 = vweird.f32 %v6040_v27  ;;  %vm1589_vm15 = vweird.f32 %v7745_v23 }
 0x3b8   : > { %v1562_v5 = vsel %vm1561_vm7, %v6036_v22, %v1558_v45  ;;  %v862_v57 = vmul.f32 %v7748_v30, %v7748_v30  ;;  %vm1571_vm13 = vmor %vm1569_vm11, %vm1570_vm10  ;;  %v1015_v0 = vsel %vm491_vm0, %v863_v26, 0.0 }
 0x3b9   : > { %v1878_v9 = vmul.f32 %v1562_v5, %v7476_v35  ;;  %v1565_v39 = vmul.f32 %v6040_v27, %v1564_v10  ;;  %v7757_v11 = vpop.f32.mrf.mxu0 }
 0x3ba   : > { %10261 = vst [vmem:[#allocation34_spill] sm:$0xff] %v7757_v11  ;;  %v1012_v58 = vsel %vm491_vm0, %v862_v57, 0.0 }
 0x3bb   : > { %v1566_v28 = vmul.f32 0.5, %v1565_v39  ;;  %1013 = vadd.xlane.f32.xlu1 %v1012_v58  ;;  %v662_v45 = vpop.xlane.xlu0 %661  ;;  %v1943_v22 = vmul.f32 %v7764_v59, %v1878_v9  ;;  %v1002_v5 = vpop.xlane.xlu1 %1001  ;;  %v1578_v39 = vmul.f32 %v7732_v4, %v1577_v61 }
 0x3bc   : > { %v747_v35 = vmul.f32 %v6514_v20, %v662_v45  ;;  %v1114_v13 = vmul.f32 %v1002_v5, %v6514_v20  ;;  %v632_v61 = vpop.xlane.xlu2 %631 }
 0x3bd   : > { %v1567_v62 = vsub.f32 1.5, %v1566_v28  ;;  %v2008_v10 = vadd.f32 %v7304_v55, %v1943_v22  ;;  %v7774_v57 = vpop.eup %6041 }
 0x3be   : > { %v7777_v9 = vsub.f32 %v7577_v63, %v747_v35  ;;  %v1584_v28 = vmul.f32 %v7774_v57, %v7745_v23  ;;  %v7788_v45 = vadd.f32 1e-05, %v1114_v13  ;;  %v7792_v63 = vsub.f32 %v7523_v51, %v736_v43 }
 0x3bf   : > { %v1568_v58 = vmul.f32 %v6040_v27, %v1567_v62  ;;  %5442 = vmatmul.msk.f32.gmra.mxu0 %vm491_vm0, %v2008_v10  ;;  %v1582_v51 = vsel %vm7782_vm12, %v7732_v4, %v1578_v39  ;;  %vm1590_vm1 = vweird.f32 %v7774_v57 }
 0x3c0   : > { %v875_v31 = vmul.f32 %v7777_v9, %v7777_v9  ;;  %v1585_v5 = vmul.f32 %v7774_v57, %v1584_v28  ;;  %6043 = vrsqrt.f32 %v7788_v45  ;;  %v737_v28 = vmul.f32 %v6514_v20, %v632_v61  ;;  %vm7827_vm2 = vmor %vm1589_vm15, %vm1590_vm1 }
 0x3c1   : > { %v1572_v22 = vsel %vm1571_vm13, %v6040_v27, %v1568_v58  ;;  %v1880_v39 = vmul.f32 %v1582_v51, %v7479_v25  ;;  %vm1599_vm3 = vweird.f32 %v7788_v45 }
 0x3c2   : > { %v1879_v35 = vmul.f32 %v1572_v22, %v7504_v46  ;;  %v7800_v62 = vpop.f32.mrf.mxu0  ;;  %v1051_v13 = vsel %vm491_vm0, %v875_v31, 0.0  ;;  %v1586_v43 = vmul.f32 0.5, %v1585_v5  ;;  %v7810_v46 = vld [vmem:[%s6495_s14 + $0x1f0] sm:$0xff]  ;;  %v864_v31 = vmul.f32 %v7792_v63, %v7792_v63 }
 0x3c3   : > { %10264 = vst [vmem:[#allocation35_spill] sm:$0xff] %v7800_v62  ;;  %1016 = vadd.xlane.f32.xlu1 %v1015_v0  ;;  %1052 = vadd.xlane.f32.xlu2 %v1051_v13  ;;  %v665_v26 = vpop.xlane.xlu0 %664  ;;  %v1005_v10 = vpop.xlane.xlu1 %1004  ;;  %v678_v13 = vsel %vm491_vm0, %v7810_v46, 0.0  ;;  %v7834_v25 = vsub.f32 %v7572_v44, %v737_v28 }
 0x3c4   : > { %v748_v27 = vmul.f32 %v6514_v20, %v665_v26  ;;  %v1944_v58 = vmul.f32 %v7764_v59, %v1879_v35  ;;  %v1587_v22 = vsub.f32 1.5, %v1586_v43  ;;  %v1115_v4 = vmul.f32 %v1005_v10, %v6514_v20 }
 0x3c6   : > { %v7819_v21 = vsub.f32 %v7621_v38, %v748_v27  ;;  %v2009_v0 = vadd.f32 %v7304_v55, %v1944_v58  ;;  %v6044_v61 = vpop.eup %6043  ;;  %v1588_v5 = vmul.f32 %v7774_v57, %v1587_v22  ;;  %v7823_v35 = vadd.f32 1e-05, %v1115_v4  ;;  %v635_v22 = vpop.xlane.xlu2 %634 }
 0x3c7   : > { %v1594_v43 = vmul.f32 %v6044_v61, %v7788_v45  ;;  %v1018_v38 = vsel %vm491_vm0, %v864_v31, 0.0  ;;  %v1945_v58 = vmul.f32 %v7764_v59, %v1880_v39  ;;  %vm1600_vm4 = vweird.f32 %v6044_v61 }
 0x3c8   : > { %5443 = vmatmul.msk.f32.gmra.mxu0 %vm491_vm0, %v2009_v0  ;;  %v876_v51 = vmul.f32 %v7819_v21, %v7819_v21  ;;  %6045 = vrsqrt.f32 %v7823_v35  ;;  %v1592_v44 = vsel %vm7827_vm2, %v7774_v57, %v1588_v5  ;;  %v865_v0 = vmul.f32 %v7834_v25, %v7834_v25  ;;  %v7854_v57 = vld [vmem:[%s6495_s14 + $0x198] sm:$0xff]  ;;  %vm7863_vm5 = vmor %vm1599_vm3, %vm1600_vm4 }
 0x3c9   : > { %v1595_v26 = vmul.f32 %v6044_v61, %v1594_v43  ;;  %v738_v23 = vmul.f32 %v6514_v20, %v635_v22  ;;  %v1881_v5 = vmul.f32 %v1592_v44, %v7538_v52  ;;  %v645_v52 = vsel %vm491_vm0, %v7854_v57, 0.0 }
 0x3ca   : > { %v7840_v10 = vpop.f32.mrf.mxu0  ;;  %v1054_v27 = vsel %vm491_vm0, %v876_v51, 0.0  ;;  %v7859_v51 = vld [vmem:[%s6495_s14 + $0x1f8] sm:$0xff]  ;;  %v1021_v44 = vsel %vm491_vm0, %v865_v0, 0.0  ;;  %vm1609_vm6 = vweird.f32 %v7823_v35 }
 0x3cb   : > { %10267 = vst [vmem:[#allocation36_spill] sm:$0xff] %v7840_v10  ;;  %679 = vadd.xlane.f32.xlu1 %v678_v13  ;;  %1019 = vadd.xlane.f32.xlu2 %v1018_v38  ;;  %v668_v28 = vpop.xlane.xlu0 %667  ;;  %v1596_v31 = vmul.f32 0.5, %v1595_v26  ;;  %v1008_v4 = vpop.xlane.xlu1 %1007  ;;  %v2010_v38 = vadd.f32 %v7304_v55, %v1945_v58  ;;  %v7876_v55 = vsub.f32 %v7617_v48, %v738_v23  ;;  %v681_v58 = vsel %vm491_vm0, %v7859_v51, 0.0 }
 0x3cc   : > { %1055 = vadd.xlane.f32.xlu0 %v1054_v27  ;;  %v749_v43 = vmul.f32 %v6514_v20, %v668_v28  ;;  %v1116_v39 = vmul.f32 %v1008_v4, %v6514_v20 }
 0x3cd   : > { %v1597_v13 = vsub.f32 1.5, %v1596_v31 }
 0x3ce   : > { %v6046_v26 = vpop.eup %6045  ;;  %v7861_v27 = vadd.f32 1e-05, %v1116_v39  ;;  %v7872_v22 = vsub.f32 %v7655_v16, %v749_v43 }
 0x3cf   : > { %v1598_v28 = vmul.f32 %v6044_v61, %v1597_v13  ;;  %v1604_v4 = vmul.f32 %v6046_v26, %v7823_v35  ;;  %v1946_v13 = vmul.f32 %v7764_v59, %v1881_v5  ;;  %vm1610_vm7 = vweird.f32 %v6046_v26  ;;  %v638_v35 = vpop.xlane.xlu2 %637 }
 0x3d0   : > { %5444 = vmatmul.msk.f32.gmra.mxu0 %vm491_vm0, %v2010_v38  ;;  %6047 = vrsqrt.f32 %v7861_v27  ;;  %v877_v0 = vmul.f32 %v7872_v22, %v7872_v22  ;;  %vm7906_vm8 = vmor %vm1609_vm6, %vm1610_vm7  ;;  %vm1619_vm9 = vweird.f32 %v7861_v27 }
 0x3d1   : > { %v1605_v31 = vmul.f32 %v6046_v26, %v1604_v4  ;;  %v1602_v38 = vsel %vm7863_vm5, %v6044_v61, %v1598_v28  ;;  %v866_v61 = vmul.f32 %v7876_v55, %v7876_v55  ;;  %v7898_v28 = vld [vmem:[%s10209_s4 + $0x1] ss:$0 sm:$0xff] }
 0x3d2   : > { %v7881_v39 = vpop.f32.mrf.mxu0  ;;  %v1882_v23 = vmul.f32 %v1602_v38, %v7588_v49  ;;  %v2011_v45 = vadd.f32 %v7898_v28, %v1946_v13  ;;  %v7902_v4 = vld [vmem:[%s6495_s14 + $0x1a0] sm:$0xff] }
 0x3d3   : > { %10270 = vst [vmem:[#allocation37_spill] sm:$0xff] %v7881_v39  ;;  %5492 = vmatpush.xpose.msk.msra.mxu3 %vm2454_vm14, %v7881_v39  ;;  %646 = vadd.xlane.f32.xlu1 %v645_v52  ;;  %v671_v48 = vpop.xlane.xlu0 %670  ;;  %v1606_v16 = vmul.f32 0.5, %v1605_v31  ;;  %v1057_v31 = vsel %vm491_vm0, %v877_v0, 0.0  ;;  %v648_v38 = vsel %vm491_vm0, %v7902_v4, 0.0 }
 0x3d4   : > { %682 = vadd.xlane.f32.xlu2 %v681_v58  ;;  %1022 = vadd.xlane.f32.xlu0 %v1021_v44  ;;  %v750_v43 = vmul.f32 %v6514_v20, %v671_v48  ;;  %v1024_v48 = vsel %vm491_vm0, %v866_v61, 0.0  ;;  %v7938_v44 = vld [vmem:[%s7928_s29] sm:$0xff] }
 0x3d5   : > { %v1607_v5 = vsub.f32 1.5, %v1606_v16 }
 0x3d6   : > { %v6048_v52 = vpop.eup %6047  ;;  %v7914_v13 = vsub.f32 %v7675_v32, %v750_v43  ;;  %v739_v43 = vmul.f32 %v6514_v20, %v638_v35 }
 0x3d7   : > { %5493 = vmatpush.xpose.msk.msra.mxu3 %vm2454_vm14, %v7840_v10  ;;  %v1608_v58 = vmul.f32 %v6046_v26, %v1607_v5  ;;  %v1614_v49 = vmul.f32 %v6048_v52, %v7861_v27  ;;  %v1947_v5 = vmul.f32 %v7764_v59, %v1882_v23  ;;  %vm1620_vm10 = vweird.f32 %v6048_v52 }
 0x3d8   : > { %5445 = vmatmul.msk.f32.gmra.mxu0 %vm491_vm0, %v2011_v45  ;;  %vm7945_vm11 = vmor %vm1619_vm9, %vm1620_vm10  ;;  %v7951_v27 = vsub.f32 %v7648_v56, %v739_v43 }
 0x3d9   : > { %v1615_v16 = vmul.f32 %v6048_v52, %v1614_v49  ;;  %v1612_v10 = vsel %vm7906_vm8, %v6046_v26, %v1608_v58  ;;  %v878_v26 = vmul.f32 %v7914_v13, %v7914_v13  ;;  %v2012_v58 = vadd.f32 %v7898_v28, %v1947_v5  ;;  %v7941_v49 = vld [vmem:[%s6495_s14 + $0x1a8] sm:$0xff] }
 0x3da   : > { %v1883_v23 = vmul.f32 %v1612_v10, %v7608_v12  ;;  %v2455_v10 = vsel %vm2454_vm14, %v7938_v44, 0.0  ;;  %v867_v43 = vmul.f32 %v7951_v27, %v7951_v27 }
 0x3db   : > { %5494 = vmatpush.xpose.msk.msra.mxu3 %vm2454_vm14, %v7800_v62  ;;  %1058 = vadd.xlane.f32.xlu1 %v1057_v31  ;;  %v674_v32 = vpop.xlane.xlu0 %673  ;;  %v1616_v0 = vmul.f32 0.5, %v1615_v16  ;;  %v1060_v12 = vsel %vm491_vm0, %v878_v26, 0.0  ;;  %v641_v16 = vpop.xlane.xlu2 %640 }
 0x3dc   : > { %649 = vadd.xlane.f32.xlu2 %v648_v38  ;;  %1025 = vadd.xlane.f32.xlu0 %v1024_v48  ;;  %v751_v61 = vmul.f32 %v6514_v20, %v674_v32  ;;  %v651_v38 = vsel %vm491_vm0, %v7941_v49, 0.0  ;;  %v1948_v5 = vmul.f32 %v7764_v59, %v1883_v23  ;;  %v7975_v23 = vld [vmem:[%s6495_s14 + $0x1b0] sm:$0xff] }
 0x3dd   : > { %v1617_v45 = vsub.f32 1.5, %v1616_v0  ;;  %v740_v0 = vmul.f32 %v6514_v20, %v641_v16 }
 0x3de   : > { %v7959_v48 = vsub.f32 %v7686_v47, %v751_v61 }
 0x3df   : > { %5495 = vmatpush.xpose.msk.msra.mxu3 %vm2454_vm14, %v7757_v11  ;;  %v1618_v35 = vmul.f32 %v6048_v52, %v1617_v45  ;;  %v7981_v45 = vsub.f32 %v7671_v6, %v740_v0 }
 0x3e0   : > { %5446 = vmatmul.msk.f32.gmra.mxu0 %vm491_vm0, %v2012_v58  ;;  %v879_v47 = vmul.f32 %v7959_v48, %v7959_v48  ;;  %v1027_v58 = vsel %vm491_vm0, %v867_v43, 0.0 }
 0x3e1   : > { %v1622_v32 = vsel %vm7945_vm11, %v6048_v52, %v1618_v35  ;;  %v2013_v52 = vadd.f32 %v7898_v28, %v1948_v5  ;;  %v654_v35 = vsel %vm491_vm0, %v7975_v23, 0.0  ;;  %v868_v6 = vmul.f32 %v7981_v45, %v7981_v45  ;;  %v8000_v5 = vld [vmem:[%s6495_s14 + $0x1b8] sm:$0xff] }
 0x3e2   : > { %v1884_v61 = vmul.f32 %v1622_v32, %v7639_v18  ;;  %v1063_v18 = vsel %vm491_vm0, %v879_v47, 0.0  ;;  %v657_v0 = vsel %vm491_vm0, %v8000_v5, 0.0 }
 0x3e3   : > { %5496 = vmatpush.xpose.msk.msra.mxu3 %vm2454_vm14, %v7738_v54  ;;  %1061 = vadd.xlane.f32.xlu1 %v1060_v12  ;;  %v677_v56 = vpop.xlane.xlu0 %676  ;;  %v1030_v32 = vsel %vm491_vm0, %v868_v6, 0.0 }
 0x3e4   : > { %2456 = vadd.xlane.f32.xlu2 %v2455_v10  ;;  %652 = vadd.xlane.f32.xlu0 %v651_v38  ;;  %v752_v26 = vmul.f32 %v6514_v20, %v677_v56  ;;  %v1949_v12 = vmul.f32 %v7764_v59, %v1884_v61 }
 0x3e6   : > { %v7988_v31 = vsub.f32 %v7697_v33, %v752_v26  ;;  %v2014_v33 = vadd.f32 %v7898_v28, %v1949_v12  ;;  %v8017_v26 = vld [vmem:[%s7928_s29 + $0x8] sm:$0xff] }
 0x3e7   : > { %5497 = vmatpush.xpose.msk.msra.mxu3 %vm2454_vm14, %v7724_v53  ;;  %v2458_v61 = vsel %vm2454_vm14, %v8017_v26, 0.0 }
 0x3e8   : > { %5447 = vmatmul.msk.f32.gmra.mxu0 %vm491_vm0, %v2013_v52  ;;  %v880_v16 = vmul.f32 %v7988_v31, %v7988_v31  ;;  %v8027_v52 = vld [vmem:[%s7928_s29 + $0x10] sm:$0xff] }
 0x3ea   : > { %v1066_v43 = vsel %vm491_vm0, %v880_v16, 0.0 }
 0x3eb   : > { %5498 = vmatpush.xpose.msk.msra.mxu3 %vm2454_vm14, %v7718_v34  ;;  %1028 = vadd.xlane.f32.xlu1 %v1027_v58  ;;  %v644_v10 = vpop.xlane.xlu0 %643  ;;  %v2461_v58 = vsel %vm2454_vm14, %v8027_v52, 0.0 }
 0x3ec   : > { %655 = vadd.xlane.f32.xlu0 %v654_v35  ;;  %1064 = vadd.xlane.f32.xlu2 %v1063_v18  ;;  %v741_v38 = vmul.f32 %v6514_v20, %v644_v10 }
 0x3ee   : > { %v8007_v56 = vsub.f32 %v7706_v2, %v741_v38 }
 0x3ef   : > { %5499 = vmatpush.xpose.msk.msra.mxu3 %vm2454_vm14, %v7716_v3 }
 0x3f0   : > { %5448 = vmatmul.msk.f32.gmra.mxu0 %vm491_vm0, %v2014_v33  ;;  %v869_v47 = vmul.f32 %v8007_v56, %v8007_v56 }
 0x3f2   : > { %v1033_v2 = vsel %vm491_vm0, %v869_v47, 0.0 }
 0x3f3   : > { %5500 = vmatpush.xpose.msk.msra.mxu3 %vm2454_vm14, %v7714_v14  ;;  %1031 = vadd.xlane.f32.xlu1 %v1030_v32  ;;  %v6374_v32 = vmov 32.0  }
 0x3f4   : > { %658 = vadd.xlane.f32.xlu0 %v657_v0  ;;  %1067 = vadd.xlane.f32.xlu2 %v1066_v43 }
 0x3f7   : > { %5501 = vmatpush.xpose.msk.msra.mxu3 %vm2454_vm14, %v7712_v24 }
 0x3fb   : > { %5502 = vmatpush.xpose.msk.msra.mxu3 %vm2454_vm14, %v7708_v15  ;;  %1034 = vadd.xlane.f32.xlu1 %v1033_v2 }
 0x3fc   : > { %2459 = vadd.xlane.f32.xlu0 %v2458_v61 }
 0x3ff   : > { %5503 = vmatpush.xpose.msk.msra.mxu3 %vm2454_vm14, %v7700_v1 }
 0x403   : > { %5504 = vmatpush.xpose.msk.msra.mxu3 %vm2454_vm14, %v7688_v36 }
 0x404   : > { %2462 = vadd.xlane.f32.xlu0 %v2461_v58 }
 0x407   : > { %5505 = vmatpush.xpose.msk.msra.mxu3 %vm2454_vm14, %v7668_v19 }
 0x40b   : > { %5506 = vmatpush.xpose.msk.msra.mxu3 %vm2454_vm14, %v7642_v60 }
 0x40f   : > { %5507 = vmatpush.xpose.msk.msra.mxu3 %vm2454_vm14, %v7592_v7 }
 0x425   : > { %v1011_v35 = vpop.xlane.xlu1 %1010 }
 0x426   : > { %v1117_v18 = vmul.f32 %v1011_v35, %v6514_v20 }
 0x428   : > { %v1181_v12 = vadd.f32 1e-05, %v1117_v18 }
 0x42a   : > { %6049 = vrsqrt.f32 %v1181_v12  ;;  %vm1629_vm13 = vweird.f32 %v1181_v12 }
 0x42b   : > { %6051 = vrcp.f32 %v6374_v32 }
 0x42e   : > { %v1014_v10 = vpop.xlane.xlu1 %1013 }
 0x42f   : > { %v1118_v6 = vmul.f32 %v1014_v10, %v6514_v20 }
 0x430   : > { %v6050_v38 = vpop.eup %6049 }
 0x431   : > { %v1624_v16 = vmul.f32 %v6050_v38, %v1181_v12  ;;  %v1182_v33 = vadd.f32 1e-05, %v1118_v6  ;;  %v8043_v61 = vpop.eup %6051  ;;  %vm1630_vm12 = vweird.f32 %v6050_v38 }
 0x432   : > { %vm1631_vm15 = vmor %vm1629_vm13, %vm1630_vm12  ;;  %v2468_v32 = vmul.f32 32.0, %v8043_v61  ;;  %vm2472_vm7 = vweird.f32 %v8043_v61 }
 0x433   : > { %v1625_v0 = vmul.f32 %v6050_v38, %v1624_v16  ;;  %6053 = vrsqrt.f32 %v1182_v33  ;;  %vm1639_vm2 = vweird.f32 %v1182_v33 }
 0x435   : > { %v1626_v43 = vmul.f32 0.5, %v1625_v0 }
 0x436   : > { %v1017_v47 = vpop.xlane.xlu1 %1016  ;;  %v1053_v2 = vpop.xlane.xlu2 %1052 }
 0x437   : > { %v1627_v58 = vsub.f32 1.5, %v1626_v43  ;;  %v1119_v35 = vmul.f32 %v1017_v47, %v6514_v20  ;;  %v1131_v18 = vmul.f32 %v1053_v2, %v6514_v20 }
 0x439   : > { %v6054_v7 = vpop.eup %6053  ;;  %v1628_v10 = vmul.f32 %v6050_v38, %v1627_v58  ;;  %v8047_v19 = vadd.f32 1e-05, %v1119_v35  ;;  %v8049_v6 = vadd.f32 1e-05, %v1131_v18  ;;  %v2469_v35 = vsub.f32 1.0, %v2468_v32 }
 0x43a   : > { %v1634_v16 = vmul.f32 %v6054_v7, %v1182_v33  ;;  %vm1640_vm1 = vweird.f32 %v6054_v7 }
 0x43b   : > { %v1632_v0 = vsel %vm1631_vm15, %v6050_v38, %v1628_v10  ;;  %6055 = vrsqrt.f32 %v8047_v19  ;;  %vm1641_vm3 = vmor %vm1639_vm2, %vm1640_vm1  ;;  %vm1649_vm4 = vweird.f32 %v8047_v19  ;;  %vm1769_vm6 = vweird.f32 %v8049_v6 }
 0x43c   : > { %v1885_v43 = vmul.f32 %v1632_v0, %v7730_v50  ;;  %v1635_v11 = vmul.f32 %v6054_v7, %v1634_v16  ;;  %6057 = vrsqrt.f32 %v8049_v6 }
 0x43e   : > { %v1636_v47 = vmul.f32 0.5, %v1635_v11  ;;  %v680_v2 = vpop.xlane.xlu1 %679  ;;  %v1020_v58 = vpop.xlane.xlu2 %1019  ;;  %v1950_v12 = vmul.f32 %v7764_v59, %v1885_v43 }
 0x43f   : > { %v753_v18 = vmul.f32 %v6514_v20, %v680_v2  ;;  %v1120_v53 = vmul.f32 %v1020_v58, %v6514_v20  ;;  %v1056_v3 = vpop.xlane.xlu0 %1055 }
 0x440   : > { %v1637_v24 = vsub.f32 1.5, %v1636_v47  ;;  %v1132_v38 = vmul.f32 %v1056_v3, %v6514_v20  ;;  %v2015_v50 = vadd.f32 %v7898_v28, %v1950_v12  ;;  %v2470_v3 = vmul.f32 %v8043_v61, %v2469_v35 }
 0x441   : > { %v6056_v10 = vpop.eup %6055  ;;  %v8061_v11 = vsub.f32 %v7810_v46, %v753_v18  ;;  %v8063_v16 = vadd.f32 1e-05, %v1120_v53 }
 0x442   : > { %v8065_v0 = vpop.eup %6057  ;;  %v1638_v32 = vmul.f32 %v6054_v7, %v1637_v24  ;;  %v1644_v43 = vmul.f32 %v6056_v10, %v8047_v19  ;;  %v8068_v2 = vadd.f32 1e-05, %v1132_v38  ;;  %5449 = vmatmul.msk.f32.gmra.mxu0 %vm491_vm0, %v2015_v50  ;;  %v8082_v18 = vadd.f32 %v8043_v61, %v2470_v3 }
 0x443   : > { %v1764_v33 = vmul.f32 %v8065_v0, %v8049_v6  ;;  %6059 = vrsqrt.f32 %v8063_v16  ;;  %v881_v58 = vmul.f32 %v8061_v11, %v8061_v11  ;;  %vm1650_vm5 = vweird.f32 %v6056_v10 }
 0x444   : > { %v1642_v46 = vsel %vm1641_vm3, %v6054_v7, %v1638_v32  ;;  %v1645_v53 = vmul.f32 %v6056_v10, %v1644_v43  ;;  %6061 = vrsqrt.f32 %v8068_v2  ;;  %vm1770_vm8 = vweird.f32 %v8065_v0  ;;  %vm1651_vm9 = vmor %vm1649_vm4, %vm1650_vm5 }
 0x445   : > { %v1886_v24 = vmul.f32 %v1642_v46, %v7748_v30  ;;  %v1765_v47 = vmul.f32 %v8065_v0, %v1764_v33  ;;  %v1069_v32 = vsel %vm491_vm0, %v881_v58, 0.0  ;;  %vm1779_vm10 = vweird.f32 %v8068_v2  ;;  %vm8128_vm12 = vmor %vm1769_vm6, %vm1770_vm8 }
 0x446   : > { %v1646_v12 = vmul.f32 0.5, %v1645_v53  ;;  %v647_v35 = vpop.xlane.xlu1 %646  ;;  %1070 = vadd.xlane.f32.xlu2 %v1069_v32  ;;  %vm1659_vm15 = vweird.f32 %v8063_v16 }
 0x447   : > { %v1766_v38 = vmul.f32 0.5, %v1765_v47  ;;  %v742_v7 = vmul.f32 %v6514_v20, %v647_v35  ;;  %v683_v50 = vpop.xlane.xlu2 %682  ;;  %v1023_v43 = vpop.xlane.xlu0 %1022  ;;  %v1951_v30 = vmul.f32 %v7764_v59, %v1886_v24 }
 0x448   : > { %v1647_v33 = vsub.f32 1.5, %v1646_v12  ;;  %v754_v46 = vmul.f32 %v6514_v20, %v683_v50  ;;  %v1121_v53 = vmul.f32 %v1023_v43, %v6514_v20 }
 0x449   : > { %v8089_v1 = vpop.eup %6059  ;;  %v1767_v3 = vsub.f32 1.5, %v1766_v38  ;;  %v8093_v47 = vsub.f32 %v7854_v57, %v742_v7  ;;  %v2016_v58 = vadd.f32 %v7898_v28, %v1951_v30 }
 0x44a   : > { %v8097_v24 = vpop.eup %6061  ;;  %v1648_v12 = vmul.f32 %v6056_v10, %v1647_v33  ;;  %v1654_v35 = vmul.f32 %v8089_v1, %v8063_v16  ;;  %v8103_v50 = vsub.f32 %v7859_v51, %v754_v46  ;;  %v8112_v7 = vadd.f32 1e-05, %v1121_v53 }
 0x44b   : > { %v1768_v57 = vmul.f32 %v8065_v0, %v1767_v3  ;;  %v1774_v38 = vmul.f32 %v8097_v24, %v8068_v2  ;;  %5450 = vmatmul.msk.f32.gmra.mxu0 %vm491_vm0, %v2016_v58  ;;  %v870_v19 = vmul.f32 %v8093_v47, %v8093_v47  ;;  %vm1660_vm11 = vweird.f32 %v8089_v1 }
 0x44c   : > { %v1652_v32 = vsel %vm1651_vm9, %v6056_v10, %v1648_v12  ;;  %v1655_v43 = vmul.f32 %v8089_v1, %v1654_v35  ;;  %v882_v51 = vmul.f32 %v8103_v50, %v8103_v50  ;;  %6063 = vrsqrt.f32 %v8112_v7  ;;  %vm1661_vm1 = vmor %vm1659_vm15, %vm1660_vm11 }
 0x44d   : > { %v1887_v30 = vmul.f32 %v1652_v32, %v7752_v8  ;;  %v1775_v33 = vmul.f32 %v8097_v24, %v1774_v38  ;;  %vm1780_vm13 = vweird.f32 %v8097_v24  ;;  %v1036_v3 = vsel %vm491_vm0, %v870_v19, 0.0 }
 0x44e   : > { %v1656_v46 = vmul.f32 0.5, %v1655_v43  ;;  %v1059_v53 = vpop.xlane.xlu1 %1058  ;;  %v1072_v8 = vsel %vm491_vm0, %v882_v51, 0.0  ;;  %1037 = vadd.xlane.f32.xlu1 %v1036_v3  ;;  %v1772_v32 = vsel %vm8128_vm12, %v8065_v0, %v1768_v57  ;;  %vm8164_vm2 = vmor %vm1779_vm10, %vm1780_vm13  ;;  %vm1669_vm3 = vweird.f32 %v8112_v7 }
 0x44f   : > { %v1776_v58 = vmul.f32 0.5, %v1775_v33  ;;  %v650_v12 = vpop.xlane.xlu2 %649  ;;  %v1133_v35 = vmul.f32 %v1059_v53, %v6514_v20  ;;  %v1026_v38 = vpop.xlane.xlu0 %1025  ;;  %v1952_v6 = vmul.f32 %v7764_v59, %v1887_v30  ;;  %1073 = vadd.xlane.f32.xlu2 %v1072_v8  ;;  %v1899_v19 = vmul.f32 %v1772_v32, %v7777_v9  ;;  %v8157_v9 = vld [vmem:[%s7928_s29 + $0x18] sm:$0xff] }
 0x450   : > { %v1657_v43 = vsub.f32 1.5, %v1656_v46  ;;  %v743_v15 = vmul.f32 %v6514_v20, %v650_v12  ;;  %v1122_v51 = vmul.f32 %v1026_v38, %v6514_v20 }
 0x451   : > { %v1777_v33 = vsub.f32 1.5, %v1776_v58  ;;  %v8144_v53 = vadd.f32 1e-05, %v1133_v35  ;;  %v2017_v30 = vadd.f32 %v7898_v28, %v1952_v6  ;;  %v1964_v10 = vmul.f32 %v7764_v59, %v1899_v19 }
 0x452   : > { %v1658_v3 = vmul.f32 %v8089_v1, %v1657_v43  ;;  %v8151_v0 = vsub.f32 %v7902_v4, %v743_v15  ;;  %v8153_v57 = vadd.f32 1e-05, %v1122_v51  ;;  %v6064_v16 = vpop.eup %6063  ;;  %v8177_v58 = vsel %vm2472_vm7, %v8043_v61, %v8082_v18 }
 0x453   : > { %v1778_v46 = vmul.f32 %v8097_v24, %v1777_v33  ;;  %6065 = vrsqrt.f32 %v8144_v53  ;;  %5451 = vmatmul.msk.f32.gmra.mxu0 %vm491_vm0, %v2017_v30  ;;  %v1664_v4 = vmul.f32 %v6064_v16, %v8112_v7  ;;  %10280 = vst [vmem:[#allocation38_spill] sm:$0xff] %v8177_v58  ;;  %v2029_v12 = vadd.f32 %v7898_v28, %v1964_v10 }
 0x454   : > { %v1662_v15 = vsel %vm1661_vm1, %v8089_v1, %v1658_v3  ;;  %6067 = vrsqrt.f32 %v8153_v57  ;;  %v2464_v35 = vsel %vm2454_vm14, %v8157_v9, 0.0  ;;  %v871_v1 = vmul.f32 %v8151_v0, %v8151_v0 }
 0x455   : > { %v1888_v2 = vmul.f32 %v1662_v15, %v7792_v63  ;;  %v1665_v38 = vmul.f32 %v6064_v16, %v1664_v4  ;;  %v1782_v32 = vsel %vm8164_vm2, %v8097_v24, %v1778_v46  ;;  %5463 = vmatmul.msk.f32.vlgmr.msra.gmra.mxu1 %vm491_vm0, %v2029_v12  ;;  %vm1670_vm4 = vweird.f32 %v6064_v16 }
 0x456   : > { %v1062_v6 = vpop.xlane.xlu1 %1061  ;;  %v1039_v18 = vsel %vm491_vm0, %v871_v1, 0.0  ;;  %v1900_v19 = vmul.f32 %v1782_v32, %v7819_v21  ;;  %vm8209_vm5 = vmor %vm1669_vm3, %vm1670_vm4  ;;  %vm1789_vm6 = vweird.f32 %v8144_v53  ;;  %vm1679_vm8 = vweird.f32 %v8153_v57 }
 0x457   : > { %v2457_v61 = vpop.xlane.xlu2 %2456  ;;  %v1134_v63 = vmul.f32 %v1062_v6, %v6514_v20  ;;  %v653_v43 = vpop.xlane.xlu0 %652  ;;  %v1953_v51 = vmul.f32 %v7764_v59, %v1888_v2  ;;  %v1666_v33 = vmul.f32 0.5, %v1665_v38  ;;  %2465 = vadd.xlane.f32.xlu2 %v2464_v35  ;;  %1040 = vadd.xlane.f32.xlu1 %v1039_v18 }
 0x458   : > { %v2474_v30 = vmul.f32 %v8177_v58, %v2457_v61  ;;  %v744_v24 = vmul.f32 %v6514_v20, %v653_v43  ;;  %v1965_v8 = vmul.f32 %v7764_v59, %v1900_v19  ;;  %v8226_v61 = vpop.f32.mrf.mxu0 }
 0x459   : > { %v8196_v3 = vpop.eup %6065  ;;  %v8198_v10 = vadd.f32 1e-05, %v1134_v63  ;;  %v2018_v46 = vadd.f32 %v7898_v28, %v1953_v51  ;;  %v1667_v4 = vsub.f32 1.5, %v1666_v33  ;;  %10283 = vst [vmem:[#allocation39_spill] sm:$0xff] %v8226_v61 }
 0x45a   : > { %v6068_v15 = vpop.eup %6067  ;;  %v1784_v21 = vmul.f32 %v8196_v3, %v8144_v53  ;;  %v8205_v2 = vsub.f32 %v7938_v44, %v2474_v30  ;;  %v8219_v44 = vsub.f32 %v7941_v49, %v744_v24  ;;  %v2030_v7 = vadd.f32 %v7898_v28, %v1965_v8 }
 0x45b   : > { %v1674_v35 = vmul.f32 %v6068_v15, %v8153_v57  ;;  %6069 = vrsqrt.f32 %v8198_v10  ;;  %5452 = vmatmul.msk.f32.gmra.mxu0 %vm491_vm0, %v2018_v46  ;;  %v1668_v1 = vmul.f32 %v6064_v16, %v1667_v4  ;;  %vm1790_vm7 = vweird.f32 %v8196_v3 }
 0x45c   : > { %v1785_v38 = vmul.f32 %v8196_v3, %v1784_v21  ;;  %v2482_v32 = vmul.f32 %v8205_v2, %v8205_v2  ;;  %vm1680_vm9 = vweird.f32 %v6068_v15  ;;  %v872_v49 = vmul.f32 %v8219_v44, %v8219_v44  ;;  %vm8243_vm10 = vmor %vm1789_vm6, %vm1790_vm7 }
 0x45d   : > { %v1675_v6 = vmul.f32 %v6068_v15, %v1674_v35  ;;  %v1672_v63 = vsel %vm8209_vm5, %v6064_v16, %v1668_v1  ;;  %5464 = vmatmul.msk.f32.gmra.mxu1 %vm491_vm0, %v2030_v7  ;;  %vm1681_vm11 = vmor %vm1679_vm8, %vm1680_vm9  ;;  %vm1799_vm12 = vweird.f32 %v8198_v10 }
 0x45e   : > { %v1786_v18 = vmul.f32 0.5, %v1785_v38  ;;  %v1029_v43 = vpop.xlane.xlu1 %1028  ;;  %v1889_v51 = vmul.f32 %v1672_v63, %v7834_v25  ;;  %v2486_v33 = vsel %vm2454_vm14, %v2482_v32, 0.0  ;;  %v1042_v4 = vsel %vm491_vm0, %v872_v49, 0.0 }
 0x45f   : > { %v1676_v19 = vmul.f32 0.5, %v1675_v6  ;;  %v1123_v30 = vmul.f32 %v1029_v43, %v6514_v20  ;;  %v1065_v24 = vpop.xlane.xlu2 %1064  ;;  %v656_v46 = vpop.xlane.xlu0 %655  ;;  %2487 = vadd.xlane.f32.xlu0 %v2486_v33  ;;  %1043 = vadd.xlane.f32.xlu1 %v1042_v4 }
 0x460   : > { %v1787_v8 = vsub.f32 1.5, %v1786_v18  ;;  %v1135_v16 = vmul.f32 %v1065_v24, %v6514_v20  ;;  %v745_v21 = vmul.f32 %v6514_v20, %v656_v46  ;;  %v1954_v38 = vmul.f32 %v7764_v59, %v1889_v51 }
 0x461   : > { %v6070_v12 = vpop.eup %6069  ;;  %v1677_v35 = vsub.f32 1.5, %v1676_v19  ;;  %v8247_v1 = vadd.f32 1e-05, %v1123_v30 }
 0x462   : > { %v1788_v7 = vmul.f32 %v8196_v3, %v1787_v8  ;;  %v1794_v6 = vmul.f32 %v6070_v12, %v8198_v10  ;;  %v8255_v32 = vadd.f32 1e-05, %v1135_v16  ;;  %v8259_v63 = vsub.f32 %v7975_v23, %v745_v21  ;;  %v8276_v21 = vpop.f32.mrf.mxu0 }
 0x463   : > { %v1678_v53 = vmul.f32 %v6068_v15, %v1677_v35  ;;  %6071 = vrsqrt.f32 %v8247_v1  ;;  %v2019_v43 = vadd.f32 %v7898_v28, %v1954_v38  ;;  %vm1800_vm13 = vweird.f32 %v6070_v12  ;;  %10286 = vst [vmem:[#allocation40_spill] sm:$0xff] %v8276_v21 }
 0x464   : > { %v1795_v18 = vmul.f32 %v6070_v12, %v1794_v6  ;;  %6073 = vrsqrt.f32 %v8255_v32  ;;  %v873_v57 = vmul.f32 %v8259_v63, %v8259_v63  ;;  %v1792_v51 = vsel %vm8243_vm10, %v8196_v3, %v1788_v7  ;;  %vm8285_vm15 = vmor %vm1799_vm12, %vm1800_vm13 }
 0x465   : > { %v1682_v49 = vsel %vm1681_vm11, %v6068_v15, %v1678_v53  ;;  %5453 = vmatmul.msk.f32.gmra.mxu0 %vm491_vm0, %v2019_v43  ;;  %v1901_v30 = vmul.f32 %v1792_v51, %v7872_v22  ;;  %vm1689_vm1 = vweird.f32 %v8247_v1  ;;  %vm1809_vm3 = vweird.f32 %v8255_v32 }
 0x466   : > { %v1890_v19 = vmul.f32 %v1682_v49, %v7876_v55  ;;  %v1796_v33 = vmul.f32 0.5, %v1795_v18  ;;  %v1032_v23 = vpop.xlane.xlu1 %1031  ;;  %v1045_v46 = vsel %vm491_vm0, %v873_v57, 0.0 }
 0x467   : > { %v1124_v15 = vmul.f32 %v1032_v23, %v6514_v20  ;;  %v1068_v24 = vpop.xlane.xlu2 %1067  ;;  %v659_v8 = vpop.xlane.xlu0 %658  ;;  %1046 = vadd.xlane.f32.xlu2 %v1045_v46  ;;  %v1966_v35 = vmul.f32 %v7764_v59, %v1901_v30 }
 0x468   : > { %v1797_v16 = vsub.f32 1.5, %v1796_v33  ;;  %v1136_v3 = vmul.f32 %v1068_v24, %v6514_v20  ;;  %v746_v55 = vmul.f32 %v6514_v20, %v659_v8  ;;  %v1955_v22 = vmul.f32 %v7764_v59, %v1890_v19 }
 0x469   : > { %v6072_v4 = vpop.eup %6071  ;;  %v8278_v25 = vadd.f32 1e-05, %v1124_v15  ;;  %v2031_v19 = vadd.f32 %v7898_v28, %v1966_v35 }
 0x46a   : > { %v6074_v38 = vpop.eup %6073  ;;  %v1798_v7 = vmul.f32 %v6070_v12, %v1797_v16  ;;  %v1684_v53 = vmul.f32 %v6072_v4, %v8247_v1  ;;  %v8290_v18 = vadd.f32 1e-05, %v1136_v3  ;;  %v8297_v57 = vsub.f32 %v8000_v5, %v746_v55 }
 0x46b   : > { %v1804_v43 = vmul.f32 %v6074_v38, %v8255_v32  ;;  %6075 = vrsqrt.f32 %v8278_v25  ;;  %v2020_v51 = vadd.f32 %v7898_v28, %v1955_v22  ;;  %vm1690_vm2 = vweird.f32 %v6072_v4  ;;  %5465 = vmatmul.msk.f32.gmra.mxu1 %vm491_vm0, %v2031_v19 }
 0x46c   : > { %v1685_v49 = vmul.f32 %v6072_v4, %v1684_v53  ;;  %6077 = vrsqrt.f32 %v8290_v18  ;;  %v1802_v33 = vsel %vm8285_vm15, %v6070_v12, %v1798_v7  ;;  %v874_v15 = vmul.f32 %v8297_v57, %v8297_v57  ;;  %vm8316_vm5 = vmor %vm1689_vm1, %vm1690_vm2 }
 0x46d   : > { %v1805_v10 = vmul.f32 %v6074_v38, %v1804_v43  ;;  %v1902_v24 = vmul.f32 %v1802_v33, %v7914_v13  ;;  %vm1810_vm4 = vweird.f32 %v6074_v38  ;;  %5454 = vmatmul.msk.f32.gmra.mxu0 %vm491_vm0, %v2020_v51  ;;  %vm1699_vm7 = vweird.f32 %v8278_v25 }
 0x46e   : > { %v1686_v23 = vmul.f32 0.5, %v1685_v49  ;;  %v1035_v30 = vpop.xlane.xlu1 %1034  ;;  %v1048_v16 = vsel %vm491_vm0, %v874_v15, 0.0  ;;  %vm8323_vm6 = vmor %vm1809_vm3, %vm1810_vm4  ;;  %v8331_v49 = vpop.f32.mrf.mxu0  ;;  %vm1819_vm9 = vweird.f32 %v8290_v18 }
 0x46f   : > { %v1806_v46 = vmul.f32 0.5, %v1805_v10  ;;  %v1125_v5 = vmul.f32 %v1035_v30, %v6514_v20  ;;  %v2460_v8 = vpop.xlane.xlu0 %2459  ;;  %v1967_v55 = vmul.f32 %v7764_v59, %v1902_v24  ;;  %1049 = vadd.xlane.f32.xlu0 %v1048_v16  ;;  %10293 = vst [vmem:[#allocation41_spill] sm:$0xff] %v8331_v49 }
 0x470   : > { %v1687_v12 = vsub.f32 1.5, %v1686_v23  ;;  %v2475_v3 = vmul.f32 %v8177_v58, %v2460_v8  ;;  %v8350_v8 = vld [vmem:[%s10209_s4] ss:$0 sm:$0xff] }
 0x471   : > { %v6076_v22 = vpop.eup %6075  ;;  %v1807_v35 = vsub.f32 1.5, %v1806_v46  ;;  %v1189_v7 = vadd.f32 1e-05, %v1125_v5  ;;  %v2032_v32 = vadd.f32 %v7898_v28, %v1967_v55 }
 0x472   : > { %v6078_v6 = vpop.eup %6077  ;;  %v1688_v53 = vmul.f32 %v6072_v4, %v1687_v12  ;;  %v1694_v59 = vmul.f32 %v6076_v22, %v8278_v25  ;;  %v8329_v1 = vsub.f32 %v8017_v26, %v2475_v3  ;;  %vm1700_vm8 = vweird.f32 %v6076_v22 }
 0x473   : > { %v1808_v10 = vmul.f32 %v6074_v38, %v1807_v35  ;;  %v1814_v51 = vmul.f32 %v6078_v6, %v8290_v18  ;;  %6079 = vrsqrt.f32 %v1189_v7  ;;  %vm1820_vm10 = vweird.f32 %v6078_v6  ;;  %5466 = vmatmul.msk.f32.gmra.mxu1 %vm491_vm0, %v2032_v32  ;;  %vm1701_vm11 = vmor %vm1699_vm7, %vm1700_vm8 }
 0x474   : > { %v1692_v19 = vsel %vm8316_vm5, %v6072_v4, %v1688_v53  ;;  %v1695_v33 = vmul.f32 %v6076_v22, %v1694_v59  ;;  %v2483_v26 = vmul.f32 %v8329_v1, %v8329_v1  ;;  %vm8362_vm12 = vmor %vm1819_vm9, %vm1820_vm10  ;;  %vm1709_vm13 = vweird.f32 %v1189_v7 }
 0x475   : > { %v1891_v23 = vmul.f32 %v1692_v19, %v7951_v27  ;;  %v1815_v30 = vmul.f32 %v6078_v6, %v1814_v51  ;;  %v1812_v15 = vsel %vm8323_vm6, %v6074_v38, %v1808_v10 }
 0x476   : > { %v1696_v24 = vmul.f32 0.5, %v1695_v33  ;;  %v1903_v4 = vmul.f32 %v1812_v15, %v7959_v48  ;;  %v2489_v5 = vsel %vm2454_vm14, %v2483_v26, 0.0  ;;  %v8369_v10 = vpop.f32.mrf.mxu0 }
 0x477   : > { %v1816_v46 = vmul.f32 0.5, %v1815_v30  ;;  %v2463_v27 = vpop.xlane.xlu0 %2462  ;;  %v1956_v38 = vmul.f32 %v8350_v8, %v1891_v23  ;;  %2490 = vadd.xlane.f32.xlu1 %v2489_v5  ;;  %10296 = vst [vmem:[#allocation42_spill] sm:$0xff] %v8369_v10 }
 0x478   : > { %v1697_v12 = vsub.f32 1.5, %v1696_v24  ;;  %v2476_v16 = vmul.f32 %v8177_v58, %v2463_v27  ;;  %v1968_v48 = vmul.f32 %v8350_v8, %v1903_v4 }
 0x479   : > { %v6080_v3 = vpop.eup %6079  ;;  %v1817_v55 = vsub.f32 1.5, %v1816_v46  ;;  %v2021_v13 = vadd.f32 %v7898_v28, %v1956_v38 }
 0x47a   : > { %v1698_v35 = vmul.f32 %v6076_v22, %v1697_v12  ;;  %v1704_v43 = vmul.f32 %v6080_v3, %v1189_v7  ;;  %v8367_v59 = vsub.f32 %v8027_v52, %v2476_v16  ;;  %v2033_v25 = vadd.f32 %v7898_v28, %v1968_v48 }
 0x47b   : > { %v1818_v51 = vmul.f32 %v6078_v6, %v1817_v55  ;;  %5455 = vmatmul.msk.f32.gmra.mxu0 %vm491_vm0, %v2021_v13  ;;  %vm1710_vm15 = vweird.f32 %v6080_v3  ;;  %v5798_v12 = vpack.i.bf16 %v7176_v29, %v7189_v42  ;;  %v5818_v16 = vpack.i.bf16 %v7225_v17, %v7248_v41 }
 0x47c   : > { %v1702_v19 = vsel %vm1701_vm11, %v6076_v22, %v1698_v35  ;;  %v1705_v33 = vmul.f32 %v6080_v3, %v1704_v43  ;;  %v2484_v18 = vmul.f32 %v8367_v59, %v8367_v59  ;;  %5467 = vmatmul.msk.f32.gmra.mxu1 %vm491_vm0, %v2033_v25  ;;  %vm1711_vm1 = vmor %vm1709_vm13, %vm1710_vm15  ;;  %v10303_v35 = vld [vmem:[#allocation8_spill] sm:$0xff] }
 0x47d   : > { %v1892_v32 = vmul.f32 %v1702_v19, %v7981_v45  ;;  %v1822_v23 = vsel %vm8362_vm12, %v6078_v6, %v1818_v51  ;;  %v5838_v53 = vpack.i.bf16 %v7800_v62, %v10303_v35  ;;  %v10305_v51 = vld [vmem:[#allocation9_spill] sm:$0xff] }
 0x47e   : > { %v1706_v52 = vmul.f32 0.5, %v1705_v33  ;;  %v2492_v30 = vsel %vm2454_vm14, %v2484_v18, 0.0  ;;  %v1904_v26 = vmul.f32 %v1822_v23, %v7988_v31  ;;  %v8386_v46 = vpop.f32.mrf.mxu0  ;;  %v5843_v25 = vpack.i.bf16 %v10305_v51, %v7881_v39 }
 0x47f   : > { %2493 = vadd.xlane.f32.xlu2 %v2492_v30  ;;  %v1957_v22 = vmul.f32 %v8350_v8, %v1892_v32  ;;  %10297 = vst [vmem:[#allocation43_spill] sm:$0xff] %v8386_v46 }
 0x480   : > { %v1707_v15 = vsub.f32 1.5, %v1706_v52  ;;  %v1969_v24 = vmul.f32 %v8350_v8, %v1904_v26 }
 0x481   : > { %v2022_v45 = vadd.f32 %v7898_v28, %v1957_v22 }
 0x482   : > { %v1708_v7 = vmul.f32 %v6080_v3, %v1707_v15  ;;  %v2034_v6 = vadd.f32 %v7898_v28, %v1969_v24 }
 0x483   : > { %5456 = vmatmul.msk.f32.gmra.mxu0 %vm491_vm0, %v2022_v45 }
 0x484   : > { %v1712_v4 = vsel %vm1711_vm1, %v6080_v3, %v1708_v7  ;;  %5468 = vmatmul.msk.f32.gmra.mxu1 %vm491_vm0, %v2034_v6  ;;  %v10301_v3 = vld [vmem:[#allocation22_spill] sm:$0xff] }
 0x485   : > { %v1893_v31 = vmul.f32 %v1712_v4, %v8007_v56  ;;  %v5808_v56 = vpack.i.bf16 %v7201_v37, %v7203_v40 }
 0x486   : > { %v8393_v38 = vpop.f32.mrf.mxu0 }
 0x487   : > { %v1958_v5 = vmul.f32 %v8350_v8, %v1893_v31  ;;  %10298 = vst [vmem:[#allocation44_spill] sm:$0xff] %v8393_v38 }
 0x489   : > { %v2023_v27 = vadd.f32 %v7898_v28, %v1958_v5  ;;  %v10300_v28 = vld [vmem:[#allocation23_spill] sm:$0xff] }
 0x48a   : > { %v5823_v55 = vpack.i.bf16 %v10301_v3, %v10300_v28 }
 0x48b   : > { %5457 = vmatmul.msk.f32.gmra.mxu0 %vm491_vm0, %v2023_v27 }
 0x48e   : > { %v8403_v48 = vpop.f32.mrf.mxu0 }
 0x48f   : > { %10299 = vst [vmem:[#allocation45_spill] sm:$0xff] %v8403_v48 }
 0x490   : > { %5799 = vrot.lane.b32.xlu1 %v5798_v12, %s10198_s15 }
 0x496   : > { %v8409_v13 = vpop.f32.mrf.mxu0 }
 0x497   : > { %5819 = vrot.lane.b32.xlu2 %v5818_v16, %s10198_s15  ;;  %10302 = vst [vmem:[#allocation46_spill] sm:$0xff] %v8409_v13 }
 0x498   : > { %5809 = vrot.lane.b32.xlu1 %v5808_v56, %s10198_s15 }
 0x49e   : > { %v8414_v43 = vpop.f32.mrf.mxu0 }
 0x49f   : > { %10304 = vst [vmem:[#allocation47_spill] sm:$0xff] %v8414_v43 }
 0x4a0   : > { %5824 = vrot.lane.b32.xlu1 %v5823_v55, %s10198_s15 }
 0x4a6   : > { %v8419_v19 = vpop.f32.mrf.mxu0 }
 0x4a7   : > { %10306 = vst [vmem:[#allocation48_spill] sm:$0xff] %v8419_v19 }
 0x4a8   : > { %5839 = vrot.lane.b32.xlu1 %v5838_v53, %s10198_s15 }
 0x4b0   : > { %5844 = vrot.lane.b32.xlu1 %v5843_v25, %s10198_s15 }
 0x4b9   : > { %v1071_v33 = vpop.xlane.xlu2 %1070 }
 0x4ba   : > { %v1137_v18 = vmul.f32 %v1071_v33, %v6514_v20 }
 0x4bc   : > { %v1201_v32 = vadd.f32 1e-05, %v1137_v18 }
 0x4be   : > { %6081 = vrsqrt.f32 %v1201_v32  ;;  %vm1829_vm3 = vweird.f32 %v1201_v32 }
 0x4bf   : > { %v8422_v23 = vpop.f32.mrf.mxu0 }
 0x4c0   : > { %10307 = vst [vmem:[#allocation49_spill] sm:$0xff] %v8422_v23 }
 0x4c1   : > { %v1038_v52 = vpop.xlane.xlu1 %1037 }
 0x4c2   : > { %v1074_v30 = vpop.xlane.xlu2 %1073  ;;  %v1126_v26 = vmul.f32 %v1038_v52, %v6514_v20 }
 0x4c3   : > { %v1138_v22 = vmul.f32 %v1074_v30, %v6514_v20 }
 0x4c4   : > { %v1190_v15 = vadd.f32 1e-05, %v1126_v26  ;;  %v6082_v24 = vpop.eup %6081 }
 0x4c5   : > { %v1202_v45 = vadd.f32 1e-05, %v1138_v22  ;;  %v1824_v7 = vmul.f32 %v6082_v24, %v1201_v32  ;;  %vm1830_vm2 = vweird.f32 %v6082_v24 }
 0x4c6   : > { %6083 = vrsqrt.f32 %v1190_v15  ;;  %vm1831_vm4 = vmor %vm1829_vm3, %vm1830_vm2  ;;  %vm1719_vm5 = vweird.f32 %v1190_v15 }
 0x4c7   : > { %6085 = vrsqrt.f32 %v1202_v45  ;;  %v1825_v4 = vmul.f32 %v6082_v24, %v1824_v7  ;;  %vm1839_vm9 = vweird.f32 %v1202_v45 }
 0x4c8   : > { %v8426_v6 = vpop.f32.mrf.mxu0 }
 0x4c9   : > { %10308 = vst [vmem:[#allocation50_spill] sm:$0xff] %v8426_v6  ;;  %v5878_v31 = vpack.i.bf16 %v7718_v34, %v8426_v6  ;;  %v1826_v5 = vmul.f32 0.5, %v1825_v4 }
 0x4ca   : > { %v2466_v27 = vpop.xlane.xlu2 %2465  ;;  %v1041_v12 = vpop.xlane.xlu1 %1040 }
 0x4cb   : > { %5879 = vrot.lane.b32.xlu1 %v5878_v31, %s10198_s15  ;;  %v2477_v16 = vmul.f32 %v8177_v58, %v2466_v27  ;;  %v1127_v56 = vmul.f32 %v1041_v12, %v6514_v20  ;;  %v1827_v53 = vsub.f32 1.5, %v1826_v5 }
 0x4cc   : > { %v6084_v55 = vpop.eup %6083 }
 0x4cd   : > { %v6086_v25 = vpop.eup %6085  ;;  %v1714_v33 = vmul.f32 %v6084_v55, %v1190_v15  ;;  %v8434_v18 = vsub.f32 %v8157_v9, %v2477_v16  ;;  %v1191_v52 = vadd.f32 1e-05, %v1127_v56  ;;  %v1828_v30 = vmul.f32 %v6082_v24, %v1827_v53 }
 0x4ce   : > { %v1834_v26 = vmul.f32 %v6086_v25, %v1202_v45  ;;  %vm1720_vm6 = vweird.f32 %v6084_v55  ;;  %vm1840_vm7 = vweird.f32 %v6086_v25 }
 0x4cf   : > { %v1715_v22 = vmul.f32 %v6084_v55, %v1714_v33  ;;  %6087 = vrsqrt.f32 %v1191_v52  ;;  %v2485_v4 = vmul.f32 %v8434_v18, %v8434_v18  ;;  %v1832_v31 = vsel %vm1831_vm4, %v6082_v24, %v1828_v30  ;;  %vm8444_vm8 = vmor %vm1719_vm5, %vm1720_vm6 }
 0x4d0   : > { %v8436_v7 = vpop.f32.mrf.mxu0  ;;  %v1835_v5 = vmul.f32 %v6086_v25, %v1834_v26  ;;  %v1905_v12 = vmul.f32 %v1832_v31, %v8061_v11  ;;  %vm1841_vm10 = vmor %vm1839_vm9, %vm1840_vm7  ;;  %vm1729_vm11 = vweird.f32 %v1191_v52 }
 0x4d1   : > { %10309 = vst [vmem:[#allocation51_spill] sm:$0xff] %v8436_v7  ;;  %v1716_v27 = vmul.f32 0.5, %v1715_v22  ;;  %v2495_v9 = vsel %vm2454_vm14, %v2485_v4, 0.0  ;;  %v8452_v22 = vld [vmem:[%s10209_s4 + $0x1] ss:$0 sm:$0xff] }
 0x4d2   : > { %v1836_v16 = vmul.f32 0.5, %v1835_v5  ;;  %2496 = vadd.xlane.f32.xlu0 %v2495_v9  ;;  %v2488_v32 = vpop.xlane.xlu0 %2487  ;;  %v1044_v53 = vpop.xlane.xlu1 %1043  ;;  %v1970_v34 = vmul.f32 %v8350_v8, %v1905_v12 }
 0x4d3   : > { %v1717_v56 = vsub.f32 1.5, %v1716_v27  ;;  %v2498_v33 = vmul.f32 %v2488_v32, %v8177_v58  ;;  %v1128_v15 = vmul.f32 %v1044_v53, %v6514_v20  ;;  %v8461_v53 = vpop.f32.mrf.mxu1 }
 0x4d4   : > { %v1837_v62 = vsub.f32 1.5, %v1836_v16  ;;  %v2035_v4 = vadd.f32 %v8452_v22, %v1970_v34  ;;  %10313 = vst [vmem:[#allocation53_spill] sm:$0xff] %v8461_v53 }
 0x4d5   : > { %v6088_v30 = vpop.eup %6087  ;;  %v1718_v26 = vmul.f32 %v6084_v55, %v1717_v56  ;;  %v2502_v11 = vadd.f32 1e-05, %v2498_v33  ;;  %v1192_v27 = vadd.f32 1e-05, %v1128_v15 }
 0x4d6   : > { %v1838_v31 = vmul.f32 %v6086_v25, %v1837_v62  ;;  %v1724_v5 = vmul.f32 %v6088_v30, %v1191_v52  ;;  %5469 = vmatmul.msk.f32.gmra.mxu1 %vm491_vm0, %v2035_v4  ;;  %vm1730_vm12 = vweird.f32 %v6088_v30 }
 0x4d7   : > { %v1722_v9 = vsel %vm8444_vm8, %v6084_v55, %v1718_v26  ;;  %6089 = vrsqrt.f32 %v2502_v11  ;;  %vm1731_vm13 = vmor %vm1729_vm11, %vm1730_vm12  ;;  %vm2512_vm15 = vweird.f32 %v2502_v11  ;;  %vm1739_vm2 = vweird.f32 %v1192_v27 }
 0x4d8   : > { %v8458_v12 = vpop.f32.mrf.mxu0  ;;  %v1842_v16 = vsel %vm1841_vm10, %v6086_v25, %v1838_v31  ;;  %v1894_v32 = vmul.f32 %v1722_v9, %v8093_v47  ;;  %v1725_v56 = vmul.f32 %v6088_v30, %v1724_v5  ;;  %6091 = vrsqrt.f32 %v1192_v27 }
 0x4d9   : > { %10312 = vst [vmem:[#allocation52_spill] sm:$0xff] %v8458_v12  ;;  %v5888_v34 = vpack.i.bf16 %v7738_v54, %v8458_v12  ;;  %v1906_v62 = vmul.f32 %v1842_v16, %v8103_v50 }
 0x4da   : > { %v1726_v45 = vmul.f32 0.5, %v1725_v56  ;;  %v1047_v55 = vpop.xlane.xlu2 %1046  ;;  %v1959_v33 = vmul.f32 %v8350_v8, %v1894_v32 }
 0x4db   : > { %v1129_v24 = vmul.f32 %v1047_v55, %v6514_v20  ;;  %5889 = vrot.lane.b32.xlu1 %v5888_v34, %s10198_s15  ;;  %v1971_v47 = vmul.f32 %v8350_v8, %v1906_v62 }
 0x4dc   : > { %v1727_v25 = vsub.f32 1.5, %v1726_v45  ;;  %v2024_v15 = vadd.f32 %v8452_v22, %v1959_v33  ;;  %v8477_v33 = vpop.f32.mrf.mxu1 }
 0x4dd   : > { %v6090_v26 = vpop.eup %6089  ;;  %v1193_v4 = vadd.f32 1e-05, %v1129_v24  ;;  %v2036_v50 = vadd.f32 %v8452_v22, %v1971_v47  ;;  %10314 = vst [vmem:[#allocation54_spill] sm:$0xff] %v8477_v33 }
 0x4de   : > { %v6092_v31 = vpop.eup %6091  ;;  %v1728_v52 = vmul.f32 %v6088_v30, %v1727_v25  ;;  %v2507_v5 = vmul.f32 %v6090_v26, %v2502_v11  ;;  %5458 = vmatmul.msk.f32.gmra.mxu0 %vm491_vm0, %v2024_v15  ;;  %vm2513_vm1 = vweird.f32 %v6090_v26  ;;  %v10315_v15 = vld [vmem:[#allocation11_spill] sm:$0xff] }
 0x4df   : > { %v1734_v9 = vmul.f32 %v6092_v31, %v1192_v27  ;;  %6093 = vrsqrt.f32 %v1193_v4  ;;  %5470 = vmatmul.msk.f32.gmra.mxu1 %vm491_vm0, %v2036_v50  ;;  %vm1740_vm3 = vweird.f32 %v6092_v31  ;;  %v10316_v50 = vld [vmem:[#allocation10_spill] sm:$0xff]  ;;  %vm2514_vm4 = vmor %vm2512_vm15, %vm2513_vm1  ;;  %vm1749_vm6 = vweird.f32 %v1193_v4 }
 0x4e0   : > { %v1732_v16 = vsel %vm1731_vm13, %v6088_v30, %v1728_v52  ;;  %v2508_v32 = vmul.f32 %v6090_v26, %v2507_v5  ;;  %vm1741_vm5 = vmor %vm1739_vm2, %vm1740_vm3 }
 0x4e1   : > { %v1895_v56 = vmul.f32 %v1732_v16, %v8151_v0  ;;  %v1735_v34 = vmul.f32 %v6092_v31, %v1734_v9  ;;  %v5793_v0 = vpack.i.bf16 %v10316_v50, %v10315_v15 }
 0x4e2   : > { %v2509_v62 = vmul.f32 0.5, %v2508_v32  ;;  %v8475_v45 = vpop.f32.mrf.mxu0  ;;  %v1050_v24 = vpop.xlane.xlu0 %1049 }
 0x4e3   : > { %v1736_v55 = vmul.f32 0.5, %v1735_v34  ;;  %v1960_v47 = vmul.f32 %v8350_v8, %v1895_v56  ;;  %v1130_v30 = vmul.f32 %v1050_v24, %v6514_v20  ;;  %v8489_v20 = vld [vmem:[%s10317_s5] ss:$0 sm:$0xff]  ;;  %v8495_v24 = vld [vmem:[%s10317_s5 + $0x1] ss:$0 sm:$0xff] }
 0x4e4   : > { %v2510_v25 = vsub.f32 1.5, %v2509_v62 }
 0x4e5   : > { %v6094_v52 = vpop.eup %6093  ;;  %v1737_v5 = vsub.f32 1.5, %v1736_v55  ;;  %v2025_v11 = vadd.f32 %v8452_v22, %v1960_v47  ;;  %v1194_v16 = vadd.f32 1e-05, %v1130_v30 }
 0x4e6   : > { %v2511_v9 = vmul.f32 %v6090_v26, %v2510_v25  ;;  %v1744_v27 = vmul.f32 %v6094_v52, %v1193_v4  ;;  %5794 = vrot.lane.b32.xlu0 %v5793_v0, %s10198_s15  ;;  %vm1750_vm7 = vweird.f32 %v6094_v52 }
 0x4e7   : > { %v1738_v32 = vmul.f32 %v6092_v31, %v1737_v5  ;;  %5459 = vmatmul.msk.f32.gmra.mxu0 %vm491_vm0, %v2025_v11  ;;  %6095 = vrsqrt.f32 %v1194_v16  ;;  %vm1751_vm8 = vmor %vm1749_vm6, %vm1750_vm7  ;;  %vm1759_vm9 = vweird.f32 %v1194_v16 }
 0x4e8   : > { %v2515_v56 = vsel %vm2514_vm4, %v6090_v26, %v2511_v9  ;;  %v1745_v34 = vmul.f32 %v6094_v52, %v1744_v27  ;;  %v8500_v5 = vpop.f32.mrf.mxu1  ;;  %v10320_v9 = vld [vmem:[#allocation14_spill] sm:$0xff] }
 0x4e9   : > { %v1742_v62 = vsel %vm1741_vm5, %v6092_v31, %v1738_v32  ;;  %v2546_v55 = vmul.f32 %v2515_v56, %v8205_v2  ;;  %10318 = vst [vmem:[#allocation55_spill] sm:$0xff] %v8500_v5  ;;  %v5913_v11 = vpack.i.bf16 %v7642_v60, %v8500_v5 }
 0x4ea   : > { %v1896_v47 = vmul.f32 %v1742_v62, %v8219_v44  ;;  %v1746_v25 = vmul.f32 0.5, %v1745_v34  ;;  %v2491_v30 = vpop.xlane.xlu1 %2490  ;;  %v8498_v0 = vpop.f32.mrf.mxu0  ;;  %v10319_v44 = vld [vmem:[#allocation15_spill] sm:$0xff] }
 0x4eb   : > { %v2499_v26 = vmul.f32 %v2491_v30, %v8177_v58  ;;  %v2551_v31 = vmul.f32 %v8489_v20, %v2546_v55  ;;  %5509 = vmatpush.xpose.msk.msrb.mxu1 %vm2454_vm14, %v8498_v0  ;;  %v5803_v4 = vpack.i.bf16 %v10320_v9, %v10319_v44  ;;  %5914 = vrot.lane.b32.xlu1 %v5913_v11, %s10198_s15 }
 0x4ec   : > { %v1747_v2 = vsub.f32 1.5, %v1746_v25  ;;  %v1961_v27 = vmul.f32 %v8350_v8, %v1896_v47 }
 0x4ed   : > { %v2503_v32 = vadd.f32 1e-05, %v2499_v26  ;;  %v2556_v56 = vadd.f32 %v8495_v24, %v2551_v31  ;;  %v6096_v34 = vpop.eup %6095 }
 0x4ee   : > { %v1748_v62 = vmul.f32 %v6094_v52, %v1747_v2  ;;  %5804 = vrot.lane.b32.xlu0 %v5803_v4, %s10198_s15  ;;  %v2026_v55 = vadd.f32 %v8452_v22, %v1961_v27  ;;  %v1754_v25 = vmul.f32 %v6096_v34, %v1194_v16  ;;  %vm1760_vm10 = vweird.f32 %v6096_v34 }
 0x4ef   : > { %6097 = vrsqrt.f32 %v2503_v32  ;;  %5471 = vmatmul.msk.f32.vlgmr.msra.gmra.mxu2 %vm2454_vm14, %v2556_v56  ;;  %5510 = vmatpush.xpose.msk.msrb.mxu1 %vm2454_vm14, %v8475_v45  ;;  %v10322_v56 = vld [vmem:[#allocation19_spill] sm:$0xff]  ;;  %vm1761_vm11 = vmor %vm1759_vm9, %vm1760_vm10  ;;  %vm2522_vm12 = vweird.f32 %v2503_v32 }
 0x4f0   : > { %v1752_v30 = vsel %vm1751_vm8, %v6094_v52, %v1748_v62  ;;  %5460 = vmatmul.msk.f32.gmra.mxu0 %vm491_vm0, %v2026_v55  ;;  %v1755_v26 = vmul.f32 %v6096_v34, %v1754_v25  ;;  %v8521_v4 = vpop.f32.mrf.mxu1  ;;  %v10323_v62 = vld [vmem:[#allocation18_spill] sm:$0xff] }
 0x4f1   : > { %v1897_v47 = vmul.f32 %v1752_v30, %v8259_v63  ;;  %10321 = vst [vmem:[#allocation56_spill] sm:$0xff] %v8521_v4  ;;  %v5813_v55 = vpack.i.bf16 %v10323_v62, %v10322_v56 }
 0x4f2   : > { %v2494_v31 = vpop.xlane.xlu2 %2493  ;;  %v1756_v11 = vmul.f32 0.5, %v1755_v26 }
 0x4f3   : > { %v2500_v2 = vmul.f32 %v2494_v31, %v8177_v58  ;;  %v1962_v27 = vmul.f32 %v8350_v8, %v1897_v47  ;;  %5511 = vmatpush.xpose.msk.msrb.mxu1 %vm2454_vm14, %v8458_v12 }
 0x4f4   : > { %v1757_v63 = vsub.f32 1.5, %v1756_v11 }
 0x4f5   : > { %v2504_v52 = vadd.f32 1e-05, %v2500_v2  ;;  %v6098_v60 = vpop.eup %6097  ;;  %v2027_v25 = vadd.f32 %v8452_v22, %v1962_v27 }
 0x4f6   : > { %v2517_v30 = vmul.f32 %v6098_v60, %v2503_v32  ;;  %5814 = vrot.lane.b32.xlu0 %v5813_v55, %s10198_s15  ;;  %v1758_v16 = vmul.f32 %v6096_v34, %v1757_v63  ;;  %vm2523_vm13 = vweird.f32 %v6098_v60 }
 0x4f7   : > { %6099 = vrsqrt.f32 %v2504_v52  ;;  %5512 = vmatpush.xpose.msk.msrb.mxu1 %vm2454_vm14, %v8436_v7  ;;  %vm2524_vm15 = vmor %vm2522_vm12, %vm2523_vm13  ;;  %vm2532_vm1 = vweird.f32 %v2504_v52 }
 0x4f8   : > { %v2518_v26 = vmul.f32 %v6098_v60, %v2517_v30  ;;  %5461 = vmatmul.msk.f32.gmra.mxu0 %vm491_vm0, %v2027_v25  ;;  %v1762_v47 = vsel %vm1761_vm11, %v6096_v34, %v1758_v16 }
 0x4f9   : > { %v1898_v31 = vmul.f32 %v1762_v47, %v8297_v57  ;;  %v8534_v11 = vpop.f32.mrf.mxu1 }
 0x4fa   : > { %v2519_v2 = vmul.f32 0.5, %v2518_v26  ;;  %10324 = vst [vmem:[#allocation57_spill] sm:$0xff] %v8534_v11  ;;  %v5828_v55 = vpack.i.bf16 %v7688_v36, %v8534_v11 }
 0x4fb   : > { %5513 = vmatpush.xpose.msk.msrb.mxu1 %vm2454_vm14, %v8426_v6  ;;  %v1963_v63 = vmul.f32 %v8350_v8, %v1898_v31 }
 0x4fc   : > { %v2520_v12 = vsub.f32 1.5, %v2519_v2  ;;  %5829 = vrot.lane.b32.xlu2 %v5828_v55, %s10198_s15 }
 0x4fd   : > { %v6100_v27 = vpop.eup %6099  ;;  %v2028_v57 = vadd.f32 %v8452_v22, %v1963_v63 }
 0x4fe   : > { %v2527_v25 = vmul.f32 %v6100_v27, %v2504_v52  ;;  %v2521_v34 = vmul.f32 %v6098_v60, %v2520_v12  ;;  %vm2533_vm2 = vweird.f32 %v6100_v27 }
 0x4ff   : > { %5514 = vmatpush.xpose.msk.msrb.mxu1 %vm2454_vm14, %v8422_v23  ;;  %vm2534_vm3 = vmor %vm2532_vm1, %vm2533_vm2 }
 0x500   : > { %v2528_v32 = vmul.f32 %v6100_v27, %v2527_v25  ;;  %v2525_v30 = vsel %vm2524_vm15, %v6098_v60, %v2521_v34  ;;  %5462 = vmatmul.msk.f32.gmra.mxu0 %vm491_vm0, %v2028_v57  ;;  %v5868_v25 = vpack.i.bf16 %v7714_v14, %v8419_v19  ;;  %v5820_v57 = vpop.permute.xlu2 %5819 }
 0x501   : > { %v2547_v26 = vmul.f32 %v2525_v30, %v8329_v1  ;;  %v8549_v12 = vpop.f32.mrf.mxu1  ;;  %v8581_v30 = vunpack.i.l.bf16 %v5820_v57 }
 0x502   : > { %v2529_v16 = vmul.f32 0.5, %v2528_v32  ;;  %v8547_v8 = vpop.permute.xlu1 %5799  ;;  %10325 = vst [vmem:[#allocation58_spill] sm:$0xff] %v8549_v12  ;;  %v5853_v60 = vpack.i.bf16 %v8549_v12, %v8403_v48 }
 0x503   : > { %v2552_v31 = vmul.f32 %v8489_v20, %v2547_v26  ;;  %5515 = vmatpush.xpose.msk.msrb.mxu1 %vm2454_vm14, %v8419_v19  ;;  %10328 = vst [vmem:[#allocation61_spill] sm:$0xff] %v8581_v30  ;;  %v10338_v19 = vld [vmem:[#allocation27_spill] sm:$0xff] }
 0x504   : > { %v2530_v47 = vsub.f32 1.5, %v2529_v16  ;;  %5854 = vrot.lane.b32.xlu2 %v5853_v60, %s10198_s15  ;;  %v8586_v16 = vunpack.i.h.bf16 %v5820_v57  ;;  %v8606_v60 = vpop.f32.mrf.mxu0 }
 0x505   : > { %v2557_v52 = vadd.f32 %v8495_v24, %v2552_v31  ;;  %10331 = vst [vmem:[#allocation64_spill] sm:$0xff] %v8606_v60 }
 0x506   : > { %v2531_v22 = vmul.f32 %v6100_v27, %v2530_v47  ;;  %10329 = vst [vmem:[#allocation62_spill] sm:$0xff] %v8586_v16 }
 0x507   : > { %5472 = vmatmul.msk.f32.gmra.mxu2 %vm2454_vm14, %v2557_v52  ;;  %5516 = vmatpush.xpose.msk.msrb.mxu1 %vm2454_vm14, %v8414_v43 }
 0x508   : > { %v2535_v1 = vsel %vm2534_vm3, %v6100_v27, %v2531_v22 }
 0x509   : > { %v2548_v2 = vmul.f32 %v2535_v1, %v8367_v59 }
 0x50a   : > { %v8562_v55 = vpop.permute.xlu1 %5809 }
 0x50b   : > { %v2553_v63 = vmul.f32 %v8489_v20, %v2548_v2  ;;  %5517 = vmatpush.xpose.msk.msrb.mxu1 %vm2454_vm14, %v8409_v13 }
 0x50c   : > { %5869 = vrot.lane.b32.xlu2 %v5868_v25, %s10198_s15  ;;  %v8609_v2 = vpop.f32.mrf.mxu0 }
 0x50d   : > { %v2558_v34 = vadd.f32 %v8495_v24, %v2553_v63  ;;  %10332 = vst [vmem:[#allocation65_spill] sm:$0xff] %v8609_v2 }
 0x50f   : > { %5473 = vmatmul.msk.f32.gmra.mxu2 %vm2454_vm14, %v2558_v34  ;;  %5518 = vmatpush.xpose.msk.msrb.mxu1 %vm2454_vm14, %v8403_v48 }
 0x512   : > { %v5825_v59 = vpop.permute.xlu1 %5824 }
 0x513   : > { %v8574_v27 = vunpack.i.l.bf16 %v5825_v59  ;;  %5519 = vmatpush.xpose.msk.msrb.mxu1 %vm2454_vm14, %v8393_v38  ;;  %v8578_v32 = vunpack.i.h.bf16 %v5825_v59 }
 0x514   : > { %v8611_v34 = vpop.f32.mrf.mxu0 }
 0x515   : > { %10326 = vst [vmem:[#allocation59_spill] sm:$0xff] %v8574_v27  ;;  %3133 = vmatpush.msrb.mxu3 %v8574_v27 }
 0x516   : > { %10327 = vst [vmem:[#allocation60_spill] sm:$0xff] %v8578_v32 }
 0x517   : > { %3134 = vmatpush.msrb.mxu3 %v8578_v32  ;;  %5520 = vmatpush.xpose.msk.msrb.mxu1 %vm2454_vm14, %v8386_v46  ;;  %10333 = vst [vmem:[#allocation66_spill] sm:$0xff] %v8611_v34 }
 0x519   : > { %3135 = vmatpush.msrb.mxu3 %v8581_v30 }
 0x51a   : > { %v8589_v26 = vpop.permute.xlu1 %5839 }
 0x51b   : > { %3136 = vmatpush.msrb.mxu3 %v8586_v16  ;;  %5521 = vmatpush.xpose.msk.msrb.mxu1 %vm2454_vm14, %v8369_v10  ;;  %v10335_v16 = vld [vmem:[#allocation28_spill] sm:$0xff] }
 0x51f   : > { %5522 = vmatpush.xpose.msk.msrb.mxu1 %vm2454_vm14, %v8331_v49 }
 0x522   : > { %v8598_v47 = vpop.permute.xlu1 %5844 }
 0x523   : > { %5523 = vmatpush.xpose.msk.msrb.mxu1 %vm2454_vm14, %v8276_v21  ;;  %v8601_v31 = vunpack.i.l.bf16 %v8598_v47 }
 0x525   : > { %10330 = vst [vmem:[#allocation63_spill] sm:$0xff] %v8601_v31 }
 0x527   : > { %5524 = vmatpush.xpose.msk.msrb.mxu1 %vm2454_vm14, %v8226_v61 }
 0x52b   : > { %3201 = vmatpush.msra.mxu1 %v8601_v31 }
 0x545   : > { %v2497_v22 = vpop.xlane.xlu0 %2496 }
 0x546   : > { %v2501_v52 = vmul.f32 %v2497_v22, %v8177_v58 }
 0x548   : > { %v2505_v1 = vadd.f32 1e-05, %v2501_v52 }
 0x54a   : > { %6101 = vrsqrt.f32 %v2505_v1  ;;  %vm2542_vm4 = vweird.f32 %v2505_v1 }
 0x550   : > { %v6102_v63 = vpop.eup %6101 }
 0x551   : > { %v2537_v25 = vmul.f32 %v6102_v63, %v2505_v1  ;;  %vm2543_vm0 = vweird.f32 %v6102_v63 }
 0x552   : > { %vm2544_vm5 = vmor %vm2542_vm4, %vm2543_vm0 }
 0x553   : > { %v2538_v59 = vmul.f32 %v6102_v63, %v2537_v25  ;;  %v8613_v57 = vpop.f32.mrf.mxu1 }
 0x554   : > { %10334 = vst [vmem:[#allocation67_spill] sm:$0xff] %v8613_v57  ;;  %v5833_v31 = vpack.i.bf16 %v10335_v16, %v8613_v57 }
 0x555   : > { %v2539_v48 = vmul.f32 0.5, %v2538_v59  ;;  %v5848_v59 = vpack.i.bf16 %v8393_v38, %v10338_v19 }
 0x556   : > { %5834 = vrot.lane.b32.xlu0 %v5833_v31, %s10198_s15 }
 0x557   : > { %v2540_v30 = vsub.f32 1.5, %v2539_v48 }
 0x558   : > { %v5795_v22 = vpop.permute.xlu0 %5794 }
 0x559   : > { %v2541_v52 = vmul.f32 %v6102_v63, %v2540_v30 }
 0x55b   : > { %v2545_v58 = vsel %vm2544_vm5, %v6102_v63, %v2541_v52  ;;  %v8618_v32 = vpop.f32.mrf.mxu0 }
 0x55c   : > { %10336 = vst [vmem:[#allocation28_spill] sm:$0xff] %v8618_v32  ;;  %v8620_v27 = vpop.f32.mrf.mxu1  ;;  %v2549_v25 = vmul.f32 %v2545_v58, %v8434_v18  ;;  %v10340_v58 = vld [vmem:[#allocation29_spill] sm:$0xff] }
 0x55d   : > { %10337 = vst [vmem:[#allocation68_spill] sm:$0xff] %v8620_v27  ;;  %5526 = vmatpush.xpose.msk.msra.mxu2 %vm2454_vm14, %v8620_v27  ;;  %v5858_v18 = vpack.i.bf16 %v8409_v13, %v10340_v58  ;;  %v5863_v52 = vpack.i.bf16 %v8620_v27, %v8414_v43 }
 0x55e   : > { %v2554_v48 = vmul.f32 %v8489_v20, %v2549_v25  ;;  %5849 = vrot.lane.b32.xlu0 %v5848_v59, %s10198_s15  ;;  %v8654_v59 = vunpack.i.l.bf16 %v8562_v55 }
 0x560   : > { %v2559_v30 = vadd.f32 %v8495_v24, %v2554_v48  ;;  %v5805_v31 = vpop.permute.xlu0 %5804  ;;  %10344 = vst [vmem:[#allocation71_spill] sm:$0xff] %v8654_v59  ;;  %v8659_v48 = vunpack.i.h.bf16 %v8562_v55 }
 0x561   : > { %5527 = vmatpush.xpose.msk.msra.mxu2 %vm2454_vm14, %v8613_v57 }
 0x562   : > { %5474 = vmatmul.msk.f32.gmra.mxu2 %vm2454_vm14, %v2559_v30  ;;  %10345 = vst [vmem:[#allocation72_spill] sm:$0xff] %v8659_v48  ;;  %v8664_v30 = vunpack.i.l.bf16 %v5805_v31 }
 0x564   : > { %v8633_v1 = vpop.f32.mrf.mxu0  ;;  %10346 = vst [vmem:[#allocation73_spill] sm:$0xff] %v8664_v30 }
 0x565   : > { %10339 = vst [vmem:[#allocation27_spill] sm:$0xff] %v8633_v1  ;;  %5528 = vmatpush.xpose.msk.msra.mxu2 %vm2454_vm14, %v8549_v12 }
 0x566   : > { %5859 = vrot.lane.b32.xlu0 %v5858_v18, %s10198_s15 }
 0x568   : > { %v5815_v20 = vpop.permute.xlu0 %5814 }
 0x569   : > { %5529 = vmatpush.xpose.msk.msra.mxu2 %vm2454_vm14, %v8534_v11  ;;  %v8642_v24 = vunpack.i.l.bf16 %v5815_v20  ;;  %v8644_v63 = vunpack.i.h.bf16 %v5815_v20  ;;  %v8668_v20 = vunpack.i.h.bf16 %v5805_v31  ;;  %v8683_v31 = vunpack.i.h.bf16 %v8547_v8 }
 0x56b   : > { %10341 = vst [vmem:[#allocation29_spill] sm:$0xff] %v8642_v24  ;;  %3137 = vmatpush.msrb.mxu3 %v8642_v24 }
 0x56c   : > { %10342 = vst [vmem:[#allocation69_spill] sm:$0xff] %v8644_v63 }
 0x56d   : > { %v8649_v25 = vpop.f32.mrf.mxu0  ;;  %5530 = vmatpush.xpose.msk.msra.mxu2 %vm2454_vm14, %v8521_v4  ;;  %3138 = vmatpush.msrb.mxu3 %v8644_v63  ;;  %10347 = vst [vmem:[#allocation74_spill] sm:$0xff] %v8668_v20  ;;  %v8764_v63 = vpop.permute.xlu2 %5829 }
 0x56e   : > { %10343 = vst [vmem:[#allocation70_spill] sm:$0xff] %v8649_v25  ;;  %5864 = vrot.lane.b32.xlu0 %v5863_v52, %s10198_s15  ;;  %v10348_v52 = vld [vmem:[#allocation30_spill] sm:$0xff] }
 0x56f   : > { %3139 = vmatpush.msrb.mxu3 %v8654_v59  ;;  %v5873_v55 = vpack.i.bf16 %v10348_v52, %v8422_v23  ;;  %v8678_v59 = vunpack.i.l.bf16 %v8547_v8  ;;  %10351 = vst [vmem:[#allocation76_spill] sm:$0xff] %v8683_v31  ;;  %v8699_v8 = vunpack.i.h.bf16 %v8598_v47  ;;  %v10358_v47 = vld [vmem:[#allocation34_spill] sm:$0xff] }
 0x571   : > { %5531 = vmatpush.xpose.msk.msra.mxu2 %vm2454_vm14, %v8500_v5  ;;  %3140 = vmatpush.msrb.mxu3 %v8659_v48  ;;  %10350 = vst [vmem:[#allocation75_spill] sm:$0xff] %v8678_v59 }
 0x572   : > { %v2593_v18 = vpop.f32.mrf.mxu2  ;;  %10356 = vst [vmem:[#allocation79_spill] sm:$0xff] %v8699_v8 }
 0x573   : > { %5491 = vmatmul.msk.f32.vlgmr.msrb.gmra.mxu2 %vm2454_vm14, %v2593_v18  ;;  %3141 = vmatpush.msrb.mxu3 %v8664_v30  ;;  %v8688_v18 = vunpack.i.l.bf16 %v5795_v22  ;;  %v8691_v30 = vunpack.i.h.bf16 %v5795_v22  ;;  %v8706_v22 = vunpack.i.l.bf16 %v8589_v26 }
 0x575   : > { %v8673_v38 = vpop.f32.mrf.mxu0  ;;  %5532 = vmatpush.xpose.msk.msra.mxu2 %vm2454_vm14, %v8477_v33  ;;  %3142 = vmatpush.msrb.mxu3 %v8668_v20  ;;  %10352 = vst [vmem:[#allocation77_spill] sm:$0xff] %v8688_v18  ;;  %v10354_v20 = vld [vmem:[#allocation32_spill] sm:$0xff] }
 0x576   : > { %10349 = vst [vmem:[#allocation30_spill] sm:$0xff] %v8673_v38  ;;  %5874 = vrot.lane.b32.xlu0 %v5873_v55, %s10198_s15  ;;  %v5883_v48 = vpack.i.bf16 %v10354_v20, %v8436_v7 }
 0x577   : > { %3143 = vmatpush.msrb.mxu3 %v8678_v59  ;;  %10353 = vst [vmem:[#allocation78_spill] sm:$0xff] %v8691_v30 }
 0x578   : > { %10357 = vst [vmem:[#allocation80_spill] sm:$0xff] %v8706_v22 }
 0x579   : > { %5533 = vmatpush.xpose.msk.msra.mxu2 %vm2454_vm14, %v8461_v53  ;;  %3144 = vmatpush.msrb.mxu3 %v8683_v31 }
 0x57b   : > { %3145 = vmatpush.msrb.mxu3 %v8688_v18  ;;  %v5893_v18 = vpack.i.bf16 %v10358_v47, %v8475_v45 }
 0x57d   : > { %v8696_v55 = vpop.f32.mrf.mxu0  ;;  %3146 = vmatpush.msrb.mxu3 %v8691_v30 }
 0x57e   : > { %10355 = vst [vmem:[#allocation32_spill] sm:$0xff] %v8696_v55  ;;  %5534 = vmatpush.xpose.msk.msra.mxu2 %vm2454_vm14, %v8696_v55  ;;  %5884 = vrot.lane.b32.xlu0 %v5883_v48, %s10198_s15 }
 0x57f   : > { %3147 = vmatpush.msrb.mxu3 %v8699_v8  ;;  %v10359_v8 = vld [vmem:[#allocation36_spill] sm:$0xff] }
 0x580   : > { %v5898_v30 = vpack.i.bf16 %v8498_v0, %v10359_v8 }
 0x581   : > { %3148 = vmatpush.msrb.mxu3 %v8706_v22 }
 0x582   : > { %5535 = vmatpush.xpose.msk.msra.mxu2 %vm2454_vm14, %v8673_v38 }
 0x586   : > { %5536 = vmatpush.xpose.msk.msra.mxu2 %vm2454_vm14, %v8649_v25  ;;  %5894 = vrot.lane.b32.xlu0 %v5893_v18, %s10198_s15  ;;  %v5903_v18 = vpack.i.bf16 %v8521_v4, %v8386_v46  ;;  %v5880_v4 = vpop.permute.xlu1 %5879 }
 0x58a   : > { %5537 = vmatpush.xpose.msk.msra.mxu2 %vm2454_vm14, %v8633_v1  ;;  %v2596_v48 = vpop.f32.mrf.mxu2 }
 0x58b   : > { %5508 = vmatmul.msk.f32.vlgmr.msra.gmra.mxu3 %vm2454_vm14, %v2596_v48  ;;  %v3359_v48 = vld [vmem:[%s9970_s6 + $0x10] sm:$0xff] }
 0x58e   : > { %5538 = vmatpush.xpose.msk.msra.mxu2 %vm2454_vm14, %v8618_v32  ;;  %5899 = vrot.lane.b32.xlu0 %v5898_v30, %s10198_s15  ;;  %v3360_v30 = vld [vmem:[%s9970_s6 + $0x18] sm:$0xff] }
 0x592   : > { %5539 = vmatpush.xpose.msk.msra.mxu2 %vm2454_vm14, %v8611_v34  ;;  %v2599_v22 = vpop.f32.mrf.mxu2 }
 0x593   : > { %5525 = vmatmul.msk.f32.vlgmr.msrb.gmra.mxu1 %vm2454_vm14, %v2599_v22  ;;  %v3358_v22 = vld [vmem:[%s9970_s6 + $0x8] sm:$0xff] }
 0x596   : > { %5540 = vmatpush.xpose.msk.msra.mxu2 %vm2454_vm14, %v8609_v2  ;;  %5904 = vrot.lane.b32.xlu0 %v5903_v18, %s10198_s15  ;;  %v3357_v18 = vld [vmem:[%s9970_s6] sm:$0xff] }
 0x59a   : > { %5541 = vmatpush.xpose.msk.msra.mxu2 %vm2454_vm14, %v8606_v60 }
 0x59e   : > { %3388 = vmatpush.msrb.mxu2 %v3360_v30 }
 0x5a0   : > { %3389 = vmatpush.msrb.mxu2 %v3359_v48 }
 0x5a2   : > { %3390 = vmatpush.msrb.mxu2 %v3358_v22 }
 0x5a4   : > { %3391 = vmatpush.msrb.mxu2 %v3357_v18 }
 0x5c8   : > { %v8747_v31 = vpop.permute.xlu0 %5834 }
 0x5d0   : > { %v8749_v59 = vpop.permute.xlu0 %5849 }
 0x5d8   : > { %v8751_v46 = vpop.permute.xlu0 %5859 }
 0x5e0   : > { %v8753_v5 = vpop.permute.xlu0 %5864 }
 0x5e5   : > { %v2602_v30 = vpop.f32.mrf.mxu2 }
 0x5e6   : > { %5542 = vmatmul.msk.f32.vlgmr.msra.gmra.mxu2 %vm2454_vm14, %v2602_v30 }
 0x5e7   : > { %5559 = vmatpush.xpose.msk.msra.mxu2 %vm2454_vm14, %v10300_v28 }
 0x5e8   : > { %v5875_v48 = vpop.permute.xlu0 %5874 }
 0x5eb   : > { %5560 = vmatpush.xpose.msk.msra.mxu2 %vm2454_vm14, %v10301_v3 }
 0x5ef   : > { %5561 = vmatpush.xpose.msk.msra.mxu2 %vm2454_vm14, %v7248_v41 }
 0x5f0   : > { %v5885_v22 = vpop.permute.xlu0 %5884 }
 0x5f3   : > { %5562 = vmatpush.xpose.msk.msra.mxu2 %vm2454_vm14, %v7225_v17  ;;  %v8772_v17 = vpop.permute.xlu2 %5854 }
 0x5f6   : > { %v2673_v18 = vpop.f32.mrf.mxu2 }
 0x5f7   : > { %v2889_v24 = vmul.f32 0.17677669, %v2673_v18  ;;  %5563 = vmatpush.xpose.msk.msra.mxu2 %vm2454_vm14, %v10322_v56  ;;  %v5890_v56 = vpop.permute.xlu1 %5889 }
 0x5f8   : > { %v5895_v28 = vpop.permute.xlu0 %5894 }
 0x5f9   : > { %v2893_v30 = vrot.slane %v2889_v24, 4 }
 0x5fb   : > { %v2894_v13 = vmax.f32 %v2889_v24, %v2893_v30  ;;  %5564 = vmatpush.xpose.msk.msra.mxu2 %vm2454_vm14, %v10323_v62  ;;  %v8781_v30 = vunpack.i.h.bf16 %v8589_v26  ;;  %v8789_v62 = vunpack.i.h.bf16 %v5895_v28  ;;  %v8801_v26 = vunpack.i.l.bf16 %v5880_v4 }
 0x5fd   : > { %v2895_v3 = vrot.slane %v2894_v13, 2  ;;  %10361 = vst [vmem:[#allocation82_spill] sm:$0xff] %v8781_v30 }
 0x5fe   : > { %10364 = vst [vmem:[#allocation85_spill] sm:$0xff] %v8789_v62 }
 0x5ff   : > { %v2896_v41 = vmax.f32 %v2894_v13, %v2895_v3  ;;  %5565 = vmatpush.xpose.msk.msra.mxu2 %vm2454_vm14, %v7203_v40  ;;  %v8783_v3 = vunpack.i.l.bf16 %v5895_v28  ;;  %v8787_v40 = vunpack.i.l.bf16 %v5890_v56  ;;  %10367 = vst [vmem:[#allocation88_spill] sm:$0xff] %v8801_v26  ;;  %v8803_v28 = vunpack.i.h.bf16 %v5885_v22 }
 0x600   : > { %v5900_v43 = vpop.permute.xlu0 %5899 }
 0x601   : > { %v2897_v11 = vrot.slane %v2896_v41, 1  ;;  %v8774_v18 = vunpack.i.h.bf16 %v5900_v43  ;;  %v8776_v12 = vunpack.i.l.bf16 %v5900_v43  ;;  %10362 = vst [vmem:[#allocation83_spill] sm:$0xff] %v8783_v3  ;;  %v8795_v43 = vunpack.i.h.bf16 %v5890_v56 }
 0x602   : > { %10363 = vst [vmem:[#allocation84_spill] sm:$0xff] %v8787_v40  ;;  %v8809_v56 = vunpack.i.h.bf16 %v5880_v4 }
 0x603   : > { %10360 = vst [vmem:[#allocation81_spill] sm:$0xff] %v8774_v18  ;;  %v2898_v57 = vmax.f32 %v2896_v41, %v2897_v11  ;;  %5566 = vmatpush.xpose.msk.msra.mxu2 %vm2454_vm14, %v7201_v37  ;;  %3202 = vmatpush.msra.mxu1 %v8776_v12  ;;  %v8797_v11 = vunpack.i.l.bf16 %v5885_v22  ;;  %v8817_v22 = vunpack.i.h.bf16 %v5875_v48  ;;  %v8828_v37 = vunpack.i.l.bf16 %v8753_v5 }
 0x604   : > { %3269 = vmatpush.msra.mxu3 %v8774_v18  ;;  %10365 = vst [vmem:[#allocation86_spill] sm:$0xff] %v8795_v43 }
 0x605   : > { %v2917_v13 = vsub.f32 %v2889_v24, %v2898_v57  ;;  %3203 = vmatpush.msra.mxu1 %v8781_v30  ;;  %10366 = vst [vmem:[#allocation87_spill] sm:$0xff] %v8797_v11  ;;  %v5870_v57 = vpop.permute.xlu2 %5869  ;;  %v8811_v24 = vunpack.i.l.bf16 %v5875_v48 }
 0x606   : > { %3270 = vmatpush.msra.mxu3 %v8783_v3  ;;  %10368 = vst [vmem:[#allocation89_spill] sm:$0xff] %v8803_v28  ;;  %v8825_v4 = vunpack.i.h.bf16 %v5870_v57 }
 0x607   : > { %v2921_v41 = vmul.f32 1.442695, %v2917_v13  ;;  %5567 = vmatpush.xpose.msk.msra.mxu2 %vm2454_vm14, %v10319_v44  ;;  %3204 = vmatpush.msra.mxu1 %v8789_v62  ;;  %10369 = vst [vmem:[#allocation90_spill] sm:$0xff] %v8809_v56  ;;  %v8815_v13 = vunpack.i.l.bf16 %v5870_v57 }
 0x608   : > { %3271 = vmatpush.msra.mxu3 %v8787_v40  ;;  %10370 = vst [vmem:[#allocation91_spill] sm:$0xff] %v8811_v24  ;;  %v8834_v40 = vunpack.i.h.bf16 %v8751_v46 }
 0x609   : > { %6103 = vpow2.f32 %v2921_v41  ;;  %3205 = vmatpush.msra.mxu1 %v8795_v43  ;;  %10371 = vst [vmem:[#allocation92_spill] sm:$0xff] %v8815_v13 }
 0x60a   : > { %3272 = vmatpush.msra.mxu3 %v8797_v11  ;;  %10372 = vst [vmem:[#allocation93_spill] sm:$0xff] %v8817_v22 }
 0x60b   : > { %5568 = vmatpush.xpose.msk.msra.mxu2 %vm2454_vm14, %v10320_v9  ;;  %3206 = vmatpush.msra.mxu1 %v8803_v28  ;;  %10373 = vst [vmem:[#allocation94_spill] sm:$0xff] %v8825_v4 }
 0x60c   : > { %3273 = vmatpush.msra.mxu3 %v8801_v26  ;;  %10374 = vst [vmem:[#allocation95_spill] sm:$0xff] %v8828_v37 }
 0x60d   : > { %3207 = vmatpush.msra.mxu1 %v8809_v56  ;;  %10375 = vst [vmem:[#allocation96_spill] sm:$0xff] %v8834_v40 }
 0x60e   : > { %v2744_v41 = vpop.f32.mrf.mxu3  ;;  %3274 = vmatpush.msra.mxu3 %v8811_v24 }
 0x60f   : > { %v8821_v44 = vpop.eup %6103  ;;  %v2890_v9 = vmul.f32 0.17677669, %v2744_v41  ;;  %5569 = vmatpush.xpose.msk.msra.mxu2 %vm2454_vm14, %v7189_v42  ;;  %3208 = vmatpush.msra.mxu1 %v8817_v22  ;;  %v8837_v41 = vunpack.i.l.bf16 %v8751_v46  ;;  %v8852_v46 = vpop.permute.xlu0 %5904 }
 0x610   : > { %v2929_v26 = vrot.slane %v8821_v44, 4  ;;  %v2815_v48 = vpop.f32.mrf.mxu1  ;;  %3275 = vmatpush.msra.mxu3 %v8815_v13  ;;  %v8845_v13 = vunpack.i.l.bf16 %v8772_v17 }
 0x611   : > { %v2899_v11 = vrot.slane %v2890_v9, 4  ;;  %v2891_v24 = vmul.f32 0.17677669, %v2815_v48  ;;  %10376 = vst [vmem:[#allocation97_spill] sm:$0xff] %v8837_v41  ;;  %3209 = vmatpush.msra.mxu1 %v8825_v4  ;;  %v8848_v48 = vunpack.i.h.bf16 %v8747_v31 }
 0x612   : > { %v2930_v57 = vadd.f32 %v8821_v44, %v2929_v26  ;;  %3276 = vmatpush.msra.mxu3 %v8828_v37  ;;  %10377 = vst [vmem:[#allocation98_spill] sm:$0xff] %v8845_v13 }
 0x613   : > { %v2900_v42 = vmax.f32 %v2890_v9, %v2899_v11  ;;  %v2905_v3 = vrot.slane %v2891_v24, 4  ;;  %5570 = vmatpush.xpose.msk.msra.mxu2 %vm2454_vm14, %v7176_v29  ;;  %10378 = vst [vmem:[#allocation99_spill] sm:$0xff] %v8848_v48  ;;  %3210 = vmatpush.msra.mxu1 %v8837_v41  ;;  %v8855_v11 = vunpack.i.h.bf16 %v8749_v59  ;;  %v8858_v29 = vunpack.i.l.bf16 %v8749_v59 }
 0x614   : > { %v2931_v18 = vrot.slane %v2930_v57, 2  ;;  %3277 = vmatpush.msra.mxu3 %v8834_v40  ;;  %v8865_v40 = vunpack.i.h.bf16 %v8764_v63 }
 0x615   : > { %v2901_v26 = vrot.slane %v2900_v42, 2  ;;  %v2906_v37 = vmax.f32 %v2891_v24, %v2905_v3  ;;  %10379 = vst [vmem:[#allocation100_spill] sm:$0xff] %v8855_v11  ;;  %3211 = vmatpush.msra.mxu1 %v8848_v48  ;;  %v8868_v3 = vunpack.i.l.bf16 %v8852_v46 }
 0x616   : > { %10380 = vst [vmem:[#allocation101_spill] sm:$0xff] %v8858_v29  ;;  %3278 = vmatpush.msra.mxu3 %v8845_v13  ;;  %v2932_v4 = vadd.f32 %v2931_v18, %v2930_v57 }
 0x617   : > { %v2907_v22 = vrot.slane %v2906_v37, 2  ;;  %5571 = vmatpush.xpose.msk.msra.mxu2 %vm2454_vm14, %v10315_v15  ;;  %10381 = vst [vmem:[#allocation102_spill] sm:$0xff] %v8865_v40  ;;  %v2902_v41 = vmax.f32 %v2900_v42, %v2901_v26  ;;  %3212 = vmatpush.msra.mxu1 %v8858_v29 }
 0x618   : > { %10382 = vst [vmem:[#allocation103_spill] sm:$0xff] %v8868_v3  ;;  %3279 = vmatpush.msra.mxu3 %v8855_v11  ;;  %v2933_v59 = vrot.slane %v2932_v4, 1 }
 0x619   : > { %v2908_v48 = vmax.f32 %v2906_v37, %v2907_v22  ;;  %3213 = vmatpush.msra.mxu1 %v8865_v40  ;;  %v2903_v15 = vrot.slane %v2902_v41, 1 }
 0x61a   : > { %3280 = vmatpush.msra.mxu3 %v8868_v3  ;;  %v2934_v18 = vadd.f32 %v2933_v59, %v2932_v4 }
 0x61b   : > { %v2909_v57 = vrot.slane %v2908_v48, 1  ;;  %5572 = vmatpush.xpose.msk.msra.mxu2 %vm2454_vm14, %v10316_v50  ;;  %v2904_v42 = vmax.f32 %v2902_v41, %v2903_v15 }
 0x61c   : > { %6105 = vrcp.f32 %v2934_v18  ;;  %v2964_v59 = vand.u32 2147483648, %v2934_v18  ;;  %v2962_v50 = vand.u32 2147483647, %v2934_v18  ;;  %vm2958_vm7 = vweird.f32 %v2934_v18 }
 0x61d   : > { %v2910_v13 = vmax.f32 %v2908_v48, %v2909_v57  ;;  %v2918_v22 = vsub.f32 %v2890_v9, %v2904_v42 }
 0x61e   : > { %v2965_v15 = vor.u32 1.1754944e-38, %v2964_v59  ;;  %vm2963_vm9 = vcmp.eq.f32.partialorder %v2962_v50, 8.507059e+37 }
 0x61f   : > { %v2919_v56 = vsub.f32 %v2891_v24, %v2910_v13  ;;  %5573 = vmatpush.xpose.msk.msra.mxu2 %vm2454_vm14, %v10305_v51  ;;  %v2923_v40 = vmul.f32 1.442695, %v2918_v22 }
 0x621   : > { %v2925_v26 = vmul.f32 1.442695, %v2919_v56 }
 0x622   : > { %v6106_v11 = vpop.eup %6105 }
 0x623   : > { %6107 = vpow2.f32 %v2925_v26  ;;  %5574 = vmatpush.xpose.msk.msra.mxu2 %vm2454_vm14, %v10303_v35  ;;  %v2954_v37 = vmul.f32 %v6106_v11, %v2934_v18  ;;  %vm2959_vm6 = vweird.f32 %v6106_v11 }
 0x624   : > { %vm2960_vm8 = vmor %vm2958_vm7, %vm2959_vm6  ;;  %6109 = vpow2.f32 %v2923_v40 }
 0x625   : > { %v2955_v4 = vsub.f32 1.0, %v2954_v37 }
 0x627   : > { %v2956_v3 = vmul.f32 %v6106_v11, %v2955_v4 }
 0x629   : > { %v6108_v48 = vpop.eup %6107  ;;  %v2957_v24 = vadd.f32 %v6106_v11, %v2956_v3 }
 0x62a   : > { %v2941_v13 = vrot.slane %v6108_v48, 4  ;;  %v6110_v22 = vpop.eup %6109 }
 0x62b   : > { %v2961_v56 = vsel %vm2960_vm8, %v6106_v11, %v2957_v24  ;;  %v2935_v18 = vrot.slane %v6110_v22, 4 }
 0x62c   : > { %v2942_v41 = vadd.f32 %v6108_v48, %v2941_v13  ;;  %v2966_v57 = vsel %vm2963_vm9, %v2965_v15, %v2961_v56 }
 0x62d   : > { %v3009_v26 = vmul.f32 %v8821_v44, %v2966_v57  ;;  %v2936_v35 = vadd.f32 %v6110_v22, %v2935_v18 }
 0x62e   : > { %v2943_v9 = vrot.slane %v2942_v41, 2 }
 0x62f   : > { %v8881_v42 = vadd.f32 1e-08, %v3009_v26  ;;  %v2937_v11 = vrot.slane %v2936_v35, 2 }
 0x630   : > { %v2944_v37 = vadd.f32 %v2943_v9, %v2942_v41 }
 0x631   : > { %3017 = vadd.xlane.f32.xlu2 %v8881_v42  ;;  %v2938_v15 = vadd.f32 %v2937_v11, %v2936_v35 }
 0x632   : > { %v2945_v4 = vrot.slane %v2944_v37, 1 }
 0x633   : > { %v2939_v26 = vrot.slane %v2938_v15, 1 }
 0x634   : > { %v2946_v3 = vadd.f32 %v2945_v4, %v2944_v37  ;;  %v10383_v37 = vld [vmem:[#allocation26_spill] sm:$0xff] }
 0x635   : > { %v5908_v4 = vpack.i.bf16 %v8369_v10, %v10383_v37 }
 0x636   : > { %6111 = vrcp.f32 %v2946_v3  ;;  %v2992_v24 = vand.u32 2147483648, %v2946_v3  ;;  %v2990_v44 = vand.u32 2147483647, %v2946_v3  ;;  %vm2986_vm11 = vweird.f32 %v2946_v3 }
 0x638   : > { %v2993_v41 = vor.u32 1.1754944e-38, %v2992_v24  ;;  %vm2991_vm13 = vcmp.eq.f32.partialorder %v2990_v44, 8.507059e+37 }
 0x63c   : > { %v6112_v59 = vpop.eup %6111 }
 0x63d   : > { %v2982_v50 = vmul.f32 %v6112_v59, %v2946_v3  ;;  %vm2987_vm10 = vweird.f32 %v6112_v59 }
 0x63e   : > { %vm2988_vm12 = vmor %vm2986_vm11, %vm2987_vm10 }
 0x63f   : > { %v2983_v40 = vsub.f32 1.0, %v2982_v50 }
 0x641   : > { %v2984_v13 = vmul.f32 %v6112_v59, %v2983_v40  ;;  %v2940_v40 = vadd.f32 %v2939_v26, %v2938_v15  ;;  %v5943_v26 = vpack.i.bf16 %v8611_v34, %v8618_v32 }
 0x643   : > { %v2985_v56 = vadd.f32 %v6112_v59, %v2984_v13  ;;  %6113 = vrcp.f32 %v2940_v40  ;;  %v2978_v44 = vand.u32 2147483648, %v2940_v40  ;;  %vm2972_vm1 = vweird.f32 %v2940_v40 }
 0x645   : > { %v2989_v57 = vsel %vm2988_vm12, %v6112_v59, %v2985_v56  ;;  %v5933_v59 = vpack.i.bf16 %v8673_v38, %v8696_v55  ;;  %v2979_v15 = vor.u32 1.1754944e-38, %v2978_v44 }
 0x646   : > { %v2994_v9 = vsel %vm2991_vm13, %v2993_v41, %v2989_v57 }
 0x647   : > { %v3011_v18 = vmul.f32 %v6108_v48, %v2994_v9  ;;  %v2976_v48 = vand.u32 2147483647, %v2940_v40 }
 0x649   : > { %5909 = vrot.lane.b32.xlu2 %v5908_v4, %s10198_s15  ;;  %v8887_v50 = vadd.f32 1e-08, %v3011_v18  ;;  %v6114_v35 = vpop.eup %6113  ;;  %vm2977_vm3 = vcmp.eq.f32.partialorder %v2976_v48, 8.507059e+37 }
 0x64a   : > { %v2968_v3 = vmul.f32 %v6114_v35, %v2940_v40  ;;  %vm2973_vm15 = vweird.f32 %v6114_v35 }
 0x64b   : > { %3021 = vadd.xlane.f32.xlu1 %v8887_v50  ;;  %vm2974_vm2 = vmor %vm2972_vm1, %vm2973_vm15 }
 0x64c   : > { %v2969_v11 = vsub.f32 1.0, %v2968_v3 }
 0x64e   : > { %v2970_v24 = vmul.f32 %v6114_v35, %v2969_v11 }
 0x650   : > { %v2971_v13 = vadd.f32 %v6114_v35, %v2970_v24 }
 0x652   : > { %v2975_v56 = vsel %vm2974_vm2, %v6114_v35, %v2971_v13 }
 0x653   : > { %v2980_v57 = vsel %vm2977_vm3, %v2979_v15, %v2975_v56 }
 0x654   : > { %v3010_v18 = vmul.f32 %v6110_v22, %v2980_v57 }
 0x656   : > { %v8896_v24 = vadd.f32 1e-08, %v3010_v18  ;;  %v10384_v18 = vld [vmem:[#allocation24_spill] sm:$0xff] }
 0x664   : > { %5934 = vrot.lane.b32.xlu1 %v5933_v59, %s10198_s15 }
 0x669   : > { %v2886_v41 = vpop.f32.mrf.mxu2 }
 0x66a   : > { %v2892_v9 = vmul.f32 0.17677669, %v2886_v41 }
 0x66c   : > { %v2911_v4 = vrot.slane %v2892_v9, 4  ;;  %5944 = vrot.lane.b32.xlu1 %v5943_v26, %s10198_s15  ;;  %v5918_v26 = vpack.i.bf16 %v8477_v33, %v8331_v49 }
 0x66e   : > { %v2912_v3 = vmax.f32 %v2892_v9, %v2911_v4 }
 0x670   : > { %v2913_v11 = vrot.slane %v2912_v3, 2 }
 0x672   : > { %v2914_v59 = vmax.f32 %v2912_v3, %v2913_v11  ;;  %3019 = vadd.xlane.f32.xlu2 %v8896_v24  ;;  %v5923_v3 = vpack.i.bf16 %v8276_v21, %v10384_v18 }
 0x674   : > { %v2915_v40 = vrot.slane %v2914_v59, 1 }
 0x676   : > { %v2916_v35 = vmax.f32 %v2914_v59, %v2915_v40  ;;  %v5928_v59 = vpack.i.bf16 %v8226_v61, %v8461_v53 }
 0x678   : > { %v2920_v13 = vsub.f32 %v2892_v9, %v2916_v35 }
 0x67a   : > { %v2927_v44 = vmul.f32 1.442695, %v2920_v13 }
 0x67c   : > { %6115 = vpow2.f32 %v2927_v44 }
 0x682   : > { %v6116_v48 = vpop.eup %6115 }
 0x683   : > { %v2947_v56 = vrot.slane %v6116_v48, 4 }
 0x685   : > { %v2948_v15 = vadd.f32 %v6116_v48, %v2947_v56 }
 0x687   : > { %v2949_v41 = vrot.slane %v2948_v15, 2 }
 0x689   : > { %v2950_v22 = vadd.f32 %v2949_v41, %v2948_v15 }
 0x68a   : > { %5919 = vrot.lane.b32.xlu2 %v5918_v26, %s10198_s15 }
 0x68b   : > { %v2951_v57 = vrot.slane %v2950_v22, 1 }
 0x68d   : > { %v2952_v4 = vadd.f32 %v2951_v57, %v2950_v22  ;;  %v5938_v22 = vpack.i.bf16 %v8633_v1, %v8649_v25 }
 0x68f   : > { %6117 = vrcp.f32 %v2952_v4  ;;  %v3006_v35 = vand.u32 2147483648, %v2952_v4  ;;  %v3004_v44 = vand.u32 2147483647, %v2952_v4  ;;  %vm3000_vm4 = vweird.f32 %v2952_v4 }
 0x691   : > { %v3007_v15 = vor.u32 1.1754944e-38, %v3006_v35  ;;  %vm3005_vm6 = vcmp.eq.f32.partialorder %v3004_v44, 8.507059e+37 }
 0x692   : > { %5924 = vrot.lane.b32.xlu2 %v5923_v3, %s10198_s15 }
 0x695   : > { %v6118_v9 = vpop.eup %6117 }
 0x696   : > { %v2996_v11 = vmul.f32 %v6118_v9, %v2952_v4  ;;  %vm3001_vm0 = vweird.f32 %v6118_v9  ;;  %v5948_v4 = vpack.i.bf16 %v8606_v60, %v8609_v2 }
 0x697   : > { %vm3002_vm5 = vmor %vm3000_vm4, %vm3001_vm0 }
 0x698   : > { %v2997_v40 = vsub.f32 1.0, %v2996_v11 }
 0x69a   : > { %5929 = vrot.lane.b32.xlu2 %v5928_v59, %s10198_s15  ;;  %v2998_v13 = vmul.f32 %v6118_v9, %v2997_v40  ;;  %v8917_v59 = vpop.permute.xlu1 %5914 }
 0x69c   : > { %v2999_v56 = vadd.f32 %v6118_v9, %v2998_v13 }
 0x69e   : > { %v3003_v41 = vsel %vm3002_vm5, %v6118_v9, %v2999_v56  ;;  %v8924_v56 = vunpack.i.h.bf16 %v8917_v59 }
 0x69f   : > { %v3008_v26 = vsel %vm3005_vm6, %v3007_v15, %v3003_v41 }
 0x6a0   : > { %v3012_v57 = vmul.f32 %v6116_v48, %v3008_v26  ;;  %10387 = vst [vmem:[#allocation104_spill] sm:$0xff] %v8924_v56 }
 0x6a2   : > { %5939 = vrot.lane.b32.xlu2 %v5938_v22, %s10198_s15  ;;  %v8911_v3 = vadd.f32 1e-08, %v3012_v57 }
 0x6a4   : > { %v3018_v11 = vpop.xlane.xlu2 %3017  ;;  %3023 = vadd.xlane.f32.xlu0 %v8911_v3 }
 0x6a5   : > { %6119 = vrcp.f32 %v3018_v11  ;;  %v3036_v15 = vand.u32 2147483648, %v3018_v11  ;;  %v3034_v26 = vand.u32 2147483647, %v3018_v11  ;;  %vm3030_vm8 = vweird.f32 %v3018_v11 }
 0x6a7   : > { %v3037_v57 = vor.u32 1.1754944e-38, %v3036_v15  ;;  %vm3035_vm10 = vcmp.eq.f32.partialorder %v3034_v26, 8.507059e+37 }
 0x6aa   : > { %5949 = vrot.lane.b32.xlu2 %v5948_v4, %s10198_s15 }
 0x6ab   : > { %v6120_v9 = vpop.eup %6119 }
 0x6ac   : > { %v3026_v40 = vmul.f32 %v6120_v9, %v3018_v11  ;;  %v5910_v35 = vpop.permute.xlu2 %5909  ;;  %vm3031_vm7 = vweird.f32 %v6120_v9 }
 0x6ad   : > { %v8919_v13 = vunpack.i.h.bf16 %v5910_v35  ;;  %v8921_v48 = vunpack.i.l.bf16 %v5910_v35  ;;  %vm3032_vm9 = vmor %vm3030_vm8, %vm3031_vm7 }
 0x6ae   : > { %v3027_v44 = vsub.f32 1.0, %v3026_v40 }
 0x6af   : > { %10385 = vst [vmem:[#allocation26_spill] sm:$0xff] %v8919_v13  ;;  %3214 = vmatpush.msra.mxu1 %v8921_v48  ;;  %3281 = vmatpush.msra.mxu3 %v8919_v13 }
 0x6b0   : > { %10386 = vst [vmem:[#allocation24_spill] sm:$0xff] %v8921_v48  ;;  %v3028_v41 = vmul.f32 %v6120_v9, %v3027_v44 }
 0x6b1   : > { %3215 = vmatpush.msra.mxu1 %v8924_v56 }
 0x6b2   : > { %v3029_v22 = vadd.f32 %v6120_v9, %v3028_v41 }
 0x6b4   : > { %v3033_v4 = vsel %vm3032_vm9, %v6120_v9, %v3029_v22 }
 0x6b5   : > { %v3038_v40 = vsel %vm3035_vm10, %v3037_v57, %v3033_v4 }
 0x6b6   : > { %v3081_v35 = vmul.f32 %v3038_v40, %v8881_v42 }
 0x6b8   : > { %3149 = vmatmul.f32.vlgmr.msrb.gmra.mxu3 %v3081_v35 }
 0x6be   : > { %v3022_v51 = vpop.xlane.xlu1 %3021 }
 0x6bf   : > { %6121 = vrcp.f32 %v3022_v51  ;;  %vm3058_vm2 = vweird.f32 %v3022_v51 }
 0x6c5   : > { %v6122_v29 = vpop.eup %6121 }
 0x6c6   : > { %v3054_v44 = vmul.f32 %v6122_v29, %v3022_v51  ;;  %vm3059_vm15 = vweird.f32 %v6122_v29 }
 0x6c7   : > { %vm3060_vm3 = vmor %vm3058_vm2, %vm3059_vm15 }
 0x6c8   : > { %v3055_v28 = vsub.f32 1.0, %v3054_v44  ;;  %v3064_v44 = vand.u32 2147483648, %v3022_v51 }
 0x6ca   : > { %v3056_v9 = vmul.f32 %v6122_v29, %v3055_v28  ;;  %v3062_v28 = vand.u32 2147483647, %v3022_v51  ;;  %v8948_v51 = vunpack.i.h.bf16 %v8772_v17  ;;  %v8962_v17 = vunpack.i.h.bf16 %v8852_v46  ;;  %v3406_v46 = vld [vmem:[%s9971_s7 + $0x8] sm:$0xff] }
 0x6cc   : > { %v3057_v4 = vadd.f32 %v6122_v29, %v3056_v9  ;;  %vm3063_vm0 = vcmp.eq.f32.partialorder %v3062_v28, 8.507059e+37  ;;  %10392 = vst [vmem:[#allocation109_spill] sm:$0xff] %v8948_v51 }
 0x6cd   : > { %10395 = vst [vmem:[#allocation112_spill] sm:$0xff] %v8962_v17 }
 0x6e5   : > { %v3020_v48 = vpop.xlane.xlu2 %3019 }
 0x6e6   : > { %6123 = vrcp.f32 %v3020_v48  ;;  %v3050_v41 = vand.u32 2147483648, %v3020_v48  ;;  %v3048_v42 = vand.u32 2147483647, %v3020_v48  ;;  %vm3044_vm12 = vweird.f32 %v3020_v48 }
 0x6e8   : > { %v3051_v57 = vor.u32 1.1754944e-38, %v3050_v41  ;;  %vm3049_vm1 = vcmp.eq.f32.partialorder %v3048_v42, 8.507059e+37  ;;  %v3065_v41 = vor.u32 1.1754944e-38, %v3064_v44  ;;  %v8970_v42 = vunpack.i.l.bf16 %v8917_v59 }
 0x6ea   : > { %10396 = vst [vmem:[#allocation113_spill] sm:$0xff] %v8970_v42 }
 0x6ec   : > { %v6124_v13 = vpop.eup %6123 }
 0x6ed   : > { %v3040_v43 = vmul.f32 %v6124_v13, %v3020_v48  ;;  %v5920_v56 = vpop.permute.xlu2 %5919  ;;  %vm3045_vm11 = vweird.f32 %v6124_v13  ;;  %v8944_v48 = vunpack.i.l.bf16 %v8747_v31  ;;  %v3408_v31 = vld [vmem:[%s9971_s7 + $0x18] sm:$0xff] }
 0x6ee   : > { %v8930_v11 = vunpack.i.l.bf16 %v5920_v56  ;;  %vm3046_vm13 = vmor %vm3044_vm12, %vm3045_vm11 }
 0x6ef   : > { %v3041_v15 = vsub.f32 1.0, %v3040_v43  ;;  %10391 = vst [vmem:[#allocation108_spill] sm:$0xff] %v8944_v48 }
 0x6f0   : > { %10388 = vst [vmem:[#allocation105_spill] sm:$0xff] %v8930_v11  ;;  %3282 = vmatpush.msra.mxu3 %v8930_v11 }
 0x6f1   : > { %v3042_v26 = vmul.f32 %v6124_v13, %v3041_v15 }
 0x6f3   : > { %v3043_v22 = vadd.f32 %v6124_v13, %v3042_v26  ;;  %v8939_v26 = vunpack.i.h.bf16 %v8753_v5 }
 0x6f5   : > { %v5925_v40 = vpop.permute.xlu2 %5924  ;;  %v3047_v35 = vsel %vm3046_vm13, %v6124_v13, %v3043_v22  ;;  %v3061_v13 = vsel %vm3060_vm3, %v6122_v29, %v3057_v4  ;;  %v8976_v22 = vunpack.i.h.bf16 %v5920_v56 }
 0x6f6   : > { %v8933_v62 = vunpack.i.h.bf16 %v5925_v40  ;;  %v8935_v43 = vunpack.i.l.bf16 %v5925_v40  ;;  %v3052_v30 = vsel %vm3049_vm1, %v3051_v57, %v3047_v35  ;;  %v3066_v5 = vsel %vm3063_vm0, %v3065_v41, %v3061_v13  ;;  %v3405_v57 = vld [vmem:[%s9971_s7] sm:$0xff] }
 0x6f7   : > { %v3082_v15 = vmul.f32 %v3052_v30, %v8896_v24  ;;  %v8952_v24 = vunpack.i.l.bf16 %v8764_v63  ;;  %v3083_v29 = vmul.f32 %v3066_v5, %v8887_v50  ;;  %v3407_v63 = vld [vmem:[%s9971_s7 + $0x10] sm:$0xff]  ;;  %v5935_v50 = vpop.permute.xlu1 %5934  ;;  %10397 = vst [vmem:[#allocation114_spill] sm:$0xff] %v8976_v22  ;;  %v8994_v35 = vld [vmem:[%s7928_s29] sm:$0xff]  ;;  %v10404_v5 = vld [vmem:[#allocation35_spill] sm:$0xff] }
 0x6f8   : > { %10389 = vst [vmem:[#allocation106_spill] sm:$0xff] %v8933_v62  ;;  %3216 = vmatpush.msra.mxu1 %v8935_v43  ;;  %3283 = vmatpush.msra.mxu3 %v8933_v62  ;;  %v8985_v40 = vunpack.i.l.bf16 %v5935_v50  ;;  %v8990_v56 = vunpack.i.h.bf16 %v5935_v50  ;;  %v3764_v50 = vld [vmem:[%s10234_s3 + $0x18] sm:$0xff] }
 0x6f9   : > { %10390 = vst [vmem:[#allocation107_spill] sm:$0xff] %v8935_v43  ;;  %3217 = vmatmul.f32.vlgmr.msra.gmra.mxu1 %v3082_v15 }
 0x6fa   : > { %3337 = vmatpush.msrb.mxu1 %v8939_v26  ;;  %10393 = vst [vmem:[#allocation110_spill] sm:$0xff] %v8952_v24 }
 0x6fb   : > { %10399 = vst [vmem:[#allocation116_spill] sm:$0xff] %v8985_v40 }
 0x6fc   : > { %3338 = vmatpush.msrb.mxu1 %v8944_v48  ;;  %10400 = vst [vmem:[#allocation117_spill] sm:$0xff] %v8990_v56 }
 0x6fd   : > { %v5930_v30 = vpop.permute.xlu2 %5929 }
 0x6fe   : > { %v8954_v9 = vunpack.i.h.bf16 %v5930_v30  ;;  %3339 = vmatpush.msrb.mxu1 %v8948_v51  ;;  %v8982_v59 = vunpack.i.l.bf16 %v5930_v30 }
 0x6ff   : > { %v5945_v28 = vpop.permute.xlu1 %5944 }
 0x700   : > { %10394 = vst [vmem:[#allocation111_spill] sm:$0xff] %v8954_v9  ;;  %3340 = vmatpush.msrb.mxu1 %v8952_v24  ;;  %3284 = vmatpush.msra.mxu3 %v8954_v9  ;;  %v9006_v13 = vunpack.i.l.bf16 %v5945_v28  ;;  %v9011_v30 = vunpack.i.h.bf16 %v5945_v28  ;;  %v9040_v28 = vld [vmem:[%s7928_s29 + $0x10] sm:$0xff] }
 0x701   : > { %3285 = vmatmul.f32.vlgmr.msra.gmra.mxu3 %v3083_v29  ;;  %10398 = vst [vmem:[#allocation115_spill] sm:$0xff] %v8982_v59  ;;  %v9015_v29 = vld [vmem:[%s7928_s29 + $0x8] sm:$0xff] }
 0x702   : > { %3341 = vmatpush.msrb.mxu1 %v8962_v17  ;;  %3436 = vmatpush.msrb.mxu3 %v3408_v31  ;;  %10403 = vst [vmem:[#allocation120_spill] sm:$0xff] %v9006_v13 }
 0x703   : > { %10405 = vst [vmem:[#allocation121_spill] sm:$0xff] %v9011_v30 }
 0x704   : > { %3342 = vmatpush.msrb.mxu1 %v8970_v42  ;;  %3437 = vmatpush.msrb.mxu3 %v3407_v63 }
 0x705   : > { %v5940_v4 = vpop.permute.xlu2 %5939 }
 0x706   : > { %3343 = vmatpush.msrb.mxu1 %v8976_v22  ;;  %3438 = vmatpush.msrb.mxu3 %v3406_v46  ;;  %v8998_v44 = vunpack.i.l.bf16 %v5940_v4  ;;  %v9003_v15 = vunpack.i.h.bf16 %v5940_v4  ;;  %v3762_v4 = vld [vmem:[%s10234_s3 + $0x8] sm:$0xff] }
 0x708   : > { %3344 = vmatpush.msrb.mxu1 %v8982_v59  ;;  %3439 = vmatpush.msrb.mxu3 %v3405_v57  ;;  %10401 = vst [vmem:[#allocation118_spill] sm:$0xff] %v8998_v44  ;;  %v3763_v57 = vld [vmem:[%s10234_s3 + $0x10] sm:$0xff] }
 0x709   : > { %5547 = vmatmul.msk.f32.vlgmr.msrb.gmra.mxu3 %vm2454_vm14, %v8994_v35  ;;  %10402 = vst [vmem:[#allocation119_spill] sm:$0xff] %v9003_v15 }
 0x70a   : > { %5576 = vmatpush.xpose.msk.msra.mxu3 %vm2454_vm14, %v7881_v39  ;;  %3345 = vmatpush.msrb.mxu1 %v8985_v40  ;;  %v9052_v39 = vld [vmem:[%s7928_s29 + $0x18] sm:$0xff]  ;;  %s10539_s29 = smov 32  }
 0x70c   : > { %3346 = vmatpush.msrb.mxu1 %v8990_v56 }
 0x70d   : > { %v5950_v41 = vpop.permute.xlu2 %5949 }
 0x70e   : > { %5577 = vmatpush.xpose.msk.msra.mxu3 %vm2454_vm14, %v10359_v8  ;;  %3347 = vmatpush.msrb.mxu1 %v8998_v44  ;;  %v9019_v31 = vunpack.i.l.bf16 %v5950_v41  ;;  %v9024_v63 = vunpack.i.h.bf16 %v5950_v41  ;;  %v3761_v41 = vld [vmem:[%s10234_s3] sm:$0xff] }
 0x710   : > { %3348 = vmatpush.msrb.mxu1 %v9003_v15  ;;  %10406 = vst [vmem:[#allocation122_spill] sm:$0xff] %v9019_v31 }
 0x711   : > { %5548 = vmatmul.msk.f32.gmra.mxu3 %vm2454_vm14, %v9015_v29  ;;  %10407 = vst [vmem:[#allocation123_spill] sm:$0xff] %v9024_v63 }
 0x712   : > { %5578 = vmatpush.xpose.msk.msra.mxu3 %vm2454_vm14, %v10404_v5  ;;  %3349 = vmatpush.msrb.mxu1 %v9006_v13  ;;  %v10408_v5 = vld [vmem:[#allocation31_spill] sm:$0xff] }
 0x714   : > { %3350 = vmatpush.msrb.mxu1 %v9011_v30 }
 0x716   : > { %5579 = vmatpush.xpose.msk.msra.mxu3 %vm2454_vm14, %v10358_v47  ;;  %3351 = vmatpush.msrb.mxu1 %v9019_v31 }
 0x717   : > { %v3024_v46 = vpop.xlane.xlu0 %3023 }
 0x718   : > { %6125 = vrcp.f32 %v3024_v46  ;;  %3352 = vmatpush.msrb.mxu1 %v9024_v63  ;;  %v3078_v8 = vand.u32 2147483648, %v3024_v46  ;;  %v3076_v63 = vand.u32 2147483647, %v3024_v46  ;;  %vm3072_vm5 = vweird.f32 %v3024_v46 }
 0x719   : > { %5549 = vmatmul.msk.f32.gmra.mxu3 %vm2454_vm14, %v9040_v28 }
 0x71a   : > { %5580 = vmatpush.xpose.msk.msra.mxu3 %vm2454_vm14, %v7738_v54  ;;  %3797 = vmatpush.msra.mxu1 %v3764_v50  ;;  %vm3077_vm7 = vcmp.eq.f32.partialorder %v3076_v63, 8.507059e+37  ;;  %v10414_v63 = vld [vmem:[#allocation59_spill] sm:$0xff] }
 0x71c   : > { %3798 = vmatpush.msra.mxu1 %v3763_v57 }
 0x71e   : > { %5581 = vmatpush.xpose.msk.msra.mxu3 %vm2454_vm14, %v10354_v20  ;;  %3799 = vmatpush.msra.mxu1 %v3762_v4  ;;  %v6126_v54 = vpop.eup %6125  ;;  %v3079_v4 = vor.u32 1.1754944e-38, %v3078_v8 }
 0x71f   : > { %v3068_v50 = vmul.f32 %v6126_v54, %v3024_v46  ;;  %vm3073_vm4 = vweird.f32 %v6126_v54  ;;  %v10415_v46 = vld [vmem:[#allocation47_spill] sm:$0xff] }
 0x720   : > { %3800 = vmatpush.msra.mxu1 %v3761_v41  ;;  %vm3074_vm6 = vmor %vm3072_vm5, %vm3073_vm4 }
 0x721   : > { %v3069_v47 = vsub.f32 1.0, %v3068_v50  ;;  %5550 = vmatmul.msk.f32.gmra.mxu3 %vm2454_vm14, %v9052_v39 }
 0x722   : > { %5582 = vmatpush.xpose.msk.msra.mxu3 %vm2454_vm14, %v10408_v5 }
 0x723   : > { %v3070_v57 = vmul.f32 %v6126_v54, %v3069_v47  ;;  %v10410_v47 = vld [vmem:[#allocation25_spill] sm:$0xff] }
 0x725   : > { %v3071_v31 = vadd.f32 %v6126_v54, %v3070_v57  ;;  %v10416_v57 = vld [vmem:[#allocation60_spill] sm:$0xff] }
 0x726   : > { %5583 = vmatpush.xpose.msk.msra.mxu3 %vm2454_vm14, %v10348_v52 }
 0x727   : > { %v3075_v41 = vsel %vm3074_vm6, %v6126_v54, %v3071_v31  ;;  %v10409_v54 = vld [vmem:[#allocation52_spill] sm:$0xff]  ;;  %v10413_v31 = vld [vmem:[#allocation58_spill] sm:$0xff] }
 0x728   : > { %v3080_v50 = vsel %vm3077_vm7, %v3079_v4, %v3075_v41  ;;  %v10417_v4 = vld [vmem:[#allocation57_spill] sm:$0xff] }
 0x729   : > { %v3084_v5 = vmul.f32 %v3080_v50, %v8911_v3  ;;  %v10411_v3 = vld [vmem:[#allocation67_spill] sm:$0xff]  ;;  %v10418_v41 = vld [vmem:[#allocation61_spill] sm:$0xff]  ;;  %v10419_v50 = vld [vmem:[#allocation46_spill] sm:$0xff] }
 0x72a   : > { %5584 = vmatpush.xpose.msk.msra.mxu3 %vm2454_vm14, %v7714_v14 }
 0x72b   : > { %3353 = vmatmul.f32.vlgmr.msrb.gmra.mxu1 %v3084_v5  ;;  %v10412_v5 = vld [vmem:[#allocation48_spill] sm:$0xff] }
 0x72c   : > { %5593 = vmatpush.xpose.msk.msrb.mxu1 %vm2454_vm14, %v8498_v0 }
 0x72e   : > { %5585 = vmatpush.xpose.msk.msra.mxu3 %vm2454_vm14, %v10340_v58 }
 0x730   : > { %5594 = vmatpush.xpose.msk.msrb.mxu1 %vm2454_vm14, %v8475_v45 }
 0x732   : > { %5586 = vmatpush.xpose.msk.msra.mxu3 %vm2454_vm14, %v10335_v16 }
 0x734   : > { %5595 = vmatpush.xpose.msk.msrb.mxu1 %vm2454_vm14, %v10409_v54 }
 0x736   : > { %5587 = vmatpush.xpose.msk.msra.mxu3 %vm2454_vm14, %v10338_v19 }
 0x738   : > { %5596 = vmatpush.xpose.msk.msrb.mxu1 %vm2454_vm14, %v8436_v7  ;;  %v10430_v7 = vld [vmem:[#allocation43_spill] sm:$0xff] }
 0x73a   : > { %5588 = vmatpush.xpose.msk.msra.mxu3 %vm2454_vm14, %v7688_v36 }
 0x73b   : > { %v3150_v8 = vpop.f32.mrf.mxu3 }
 0x73c   : > { %5597 = vmatpush.xpose.msk.msrb.mxu1 %vm2454_vm14, %v8426_v6  ;;  %5543 = vmatmul.msk.f32.vlgmr.msrb.gmra.mxu2 %vm2454_vm14, %v3150_v8  ;;  %v10420_v8 = vld [vmem:[#allocation62_spill] sm:$0xff]  ;;  %v10425_v6 = vld [vmem:[#allocation55_spill] sm:$0xff] }
 0x73d   : > { %5610 = vmatpush.xpose.msk.msrb.mxu2 %vm2454_vm14, %v8620_v27 }
 0x73e   : > { %5589 = vmatpush.xpose.msk.msra.mxu3 %vm2454_vm14, %v10383_v37 }
 0x740   : > { %5598 = vmatpush.xpose.msk.msrb.mxu1 %vm2454_vm14, %v8422_v23  ;;  %v10422_v23 = vld [vmem:[#allocation29_spill] sm:$0xff] }
 0x741   : > { %5611 = vmatpush.xpose.msk.msrb.mxu2 %vm2454_vm14, %v10411_v3  ;;  %v10427_v3 = vld [vmem:[#allocation44_spill] sm:$0xff] }
 0x742   : > { %5590 = vmatpush.xpose.msk.msra.mxu3 %vm2454_vm14, %v10410_v47 }
 0x744   : > { %5599 = vmatpush.xpose.msk.msrb.mxu1 %vm2454_vm14, %v10412_v5  ;;  %v10421_v5 = vld [vmem:[#allocation56_spill] sm:$0xff] }
 0x745   : > { %5612 = vmatpush.xpose.msk.msrb.mxu2 %vm2454_vm14, %v10413_v31  ;;  %v10423_v31 = vld [vmem:[#allocation45_spill] sm:$0xff] }
 0x746   : > { %5591 = vmatpush.xpose.msk.msra.mxu3 %vm2454_vm14, %v10384_v18 }
 0x748   : > { %5600 = vmatpush.xpose.msk.msrb.mxu1 %vm2454_vm14, %v10415_v46  ;;  %v10424_v46 = vld [vmem:[#allocation69_spill] sm:$0xff] }
 0x749   : > { %5613 = vmatpush.xpose.msk.msrb.mxu2 %vm2454_vm14, %v10417_v4  ;;  %v10426_v4 = vld [vmem:[#allocation71_spill] sm:$0xff] }
 0x74a   : > { %4102 = vmatpush.msrb.mxu3 %v10414_v63 }
 0x74c   : > { %4103 = vmatpush.msrb.mxu3 %v10416_v57  ;;  %5601 = vmatpush.xpose.msk.msrb.mxu1 %vm2454_vm14, %v10419_v50  ;;  %v10428_v50 = vld [vmem:[#allocation72_spill] sm:$0xff] }
 0x74d   : > { %5614 = vmatpush.xpose.msk.msrb.mxu2 %vm2454_vm14, %v10421_v5  ;;  %v10429_v5 = vld [vmem:[#allocation73_spill] sm:$0xff] }
 0x74e   : > { %4104 = vmatpush.msrb.mxu3 %v10418_v41 }
 0x750   : > { %4105 = vmatpush.msrb.mxu3 %v10420_v8  ;;  %5602 = vmatpush.xpose.msk.msrb.mxu1 %vm2454_vm14, %v10423_v31  ;;  %v10431_v31 = vld [vmem:[#allocation74_spill] sm:$0xff] }
 0x751   : > { %5615 = vmatpush.xpose.msk.msrb.mxu2 %vm2454_vm14, %v10425_v6  ;;  %v10432_v6 = vld [vmem:[#allocation75_spill] sm:$0xff] }
 0x752   : > { %4106 = vmatpush.msrb.mxu3 %v10422_v23 }
 0x754   : > { %4107 = vmatpush.msrb.mxu3 %v10424_v46  ;;  %5603 = vmatpush.xpose.msk.msrb.mxu1 %vm2454_vm14, %v10427_v3  ;;  %v10433_v3 = vld [vmem:[#allocation76_spill] sm:$0xff] }
 0x755   : > { %5616 = vmatpush.xpose.msk.msrb.mxu2 %vm2454_vm14, %v8477_v33  ;;  %v10434_v33 = vld [vmem:[#allocation77_spill] sm:$0xff] }
 0x756   : > { %4108 = vmatpush.msrb.mxu3 %v10426_v4 }
 0x758   : > { %4109 = vmatpush.msrb.mxu3 %v10428_v50  ;;  %5604 = vmatpush.xpose.msk.msrb.mxu1 %vm2454_vm14, %v10430_v7  ;;  %v10435_v7 = vld [vmem:[#allocation78_spill] sm:$0xff] }
 0x759   : > { %5617 = vmatpush.xpose.msk.msrb.mxu2 %vm2454_vm14, %v8461_v53  ;;  %v10436_v53 = vld [vmem:[#allocation79_spill] sm:$0xff] }
 0x75a   : > { %4110 = vmatpush.msrb.mxu3 %v10429_v5 }
 0x75c   : > { %4111 = vmatpush.msrb.mxu3 %v10431_v31  ;;  %5605 = vmatpush.xpose.msk.msrb.mxu1 %vm2454_vm14, %v8369_v10  ;;  %v10437_v10 = vld [vmem:[#allocation80_spill] sm:$0xff] }
 0x75d   : > { %5618 = vmatpush.xpose.msk.msrb.mxu2 %vm2454_vm14, %v8696_v55 }
 0x75e   : > { %4112 = vmatpush.msrb.mxu3 %v10432_v6 }
 0x760   : > { %4113 = vmatpush.msrb.mxu3 %v10433_v3  ;;  %5606 = vmatpush.xpose.msk.msrb.mxu1 %vm2454_vm14, %v8331_v49 }
 0x761   : > { %5619 = vmatpush.xpose.msk.msrb.mxu2 %vm2454_vm14, %v8673_v38 }
 0x762   : > { %4114 = vmatpush.msrb.mxu3 %v10434_v33 }
 0x764   : > { %4115 = vmatpush.msrb.mxu3 %v10435_v7  ;;  %5607 = vmatpush.xpose.msk.msrb.mxu1 %vm2454_vm14, %v8276_v21 }
 0x765   : > { %5620 = vmatpush.xpose.msk.msrb.mxu2 %vm2454_vm14, %v8649_v25 }
 0x766   : > { %4116 = vmatpush.msrb.mxu3 %v10436_v53 }
 0x768   : > { %4117 = vmatpush.msrb.mxu3 %v10437_v10  ;;  %5608 = vmatpush.xpose.msk.msrb.mxu1 %vm2454_vm14, %v8226_v61  ;;  %v5957_v61 = vld [vmem:[%s9973_s9] ss:$0 sm:$0xff] }
 0x769   : > { %5621 = vmatpush.xpose.msk.msrb.mxu2 %vm2454_vm14, %v8633_v1 }
 0x76d   : > { %5622 = vmatpush.xpose.msk.msrb.mxu2 %vm2454_vm14, %v8618_v32 }
 0x771   : > { %5623 = vmatpush.xpose.msk.msrb.mxu2 %vm2454_vm14, %v8611_v34 }
 0x775   : > { %5624 = vmatpush.xpose.msk.msrb.mxu2 %vm2454_vm14, %v8609_v2 }
 0x776   : > { %v3218_v21 = vpop.f32.mrf.mxu1 }
 0x777   : > { %5544 = vmatmul.msk.f32.gmra.mxu2 %vm2454_vm14, %v3218_v21 }
 0x779   : > { %5625 = vmatpush.xpose.msk.msrb.mxu2 %vm2454_vm14, %v8606_v60 }
 0x784   : > { %v3286_v49 = vpop.f32.mrf.mxu3 }
 0x785   : > { %5545 = vmatmul.msk.f32.gmra.mxu2 %vm2454_vm14, %v3286_v49 }
 0x78c   : > { %v3441_v32 = vpop.f32.mrf.mxu3 }
 0x78d   : > { %v3442_v1 = vadd.f32 %v5957_v61, %v3441_v32  ;;  %v9172_v32 = vld [vmem:[%s9972_s8] ss:$0 sm:$0xff] }
 0x78f   : > { %3537 = vrot.lane.b32.xlu1 %v3442_v1, %s6376_s13 }
 0x794   : > { %v3444_v34 = vpop.f32.mrf.mxu3 }
 0x795   : > { %v3445_v2 = vadd.f32 %v5957_v61, %v3444_v34 }
 0x797   : > { %3539 = vrot.lane.b32.xlu0 %v3445_v2, %s6376_s13 }
 0x79c   : > { %v3447_v60 = vpop.f32.mrf.mxu3 }
 0x79d   : > { %v3448_v25 = vadd.f32 %v5957_v61, %v3447_v60 }
 0x79f   : > { %3541 = vrot.lane.b32.xlu2 %v3448_v25, %s6376_s13 }
 0x7a4   : > { %v3450_v49 = vpop.f32.mrf.mxu3 }
 0x7a5   : > { %v9165_v38 = vadd.f32 %v5957_v61, %v3450_v49 }
 0x7a7   : > { %3543 = vrot.lane.b32.xlu1 %v9165_v38, %s6376_s13 }
 0x7a8   : > { %v3354_v21 = vpop.f32.mrf.mxu1 }
 0x7a9   : > { %5546 = vmatmul.msk.f32.gmra.mxu2 %vm2454_vm14, %v3354_v21 }
 0x7bf   : > { %v3393_v34 = vpop.f32.mrf.mxu2 }
 0x7c0   : > { %v9175_v55 = vadd.f32 %v9172_v32, %v3393_v34 }
 0x7c2   : > { %v3453_v21 = vadd.f32 %v3442_v1, %v9175_v55 }
 0x7c4   : > { %v5551_v60 = vmul.f32 -1.442695, %v3453_v21 }
 0x7c6   : > { %6127 = vpow2.f32 %v5551_v60 }
 0x7cc   : > { %v6128_v10 = vpop.eup %6127 }
 0x7cd   : > { %v3469_v53 = vadd.f32 1.0, %v6128_v10 }
 0x7cf   : > { %6129 = vrcp.f32 %v3469_v53  ;;  %v3484_v5 = vand.u32 2147483648, %v3469_v53  ;;  %vm3478_vm9 = vweird.f32 %v3469_v53  ;;  %v3482_v1 = vand.u32 2147483647, %v3469_v53 }
 0x7d1   : > { %v3485_v10 = vor.u32 1.1754944e-38, %v3484_v5  ;;  %vm3483_vm11 = vcmp.eq.f32.partialorder %v3482_v1, 8.507059e+37 }
 0x7d5   : > { %v6130_v61 = vpop.eup %6129 }
 0x7d6   : > { %v3474_v49 = vmul.f32 %v6130_v61, %v3469_v53  ;;  %vm3479_vm8 = vweird.f32 %v6130_v61 }
 0x7d7   : > { %vm3480_vm10 = vmor %vm3478_vm9, %vm3479_vm8 }
 0x7d8   : > { %v3475_v7 = vsub.f32 1.0, %v3474_v49 }
 0x7da   : > { %v3476_v33 = vmul.f32 %v6130_v61, %v3475_v7 }
 0x7dc   : > { %v3477_v31 = vadd.f32 %v6130_v61, %v3476_v33 }
 0x7de   : > { %v3481_v60 = vsel %vm3480_vm10, %v6130_v61, %v3477_v31 }
 0x7df   : > { %v9182_v49 = vsel %vm3483_vm11, %v3485_v10, %v3481_v60 }
 0x7fa   : > { %v3396_v3 = vpop.f32.mrf.mxu2 }
 0x7fb   : > { %v9179_v6 = vadd.f32 %v9172_v32, %v3396_v3 }
 0x7fd   : > { %v3454_v34 = vadd.f32 %v3445_v2, %v9179_v6 }
 0x7ff   : > { %v5552_v21 = vmul.f32 -1.442695, %v3454_v34 }
 0x801   : > { %6131 = vpow2.f32 %v5552_v21  ;;  %v3538_v50 = vpop.permute.xlu1 %3537 }
 0x802   : > { %v3549_v7 = vmul.f32 %v3538_v50, %v9182_v49 }
 0x804   : > { %3557 = vrot.lane.b32.xlu2 %v3549_v7, %s6376_s13 }
 0x807   : > { %v6132_v33 = vpop.eup %6131 }
 0x808   : > { %v3470_v3 = vadd.f32 1.0, %v6132_v33  ;;  %v3399_v4 = vpop.f32.mrf.mxu2 }
 0x809   : > { %v9187_v2 = vadd.f32 %v9172_v32, %v3399_v4  ;;  %v3540_v33 = vpop.permute.xlu0 %3539 }
 0x80a   : > { %6133 = vrcp.f32 %v3470_v3  ;;  %v3499_v1 = vand.u32 2147483648, %v3470_v3  ;;  %v3497_v50 = vand.u32 2147483647, %v3470_v3  ;;  %vm3493_vm13 = vweird.f32 %v3470_v3 }
 0x80b   : > { %v3455_v53 = vadd.f32 %v3448_v25, %v9187_v2 }
 0x80c   : > { %v3500_v4 = vor.u32 1.1754944e-38, %v3499_v1  ;;  %vm3498_vm1 = vcmp.eq.f32.partialorder %v3497_v50, 8.507059e+37 }
 0x80d   : > { %v5553_v31 = vmul.f32 -1.442695, %v3455_v53 }
 0x80f   : > { %6135 = vpow2.f32 %v5553_v31 }
 0x810   : > { %v6134_v5 = vpop.eup %6133 }
 0x811   : > { %v3489_v61 = vmul.f32 %v6134_v5, %v3470_v3  ;;  %vm3494_vm12 = vweird.f32 %v6134_v5 }
 0x812   : > { %vm3495_vm15 = vmor %vm3493_vm13, %vm3494_vm12 }
 0x813   : > { %v3490_v34 = vsub.f32 1.0, %v3489_v61 }
 0x815   : > { %v6136_v21 = vpop.eup %6135  ;;  %v3491_v60 = vmul.f32 %v6134_v5, %v3490_v34 }
 0x816   : > { %v3471_v10 = vadd.f32 1.0, %v6136_v21 }
 0x817   : > { %v3492_v7 = vadd.f32 %v6134_v5, %v3491_v60  ;;  %v3542_v60 = vpop.permute.xlu2 %3541 }
 0x818   : > { %6137 = vrcp.f32 %v3471_v10  ;;  %v3514_v54 = vand.u32 2147483648, %v3471_v10  ;;  %v3512_v21 = vand.u32 2147483647, %v3471_v10  ;;  %vm3508_vm3 = vweird.f32 %v3471_v10 }
 0x819   : > { %v3496_v27 = vsel %vm3495_vm15, %v6134_v5, %v3492_v7 }
 0x81a   : > { %v9190_v25 = vsel %vm3498_vm1, %v3500_v4, %v3496_v27  ;;  %v3515_v1 = vor.u32 1.1754944e-38, %v3514_v54  ;;  %vm3513_vm4 = vcmp.eq.f32.partialorder %v3512_v21, 8.507059e+37 }
 0x81b   : > { %v3550_v53 = vmul.f32 %v3540_v33, %v9190_v25 }
 0x81d   : > { %3559 = vrot.lane.b32.xlu1 %v3550_v53, %s6376_s13 }
 0x81e   : > { %v6138_v31 = vpop.eup %6137 }
 0x81f   : > { %v3504_v61 = vmul.f32 %v6138_v31, %v3471_v10  ;;  %vm3509_vm2 = vweird.f32 %v6138_v31 }
 0x820   : > { %vm3510_vm0 = vmor %vm3508_vm3, %vm3509_vm2 }
 0x821   : > { %v3505_v34 = vsub.f32 1.0, %v3504_v61 }
 0x823   : > { %v3506_v46 = vmul.f32 %v6138_v31, %v3505_v34 }
 0x825   : > { %v3507_v3 = vadd.f32 %v6138_v31, %v3506_v46 }
 0x827   : > { %v3511_v5 = vsel %vm3510_vm0, %v6138_v31, %v3507_v3 }
 0x828   : > { %v9194_v27 = vsel %vm3513_vm4, %v3515_v1, %v3511_v5 }
 0x829   : > { %v3551_v50 = vmul.f32 %v3542_v60, %v9194_v27 }
 0x82b   : > { %3561 = vrot.lane.b32.xlu2 %v3551_v50, %s6376_s13 }
 0x82c   : > { %v3402_v7 = vpop.f32.mrf.mxu2 }
 0x82d   : > { %v3403_v33 = vadd.f32 %v9172_v32, %v3402_v7  ;;  %v3544_v32 = vpop.permute.xlu1 %3543 }
 0x82f   : > { %v3456_v4 = vadd.f32 %v9165_v38, %v3403_v33 }
 0x831   : > { %v5554_v53 = vmul.f32 -1.442695, %v3456_v4 }
 0x833   : > { %6139 = vpow2.f32 %v5554_v53  ;;  %3601 = vrot.lane.b32.xlu2 %v8994_v35, %s10195_s24 }
 0x839   : > { %v6140_v54 = vpop.eup %6139 }
 0x83a   : > { %v3472_v46 = vadd.f32 1.0, %v6140_v54 }
 0x83c   : > { %6141 = vrcp.f32 %v3472_v46  ;;  %v3529_v34 = vand.u32 2147483648, %v3472_v46  ;;  %v3527_v3 = vand.u32 2147483647, %v3472_v46  ;;  %vm3523_vm6 = vweird.f32 %v3472_v46 }
 0x83e   : > { %v3530_v38 = vor.u32 1.1754944e-38, %v3529_v34  ;;  %vm3528_vm8 = vcmp.eq.f32.partialorder %v3527_v3, 8.507059e+37 }
 0x842   : > { %v6142_v10 = vpop.eup %6141 }
 0x843   : > { %v3519_v31 = vmul.f32 %v6142_v10, %v3472_v46  ;;  %vm3524_vm5 = vweird.f32 %v6142_v10 }
 0x844   : > { %vm3525_vm7 = vmor %vm3523_vm6, %vm3524_vm5 }
 0x845   : > { %v3520_v61 = vsub.f32 1.0, %v3519_v31 }
 0x847   : > { %v3521_v21 = vmul.f32 %v6142_v10, %v3520_v61 }
 0x849   : > { %v3522_v60 = vadd.f32 %v6142_v10, %v3521_v21  ;;  %v3577_v21 = vsub.f32 1.0, %v9182_v49 }
 0x84b   : > { %v3526_v1 = vsel %vm3525_vm7, %v6142_v10, %v3522_v60 }
 0x84c   : > { %v3531_v5 = vsel %vm3528_vm8, %v3530_v38, %v3526_v1 }
 0x84d   : > { %v3552_v50 = vmul.f32 %v3544_v32, %v3531_v5 }
 0x84f   : > { %3563 = vrot.lane.b32.xlu0 %v3552_v50, %s6376_s13 }
 0x85e   : > { %v3558_v35 = vpop.permute.xlu2 %3557 }
 0x85f   : > { %v3569_v7 = vadd.f32 %v3558_v35, %v9175_v55 }
 0x861   : > { %6143 = vtanh.f32 %v3569_v7 }
 0x867   : > { %v6144_v4 = vpop.eup %6143 }
 0x868   : > { %3585 = vrot.lane.b32.xlu1 %v6144_v4, %s10198_s15 }
 0x870   : > { %3603 = vrot.lane.b32.xlu1 %v9015_v29, %s10195_s24 }
 0x885   : > { %v3562_v53 = vpop.permute.xlu2 %3561 }
 0x886   : > { %v3571_v54 = vadd.f32 %v3562_v53, %v9187_v2 }
 0x888   : > { %6145 = vtanh.f32 %v3571_v54 }
 0x88d   : > { %v3602_v34 = vpop.permute.xlu2 %3601 }
 0x88e   : > { %v6146_v46 = vpop.eup %6145  ;;  %v3613_v3 = vmul.f32 %v3602_v34, %v9182_v49  ;;  %v3579_v49 = vsub.f32 1.0, %v9194_v27 }
 0x88f   : > { %v3560_v10 = vpop.permute.xlu1 %3559  ;;  %3589 = vrot.lane.b32.xlu2 %v6146_v46, %s10198_s15 }
 0x890   : > { %v3570_v31 = vadd.f32 %v3560_v10, %v9179_v6 }
 0x892   : > { %6147 = vtanh.f32 %v3570_v31 }
 0x897   : > { %3607 = vrot.lane.b32.xlu2 %v9052_v39, %s10195_s24 }
 0x898   : > { %v6148_v55 = vpop.eup %6147 }
 0x899   : > { %3587 = vrot.lane.b32.xlu0 %v6148_v55, %s10198_s15 }
 0x8a1   : > { %3605 = vrot.lane.b32.xlu0 %v9040_v28, %s10195_s24  ;;  %v3578_v28 = vsub.f32 1.0, %v9190_v25 }
 0x8c1   : > { %v3564_v29 = vpop.permute.xlu0 %3563 }
 0x8c2   : > { %v3572_v61 = vadd.f32 %v3564_v29, %v3403_v33 }
 0x8c4   : > { %6149 = vtanh.f32 %v3572_v61 }
 0x8ca   : > { %v6150_v2 = vpop.eup %6149 }
 0x8cb   : > { %3591 = vrot.lane.b32.xlu1 %v6150_v2, %s10198_s15 }
 0x8da   : > { %v3586_v6 = vpop.permute.xlu1 %3585 }
 0x8db   : > { %v3597_v60 = vmul.f32 %v3586_v6, %v3577_v21 }
 0x8dd   : > { %v9218_v39 = vadd.f32 %v3613_v3, %v3597_v60 }
 0x8df   : > { %10438 = vst [vmem:[#allocation25_spill] sm:$0xff] %v9218_v39  ;;  %3627 = vrot.lane.b32.xlu0 %v9218_v39, %s10198_s15 }
 0x8e2   : > { %v3604_v32 = vpop.permute.xlu1 %3603 }
 0x8e3   : > { %v3614_v38 = vmul.f32 %v3604_v32, %v9190_v25  ;;  %v3580_v25 = vsub.f32 1.0, %v3531_v5  ;;  %v10442_v32 = vld [vmem:[#allocation38_spill] sm:$0xff] }
 0x8e9   : > { %v3590_v35 = vpop.permute.xlu2 %3589 }
 0x8ea   : > { %v3599_v4 = vmul.f32 %v3590_v35, %v3579_v49 }
 0x8f1   : > { %v3608_v46 = vpop.permute.xlu2 %3607 }
 0x8f2   : > { %v3616_v31 = vmul.f32 %v3608_v46, %v3531_v5 }
 0x90b   : > { %v3588_v33 = vpop.permute.xlu0 %3587 }
 0x90c   : > { %v3598_v1 = vmul.f32 %v3588_v33, %v3578_v28 }
 0x90e   : > { %v9224_v50 = vadd.f32 %v3614_v38, %v3598_v1 }
 0x910   : > { %10439 = vst [vmem:[#allocation59_spill] sm:$0xff] %v9224_v50  ;;  %3629 = vrot.lane.b32.xlu1 %v9224_v50, %s10198_s15 }
 0x913   : > { %v3606_v7 = vpop.permute.xlu0 %3605 }
 0x914   : > { %v3615_v53 = vmul.f32 %v3606_v7, %v9194_v27 }
 0x916   : > { %v9230_v54 = vadd.f32 %v3615_v53, %v3599_v4 }
 0x918   : > { %10440 = vst [vmem:[#allocation60_spill] sm:$0xff] %v9230_v54  ;;  %3631 = vrot.lane.b32.xlu2 %v9230_v54, %s10198_s15 }
 0x93d   : > { %v3592_v10 = vpop.permute.xlu1 %3591 }
 0x93e   : > { %v3600_v55 = vmul.f32 %v3592_v10, %v3580_v25 }
 0x940   : > { %v9234_v29 = vadd.f32 %v3616_v31, %v3600_v55 }
 0x942   : > { %10441 = vst [vmem:[#allocation61_spill] sm:$0xff] %v9234_v29  ;;  %3633 = vrot.lane.b32.xlu0 %v9234_v29, %s10198_s15 }
 0x951   : > { %v9238_v61 = vpop.permute.xlu0 %3627 }
 0x952   : > { %v3639_v27 = vsel %vm2454_vm14, %v9238_v61, 0.0 }
 0x953   : > { %3640 = vadd.xlane.f32.xlu1 %v3639_v27 }
 0x972   : > { %v9242_v2 = vpop.permute.xlu2 %3631 }
 0x973   : > { %v3645_v34 = vsel %vm2454_vm14, %v9242_v2, 0.0 }
 0x974   : > { %3646 = vadd.xlane.f32.xlu0 %v3645_v34 }
 0x982   : > { %v9246_v21 = vpop.permute.xlu1 %3629 }
 0x983   : > { %v3642_v5 = vsel %vm2454_vm14, %v9246_v21, 0.0 }
 0x984   : > { %3643 = vadd.xlane.f32.xlu2 %v3642_v5 }
 0x9b4   : > { %v9250_v6 = vpop.permute.xlu0 %3633 }
 0x9b5   : > { %v3648_v3 = vsel %vm2454_vm14, %v9250_v6, 0.0 }
 0x9b6   : > { %3649 = vadd.xlane.f32.xlu1 %v3648_v3  ;;  %v5959_v3 = vld [vmem:[%s10317_s5] ss:$0 sm:$0xff] }
 0x9c6   : > { %v3641_v60 = vpop.xlane.xlu1 %3640 }
 0x9c7   : > { %v3651_v28 = vmul.f32 %v3641_v60, %v10442_v32  ;;  %v5960_v60 = vld [vmem:[%s10317_s5 + $0x1] ss:$0 sm:$0xff] }
 0x9c9   : > { %v3655_v33 = vsub.f32 %v9218_v39, %v3651_v28 }
 0x9cb   : > { %v3659_v38 = vmul.f32 %v3655_v33, %v3655_v33 }
 0x9cd   : > { %3667 = vrot.lane.b32.xlu2 %v3659_v38, %s10198_s15 }
 0x9e7   : > { %v3647_v1 = vpop.xlane.xlu0 %3646 }
 0x9e8   : > { %v3653_v35 = vmul.f32 %v3647_v1, %v10442_v32 }
 0x9ea   : > { %v9259_v49 = vsub.f32 %v9230_v54, %v3653_v35 }
 0x9ec   : > { %v3661_v7 = vmul.f32 %v9259_v49, %v9259_v49 }
 0x9ee   : > { %3671 = vrot.lane.b32.xlu1 %v3661_v7, %s10198_s15 }
 0x9f7   : > { %v3644_v4 = vpop.xlane.xlu2 %3643 }
 0x9f8   : > { %v3652_v53 = vmul.f32 %v3644_v4, %v10442_v32 }
 0x9fa   : > { %v9266_v46 = vsub.f32 %v9224_v50, %v3652_v53 }
 0x9fc   : > { %v3660_v25 = vmul.f32 %v9266_v46, %v9266_v46 }
 0x9fe   : > { %3669 = vrot.lane.b32.xlu0 %v3660_v25, %s10198_s15 }
 0xa27   : > { %v3668_v10 = vpop.permute.xlu2 %3667 }
 0xa28   : > { %v3679_v31 = vsel %vm2454_vm14, %v3668_v10, 0.0 }
 0xa29   : > { %v3650_v55 = vpop.xlane.xlu1 %3649  ;;  %3680 = vadd.xlane.f32.xlu2 %v3679_v31 }
 0xa2a   : > { %v3654_v27 = vmul.f32 %v3650_v55, %v10442_v32 }
 0xa2c   : > { %v9274_v34 = vsub.f32 %v9234_v29, %v3654_v27 }
 0xa2e   : > { %v3662_v5 = vmul.f32 %v9274_v34, %v9274_v34 }
 0xa30   : > { %3673 = vrot.lane.b32.xlu0 %v3662_v5, %s10198_s15 }
 0xa38   : > { %3745 = vrot.lane.b32.xlu0 %v5959_v3, %s10195_s24 }
 0xa40   : > { %3754 = vrot.lane.b32.xlu0 %v5960_v60, %s10195_s24  ;;  %s5286_s24 = sshll.u32 %s9777_s25, 4  ;;  %s5287_s24 = int_to_ptr.vmem [resolvable:$true] %s5286_s24 }
 0xa60   : > { %v3672_v28 = vpop.permute.xlu1 %3671 }
 0xa61   : > { %v3685_v38 = vsel %vm2454_vm14, %v3672_v28, 0.0 }
 0xa6a   : > { %3686 = vadd.xlane.f32.xlu0 %v3685_v38 }
 0xa70   : > { %v3670_v1 = vpop.permute.xlu0 %3669 }
 0xa71   : > { %v3682_v35 = vsel %vm2454_vm14, %v3670_v1, 0.0 }
 0xa72   : > { %3683 = vadd.xlane.f32.xlu1 %v3682_v35 }
 0xa9c   : > { %v3681_v7 = vpop.xlane.xlu2 %3680 }
 0xa9d   : > { %v3691_v4 = vmul.f32 %v3681_v7, %v10442_v32 }
 0xa9f   : > { %v3695_v53 = vadd.f32 1e-05, %v3691_v4 }
 0xaa1   : > { %6151 = vrsqrt.f32 %v3695_v53  ;;  %vm3705_vm10 = vweird.f32 %v3695_v53 }
 0xaa2   : > { %v3674_v25 = vpop.permute.xlu0 %3673 }
 0xaa3   : > { %v3688_v10 = vsel %vm2454_vm14, %v3674_v25, 0.0 }
 0xaa4   : > { %3689 = vadd.xlane.f32.xlu2 %v3688_v10 }
 0xaa7   : > { %v6152_v31 = vpop.eup %6151 }
 0xaa8   : > { %v3700_v55 = vmul.f32 %v6152_v31, %v3695_v53  ;;  %vm3706_vm9 = vweird.f32 %v6152_v31 }
 0xaa9   : > { %vm3707_vm11 = vmor %vm3705_vm10, %vm3706_vm9 }
 0xaaa   : > { %v3701_v27 = vmul.f32 %v6152_v31, %v3700_v55  ;;  %v9291_v5 = vpop.permute.xlu0 %3745 }
 0xaac   : > { %v3702_v3 = vmul.f32 0.5, %v3701_v27 }
 0xaae   : > { %v3703_v60 = vsub.f32 1.5, %v3702_v3 }
 0xab0   : > { %v3704_v28 = vmul.f32 %v6152_v31, %v3703_v60 }
 0xab2   : > { %v3708_v38 = vsel %vm3707_vm11, %v6152_v31, %v3704_v28  ;;  %v3755_v35 = vpop.permute.xlu0 %3754 }
 0xab3   : > { %v3739_v1 = vmul.f32 %v3708_v38, %v3655_v33 }
 0xab5   : > { %v3748_v7 = vmul.f32 %v9291_v5, %v3739_v1 }
 0xab7   : > { %v3757_v4 = vadd.f32 %v3755_v35, %v3748_v7 }
 0xab9   : > { %3769 = vrot.lane.b32.xlu1 %v3757_v4, %s10198_s15 }
 0xadd   : > { %v3687_v25 = vpop.xlane.xlu0 %3686 }
 0xade   : > { %v3693_v10 = vmul.f32 %v3687_v25, %v10442_v32 }
 0xae0   : > { %v3697_v55 = vadd.f32 1e-05, %v3693_v10 }
 0xae2   : > { %6153 = vrsqrt.f32 %v3697_v55  ;;  %vm3725_vm13 = vweird.f32 %v3697_v55 }
 0xae5   : > { %v3684_v29 = vpop.xlane.xlu1 %3683 }
 0xae6   : > { %v3692_v27 = vmul.f32 %v3684_v29, %v10442_v32 }
 0xae8   : > { %v6154_v3 = vpop.eup %6153  ;;  %v3696_v60 = vadd.f32 1e-05, %v3692_v27 }
 0xae9   : > { %v3720_v53 = vmul.f32 %v6154_v3, %v3697_v55  ;;  %vm3726_vm12 = vweird.f32 %v6154_v3 }
 0xaea   : > { %6155 = vrsqrt.f32 %v3696_v60  ;;  %vm3727_vm15 = vmor %vm3725_vm13, %vm3726_vm12  ;;  %vm3715_vm2 = vweird.f32 %v3696_v60 }
 0xaeb   : > { %v3721_v31 = vmul.f32 %v6154_v3, %v3720_v53 }
 0xaed   : > { %v3722_v33 = vmul.f32 0.5, %v3721_v31 }
 0xaef   : > { %v3723_v28 = vsub.f32 1.5, %v3722_v33 }
 0xaf0   : > { %v6156_v38 = vpop.eup %6155 }
 0xaf1   : > { %v3724_v1 = vmul.f32 %v6154_v3, %v3723_v28  ;;  %v3710_v7 = vmul.f32 %v6156_v38, %v3696_v60  ;;  %vm3716_vm1 = vweird.f32 %v6156_v38 }
 0xaf2   : > { %vm3717_vm3 = vmor %vm3715_vm2, %vm3716_vm1 }
 0xaf3   : > { %v3728_v4 = vsel %vm3727_vm15, %v6154_v3, %v3724_v1  ;;  %v3711_v25 = vmul.f32 %v6156_v38, %v3710_v7 }
 0xaf4   : > { %v3741_v10 = vmul.f32 %v3728_v4, %v9259_v49 }
 0xaf5   : > { %v3712_v50 = vmul.f32 0.5, %v3711_v25  ;;  %v10443_v25 = vld [vmem:[#allocation63_spill] sm:$0xff] }
 0xaf6   : > { %v3750_v29 = vmul.f32 %v9291_v5, %v3741_v10 }
 0xaf7   : > { %v3713_v54 = vsub.f32 1.5, %v3712_v50 }
 0xaf8   : > { %v3759_v27 = vadd.f32 %v3755_v35, %v3750_v29  ;;  %v10444_v29 = vld [vmem:[#allocation82_spill] sm:$0xff] }
 0xaf9   : > { %v3714_v39 = vmul.f32 %v6156_v38, %v3713_v54 }
 0xafa   : > { %3773 = vrot.lane.b32.xlu0 %v3759_v27, %s10198_s15 }
 0xafb   : > { %v3718_v53 = vsel %vm3717_vm3, %v6156_v38, %v3714_v39 }
 0xafc   : > { %v3740_v55 = vmul.f32 %v3718_v53, %v9266_v46  ;;  %v10445_v53 = vld [vmem:[#allocation85_spill] sm:$0xff] }
 0xafe   : > { %v3749_v31 = vmul.f32 %v9291_v5, %v3740_v55  ;;  %v10446_v55 = vld [vmem:[#allocation86_spill] sm:$0xff] }
 0xb00   : > { %v3758_v3 = vadd.f32 %v3755_v35, %v3749_v31  ;;  %v10447_v31 = vld [vmem:[#allocation89_spill] sm:$0xff] }
 0xb02   : > { %3771 = vrot.lane.b32.xlu2 %v3758_v3, %s10198_s15  ;;  %v10448_v3 = vld [vmem:[#allocation90_spill] sm:$0xff] }
 0xb17   : > { %v3690_v49 = vpop.xlane.xlu2 %3689 }
 0xb18   : > { %v3694_v33 = vmul.f32 %v3690_v49, %v10442_v32  ;;  %v10450_v49 = vld [vmem:[#allocation94_spill] sm:$0xff] }
 0xb1a   : > { %v3698_v28 = vadd.f32 1e-05, %v3694_v33  ;;  %v10451_v33 = vld [vmem:[#allocation97_spill] sm:$0xff] }
 0xb1c   : > { %6157 = vrsqrt.f32 %v3698_v28  ;;  %vm3735_vm4 = vweird.f32 %v3698_v28 }
 0xb22   : > { %v6158_v50 = vpop.eup %6157 }
 0xb23   : > { %v3730_v1 = vmul.f32 %v6158_v50, %v3698_v28  ;;  %vm3736_vm0 = vweird.f32 %v6158_v50  ;;  %v10453_v28 = vld [vmem:[#allocation101_spill] sm:$0xff] }
 0xb24   : > { %vm3737_vm5 = vmor %vm3735_vm4, %vm3736_vm0 }
 0xb25   : > { %v3731_v54 = vmul.f32 %v6158_v50, %v3730_v1  ;;  %v10456_v1 = vld [vmem:[#allocation104_spill] sm:$0xff] }
 0xb27   : > { %v3732_v60 = vmul.f32 0.5, %v3731_v54 }
 0xb29   : > { %v3733_v7 = vsub.f32 1.5, %v3732_v60 }
 0xb2b   : > { %v3734_v4 = vmul.f32 %v6158_v50, %v3733_v7  ;;  %v3770_v39 = vpop.permute.xlu1 %3769 }
 0xb2c   : > { %5555 = vmatmul.msk.f32.vlgmr.msra.gmra.mxu1 %vm2454_vm14, %v3770_v39 }
 0xb2d   : > { %v3738_v46 = vsel %vm3737_vm5, %v6158_v50, %v3734_v4  ;;  %4122 = vmatpush.msra.mxu1 %v10443_v25  ;;  %v10455_v50 = vld [vmem:[#allocation24_spill] sm:$0xff] }
 0xb2e   : > { %v3742_v38 = vmul.f32 %v3738_v46, %v9274_v34  ;;  %v10449_v34 = vld [vmem:[#allocation93_spill] sm:$0xff] }
 0xb2f   : > { %4123 = vmatpush.msra.mxu1 %v8776_v12  ;;  %v10457_v46 = vld [vmem:[#allocation81_spill] sm:$0xff] }
 0xb30   : > { %v3751_v10 = vmul.f32 %v9291_v5, %v3742_v38  ;;  %v10452_v5 = vld [vmem:[#allocation99_spill] sm:$0xff] }
 0xb31   : > { %4124 = vmatpush.msra.mxu1 %v10444_v29  ;;  %v10458_v38 = vld [vmem:[#allocation83_spill] sm:$0xff] }
 0xb32   : > { %v3760_v27 = vadd.f32 %v3755_v35, %v3751_v10  ;;  %v10454_v35 = vld [vmem:[#allocation102_spill] sm:$0xff]  ;;  %v10459_v10 = vld [vmem:[#allocation84_spill] sm:$0xff] }
 0xb33   : > { %4125 = vmatpush.msra.mxu1 %v10445_v53 }
 0xb34   : > { %3775 = vrot.lane.b32.xlu1 %v3760_v27, %s10198_s15  ;;  %v10460_v27 = vld [vmem:[#allocation87_spill] sm:$0xff] }
 0xb35   : > { %4126 = vmatpush.msra.mxu1 %v10446_v55 }
 0xb37   : > { %4127 = vmatpush.msra.mxu1 %v10447_v31 }
 0xb39   : > { %4128 = vmatpush.msra.mxu1 %v10448_v3 }
 0xb3b   : > { %4129 = vmatpush.msra.mxu1 %v10449_v34 }
 0xb3d   : > { %4130 = vmatpush.msra.mxu1 %v10450_v49 }
 0xb3f   : > { %4131 = vmatpush.msra.mxu1 %v10451_v33 }
 0xb41   : > { %4132 = vmatpush.msra.mxu1 %v10452_v5 }
 0xb43   : > { %4133 = vmatpush.msra.mxu1 %v10453_v28 }
 0xb45   : > { %4134 = vmatpush.msra.mxu1 %v10454_v35 }
 0xb47   : > { %4135 = vmatpush.msra.mxu1 %v10455_v50 }
 0xb49   : > { %4136 = vmatpush.msra.mxu1 %v10456_v1 }
 0xb4b   : > { %4137 = vmatpush.msra.mxu1 %v8935_v43  ;;  %v10463_v43 = vld [vmem:[#allocation92_spill] sm:$0xff] }
 0xb5c   : > { %v3772_v54 = vpop.permute.xlu2 %3771 }
 0xb5d   : > { %5556 = vmatmul.msk.f32.gmra.mxu1 %vm2454_vm14, %v3772_v54  ;;  %v10461_v54 = vld [vmem:[#allocation88_spill] sm:$0xff] }
 0xb6c   : > { %v3774_v60 = vpop.permute.xlu0 %3773 }
 0xb6d   : > { %5557 = vmatmul.msk.f32.gmra.mxu1 %vm2454_vm14, %v3774_v60  ;;  %v10462_v60 = vld [vmem:[#allocation91_spill] sm:$0xff] }
 0xba6   : > { %v3776_v7 = vpop.permute.xlu1 %3775 }
 0xba7   : > { %5558 = vmatmul.msk.f32.gmra.mxu1 %vm2454_vm14, %v3776_v7  ;;  %v10464_v7 = vld [vmem:[#allocation95_spill] sm:$0xff] }
 0xba9   : > { %v3802_v4 = vpop.f32.mrf.mxu1 }
 0xbaa   : > { %5575 = vmatmul.msk.f32.vlgmr.msra.gmra.mxu2 %vm2454_vm14, %v3802_v4 }
 0xbda   : > { %v3805_v39 = vpop.f32.mrf.mxu1 }
 0xbdb   : > { %5592 = vmatmul.msk.f32.vlgmr.msra.gmra.mxu3 %vm2454_vm14, %v3805_v39  ;;  %v4185_v39 = vld [vmem:[%s9970_s6 + $0x18] sm:$0xff] }
 0xbdc   : > { %4142 = vmatpush.msra.mxu3 %v10457_v46  ;;  %4210 = vmatpush.msra.mxu2 %v4185_v39  ;;  %v10469_v39 = vld [vmem:[#allocation26_spill] sm:$0xff] }
 0xbde   : > { %4143 = vmatpush.msra.mxu3 %v10458_v38  ;;  %v4184_v38 = vld [vmem:[%s9970_s6 + $0x10] sm:$0xff] }
 0xbdf   : > { %4211 = vmatpush.msra.mxu2 %v4184_v38  ;;  %v4182_v38 = vld [vmem:[%s9970_s6] sm:$0xff] }
 0xbe0   : > { %4144 = vmatpush.msra.mxu3 %v10459_v10 }
 0xbe2   : > { %4145 = vmatpush.msra.mxu3 %v10460_v27  ;;  %v10465_v27 = vld [vmem:[#allocation96_spill] sm:$0xff] }
 0xbe4   : > { %4146 = vmatpush.msra.mxu3 %v10461_v54 }
 0xbe6   : > { %4147 = vmatpush.msra.mxu3 %v10462_v60  ;;  %v10467_v60 = vld [vmem:[#allocation100_spill] sm:$0xff] }
 0xbe8   : > { %4148 = vmatpush.msra.mxu3 %v10463_v43  ;;  %v10466_v43 = vld [vmem:[#allocation98_spill] sm:$0xff] }
 0xbea   : > { %4149 = vmatpush.msra.mxu3 %v10464_v7  ;;  %v3808_v4 = vpop.f32.mrf.mxu1  ;;  %v4183_v7 = vld [vmem:[%s9970_s6 + $0x8] sm:$0xff] }
 0xbeb   : > { %5609 = vmatmul.msk.f32.vlgmr.msrb.gmra.mxu1 %vm2454_vm14, %v3808_v4  ;;  %4212 = vmatpush.msra.mxu2 %v4183_v7  ;;  %v10468_v4 = vld [vmem:[#allocation103_spill] sm:$0xff]  ;;  %v10470_v7 = vld [vmem:[#allocation122_spill] sm:$0xff] }
 0xbec   : > { %4150 = vmatpush.msra.mxu3 %v10465_v27  ;;  %4162 = vmatpush.msrb.mxu1 %v8939_v26 }
 0xbed   : > { %4213 = vmatpush.msra.mxu2 %v4182_v38 }
 0xbee   : > { %4151 = vmatpush.msra.mxu3 %v10466_v43  ;;  %4163 = vmatpush.msrb.mxu1 %v8944_v48 }
 0xbf0   : > { %4152 = vmatpush.msra.mxu3 %v10467_v60  ;;  %4164 = vmatpush.msrb.mxu1 %v8948_v51  ;;  %v10487_v60 = vld [vmem:[#allocation8_spill] sm:$0xff] }
 0xbf2   : > { %4153 = vmatpush.msra.mxu3 %v10468_v4  ;;  %4165 = vmatpush.msrb.mxu1 %v8952_v24  ;;  %v10478_v4 = vld [vmem:[#allocation17_spill] sm:$0xff] }
 0xbf4   : > { %4154 = vmatpush.msra.mxu3 %v10469_v39  ;;  %4166 = vmatpush.msrb.mxu1 %v8962_v17 }
 0xbf6   : > { %4155 = vmatpush.msra.mxu3 %v8930_v11  ;;  %4167 = vmatpush.msrb.mxu1 %v8970_v42 }
 0xbf8   : > { %4156 = vmatpush.msra.mxu3 %v8933_v62  ;;  %4168 = vmatpush.msrb.mxu1 %v8976_v22 }
 0xbfa   : > { %4157 = vmatpush.msra.mxu3 %v8954_v9  ;;  %4169 = vmatpush.msrb.mxu1 %v8982_v59  ;;  %v10471_v9 = vld [vmem:[#allocation123_spill] sm:$0xff] }
 0xbfc   : > { %4170 = vmatpush.msrb.mxu1 %v8985_v40  ;;  %v10476_v40 = vld [vmem:[#allocation19_spill] sm:$0xff] }
 0xbfe   : > { %4171 = vmatpush.msrb.mxu1 %v8990_v56  ;;  %v10472_v56 = vld [vmem:[#allocation23_spill] sm:$0xff] }
 0xc00   : > { %4172 = vmatpush.msrb.mxu1 %v8998_v44  ;;  %v10474_v44 = vld [vmem:[#allocation21_spill] sm:$0xff] }
 0xc02   : > { %4173 = vmatpush.msrb.mxu1 %v9003_v15  ;;  %v10473_v15 = vld [vmem:[#allocation22_spill] sm:$0xff] }
 0xc04   : > { %4174 = vmatpush.msrb.mxu1 %v9006_v13 }
 0xc06   : > { %4175 = vmatpush.msrb.mxu1 %v9011_v30  ;;  %v10475_v30 = vld [vmem:[#allocation20_spill] sm:$0xff] }
 0xc08   : > { %4176 = vmatpush.msrb.mxu1 %v10470_v7 }
 0xc0a   : > { %4177 = vmatpush.msrb.mxu1 %v10471_v9 }
 0xc24   : > { %v3811_v62 = vpop.f32.mrf.mxu1 }
 0xc25   : > { %5626 = vmatmul.msk.f32.vlgmr.msrb.gmra.mxu2 %vm2454_vm14, %v3811_v62 }
 0xc26   : > { %5643 = vmatpush.xpose.msk.msrb.mxu2 %vm2454_vm14, %v10472_v56  ;;  %v10477_v56 = vld [vmem:[#allocation18_spill] sm:$0xff] }
 0xc2a   : > { %5644 = vmatpush.xpose.msk.msrb.mxu2 %vm2454_vm14, %v10473_v15 }
 0xc2d   : > { %v3834_v13 = vpop.f32.mrf.mxu2 }
 0xc2e   : > { %5645 = vmatpush.xpose.msk.msrb.mxu2 %vm2454_vm14, %v10474_v44  ;;  %v3906_v38 = vmul.f32 0.17677669, %v3834_v13  ;;  %v10479_v13 = vld [vmem:[#allocation16_spill] sm:$0xff] }
 0xc30   : > { %v3910_v11 = vrot.slane %v3906_v38, 4 }
 0xc32   : > { %5646 = vmatpush.xpose.msk.msrb.mxu2 %vm2454_vm14, %v10475_v30  ;;  %v3911_v7 = vmax.f32 %v3906_v38, %v3910_v11  ;;  %v10480_v11 = vld [vmem:[#allocation15_spill] sm:$0xff] }
 0xc34   : > { %v3912_v9 = vrot.slane %v3911_v7, 2 }
 0xc36   : > { %5647 = vmatpush.xpose.msk.msrb.mxu2 %vm2454_vm14, %v10476_v40  ;;  %v3913_v62 = vmax.f32 %v3911_v7, %v3912_v9  ;;  %v10481_v7 = vld [vmem:[#allocation14_spill] sm:$0xff] }
 0xc38   : > { %v3914_v39 = vrot.slane %v3913_v62, 1 }
 0xc3a   : > { %5648 = vmatpush.xpose.msk.msrb.mxu2 %vm2454_vm14, %v10477_v56  ;;  %v3915_v15 = vmax.f32 %v3913_v62, %v3914_v39  ;;  %v10482_v39 = vld [vmem:[#allocation13_spill] sm:$0xff] }
 0xc3c   : > { %v3934_v59 = vsub.f32 %v3906_v38, %v3915_v15  ;;  %v10484_v15 = vld [vmem:[#allocation11_spill] sm:$0xff] }
 0xc3e   : > { %5649 = vmatpush.xpose.msk.msrb.mxu2 %vm2454_vm14, %v10478_v4  ;;  %v3938_v44 = vmul.f32 1.442695, %v3934_v59  ;;  %v10483_v59 = vld [vmem:[#allocation12_spill] sm:$0xff] }
 0xc40   : > { %6159 = vpow2.f32 %v3938_v44 }
 0xc42   : > { %5650 = vmatpush.xpose.msk.msrb.mxu2 %vm2454_vm14, %v10479_v13  ;;  %v10485_v13 = vld [vmem:[#allocation10_spill] sm:$0xff] }
 0xc46   : > { %5651 = vmatpush.xpose.msk.msrb.mxu2 %vm2454_vm14, %v10480_v11  ;;  %v6160_v30 = vpop.eup %6159 }
 0xc47   : > { %v3946_v40 = vrot.slane %v6160_v30, 4 }
 0xc49   : > { %v3947_v9 = vadd.f32 %v6160_v30, %v3946_v40 }
 0xc4a   : > { %5652 = vmatpush.xpose.msk.msrb.mxu2 %vm2454_vm14, %v10481_v7  ;;  %v10486_v7 = vld [vmem:[#allocation9_spill] sm:$0xff] }
 0xc4b   : > { %v3948_v56 = vrot.slane %v3947_v9, 2 }
 0xc4d   : > { %v3949_v38 = vadd.f32 %v3948_v56, %v3947_v9 }
 0xc4e   : > { %5653 = vmatpush.xpose.msk.msrb.mxu2 %vm2454_vm14, %v10482_v39 }
 0xc4f   : > { %v3950_v4 = vrot.slane %v3949_v38, 1 }
 0xc51   : > { %v3951_v62 = vadd.f32 %v3950_v4, %v3949_v38 }
 0xc52   : > { %5654 = vmatpush.xpose.msk.msrb.mxu2 %vm2454_vm14, %v10483_v59 }
 0xc53   : > { %6161 = vrcp.f32 %v3951_v62  ;;  %v3981_v9 = vand.u32 2147483648, %v3951_v62  ;;  %v3979_v59 = vand.u32 2147483647, %v3951_v62  ;;  %vm3975_vm7 = vweird.f32 %v3951_v62 }
 0xc55   : > { %vm3980_vm9 = vcmp.eq.f32.partialorder %v3979_v59, 8.507059e+37 }
 0xc56   : > { %5655 = vmatpush.xpose.msk.msrb.mxu2 %vm2454_vm14, %v10484_v15  ;;  %v3982_v15 = vor.u32 1.1754944e-38, %v3981_v9 }
 0xc59   : > { %v6162_v44 = vpop.eup %6161 }
 0xc5a   : > { %5656 = vmatpush.xpose.msk.msrb.mxu2 %vm2454_vm14, %v10485_v13  ;;  %v3971_v11 = vmul.f32 %v6162_v44, %v3951_v62  ;;  %vm3976_vm6 = vweird.f32 %v6162_v44 }
 0xc5b   : > { %vm3977_vm8 = vmor %vm3975_vm7, %vm3976_vm6 }
 0xc5c   : > { %v3972_v40 = vsub.f32 1.0, %v3971_v11 }
 0xc5e   : > { %5657 = vmatpush.xpose.msk.msrb.mxu2 %vm2454_vm14, %v10486_v7  ;;  %v3857_v39 = vpop.f32.mrf.mxu3  ;;  %v3973_v22 = vmul.f32 %v6162_v44, %v3972_v40 }
 0xc5f   : > { %v3907_v56 = vmul.f32 0.17677669, %v3857_v39 }
 0xc60   : > { %v3974_v4 = vadd.f32 %v6162_v44, %v3973_v22 }
 0xc61   : > { %v3916_v38 = vrot.slane %v3907_v56, 4 }
 0xc62   : > { %5658 = vmatpush.xpose.msk.msrb.mxu2 %vm2454_vm14, %v10487_v60  ;;  %v3978_v42 = vsel %vm3977_vm8, %v6162_v44, %v3974_v4 }
 0xc63   : > { %v3917_v13 = vmax.f32 %v3907_v56, %v3916_v38  ;;  %v3983_v11 = vsel %vm3980_vm9, %v3982_v15, %v3978_v42 }
 0xc64   : > { %v4026_v7 = vmul.f32 %v6160_v30, %v3983_v11 }
 0xc65   : > { %v3918_v43 = vrot.slane %v3917_v13, 2 }
 0xc66   : > { %v9407_v27 = vadd.f32 1e-08, %v4026_v7 }
 0xc67   : > { %v3919_v17 = vmax.f32 %v3917_v13, %v3918_v43 }
 0xc68   : > { %v3880_v40 = vpop.f32.mrf.mxu1  ;;  %4034 = vadd.xlane.f32.xlu2 %v9407_v27 }
 0xc69   : > { %v3920_v39 = vrot.slane %v3919_v17, 1  ;;  %v3908_v22 = vmul.f32 0.17677669, %v3880_v40 }
 0xc6b   : > { %v3921_v62 = vmax.f32 %v3919_v17, %v3920_v39  ;;  %v3922_v24 = vrot.slane %v3908_v22, 4 }
 0xc6d   : > { %v3935_v51 = vsub.f32 %v3907_v56, %v3921_v62  ;;  %v3923_v60 = vmax.f32 %v3908_v22, %v3922_v24 }
 0xc6f   : > { %v3940_v48 = vmul.f32 1.442695, %v3935_v51  ;;  %v3924_v9 = vrot.slane %v3923_v60, 2 }
 0xc71   : > { %6163 = vpow2.f32 %v3940_v48  ;;  %v3925_v44 = vmax.f32 %v3923_v60, %v3924_v9 }
 0xc73   : > { %v3926_v59 = vrot.slane %v3925_v44, 1 }
 0xc75   : > { %v3927_v42 = vmax.f32 %v3925_v44, %v3926_v59 }
 0xc77   : > { %v6164_v38 = vpop.eup %6163  ;;  %v3936_v30 = vsub.f32 %v3908_v22, %v3927_v42 }
 0xc78   : > { %v3952_v43 = vrot.slane %v6164_v38, 4 }
 0xc79   : > { %v3942_v4 = vmul.f32 1.442695, %v3936_v30 }
 0xc7a   : > { %v3953_v15 = vadd.f32 %v6164_v38, %v3952_v43 }
 0xc7b   : > { %6165 = vpow2.f32 %v3942_v4 }
 0xc7c   : > { %v3954_v13 = vrot.slane %v3953_v15, 2 }
 0xc7e   : > { %v3955_v11 = vadd.f32 %v3954_v13, %v3953_v15 }
 0xc80   : > { %v3956_v7 = vrot.slane %v3955_v11, 1 }
 0xc81   : > { %v6166_v40 = vpop.eup %6165 }
 0xc82   : > { %v3958_v17 = vrot.slane %v6166_v40, 4  ;;  %v3957_v39 = vadd.f32 %v3956_v7, %v3955_v11 }
 0xc84   : > { %v3959_v56 = vadd.f32 %v6166_v40, %v3958_v17  ;;  %6167 = vrcp.f32 %v3957_v39  ;;  %v3995_v22 = vand.u32 2147483648, %v3957_v39  ;;  %v3993_v42 = vand.u32 2147483647, %v3957_v39 }
 0xc85   : > { %vm3989_vm11 = vweird.f32 %v3957_v39 }
 0xc86   : > { %v3960_v51 = vrot.slane %v3959_v56, 2  ;;  %v3996_v43 = vor.u32 1.1754944e-38, %v3995_v22  ;;  %vm3994_vm13 = vcmp.eq.f32.partialorder %v3993_v42, 8.507059e+37 }
 0xc88   : > { %v3961_v24 = vadd.f32 %v3960_v51, %v3959_v56 }
 0xc8a   : > { %v6168_v48 = vpop.eup %6167  ;;  %v3962_v62 = vrot.slane %v3961_v24, 1 }
 0xc8b   : > { %v3985_v60 = vmul.f32 %v6168_v48, %v3957_v39  ;;  %vm3990_vm10 = vweird.f32 %v6168_v48 }
 0xc8c   : > { %v3963_v9 = vadd.f32 %v3962_v62, %v3961_v24  ;;  %vm3991_vm12 = vmor %vm3989_vm11, %vm3990_vm10 }
 0xc8d   : > { %v3986_v44 = vsub.f32 1.0, %v3985_v60 }
 0xc8e   : > { %6169 = vrcp.f32 %v3963_v9  ;;  %v4009_v51 = vand.u32 2147483648, %v3963_v9  ;;  %v4007_v62 = vand.u32 2147483647, %v3963_v9  ;;  %vm4003_vm1 = vweird.f32 %v3963_v9 }
 0xc8f   : > { %v3987_v59 = vmul.f32 %v6168_v48, %v3986_v44 }
 0xc90   : > { %v4010_v39 = vor.u32 1.1754944e-38, %v4009_v51  ;;  %vm4008_vm3 = vcmp.eq.f32.partialorder %v4007_v62, 8.507059e+37 }
 0xc91   : > { %v3988_v30 = vadd.f32 %v6168_v48, %v3987_v59 }
 0xc93   : > { %v3992_v4 = vsel %vm3991_vm12, %v6168_v48, %v3988_v30 }
 0xc94   : > { %v6170_v15 = vpop.eup %6169  ;;  %v3997_v13 = vsel %vm3994_vm13, %v3996_v43, %v3992_v4 }
 0xc95   : > { %v4027_v11 = vmul.f32 %v6164_v38, %v3997_v13  ;;  %v3999_v7 = vmul.f32 %v6170_v15, %v3963_v9  ;;  %vm4004_vm15 = vweird.f32 %v6170_v15 }
 0xc96   : > { %vm4005_vm2 = vmor %vm4003_vm1, %vm4004_vm15 }
 0xc97   : > { %v9410_v17 = vadd.f32 1e-08, %v4027_v11  ;;  %v4000_v56 = vsub.f32 1.0, %v3999_v7 }
 0xc99   : > { %4036 = vadd.xlane.f32.xlu1 %v9410_v17  ;;  %v4001_v24 = vmul.f32 %v6170_v15, %v4000_v56 }
 0xc9b   : > { %v4002_v60 = vadd.f32 %v6170_v15, %v4001_v24 }
 0xc9d   : > { %v4006_v44 = vsel %vm4005_vm2, %v6170_v15, %v4002_v60 }
 0xc9e   : > { %v4011_v48 = vsel %vm4008_vm3, %v4010_v39, %v4006_v44 }
 0xc9f   : > { %v4028_v22 = vmul.f32 %v6166_v40, %v4011_v48 }
 0xca1   : > { %v9413_v59 = vadd.f32 1e-08, %v4028_v22 }
 0xca3   : > { %4038 = vadd.xlane.f32.xlu0 %v9413_v59 }
 0xca8   : > { %v3903_v38 = vpop.f32.mrf.mxu2 }
 0xca9   : > { %v3909_v42 = vmul.f32 0.17677669, %v3903_v38 }
 0xcab   : > { %v3928_v30 = vrot.slane %v3909_v42, 4 }
 0xcad   : > { %v3929_v43 = vmax.f32 %v3909_v42, %v3928_v30 }
 0xcaf   : > { %v3930_v4 = vrot.slane %v3929_v43, 2 }
 0xcb1   : > { %v3931_v13 = vmax.f32 %v3929_v43, %v3930_v4 }
 0xcb3   : > { %v3932_v11 = vrot.slane %v3931_v13, 1 }
 0xcb5   : > { %v3933_v7 = vmax.f32 %v3931_v13, %v3932_v11 }
 0xcb7   : > { %v3937_v56 = vsub.f32 %v3909_v42, %v3933_v7 }
 0xcb9   : > { %v3944_v9 = vmul.f32 1.442695, %v3937_v56 }
 0xcbb   : > { %6171 = vpow2.f32 %v3944_v9 }
 0xcc1   : > { %v6172_v51 = vpop.eup %6171 }
 0xcc2   : > { %v3964_v15 = vrot.slane %v6172_v51, 4 }
 0xcc4   : > { %v3965_v24 = vadd.f32 %v6172_v51, %v3964_v15 }
 0xcc6   : > { %v3966_v62 = vrot.slane %v3965_v24, 2 }
 0xcc8   : > { %v3967_v40 = vadd.f32 %v3966_v62, %v3965_v24 }
 0xcca   : > { %v3968_v60 = vrot.slane %v3967_v40, 1 }
 0xccc   : > { %v3969_v39 = vadd.f32 %v3968_v60, %v3967_v40 }
 0xcce   : > { %6173 = vrcp.f32 %v3969_v39  ;;  %v4023_v30 = vand.u32 2147483648, %v3969_v39  ;;  %v4021_v43 = vand.u32 2147483647, %v3969_v39  ;;  %vm4017_vm4 = vweird.f32 %v3969_v39 }
 0xcd0   : > { %v4024_v42 = vor.u32 1.1754944e-38, %v4023_v30  ;;  %vm4022_vm6 = vcmp.eq.f32.partialorder %v4021_v43, 8.507059e+37  ;;  %v4230_v30 = vld [vmem:[%s9971_s7 + $0x18] sm:$0xff]  ;;  %v4229_v43 = vld [vmem:[%s9971_s7 + $0x10] sm:$0xff] }
 0xcd4   : > { %v6174_v44 = vpop.eup %6173 }
 0xcd5   : > { %v4013_v48 = vmul.f32 %v6174_v44, %v3969_v39  ;;  %vm4018_vm0 = vweird.f32 %v6174_v44 }
 0xcd6   : > { %vm4019_vm5 = vmor %vm4017_vm4, %vm4018_vm0 }
 0xcd7   : > { %v4014_v22 = vsub.f32 1.0, %v4013_v48 }
 0xcd9   : > { %v4015_v38 = vmul.f32 %v6174_v44, %v4014_v22 }
 0xcdb   : > { %v4016_v4 = vadd.f32 %v6174_v44, %v4015_v38  ;;  %v4035_v13 = vpop.xlane.xlu2 %4034 }
 0xcdc   : > { %6175 = vrcp.f32 %v4035_v13  ;;  %v4053_v40 = vand.u32 2147483648, %v4035_v13  ;;  %v4051_v48 = vand.u32 2147483647, %v4035_v13  ;;  %vm4047_vm8 = vweird.f32 %v4035_v13 }
 0xcdd   : > { %v4020_v11 = vsel %vm4019_vm5, %v6174_v44, %v4016_v4  ;;  %v4228_v4 = vld [vmem:[%s9971_s7 + $0x8] sm:$0xff] }
 0xcde   : > { %v4025_v7 = vsel %vm4022_vm6, %v4024_v42, %v4020_v11  ;;  %v4054_v39 = vor.u32 1.1754944e-38, %v4053_v40  ;;  %vm4052_vm10 = vcmp.eq.f32.partialorder %v4051_v48, 8.507059e+37 }
 0xcdf   : > { %v4029_v56 = vmul.f32 %v6172_v51, %v4025_v7 }
 0xce1   : > { %v9416_v9 = vadd.f32 1e-08, %v4029_v56 }
 0xce2   : > { %v6176_v15 = vpop.eup %6175 }
 0xce3   : > { %v4043_v24 = vmul.f32 %v6176_v15, %v4035_v13  ;;  %4040 = vadd.xlane.f32.xlu2 %v9416_v9  ;;  %vm4048_vm7 = vweird.f32 %v6176_v15  ;;  %v4227_v13 = vld [vmem:[%s9971_s7] sm:$0xff] }
 0xce4   : > { %vm4049_vm9 = vmor %vm4047_vm8, %vm4048_vm7 }
 0xce5   : > { %v4044_v62 = vsub.f32 1.0, %v4043_v24 }
 0xce7   : > { %v4045_v60 = vmul.f32 %v6176_v15, %v4044_v62 }
 0xce9   : > { %v4046_v22 = vadd.f32 %v6176_v15, %v4045_v60 }
 0xceb   : > { %v4050_v44 = vsel %vm4049_vm9, %v6176_v15, %v4046_v22 }
 0xcec   : > { %v4055_v38 = vsel %vm4052_vm10, %v4054_v39, %v4050_v44 }
 0xced   : > { %v4098_v51 = vmul.f32 %v4055_v38, %v9407_v27 }
 0xcef   : > { %4118 = vmatmul.f32.vlgmr.msrb.gmra.mxu3 %v4098_v51 }
 0xcf0   : > { %4251 = vmatpush.msrb.mxu3 %v4230_v30 }
 0xcf2   : > { %4252 = vmatpush.msrb.mxu3 %v4229_v43 }
 0xcf4   : > { %4253 = vmatpush.msrb.mxu3 %v4228_v4 }
 0xcf6   : > { %4254 = vmatpush.msrb.mxu3 %v4227_v13 }
 0xd0c   : > { %v4037_v27 = vpop.xlane.xlu1 %4036 }
 0xd0d   : > { %6177 = vrcp.f32 %v4037_v27  ;;  %v4067_v15 = vand.u32 2147483648, %v4037_v27  ;;  %v4065_v62 = vand.u32 2147483647, %v4037_v27  ;;  %vm4061_vm12 = vweird.f32 %v4037_v27 }
 0xd0f   : > { %v4068_v60 = vor.u32 1.1754944e-38, %v4067_v15  ;;  %vm4066_vm15 = vcmp.eq.f32.partialorder %v4065_v62, 8.507059e+37  ;;  %v10488_v15 = vld [vmem:[#allocation37_spill] sm:$0xff]  ;;  %v10493_v62 = vld [vmem:[#allocation31_spill] sm:$0xff] }
 0xd13   : > { %v6178_v42 = vpop.eup %6177 }
 0xd14   : > { %v4057_v11 = vmul.f32 %v6178_v42, %v4037_v27  ;;  %vm4062_vm11 = vweird.f32 %v6178_v42 }
 0xd15   : > { %vm4063_vm13 = vmor %vm4061_vm12, %vm4062_vm11 }
 0xd16   : > { %v4058_v7 = vsub.f32 1.0, %v4057_v11  ;;  %v4039_v56 = vpop.xlane.xlu0 %4038 }
 0xd17   : > { %6179 = vrcp.f32 %v4039_v56  ;;  %v4081_v30 = vand.u32 2147483648, %v4039_v56  ;;  %v4079_v4 = vand.u32 2147483647, %v4039_v56  ;;  %vm4075_vm2 = vweird.f32 %v4039_v56 }
 0xd18   : > { %v4059_v24 = vmul.f32 %v6178_v42, %v4058_v7 }
 0xd19   : > { %v4082_v11 = vor.u32 1.1754944e-38, %v4081_v30  ;;  %vm4080_vm0 = vcmp.eq.f32.partialorder %v4079_v4, 8.507059e+37  ;;  %v10507_v30 = vld [vmem:[#allocation49_spill] sm:$0xff] }
 0xd1a   : > { %v4060_v40 = vadd.f32 %v6178_v42, %v4059_v24  ;;  %v10490_v24 = vld [vmem:[#allocation35_spill] sm:$0xff]  ;;  %v10509_v4 = vld [vmem:[#allocation77_spill] sm:$0xff] }
 0xd1c   : > { %v4064_v48 = vsel %vm4063_vm13, %v6178_v42, %v4060_v40 }
 0xd1d   : > { %v6180_v22 = vpop.eup %6179  ;;  %v4069_v39 = vsel %vm4066_vm15, %v4068_v60, %v4064_v48 }
 0xd1e   : > { %v4071_v44 = vmul.f32 %v6180_v22, %v4039_v56  ;;  %v4099_v38 = vmul.f32 %v4069_v39, %v9410_v17  ;;  %vm4076_vm1 = vweird.f32 %v6180_v22  ;;  %v10489_v17 = vld [vmem:[#allocation36_spill] sm:$0xff]  ;;  %v10491_v56 = vld [vmem:[#allocation34_spill] sm:$0xff] }
 0xd1f   : > { %vm4077_vm3 = vmor %vm4075_vm2, %vm4076_vm1  ;;  %v10503_v39 = vld [vmem:[#allocation50_spill] sm:$0xff] }
 0xd20   : > { %v4072_v51 = vsub.f32 1.0, %v4071_v44  ;;  %4138 = vmatmul.f32.vlgmr.msra.gmra.mxu1 %v4099_v38  ;;  %v10504_v44 = vld [vmem:[#allocation58_spill] sm:$0xff]  ;;  %v10505_v38 = vld [vmem:[#allocation75_spill] sm:$0xff] }
 0xd22   : > { %v4073_v43 = vmul.f32 %v6180_v22, %v4072_v51  ;;  %v10506_v51 = vld [vmem:[#allocation76_spill] sm:$0xff] }
 0xd24   : > { %v4074_v13 = vadd.f32 %v6180_v22, %v4073_v43  ;;  %v10508_v43 = vld [vmem:[#allocation57_spill] sm:$0xff] }
 0xd26   : > { %v4078_v27 = vsel %vm4077_vm3, %v6180_v22, %v4074_v13  ;;  %v10510_v13 = vld [vmem:[#allocation78_spill] sm:$0xff] }
 0xd27   : > { %v4083_v7 = vsel %vm4080_vm0, %v4082_v11, %v4078_v27  ;;  %v10511_v11 = vld [vmem:[#allocation48_spill] sm:$0xff] }
 0xd28   : > { %v4100_v42 = vmul.f32 %v4083_v7, %v9413_v59  ;;  %v10492_v59 = vld [vmem:[#allocation33_spill] sm:$0xff]  ;;  %v10512_v27 = vld [vmem:[#allocation56_spill] sm:$0xff]  ;;  %v10513_v7 = vld [vmem:[#allocation79_spill] sm:$0xff] }
 0xd2a   : > { %4158 = vmatmul.f32.vlgmr.msra.gmra.mxu3 %v4100_v42  ;;  %v10514_v42 = vld [vmem:[#allocation80_spill] sm:$0xff] }
 0xd2b   : > { %5660 = vmatpush.xpose.msk.msra.mxu3 %vm2454_vm14, %v10488_v15  ;;  %v10515_v15 = vld [vmem:[#allocation47_spill] sm:$0xff] }
 0xd2f   : > { %5661 = vmatpush.xpose.msk.msra.mxu3 %vm2454_vm14, %v10489_v17  ;;  %v10516_v17 = vld [vmem:[#allocation55_spill] sm:$0xff] }
 0xd32   : > { %5631 = vmatmul.msk.f32.vlgmr.msrb.gmra.mxu3 %vm2454_vm14, %v9238_v61  ;;  %v4567_v61 = vld [vmem:[%s10234_s3 + $0x18] sm:$0xff] }
 0xd33   : > { %5662 = vmatpush.xpose.msk.msra.mxu3 %vm2454_vm14, %v10490_v24  ;;  %4600 = vmatpush.msra.mxu1 %v4567_v61  ;;  %v10517_v24 = vld [vmem:[#allocation46_spill] sm:$0xff]  ;;  %v10521_v61 = vld [vmem:[#allocation44_spill] sm:$0xff] }
 0xd37   : > { %5663 = vmatpush.xpose.msk.msra.mxu3 %vm2454_vm14, %v10491_v56  ;;  %v10518_v56 = vld [vmem:[#allocation54_spill] sm:$0xff] }
 0xd3a   : > { %5632 = vmatmul.msk.f32.gmra.mxu3 %vm2454_vm14, %v9246_v21  ;;  %v4566_v21 = vld [vmem:[%s10234_s3 + $0x10] sm:$0xff] }
 0xd3b   : > { %5664 = vmatpush.xpose.msk.msra.mxu3 %vm2454_vm14, %v10492_v59  ;;  %4601 = vmatpush.msra.mxu1 %v4566_v21  ;;  %v10519_v59 = vld [vmem:[#allocation45_spill] sm:$0xff]  ;;  %v10522_v21 = vld [vmem:[#allocation32_spill] sm:$0xff] }
 0xd3f   : > { %5665 = vmatpush.xpose.msk.msra.mxu3 %vm2454_vm14, %v10354_v20  ;;  %v4565_v20 = vld [vmem:[%s10234_s3 + $0x8] sm:$0xff] }
 0xd40   : > { %4602 = vmatpush.msra.mxu1 %v4565_v20  ;;  %v10523_v20 = vld [vmem:[#allocation43_spill] sm:$0xff] }
 0xd42   : > { %5633 = vmatmul.msk.f32.gmra.mxu3 %vm2454_vm14, %v9242_v2  ;;  %v4564_v2 = vld [vmem:[%s10234_s3] sm:$0xff]  ;;  %s6297_s3 = scalar_lea.hbm %s9975_s11, 64 }
 0xd43   : > { %5666 = vmatpush.xpose.msk.msra.mxu3 %vm2454_vm14, %v10493_v62  ;;  %4603 = vmatpush.msra.mxu1 %v4564_v2  ;;  %v10520_v62 = vld [vmem:[#allocation53_spill] sm:$0xff]  ;;  %v10524_v2 = vld [vmem:[#allocation30_spill] sm:$0xff] }
 0xd47   : > { %5667 = vmatpush.xpose.msk.msra.mxu3 %vm2454_vm14, %v10348_v52 }
 0xd4a   : > { %5634 = vmatmul.msk.f32.gmra.mxu3 %vm2454_vm14, %v9250_v6 }
 0xd4b   : > { %5668 = vmatpush.xpose.msk.msra.mxu3 %vm2454_vm14, %v7714_v14 }
 0xd4f   : > { %5669 = vmatpush.xpose.msk.msra.mxu3 %vm2454_vm14, %v10340_v58 }
 0xd53   : > { %5670 = vmatpush.xpose.msk.msra.mxu3 %vm2454_vm14, %v10335_v16 }
 0xd56   : > { %v4041_v52 = vpop.xlane.xlu2 %4040 }
 0xd57   : > { %5671 = vmatpush.xpose.msk.msra.mxu3 %vm2454_vm14, %v10338_v19  ;;  %6181 = vrcp.f32 %v4041_v52  ;;  %v4095_v60 = vand.u32 2147483648, %v4041_v52  ;;  %v4093_v58 = vand.u32 2147483647, %v4041_v52  ;;  %vm4089_vm5 = vweird.f32 %v4041_v52 }
 0xd59   : > { %v4096_v19 = vor.u32 1.1754944e-38, %v4095_v60  ;;  %vm4094_vm7 = vcmp.eq.f32.partialorder %v4093_v58, 8.507059e+37  ;;  %v10528_v60 = vld [vmem:[#allocation27_spill] sm:$0xff]  ;;  %v10530_v58 = vld [vmem:[#allocation28_spill] sm:$0xff] }
 0xd5b   : > { %5672 = vmatpush.xpose.msk.msra.mxu3 %vm2454_vm14, %v7688_v36 }
 0xd5d   : > { %v6182_v40 = vpop.eup %6181 }
 0xd5e   : > { %v4085_v6 = vmul.f32 %v6182_v40, %v4041_v52  ;;  %vm4090_vm4 = vweird.f32 %v6182_v40  ;;  %v10525_v52 = vld [vmem:[#allocation42_spill] sm:$0xff] }
 0xd5f   : > { %5673 = vmatpush.xpose.msk.msra.mxu3 %vm2454_vm14, %v10383_v37  ;;  %vm4091_vm6 = vmor %vm4089_vm5, %vm4090_vm4 }
 0xd60   : > { %v4086_v14 = vsub.f32 1.0, %v4085_v6 }
 0xd62   : > { %v4087_v48 = vmul.f32 %v6182_v40, %v4086_v14  ;;  %v10527_v14 = vld [vmem:[#allocation41_spill] sm:$0xff] }
 0xd63   : > { %5674 = vmatpush.xpose.msk.msra.mxu3 %vm2454_vm14, %v10410_v47 }
 0xd64   : > { %v4088_v16 = vadd.f32 %v6182_v40, %v4087_v48  ;;  %v10529_v48 = vld [vmem:[#allocation40_spill] sm:$0xff] }
 0xd66   : > { %v4092_v36 = vsel %vm4091_vm6, %v6182_v40, %v4088_v16  ;;  %v10526_v40 = vld [vmem:[#allocation70_spill] sm:$0xff]  ;;  %v10531_v16 = vld [vmem:[#allocation39_spill] sm:$0xff] }
 0xd67   : > { %5675 = vmatpush.xpose.msk.msra.mxu3 %vm2454_vm14, %v10384_v18  ;;  %v4097_v37 = vsel %vm4094_vm7, %v4096_v19, %v4092_v36  ;;  %v10494_v18 = vld [vmem:[#allocation69_spill] sm:$0xff]  ;;  %v10532_v19 = vld [vmem:[#allocation66_spill] sm:$0xff] }
 0xd68   : > { %v4101_v22 = vmul.f32 %v4097_v37, %v9416_v9  ;;  %v10502_v9 = vld [vmem:[#allocation74_spill] sm:$0xff]  ;;  %v10533_v36 = vld [vmem:[#allocation65_spill] sm:$0xff] }
 0xd6a   : > { %4178 = vmatmul.f32.vlgmr.msrb.gmra.mxu1 %v4101_v22  ;;  %v10534_v22 = vld [vmem:[#allocation64_spill] sm:$0xff] }
 0xd6b   : > { %4905 = vmatpush.msrb.mxu3 %v10414_v63  ;;  %5677 = vmatpush.xpose.msk.msrb.mxu1 %vm2454_vm14, %v8498_v0  ;;  %v10495_v63 = vld [vmem:[#allocation52_spill] sm:$0xff]  ;;  %v10497_v0 = vld [vmem:[#allocation71_spill] sm:$0xff] }
 0xd6d   : > { %4906 = vmatpush.msrb.mxu3 %v10416_v57  ;;  %v10496_v57 = vld [vmem:[#allocation68_spill] sm:$0xff] }
 0xd6f   : > { %4907 = vmatpush.msrb.mxu3 %v10418_v41  ;;  %5678 = vmatpush.xpose.msk.msrb.mxu1 %vm2454_vm14, %v8475_v45  ;;  %v10498_v41 = vld [vmem:[#allocation72_spill] sm:$0xff]  ;;  %v10500_v45 = vld [vmem:[#allocation67_spill] sm:$0xff] }
 0xd71   : > { %4908 = vmatpush.msrb.mxu3 %v10420_v8  ;;  %v10499_v8 = vld [vmem:[#allocation51_spill] sm:$0xff] }
 0xd72   : > { %v4119_v47 = vpop.f32.mrf.mxu3 }
 0xd73   : > { %4909 = vmatpush.msrb.mxu3 %v10422_v23  ;;  %5679 = vmatpush.xpose.msk.msrb.mxu1 %vm2454_vm14, %v10495_v63  ;;  %v10501_v23 = vld [vmem:[#allocation73_spill] sm:$0xff] }
 0xd74   : > { %5627 = vmatmul.msk.f32.vlgmr.msra.gmra.mxu2 %vm2454_vm14, %v4119_v47  ;;  %v6273_v47 = vld [vmem:[%s9973_s9] ss:$0 sm:$0xff] }
 0xd75   : > { %4910 = vmatpush.msrb.mxu3 %v10494_v18  ;;  %5694 = vmatpush.xpose.msk.msra.mxu2 %vm2454_vm14, %v10496_v57 }
 0xd77   : > { %4911 = vmatpush.msrb.mxu3 %v10497_v0  ;;  %5680 = vmatpush.xpose.msk.msrb.mxu1 %vm2454_vm14, %v10499_v8 }
 0xd79   : > { %4912 = vmatpush.msrb.mxu3 %v10498_v41  ;;  %5695 = vmatpush.xpose.msk.msra.mxu2 %vm2454_vm14, %v10500_v45 }
 0xd7b   : > { %4913 = vmatpush.msrb.mxu3 %v10501_v23  ;;  %5681 = vmatpush.xpose.msk.msrb.mxu1 %vm2454_vm14, %v10503_v39 }
 0xd7d   : > { %4914 = vmatpush.msrb.mxu3 %v10502_v9  ;;  %5696 = vmatpush.xpose.msk.msra.mxu2 %vm2454_vm14, %v10504_v44  ;;  %v9584_v44 = vld [vmem:[%s9972_s8] ss:$0 sm:$0xff] }
 0xd7f   : > { %4915 = vmatpush.msrb.mxu3 %v10505_v38  ;;  %5682 = vmatpush.xpose.msk.msrb.mxu1 %vm2454_vm14, %v10507_v30 }
 0xd81   : > { %4916 = vmatpush.msrb.mxu3 %v10506_v51  ;;  %5697 = vmatpush.xpose.msk.msra.mxu2 %vm2454_vm14, %v10508_v43 }
 0xd83   : > { %4917 = vmatpush.msrb.mxu3 %v10509_v4  ;;  %5683 = vmatpush.xpose.msk.msrb.mxu1 %vm2454_vm14, %v10511_v11 }
 0xd85   : > { %4918 = vmatpush.msrb.mxu3 %v10510_v13  ;;  %5698 = vmatpush.xpose.msk.msra.mxu2 %vm2454_vm14, %v10512_v27 }
 0xd87   : > { %4919 = vmatpush.msrb.mxu3 %v10513_v7  ;;  %5684 = vmatpush.xpose.msk.msrb.mxu1 %vm2454_vm14, %v10515_v15 }
 0xd89   : > { %4920 = vmatpush.msrb.mxu3 %v10514_v42  ;;  %5699 = vmatpush.xpose.msk.msra.mxu2 %vm2454_vm14, %v10516_v17 }
 0xd8b   : > { %5685 = vmatpush.xpose.msk.msrb.mxu1 %vm2454_vm14, %v10517_v24 }
 0xd8d   : > { %5700 = vmatpush.xpose.msk.msra.mxu2 %vm2454_vm14, %v10518_v56 }
 0xd8f   : > { %5686 = vmatpush.xpose.msk.msrb.mxu1 %vm2454_vm14, %v10519_v59 }
 0xd91   : > { %5701 = vmatpush.xpose.msk.msra.mxu2 %vm2454_vm14, %v10520_v62 }
 0xd93   : > { %5687 = vmatpush.xpose.msk.msrb.mxu1 %vm2454_vm14, %v10521_v61 }
 0xd95   : > { %5702 = vmatpush.xpose.msk.msra.mxu2 %vm2454_vm14, %v10522_v21 }
 0xd97   : > { %5688 = vmatpush.xpose.msk.msrb.mxu1 %vm2454_vm14, %v10523_v20 }
 0xd99   : > { %5703 = vmatpush.xpose.msk.msra.mxu2 %vm2454_vm14, %v10524_v2 }
 0xd9b   : > { %5689 = vmatpush.xpose.msk.msrb.mxu1 %vm2454_vm14, %v10525_v52 }
 0xd9d   : > { %5704 = vmatpush.xpose.msk.msra.mxu2 %vm2454_vm14, %v10526_v40  ;;  %v4139_v6 = vpop.f32.mrf.mxu1 }
 0xd9e   : > { %5628 = vmatmul.msk.f32.gmra.mxu2 %vm2454_vm14, %v4139_v6 }
 0xd9f   : > { %5690 = vmatpush.xpose.msk.msrb.mxu1 %vm2454_vm14, %v10527_v14 }
 0xda1   : > { %5705 = vmatpush.xpose.msk.msra.mxu2 %vm2454_vm14, %v10528_v60 }
 0xda3   : > { %5691 = vmatpush.xpose.msk.msrb.mxu1 %vm2454_vm14, %v10529_v48 }
 0xda5   : > { %5706 = vmatpush.xpose.msk.msra.mxu2 %vm2454_vm14, %v10530_v58 }
 0xda7   : > { %5692 = vmatpush.xpose.msk.msrb.mxu1 %vm2454_vm14, %v10531_v16 }
 0xda9   : > { %5707 = vmatpush.xpose.msk.msra.mxu2 %vm2454_vm14, %v10532_v19 }
 0xdad   : > { %5708 = vmatpush.xpose.msk.msra.mxu2 %vm2454_vm14, %v10533_v36  ;;  %v4159_v37 = vpop.f32.mrf.mxu3 }
 0xdae   : > { %5629 = vmatmul.msk.f32.gmra.mxu2 %vm2454_vm14, %v4159_v37 }
 0xdb1   : > { %5709 = vmatpush.xpose.msk.msra.mxu2 %vm2454_vm14, %v10534_v22 }
 0xdb5   : > { %v4256_v18 = vpop.f32.mrf.mxu3 }
 0xdb6   : > { %v4257_v63 = vadd.f32 %v6273_v47, %v4256_v18 }
 0xdb8   : > { %4352 = vrot.lane.b32.xlu1 %v4257_v63, %s6376_s13 }
 0xdbd   : > { %v4259_v57 = vpop.f32.mrf.mxu3 }
 0xdbe   : > { %v4260_v0 = vadd.f32 %v6273_v47, %v4259_v57 }
 0xdc0   : > { %4354 = vrot.lane.b32.xlu2 %v4260_v0, %s6376_s13 }
 0xdc5   : > { %v4262_v41 = vpop.f32.mrf.mxu3 }
 0xdc6   : > { %v4263_v8 = vadd.f32 %v6273_v47, %v4262_v41 }
 0xdc8   : > { %4356 = vrot.lane.b32.xlu0 %v4263_v8, %s6376_s13 }
 0xdcd   : > { %v4265_v45 = vpop.f32.mrf.mxu3 }
 0xdce   : > { %v9576_v23 = vadd.f32 %v6273_v47, %v4265_v45 }
 0xdd0   : > { %4358 = vrot.lane.b32.xlu0 %v9576_v23, %s6376_s13 }
 0xde7   : > { %v4179_v9 = vpop.f32.mrf.mxu1 }
 0xde8   : > { %5630 = vmatmul.msk.f32.gmra.mxu2 %vm2454_vm14, %v4179_v9 }
 0xdf7   : > { %v4215_v39 = vpop.f32.mrf.mxu2 }
 0xdf8   : > { %v9587_v38 = vadd.f32 %v9584_v44, %v4215_v39 }
 0xdfa   : > { %v4268_v51 = vadd.f32 %v4257_v63, %v9587_v38 }
 0xdfc   : > { %v5635_v30 = vmul.f32 -1.442695, %v4268_v51 }
 0xdfe   : > { %6183 = vpow2.f32 %v5635_v30 }
 0xe04   : > { %v6184_v43 = vpop.eup %6183 }
 0xe05   : > { %v4284_v4 = vadd.f32 1.0, %v6184_v43 }
 0xe07   : > { %6185 = vrcp.f32 %v4284_v4  ;;  %v4299_v56 = vand.u32 2147483648, %v4284_v4  ;;  %vm4293_vm9 = vweird.f32 %v4284_v4  ;;  %v4297_v59 = vand.u32 2147483647, %v4284_v4 }
 0xe09   : > { %v4300_v21 = vor.u32 1.1754944e-38, %v4299_v56  ;;  %vm4298_vm11 = vcmp.eq.f32.partialorder %v4297_v59, 8.507059e+37 }
 0xe0d   : > { %v6186_v13 = vpop.eup %6185 }
 0xe0e   : > { %v4289_v11 = vmul.f32 %v6186_v13, %v4284_v4  ;;  %vm4294_vm8 = vweird.f32 %v6186_v13 }
 0xe0f   : > { %vm4295_vm10 = vmor %vm4293_vm9, %vm4294_vm8 }
 0xe10   : > { %v4290_v27 = vsub.f32 1.0, %v4289_v11 }
 0xe12   : > { %v4291_v7 = vmul.f32 %v6186_v13, %v4290_v27 }
 0xe14   : > { %v4292_v17 = vadd.f32 %v6186_v13, %v4291_v7 }
 0xe16   : > { %v4296_v61 = vsel %vm4295_vm10, %v6186_v13, %v4292_v17 }
 0xe17   : > { %v9594_v2 = vsel %vm4298_vm11, %v4300_v21, %v4296_v61 }
 0xe1a   : > { %v4355_v45 = vpop.permute.xlu2 %4354 }
 0xe21   : > { %v4218_v42 = vpop.f32.mrf.mxu2 }
 0xe22   : > { %v9591_v15 = vadd.f32 %v9584_v44, %v4218_v42 }
 0xe24   : > { %v4269_v24 = vadd.f32 %v4260_v0, %v9591_v15 }
 0xe26   : > { %v5636_v62 = vmul.f32 -1.442695, %v4269_v24 }
 0xe28   : > { %6187 = vpow2.f32 %v5636_v62 }
 0xe2a   : > { %v4353_v20 = vpop.permute.xlu1 %4352 }
 0xe2b   : > { %v4364_v52 = vmul.f32 %v4353_v20, %v9594_v2 }
 0xe2d   : > { %4372 = vrot.lane.b32.xlu2 %v4364_v52, %s6376_s13 }
 0xe2e   : > { %v6188_v40 = vpop.eup %6187 }
 0xe2f   : > { %v4285_v6 = vadd.f32 1.0, %v6188_v40 }
 0xe31   : > { %6189 = vrcp.f32 %v4285_v6  ;;  %v4221_v14 = vpop.f32.mrf.mxu2  ;;  %v4314_v22 = vand.u32 2147483648, %v4285_v6  ;;  %v4312_v18 = vand.u32 2147483647, %v4285_v6  ;;  %vm4308_vm13 = vweird.f32 %v4285_v6 }
 0xe32   : > { %v9599_v60 = vadd.f32 %v9584_v44, %v4221_v14 }
 0xe33   : > { %v4315_v41 = vor.u32 1.1754944e-38, %v4314_v22  ;;  %vm4313_vm1 = vcmp.eq.f32.partialorder %v4312_v18, 8.507059e+37 }
 0xe34   : > { %v4270_v48 = vadd.f32 %v4263_v8, %v9599_v60 }
 0xe36   : > { %v5637_v58 = vmul.f32 -1.442695, %v4270_v48 }
 0xe37   : > { %v6190_v16 = vpop.eup %6189 }
 0xe38   : > { %v4304_v19 = vmul.f32 %v6190_v16, %v4285_v6  ;;  %6191 = vpow2.f32 %v5637_v58  ;;  %vm4309_vm12 = vweird.f32 %v6190_v16 }
 0xe39   : > { %vm4310_vm15 = vmor %vm4308_vm13, %vm4309_vm12 }
 0xe3a   : > { %v4305_v36 = vsub.f32 1.0, %v4304_v19  ;;  %v4357_v42 = vpop.permute.xlu0 %4356 }
 0xe3c   : > { %v4306_v37 = vmul.f32 %v6190_v16, %v4305_v36 }
 0xe3e   : > { %v6192_v47 = vpop.eup %6191  ;;  %v4307_v63 = vadd.f32 %v6190_v16, %v4306_v37 }
 0xe3f   : > { %v4286_v57 = vadd.f32 1.0, %v6192_v47 }
 0xe40   : > { %v4311_v0 = vsel %vm4310_vm15, %v6190_v16, %v4307_v63 }
 0xe41   : > { %6193 = vrcp.f32 %v4286_v57  ;;  %v9602_v8 = vsel %vm4313_vm1, %v4315_v41, %v4311_v0  ;;  %v4329_v43 = vand.u32 2147483648, %v4286_v57  ;;  %v4327_v13 = vand.u32 2147483647, %v4286_v57 }
 0xe42   : > { %v4365_v9 = vmul.f32 %v4355_v45, %v9602_v8  ;;  %vm4323_vm3 = vweird.f32 %v4286_v57  ;;  %v4359_v37 = vpop.permute.xlu0 %4358 }
 0xe43   : > { %v4330_v27 = vor.u32 1.1754944e-38, %v4329_v43  ;;  %vm4328_vm4 = vcmp.eq.f32.partialorder %v4327_v13, 8.507059e+37  ;;  %v10535_v43 = vld [vmem:[#allocation25_spill] sm:$0xff] }
 0xe44   : > { %4374 = vrot.lane.b32.xlu1 %v4365_v9, %s6376_s13 }
 0xe47   : > { %v6194_v39 = vpop.eup %6193 }
 0xe48   : > { %v4319_v51 = vmul.f32 %v6194_v39, %v4286_v57  ;;  %vm4324_vm2 = vweird.f32 %v6194_v39 }
 0xe49   : > { %vm4325_vm0 = vmor %vm4323_vm3, %vm4324_vm2 }
 0xe4a   : > { %v4320_v30 = vsub.f32 1.0, %v4319_v51 }
 0xe4c   : > { %v4321_v4 = vmul.f32 %v6194_v39, %v4320_v30  ;;  %v4392_v30 = vsub.f32 1.0, %v9594_v2 }
 0xe4e   : > { %v4322_v11 = vadd.f32 %v6194_v39, %v4321_v4  ;;  %v4416_v4 = vmul.f32 %v9594_v2, %v10535_v43  ;;  %v10537_v2 = vld [vmem:[#allocation59_spill] sm:$0xff] }
 0xe50   : > { %v4326_v7 = vsel %vm4325_vm0, %v6194_v39, %v4322_v11 }
 0xe51   : > { %v4331_v17 = vsel %vm4328_vm4, %v4330_v27, %v4326_v7  ;;  %v10536_v7 = vld [vmem:[#allocation60_spill] sm:$0xff] }
 0xe52   : > { %v4366_v24 = vmul.f32 %v4357_v42, %v4331_v17  ;;  %v4418_v42 = vmul.f32 %v4331_v17, %v10536_v7 }
 0xe54   : > { %4376 = vrot.lane.b32.xlu0 %v4366_v24, %s6376_s13 }
 0xe6b   : > { %v4224_v56 = vpop.f32.mrf.mxu2 }
 0xe6c   : > { %v4225_v59 = vadd.f32 %v9584_v44, %v4224_v56 }
 0xe6e   : > { %v4271_v62 = vadd.f32 %v9576_v23, %v4225_v59 }
 0xe70   : > { %v5638_v61 = vmul.f32 -1.442695, %v4271_v62 }
 0xe72   : > { %6195 = vpow2.f32 %v5638_v61  ;;  %v4417_v61 = vmul.f32 %v9602_v8, %v10537_v2 }
 0xe78   : > { %v6196_v21 = vpop.eup %6195 }
 0xe79   : > { %v4287_v20 = vadd.f32 1.0, %v6196_v21 }
 0xe7b   : > { %6197 = vrcp.f32 %v4287_v20  ;;  %v4344_v14 = vand.u32 2147483648, %v4287_v20  ;;  %v4342_v16 = vand.u32 2147483647, %v4287_v20  ;;  %vm4338_vm6 = vweird.f32 %v4287_v20 }
 0xe7d   : > { %v4345_v23 = vor.u32 1.1754944e-38, %v4344_v14  ;;  %vm4343_vm8 = vcmp.eq.f32.partialorder %v4342_v16, 8.507059e+37 }
 0xe81   : > { %v6198_v52 = vpop.eup %6197 }
 0xe82   : > { %v4334_v40 = vmul.f32 %v6198_v52, %v4287_v20  ;;  %vm4339_vm5 = vweird.f32 %v6198_v52 }
 0xe83   : > { %vm4340_vm7 = vmor %vm4338_vm6, %vm4339_vm5 }
 0xe84   : > { %v4335_v6 = vsub.f32 1.0, %v4334_v40  ;;  %v10538_v40 = vld [vmem:[#allocation61_spill] sm:$0xff] }
 0xe86   : > { %v4336_v58 = vmul.f32 %v6198_v52, %v4335_v6 }
 0xe87   : > { %v4373_v48 = vpop.permute.xlu2 %4372 }
 0xe88   : > { %v4384_v19 = vadd.f32 %v4373_v48, %v9587_v38  ;;  %v4337_v36 = vadd.f32 %v6198_v52, %v4336_v58 }
 0xe8a   : > { %6199 = vtanh.f32 %v4384_v19  ;;  %v4341_v44 = vsel %vm4340_vm7, %v6198_v52, %v4337_v36 }
 0xe8b   : > { %v4346_v22 = vsel %vm4343_vm8, %v4345_v23, %v4341_v44 }
 0xe8c   : > { %v4367_v18 = vmul.f32 %v4359_v37, %v4346_v22  ;;  %v4395_v52 = vsub.f32 1.0, %v4346_v22  ;;  %v4419_v6 = vmul.f32 %v4346_v22, %v10538_v40 }
 0xe8e   : > { %4378 = vrot.lane.b32.xlu2 %v4367_v18, %s6376_s13 }
 0xe90   : > { %v6200_v47 = vpop.eup %6199 }
 0xe91   : > { %4400 = vrot.lane.b32.xlu1 %v6200_v47, %s10198_s15 }
 0xeb6   : > { %v4375_v63 = vpop.permute.xlu1 %4374 }
 0xeb7   : > { %v4385_v57 = vadd.f32 %v4375_v63, %v9591_v15 }
 0xeb9   : > { %6201 = vtanh.f32 %v4385_v57 }
 0xebf   : > { %v6202_v38 = vpop.eup %6201 }
 0xec0   : > { %4402 = vrot.lane.b32.xlu0 %v6202_v38, %s10198_s15 }
 0xec6   : > { %v4377_v0 = vpop.permute.xlu0 %4376 }
 0xec7   : > { %v4386_v41 = vadd.f32 %v4377_v0, %v9599_v60  ;;  %v4394_v60 = vsub.f32 1.0, %v4331_v17 }
 0xec9   : > { %6203 = vtanh.f32 %v4386_v41 }
 0xecf   : > { %v6204_v45 = vpop.eup %6203 }
 0xed0   : > { %4404 = vrot.lane.b32.xlu2 %v6204_v45, %s10198_s15 }
 0xee8   : > { %v4379_v9 = vpop.permute.xlu2 %4378 }
 0xee9   : > { %v4387_v39 = vadd.f32 %v4379_v9, %v4225_v59  ;;  %v4393_v59 = vsub.f32 1.0, %v9602_v8 }
 0xeeb   : > { %6205 = vtanh.f32 %v4387_v39 }
 0xef1   : > { %v6206_v51 = vpop.eup %6205 }
 0xef2   : > { %4406 = vrot.lane.b32.xlu1 %v6206_v51, %s10198_s15 }
 0xf03   : > { %v4401_v15 = vpop.permute.xlu1 %4400 }
 0xf04   : > { %v4412_v13 = vmul.f32 %v4401_v15, %v4392_v30 }
 0xf06   : > { %v9620_v11 = vadd.f32 %v4416_v4, %v4412_v13 }
 0xf08   : > { %4430 = vrot.lane.b32.xlu0 %v9620_v11, %s10198_s15 }
 0xf2a   : > { %v4405_v27 = vpop.permute.xlu2 %4404 }
 0xf2b   : > { %v4414_v24 = vmul.f32 %v4405_v27, %v4394_v60 }
 0xf2d   : > { %v9625_v56 = vadd.f32 %v4418_v42, %v4414_v24  ;;  %v5961_v42 = vld [vmem:[%s10317_s5] ss:$0 sm:$0xff]  ;;  %v5962_v24 = vld [vmem:[%s10317_s5 + $0x1] ss:$0 sm:$0xff] }
 0xf2f   : > { %4434 = vrot.lane.b32.xlu1 %v9625_v56, %s10198_s15 }
 0xf32   : > { %v4403_v62 = vpop.permute.xlu0 %4402 }
 0xf33   : > { %v4413_v21 = vmul.f32 %v4403_v62, %v4393_v59 }
 0xf35   : > { %v9632_v20 = vadd.f32 %v4417_v61, %v4413_v21 }
 0xf37   : > { %4432 = vrot.lane.b32.xlu2 %v9632_v20, %s10198_s15 }
 0xf64   : > { %v4407_v17 = vpop.permute.xlu1 %4406 }
 0xf65   : > { %v4415_v14 = vmul.f32 %v4407_v17, %v4395_v52 }
 0xf67   : > { %v9637_v48 = vadd.f32 %v4419_v6, %v4415_v14 }
 0xf69   : > { %4436 = vrot.lane.b32.xlu0 %v9637_v48, %s10198_s15 }
 0xf7a   : > { %v9641_v58 = vpop.permute.xlu0 %4430 }
 0xf7b   : > { %v4442_v8 = vsel %vm2454_vm14, %v9641_v58, 0.0 }
 0xf7c   : > { %4443 = vadd.xlane.f32.xlu2 %v4442_v8 }
 0xf91   : > { %v9645_v16 = vpop.permute.xlu2 %4432 }
 0xf92   : > { %v4445_v19 = vsel %vm2454_vm14, %v9645_v16, 0.0 }
 0xf93   : > { %4446 = vadd.xlane.f32.xlu1 %v4445_v19 }
 0xfa1   : > { %v9649_v36 = vpop.permute.xlu1 %4434 }
 0xfa2   : > { %v4448_v23 = vsel %vm2454_vm14, %v9649_v36, 0.0 }
 0xfa3   : > { %4449 = vadd.xlane.f32.xlu0 %v4448_v23 }
 0xfdb   : > { %v9653_v44 = vpop.permute.xlu0 %4436 }
 0xfdc   : > { %v4451_v37 = vsel %vm2454_vm14, %v9653_v44, 0.0 }
 0xfdd   : > { %4452 = vadd.xlane.f32.xlu2 %v4451_v37 }
 0xfef   : > { %v4444_v22 = vpop.xlane.xlu2 %4443 }
 0xff0   : > { %v4454_v18 = vmul.f32 %v4444_v22, %v10442_v32 }
 0xff2   : > { %v9659_v47 = vsub.f32 %v9620_v11, %v4454_v18 }
 0xff4   : > { %v4462_v63 = vmul.f32 %v9659_v47, %v9659_v47 }
 0xff6   : > { %4470 = vrot.lane.b32.xlu1 %v4462_v63, %s10198_s15 }
0x1006   : > { %v4447_v57 = vpop.xlane.xlu1 %4446 }
0x1007   : > { %v4455_v38 = vmul.f32 %v4447_v57, %v10442_v32 }
0x1009   : > { %v4459_v0 = vsub.f32 %v9632_v20, %v4455_v38 }
0x100b   : > { %v4463_v41 = vmul.f32 %v4459_v0, %v4459_v0 }
0x100d   : > { %4472 = vrot.lane.b32.xlu2 %v4463_v41, %s10198_s15 }
0x1016   : > { %v4450_v45 = vpop.xlane.xlu0 %4449 }
0x1017   : > { %v4456_v9 = vmul.f32 %v4450_v45, %v10442_v32 }
0x1019   : > { %v9669_v39 = vsub.f32 %v9625_v56, %v4456_v9 }
0x101b   : > { %v4464_v51 = vmul.f32 %v9669_v39, %v9669_v39 }
0x101d   : > { %4474 = vrot.lane.b32.xlu0 %v4464_v51, %s10198_s15 }
0x1050   : > { %v4453_v30 = vpop.xlane.xlu2 %4452 }
0x1051   : > { %v4457_v15 = vmul.f32 %v4453_v30, %v10442_v32 }
0x1053   : > { %v9676_v43 = vsub.f32 %v9637_v48, %v4457_v15 }
0x1055   : > { %v4465_v4 = vmul.f32 %v9676_v43, %v9676_v43 }
0x1057   : > { %4476 = vrot.lane.b32.xlu1 %v4465_v4, %s10198_s15 }
0x1067   : > { %v4473_v13 = vpop.permute.xlu2 %4472 }
0x1068   : > { %v4471_v60 = vpop.permute.xlu1 %4470  ;;  %v4485_v27 = vsel %vm2454_vm14, %v4473_v13, 0.0 }
0x1069   : > { %v4482_v7 = vsel %vm2454_vm14, %v4471_v60, 0.0  ;;  %4486 = vadd.xlane.f32.xlu2 %v4485_v27 }
0x106a   : > { %4483 = vadd.xlane.f32.xlu0 %v4482_v7 }
0x107e   : > { %4548 = vrot.lane.b32.xlu0 %v5961_v42, %s10539_s29 }
0x1081   : > { %4557 = vrot.lane.b32.xlu2 %v5962_v24, %s10539_s29 }
0x108f   : > { %v4475_v59 = vpop.permute.xlu0 %4474 }
0x1090   : > { %v4488_v62 = vsel %vm2454_vm14, %v4475_v59, 0.0 }
0x1091   : > { %4489 = vadd.xlane.f32.xlu1 %v4488_v62 }
0x10c9   : > { %v4477_v2 = vpop.permute.xlu1 %4476 }
0x10ca   : > { %v4491_v61 = vsel %vm2454_vm14, %v4477_v2, 0.0 }
0x10cb   : > { %4492 = vadd.xlane.f32.xlu1 %v4491_v61 }
0x10dc   : > { %v4487_v21 = vpop.xlane.xlu2 %4486 }
0x10dd   : > { %v4484_v52 = vpop.xlane.xlu0 %4483  ;;  %v4495_v17 = vmul.f32 %v4487_v21, %v10442_v32 }
0x10de   : > { %v4494_v40 = vmul.f32 %v4484_v52, %v10442_v32 }
0x10df   : > { %v4499_v6 = vadd.f32 1e-05, %v4495_v17 }
0x10e0   : > { %v4498_v14 = vadd.f32 1e-05, %v4494_v40 }
0x10e1   : > { %6207 = vrsqrt.f32 %v4499_v6  ;;  %vm4518_vm11 = vweird.f32 %v4499_v6 }
0x10e2   : > { %6209 = vrsqrt.f32 %v4498_v14  ;;  %vm4508_vm13 = vweird.f32 %v4498_v14 }
0x10e4   : > { %v4558_v60 = vpop.permute.xlu2 %4557 }
0x10e7   : > { %v6208_v8 = vpop.eup %6207 }
0x10e8   : > { %v6210_v19 = vpop.eup %6209  ;;  %v4513_v23 = vmul.f32 %v6208_v8, %v4499_v6  ;;  %vm4519_vm9 = vweird.f32 %v6208_v8 }
0x10e9   : > { %v4503_v37 = vmul.f32 %v6210_v19, %v4498_v14  ;;  %vm4509_vm10 = vweird.f32 %v6210_v19  ;;  %vm4520_vm12 = vmor %vm4518_vm11, %vm4519_vm9 }
0x10ea   : > { %v4514_v22 = vmul.f32 %v6208_v8, %v4513_v23  ;;  %vm4510_vm15 = vmor %vm4508_vm13, %vm4509_vm10 }
0x10eb   : > { %v4504_v18 = vmul.f32 %v6210_v19, %v4503_v37 }
0x10ec   : > { %v4515_v63 = vmul.f32 0.5, %v4514_v22 }
0x10ed   : > { %v4505_v57 = vmul.f32 0.5, %v4504_v18 }
0x10ee   : > { %v4516_v38 = vsub.f32 1.5, %v4515_v63 }
0x10ef   : > { %v4506_v41 = vsub.f32 1.5, %v4505_v57 }
0x10f0   : > { %v4517_v45 = vmul.f32 %v6208_v8, %v4516_v38  ;;  %v4549_v51 = vpop.permute.xlu0 %4548 }
0x10f1   : > { %v4507_v9 = vmul.f32 %v6210_v19, %v4506_v41 }
0x10f2   : > { %v4521_v30 = vsel %vm4520_vm12, %v6208_v8, %v4517_v45 }
0x10f3   : > { %v4511_v15 = vsel %vm4510_vm15, %v6210_v19, %v4507_v9  ;;  %v4543_v4 = vmul.f32 %v4521_v30, %v4459_v0 }
0x10f4   : > { %v4542_v13 = vmul.f32 %v4511_v15, %v9659_v47 }
0x10f5   : > { %v4552_v27 = vmul.f32 %v4549_v51, %v4543_v4  ;;  %v10556_v4 = vld [vmem:[#allocation115_spill] sm:$0xff] }
0x10f6   : > { %v4551_v7 = vmul.f32 %v4549_v51, %v4542_v13  ;;  %v10557_v13 = vld [vmem:[#allocation26_spill] sm:$0xff] }
0x10f7   : > { %v4561_v42 = vadd.f32 %v4558_v60, %v4552_v27  ;;  %v10559_v27 = vld [vmem:[#allocation105_spill] sm:$0xff] }
0x10f8   : > { %v4560_v24 = vadd.f32 %v4558_v60, %v4551_v7  ;;  %v10560_v7 = vld [vmem:[#allocation117_spill] sm:$0xff] }
0x10f9   : > { %4574 = vrot.lane.b32.xlu0 %v4561_v42, %s10198_s15  ;;  %v10561_v42 = vld [vmem:[#allocation106_spill] sm:$0xff] }
0x10fa   : > { %4572 = vrot.lane.b32.xlu1 %v4560_v24, %s10198_s15  ;;  %v10562_v24 = vld [vmem:[#allocation118_spill] sm:$0xff] }
0x1104   : > { %v4490_v59 = vpop.xlane.xlu1 %4489 }
0x1105   : > { %v4496_v62 = vmul.f32 %v4490_v59, %v10442_v32  ;;  %v10563_v59 = vld [vmem:[#allocation111_spill] sm:$0xff] }
0x1107   : > { %v4500_v2 = vadd.f32 1e-05, %v4496_v62  ;;  %v10564_v62 = vld [vmem:[#allocation119_spill] sm:$0xff] }
0x1109   : > { %6211 = vrsqrt.f32 %v4500_v2  ;;  %vm4528_vm2 = vweird.f32 %v4500_v2 }
0x110f   : > { %v6212_v61 = vpop.eup %6211 }
0x1110   : > { %v4523_v21 = vmul.f32 %v6212_v61, %v4500_v2  ;;  %vm4529_vm1 = vweird.f32 %v6212_v61  ;;  %v10565_v2 = vld [vmem:[#allocation120_spill] sm:$0xff] }
0x1111   : > { %vm4530_vm3 = vmor %vm4528_vm2, %vm4529_vm1 }
0x1112   : > { %v4524_v52 = vmul.f32 %v6212_v61, %v4523_v21  ;;  %v10567_v21 = vld [vmem:[#allocation122_spill] sm:$0xff] }
0x1114   : > { %v4525_v0 = vmul.f32 0.5, %v4524_v52  ;;  %v10568_v52 = vld [vmem:[#allocation123_spill] sm:$0xff] }
0x1116   : > { %v4526_v17 = vsub.f32 1.5, %v4525_v0 }
0x1118   : > { %v4527_v47 = vmul.f32 %v6212_v61, %v4526_v17 }
0x111a   : > { %v4531_v40 = vsel %vm4530_vm3, %v6212_v61, %v4527_v47  ;;  %v10566_v61 = vld [vmem:[#allocation121_spill] sm:$0xff] }
0x111b   : > { %v4544_v6 = vmul.f32 %v4531_v40, %v9669_v39 }
0x111d   : > { %v4553_v14 = vmul.f32 %v4549_v51, %v4544_v6 }
0x111f   : > { %v4562_v8 = vadd.f32 %v4558_v60, %v4553_v14 }
0x1121   : > { %4576 = vrot.lane.b32.xlu2 %v4562_v8, %s10198_s15 }
0x113e   : > { %v4493_v19 = vpop.xlane.xlu1 %4492 }
0x113f   : > { %v4497_v23 = vmul.f32 %v4493_v19, %v10442_v32 }
0x1141   : > { %v4501_v37 = vadd.f32 1e-05, %v4497_v23 }
0x1143   : > { %6213 = vrsqrt.f32 %v4501_v37  ;;  %vm4538_vm4 = vweird.f32 %v4501_v37 }
0x1149   : > { %v6214_v22 = vpop.eup %6213 }
0x114a   : > { %v4533_v18 = vmul.f32 %v6214_v22, %v4501_v37  ;;  %vm4539_vm0 = vweird.f32 %v6214_v22 }
0x114b   : > { %vm4540_vm5 = vmor %vm4538_vm4, %vm4539_vm0 }
0x114c   : > { %v4534_v63 = vmul.f32 %v6214_v22, %v4533_v18 }
0x114e   : > { %v4535_v57 = vmul.f32 0.5, %v4534_v63 }
0x1150   : > { %v4536_v38 = vsub.f32 1.5, %v4535_v57 }
0x1152   : > { %v4537_v41 = vmul.f32 %v6214_v22, %v4536_v38 }
0x1154   : > { %v4541_v45 = vsel %vm4540_vm5, %v6214_v22, %v4537_v41 }
0x1155   : > { %v4545_v39 = vmul.f32 %v4541_v45, %v9676_v43 }
0x1157   : > { %v4554_v9 = vmul.f32 %v4549_v51, %v4545_v39  ;;  %v10555_v51 = vld [vmem:[#allocation103_spill] sm:$0xff] }
0x1159   : > { %v4563_v30 = vadd.f32 %v4558_v60, %v4554_v9  ;;  %v10558_v60 = vld [vmem:[#allocation116_spill] sm:$0xff] }
0x115b   : > { %4578 = vrot.lane.b32.xlu0 %v4563_v30, %s10198_s15 }
0x116b   : > { %v4575_v32 = vpop.permute.xlu0 %4574 }
0x116c   : > { %v4573_v15 = vpop.permute.xlu1 %4572 }
0x116d   : > { %5639 = vmatmul.msk.f32.vlgmr.msra.gmra.mxu1 %vm2454_vm14, %v4573_v15 }
0x116e   : > { %4925 = vmatpush.msra.mxu1 %v10443_v25 }
0x1170   : > { %4926 = vmatpush.msra.mxu1 %v8776_v12  ;;  %v10540_v12 = vld [vmem:[#allocation107_spill] sm:$0xff] }
0x1172   : > { %4927 = vmatpush.msra.mxu1 %v10444_v29 }
0x1174   : > { %4928 = vmatpush.msra.mxu1 %v10445_v53 }
0x1175   : > { %5640 = vmatmul.msk.f32.gmra.mxu1 %vm2454_vm14, %v4575_v32 }
0x1176   : > { %4929 = vmatpush.msra.mxu1 %v10446_v55  ;;  %v10541_v55 = vld [vmem:[#allocation83_spill] sm:$0xff] }
0x1178   : > { %4930 = vmatpush.msra.mxu1 %v10447_v31  ;;  %v10542_v31 = vld [vmem:[#allocation87_spill] sm:$0xff] }
0x117a   : > { %4931 = vmatpush.msra.mxu1 %v10448_v3 }
0x117b   : > { %v4577_v43 = vpop.permute.xlu2 %4576 }
0x117c   : > { %4932 = vmatpush.msra.mxu1 %v10449_v34  ;;  %v10543_v34 = vld [vmem:[#allocation91_spill] sm:$0xff] }
0x117d   : > { %5641 = vmatmul.msk.f32.gmra.mxu1 %vm2454_vm14, %v4577_v43 }
0x117e   : > { %4933 = vmatpush.msra.mxu1 %v10450_v49  ;;  %v10544_v49 = vld [vmem:[#allocation108_spill] sm:$0xff] }
0x1180   : > { %4934 = vmatpush.msra.mxu1 %v10451_v33  ;;  %v10545_v33 = vld [vmem:[#allocation92_spill] sm:$0xff] }
0x1182   : > { %4935 = vmatpush.msra.mxu1 %v10452_v5  ;;  %v10546_v5 = vld [vmem:[#allocation109_spill] sm:$0xff] }
0x1184   : > { %4936 = vmatpush.msra.mxu1 %v10453_v28  ;;  %v10547_v28 = vld [vmem:[#allocation95_spill] sm:$0xff] }
0x1186   : > { %4937 = vmatpush.msra.mxu1 %v10454_v35  ;;  %v10548_v35 = vld [vmem:[#allocation110_spill] sm:$0xff] }
0x1188   : > { %4938 = vmatpush.msra.mxu1 %v10455_v50  ;;  %v10549_v50 = vld [vmem:[#allocation96_spill] sm:$0xff] }
0x118a   : > { %4939 = vmatpush.msra.mxu1 %v10456_v1  ;;  %v10550_v1 = vld [vmem:[#allocation112_spill] sm:$0xff] }
0x118c   : > { %4940 = vmatpush.msra.mxu1 %v10540_v12 }
0x11cd   : > { %v4579_v25 = vpop.permute.xlu0 %4578 }
0x11ce   : > { %5642 = vmatmul.msk.f32.gmra.mxu1 %vm2454_vm14, %v4579_v25 }
0x11ea   : > { %v4605_v29 = vpop.f32.mrf.mxu1 }
0x11eb   : > { %5659 = vmatmul.msk.f32.vlgmr.msrb.gmra.mxu2 %vm2454_vm14, %v4605_v29 }
0x11f2   : > { %v4608_v53 = vpop.f32.mrf.mxu1 }
0x11f3   : > { %5676 = vmatmul.msk.f32.vlgmr.msra.gmra.mxu3 %vm2454_vm14, %v4608_v53 }
0x11f4   : > { %4945 = vmatpush.msra.mxu3 %v10457_v46  ;;  %v10551_v46 = vld [vmem:[#allocation98_spill] sm:$0xff] }
0x11f6   : > { %4946 = vmatpush.msra.mxu3 %v10541_v55 }
0x11f8   : > { %4947 = vmatpush.msra.mxu3 %v10459_v10  ;;  %v10552_v10 = vld [vmem:[#allocation113_spill] sm:$0xff] }
0x11fa   : > { %4948 = vmatpush.msra.mxu3 %v10542_v31  ;;  %v4611_v3 = vpop.f32.mrf.mxu1 }
0x11fb   : > { %5693 = vmatmul.msk.f32.vlgmr.msrb.gmra.mxu1 %vm2454_vm14, %v4611_v3 }
0x11fc   : > { %4949 = vmatpush.msra.mxu3 %v10461_v54  ;;  %4965 = vmatpush.msrb.mxu1 %v8939_v26  ;;  %v10553_v26 = vld [vmem:[#allocation100_spill] sm:$0xff]  ;;  %v10554_v54 = vld [vmem:[#allocation114_spill] sm:$0xff] }
0x11fe   : > { %4950 = vmatpush.msra.mxu3 %v10543_v34  ;;  %4966 = vmatpush.msrb.mxu1 %v10544_v49 }
0x1200   : > { %4951 = vmatpush.msra.mxu3 %v10545_v33  ;;  %4967 = vmatpush.msrb.mxu1 %v10546_v5 }
0x1202   : > { %4952 = vmatpush.msra.mxu3 %v10547_v28  ;;  %4968 = vmatpush.msrb.mxu1 %v10548_v35 }
0x1204   : > { %4953 = vmatpush.msra.mxu3 %v10549_v50  ;;  %4969 = vmatpush.msrb.mxu1 %v10550_v1 }
0x1206   : > { %4954 = vmatpush.msra.mxu3 %v10551_v46  ;;  %4970 = vmatpush.msrb.mxu1 %v10552_v10 }
0x1208   : > { %4955 = vmatpush.msra.mxu3 %v10553_v26  ;;  %4971 = vmatpush.msrb.mxu1 %v10554_v54 }
0x120a   : > { %4956 = vmatpush.msra.mxu3 %v10555_v51  ;;  %4972 = vmatpush.msrb.mxu1 %v10556_v4 }
0x120c   : > { %4957 = vmatpush.msra.mxu3 %v10557_v13  ;;  %4973 = vmatpush.msrb.mxu1 %v10558_v60 }
0x120e   : > { %4958 = vmatpush.msra.mxu3 %v10559_v27  ;;  %4974 = vmatpush.msrb.mxu1 %v10560_v7 }
0x1210   : > { %4959 = vmatpush.msra.mxu3 %v10561_v42  ;;  %4975 = vmatpush.msrb.mxu1 %v10562_v24 }
0x1212   : > { %4960 = vmatpush.msra.mxu3 %v10563_v59  ;;  %4976 = vmatpush.msrb.mxu1 %v10564_v62 }
0x1214   : > { %4977 = vmatpush.msrb.mxu1 %v10565_v2 }
0x1216   : > { %4978 = vmatpush.msrb.mxu1 %v10566_v61 }
0x1218   : > { %4979 = vmatpush.msrb.mxu1 %v10567_v21 }
0x121a   : > { %4980 = vmatpush.msrb.mxu1 %v10568_v52 }
0x124b   : > { %v4614_v0 = vpop.f32.mrf.mxu1 }
0x124c   : > { %5710 = vmatmul.msk.f32.vlgmr.msra.gmra.mxu2 %vm2454_vm14, %v4614_v0 }
0x126e   : > { %v4637_v17 = vpop.f32.mrf.mxu2 }
0x126f   : > { %v4709_v47 = vmul.f32 0.17677669, %v4637_v17 }
0x1271   : > { %v4713_v40 = vrot.slane %v4709_v47, 4 }
0x1273   : > { %v4714_v6 = vmax.f32 %v4709_v47, %v4713_v40 }
0x1275   : > { %v4715_v14 = vrot.slane %v4714_v6, 2 }
0x1276   : > { %v4660_v8 = vpop.f32.mrf.mxu3 }
0x1277   : > { %v4716_v19 = vmax.f32 %v4714_v6, %v4715_v14  ;;  %v4710_v23 = vmul.f32 0.17677669, %v4660_v8 }
0x1278   : > { %v4683_v37 = vpop.f32.mrf.mxu1 }
0x1279   : > { %v4717_v22 = vrot.slane %v4716_v19, 1  ;;  %v4719_v18 = vrot.slane %v4710_v23, 4  ;;  %v4711_v63 = vmul.f32 0.17677669, %v4683_v37 }
0x127b   : > { %v4718_v57 = vmax.f32 %v4716_v19, %v4717_v22  ;;  %v4720_v38 = vmax.f32 %v4710_v23, %v4719_v18  ;;  %v4725_v41 = vrot.slane %v4711_v63, 4 }
0x127d   : > { %v4737_v45 = vsub.f32 %v4709_v47, %v4718_v57  ;;  %v4721_v39 = vrot.slane %v4720_v38, 2  ;;  %v4726_v9 = vmax.f32 %v4711_v63, %v4725_v41 }
0x127f   : > { %v4741_v30 = vmul.f32 1.442695, %v4737_v45  ;;  %v4722_v15 = vmax.f32 %v4720_v38, %v4721_v39  ;;  %v4727_v32 = vrot.slane %v4726_v9, 2 }
0x1281   : > { %6215 = vpow2.f32 %v4741_v30  ;;  %v4723_v43 = vrot.slane %v4722_v15, 1  ;;  %v4728_v12 = vmax.f32 %v4726_v9, %v4727_v32 }
0x1283   : > { %v4724_v25 = vmax.f32 %v4722_v15, %v4723_v43  ;;  %v4729_v29 = vrot.slane %v4728_v12, 1 }
0x1285   : > { %v4738_v53 = vsub.f32 %v4710_v23, %v4724_v25  ;;  %v4730_v55 = vmax.f32 %v4728_v12, %v4729_v29 }
0x1287   : > { %v6216_v31 = vpop.eup %6215  ;;  %v4743_v3 = vmul.f32 1.442695, %v4738_v53  ;;  %v4739_v34 = vsub.f32 %v4711_v63, %v4730_v55 }
0x1288   : > { %v4749_v49 = vrot.slane %v6216_v31, 4 }
0x1289   : > { %6217 = vpow2.f32 %v4743_v3  ;;  %v4745_v33 = vmul.f32 1.442695, %v4739_v34 }
0x128a   : > { %v4750_v5 = vadd.f32 %v6216_v31, %v4749_v49 }
0x128b   : > { %6219 = vpow2.f32 %v4745_v33 }
0x128c   : > { %v4751_v28 = vrot.slane %v4750_v5, 2 }
0x128e   : > { %v4752_v35 = vadd.f32 %v4751_v28, %v4750_v5 }
0x128f   : > { %v9760_v50 = vpop.eup %6217 }
0x1290   : > { %v4755_v1 = vrot.slane %v9760_v50, 4  ;;  %v4753_v46 = vrot.slane %v4752_v35, 1 }
0x1291   : > { %v9763_v10 = vpop.eup %6219 }
0x1292   : > { %v4756_v26 = vadd.f32 %v9760_v50, %v4755_v1  ;;  %v4761_v54 = vrot.slane %v9763_v10, 4  ;;  %v4754_v51 = vadd.f32 %v4753_v46, %v4752_v35 }
0x1294   : > { %v4757_v4 = vrot.slane %v4756_v26, 2  ;;  %v4762_v13 = vadd.f32 %v9763_v10, %v4761_v54  ;;  %6221 = vrcp.f32 %v4754_v51  ;;  %v4784_v52 = vand.u32 2147483648, %v4754_v51 }
0x1295   : > { %v4782_v17 = vand.u32 2147483647, %v4754_v51  ;;  %vm4778_vm7 = vweird.f32 %v4754_v51 }
0x1296   : > { %v4763_v60 = vrot.slane %v4762_v13, 2  ;;  %v4758_v27 = vadd.f32 %v4757_v4, %v4756_v26  ;;  %v4785_v6 = vor.u32 1.1754944e-38, %v4784_v52 }
0x1297   : > { %vm4783_vm9 = vcmp.eq.f32.partialorder %v4782_v17, 8.507059e+37 }
0x1298   : > { %v4759_v7 = vrot.slane %v4758_v27, 1  ;;  %v4764_v42 = vadd.f32 %v4763_v60, %v4762_v13 }
0x129a   : > { %v6222_v24 = vpop.eup %6221  ;;  %v4760_v59 = vadd.f32 %v4759_v7, %v4758_v27  ;;  %v4765_v62 = vrot.slane %v4764_v42, 1 }
0x129b   : > { %v4774_v2 = vmul.f32 %v6222_v24, %v4754_v51  ;;  %vm4779_vm6 = vweird.f32 %v6222_v24 }
0x129c   : > { %6223 = vrcp.f32 %v4760_v59  ;;  %v4766_v21 = vadd.f32 %v4765_v62, %v4764_v42  ;;  %vm4780_vm8 = vmor %vm4778_vm7, %vm4779_vm6  ;;  %v4798_v18 = vand.u32 2147483648, %v4760_v59  ;;  %v4796_v41 = vand.u32 2147483647, %v4760_v59 }
0x129d   : > { %v4775_v61 = vsub.f32 1.0, %v4774_v2  ;;  %vm4792_vm11 = vweird.f32 %v4760_v59 }
0x129e   : > { %6225 = vrcp.f32 %v4766_v21  ;;  %v4812_v9 = vand.u32 2147483648, %v4766_v21  ;;  %v4799_v30 = vor.u32 1.1754944e-38, %v4798_v18  ;;  %v4810_v32 = vand.u32 2147483647, %v4766_v21 }
0x129f   : > { %v4776_v0 = vmul.f32 %v6222_v24, %v4775_v61  ;;  %vm4797_vm15 = vcmp.eq.f32.partialorder %v4796_v41, 8.507059e+37  ;;  %vm4806_vm1 = vweird.f32 %v4766_v21 }
0x12a0   : > { %v4813_v53 = vor.u32 1.1754944e-38, %v4812_v9  ;;  %vm4811_vm3 = vcmp.eq.f32.partialorder %v4810_v32, 8.507059e+37 }
0x12a1   : > { %v4777_v47 = vadd.f32 %v6222_v24, %v4776_v0 }
0x12a2   : > { %v6224_v40 = vpop.eup %6223 }
0x12a3   : > { %v4781_v14 = vsel %vm4780_vm8, %v6222_v24, %v4777_v47  ;;  %v4788_v8 = vmul.f32 %v6224_v40, %v4760_v59  ;;  %vm4793_vm10 = vweird.f32 %v6224_v40 }
0x12a4   : > { %v4786_v19 = vsel %vm4783_vm9, %v4785_v6, %v4781_v14  ;;  %v6226_v23 = vpop.eup %6225  ;;  %vm4794_vm12 = vmor %vm4792_vm11, %vm4793_vm10 }
0x12a5   : > { %v4829_v37 = vmul.f32 %v6216_v31, %v4786_v19  ;;  %v4789_v22 = vsub.f32 1.0, %v4788_v8  ;;  %v4802_v63 = vmul.f32 %v6226_v23, %v4766_v21  ;;  %vm4807_vm13 = vweird.f32 %v6226_v23 }
0x12a6   : > { %vm4808_vm2 = vmor %vm4806_vm1, %vm4807_vm13 }
0x12a7   : > { %v9772_v57 = vadd.f32 1e-08, %v4829_v37  ;;  %v4790_v38 = vmul.f32 %v6224_v40, %v4789_v22  ;;  %v4803_v45 = vsub.f32 1.0, %v4802_v63 }
0x12a9   : > { %4837 = vadd.xlane.f32.xlu2 %v9772_v57  ;;  %5247 = vst [vmem:[%s9777_s25] sm:$0xff] %v9772_v57  ;;  %v4791_v39 = vadd.f32 %v6224_v40, %v4790_v38  ;;  %v4804_v15 = vmul.f32 %v6226_v23, %v4803_v45 }
0x12ab   : > { %v4795_v43 = vsel %vm4794_vm12, %v6224_v40, %v4791_v39  ;;  %v4805_v25 = vadd.f32 %v6226_v23, %v4804_v15 }
0x12ac   : > { %v4800_v12 = vsel %vm4797_vm15, %v4799_v30, %v4795_v43 }
0x12ad   : > { %v4830_v29 = vmul.f32 %v9760_v50, %v4800_v12  ;;  %v4809_v55 = vsel %vm4808_vm2, %v6226_v23, %v4805_v25  ;;  %v5033_v25 = vld [vmem:[%s9971_s7 + $0x18] sm:$0xff] }
0x12ae   : > { %v4814_v3 = vsel %vm4811_vm3, %v4813_v53, %v4809_v55 }
0x12af   : > { %v9782_v31 = vadd.f32 1e-08, %v4830_v29  ;;  %v4831_v34 = vmul.f32 %v9763_v10, %v4814_v3 }
0x12b1   : > { %4839 = vadd.xlane.f32.xlu0 %v9782_v31  ;;  %5248 = vst [vmem:[%s9777_s25 + $0x8] sm:$0xff] %v9782_v31  ;;  %v9788_v49 = vadd.f32 1e-08, %v4831_v34  ;;  %v5032_v34 = vld [vmem:[%s9971_s7 + $0x10] sm:$0xff] }
0x12b3   : > { %4841 = vadd.xlane.f32.xlu1 %v9788_v49  ;;  %5249 = vst [vmem:[%s9777_s25 + $0x10] sm:$0xff] %v9788_v49 }
0x12cf   : > { %v4706_v33 = vpop.f32.mrf.mxu2 }
0x12d0   : > { %v4712_v5 = vmul.f32 0.17677669, %v4706_v33 }
0x12d2   : > { %v4731_v28 = vrot.slane %v4712_v5, 4 }
0x12d4   : > { %v4732_v35 = vmax.f32 %v4712_v5, %v4731_v28 }
0x12d6   : > { %v4733_v50 = vrot.slane %v4732_v35, 2 }
0x12d8   : > { %v4734_v1 = vmax.f32 %v4732_v35, %v4733_v50 }
0x12da   : > { %v4735_v46 = vrot.slane %v4734_v1, 1 }
0x12dc   : > { %v4736_v26 = vmax.f32 %v4734_v1, %v4735_v46 }
0x12de   : > { %v4740_v54 = vsub.f32 %v4712_v5, %v4736_v26  ;;  %v5030_v26 = vld [vmem:[%s9971_s7] sm:$0xff] }
0x12e0   : > { %v4747_v10 = vmul.f32 1.442695, %v4740_v54 }
0x12e2   : > { %6227 = vpow2.f32 %v4747_v10 }
0x12e8   : > { %v6228_v51 = vpop.eup %6227 }
0x12e9   : > { %v4767_v4 = vrot.slane %v6228_v51, 4 }
0x12eb   : > { %v4768_v13 = vadd.f32 %v6228_v51, %v4767_v4 }
0x12ed   : > { %v4769_v60 = vrot.slane %v4768_v13, 2 }
0x12ef   : > { %v4770_v27 = vadd.f32 %v4769_v60, %v4768_v13 }
0x12f1   : > { %v4771_v7 = vrot.slane %v4770_v27, 1 }
0x12f3   : > { %v4772_v42 = vadd.f32 %v4771_v7, %v4770_v27 }
0x12f5   : > { %6229 = vrcp.f32 %v4772_v42  ;;  %v4826_v2 = vand.u32 2147483648, %v4772_v42  ;;  %v4824_v21 = vand.u32 2147483647, %v4772_v42  ;;  %vm4820_vm4 = vweird.f32 %v4772_v42 }
0x12f7   : > { %v4827_v0 = vor.u32 1.1754944e-38, %v4826_v2  ;;  %vm4825_vm6 = vcmp.eq.f32.partialorder %v4824_v21, 8.507059e+37 }
0x12fb   : > { %v6230_v24 = vpop.eup %6229 }
0x12fc   : > { %v4816_v59 = vmul.f32 %v6230_v24, %v4772_v42  ;;  %vm4821_vm0 = vweird.f32 %v6230_v24 }
0x12fd   : > { %vm4822_vm5 = vmor %vm4820_vm4, %vm4821_vm0 }
0x12fe   : > { %v4817_v62 = vsub.f32 1.0, %v4816_v59 }
0x1300   : > { %v4818_v61 = vmul.f32 %v6230_v24, %v4817_v62 }
0x1302   : > { %v4819_v52 = vadd.f32 %v6230_v24, %v4818_v61 }
0x1304   : > { %v4823_v17 = vsel %vm4822_vm5, %v6230_v24, %v4819_v52 }
0x1305   : > { %v4828_v47 = vsel %vm4825_vm6, %v4827_v0, %v4823_v17  ;;  %v4985_v0 = vld [vmem:[%s9970_s6] sm:$0xff] }
0x1306   : > { %v4832_v40 = vmul.f32 %v6228_v51, %v4828_v47 }
0x1308   : > { %v9793_v6 = vadd.f32 1e-08, %v4832_v40 }
0x130a   : > { %4843 = vadd.xlane.f32.xlu2 %v9793_v6  ;;  %5250 = vst [vmem:[%s9777_s25 + $0x18] sm:$0xff] %v9793_v6 }
0x131c   : > { %v4838_v14 = vpop.xlane.xlu2 %4837 }
0x131d   : > { %6231 = vrcp.f32 %v4838_v14  ;;  %v4856_v22 = vand.u32 2147483648, %v4838_v14  ;;  %v4854_v38 = vand.u32 2147483647, %v4838_v14  ;;  %vm4850_vm8 = vweird.f32 %v4838_v14 }
0x131f   : > { %v4857_v39 = vor.u32 1.1754944e-38, %v4856_v22  ;;  %vm4855_vm10 = vcmp.eq.f32.partialorder %v4854_v38, 8.507059e+37 }
0x1323   : > { %v6232_v8 = vpop.eup %6231 }
0x1324   : > { %v4846_v19 = vmul.f32 %v6232_v8, %v4838_v14  ;;  %v4840_v23 = vpop.xlane.xlu0 %4839  ;;  %vm4851_vm7 = vweird.f32 %v6232_v8 }
0x1325   : > { %6233 = vrcp.f32 %v4840_v23  ;;  %vm4852_vm9 = vmor %vm4850_vm8, %vm4851_vm7  ;;  %v4870_v29 = vand.u32 2147483648, %v4840_v23  ;;  %v4868_v3 = vand.u32 2147483647, %v4840_v23  ;;  %vm4864_vm12 = vweird.f32 %v4840_v23 }
0x1326   : > { %v4847_v37 = vsub.f32 1.0, %v4846_v19  ;;  %v4842_v18 = vpop.xlane.xlu1 %4841 }
0x1327   : > { %6235 = vrcp.f32 %v4842_v18  ;;  %v4884_v28 = vand.u32 2147483648, %v4842_v18  ;;  %v4871_v35 = vor.u32 1.1754944e-38, %v4870_v29  ;;  %v4882_v1 = vand.u32 2147483647, %v4842_v18 }
0x1328   : > { %v4848_v63 = vmul.f32 %v6232_v8, %v4847_v37  ;;  %vm4869_vm1 = vcmp.eq.f32.partialorder %v4868_v3, 8.507059e+37  ;;  %vm4878_vm2 = vweird.f32 %v4842_v18 }
0x1329   : > { %v4885_v51 = vor.u32 1.1754944e-38, %v4884_v28  ;;  %vm4883_vm0 = vcmp.eq.f32.partialorder %v4882_v1, 8.507059e+37 }
0x132a   : > { %v4849_v41 = vadd.f32 %v6232_v8, %v4848_v63 }
0x132b   : > { %v6234_v45 = vpop.eup %6233 }
0x132c   : > { %v4860_v9 = vmul.f32 %v6234_v45, %v4840_v23  ;;  %v4853_v30 = vsel %vm4852_vm9, %v6232_v8, %v4849_v41  ;;  %vm4865_vm11 = vweird.f32 %v6234_v45 }
0x132d   : > { %v4858_v15 = vsel %vm4855_vm10, %v4857_v39, %v4853_v30  ;;  %v6236_v32 = vpop.eup %6235  ;;  %vm4866_vm13 = vmor %vm4864_vm12, %vm4865_vm11 }
0x132e   : > { %v4861_v43 = vsub.f32 1.0, %v4860_v9  ;;  %v4901_v12 = vmul.f32 %v4858_v15, %v9772_v57  ;;  %v4874_v53 = vmul.f32 %v6236_v32, %v4842_v18  ;;  %v5031_v57 = vld [vmem:[%s9971_s7 + $0x8] sm:$0xff]  ;;  %vm4879_vm15 = vweird.f32 %v6236_v32 }
0x132f   : > { %vm4880_vm3 = vmor %vm4878_vm2, %vm4879_vm15 }
0x1330   : > { %v4862_v55 = vmul.f32 %v6234_v45, %v4861_v43  ;;  %4921 = vmatmul.f32.vlgmr.msrb.gmra.mxu3 %v4901_v12  ;;  %v4875_v33 = vsub.f32 1.0, %v4874_v53 }
0x1331   : > { %5054 = vmatpush.msrb.mxu3 %v5033_v25 }
0x1332   : > { %v4863_v5 = vadd.f32 %v6234_v45, %v4862_v55  ;;  %v4876_v50 = vmul.f32 %v6236_v32, %v4875_v33 }
0x1333   : > { %5055 = vmatpush.msrb.mxu3 %v5032_v34 }
0x1334   : > { %v4867_v46 = vsel %vm4866_vm13, %v6234_v45, %v4863_v5  ;;  %v4877_v54 = vadd.f32 %v6236_v32, %v4876_v50  ;;  %v9851_v45 = vld [vmem:[%s9972_s8] ss:$0 sm:$0xff] }
0x1335   : > { %v4872_v10 = vsel %vm4869_vm1, %v4871_v35, %v4867_v46  ;;  %5056 = vmatpush.msrb.mxu3 %v5031_v57 }
0x1336   : > { %v4902_v4 = vmul.f32 %v4872_v10, %v9782_v31  ;;  %v4881_v13 = vsel %vm4880_vm3, %v6236_v32, %v4877_v54  ;;  %v4988_v31 = vld [vmem:[%s9970_s6 + $0x18] sm:$0xff] }
0x1337   : > { %5057 = vmatpush.msrb.mxu3 %v5030_v26  ;;  %v4886_v60 = vsel %vm4883_vm0, %v4885_v51, %v4881_v13  ;;  %5013 = vmatpush.msrb.mxu2 %v4988_v31 }
0x1338   : > { %4941 = vmatmul.f32.vlgmr.msra.gmra.mxu1 %v4902_v4  ;;  %v4903_v27 = vmul.f32 %v4886_v60, %v9788_v49  ;;  %v4987_v49 = vld [vmem:[%s9970_s6 + $0x10] sm:$0xff] }
0x1339   : > { %5014 = vmatpush.msrb.mxu2 %v4987_v49 }
0x133a   : > { %4961 = vmatmul.f32.vlgmr.msra.gmra.mxu3 %v4903_v27 }
0x1342   : > { %5715 = vmatmul.msk.f32.vlgmr.msrb.gmra.mxu3 %vm2454_vm14, %v9641_v58  ;;  %v4986_v58 = vld [vmem:[%s9970_s6 + $0x8] sm:$0xff] }
0x1343   : > { %5015 = vmatpush.msrb.mxu2 %v4986_v58 }
0x1345   : > { %5016 = vmatpush.msrb.mxu2 %v4985_v0 }
0x134a   : > { %5716 = vmatmul.msk.f32.gmra.mxu3 %vm2454_vm14, %v9645_v16 }
0x1352   : > { %5717 = vmatmul.msk.f32.gmra.mxu3 %vm2454_vm14, %v9649_v36 }
0x135a   : > { %5718 = vmatmul.msk.f32.gmra.mxu3 %vm2454_vm14, %v9653_v44 }
0x137d   : > { %v4844_v16 = vpop.xlane.xlu2 %4843 }
0x137e   : > { %6237 = vrcp.f32 %v4844_v16  ;;  %v4898_v42 = vand.u32 2147483648, %v4844_v16  ;;  %v4896_v59 = vand.u32 2147483647, %v4844_v16  ;;  %vm4892_vm5 = vweird.f32 %v4844_v16 }
0x1380   : > { %v4899_v2 = vor.u32 1.1754944e-38, %v4898_v42  ;;  %vm4897_vm7 = vcmp.eq.f32.partialorder %v4896_v59, 8.507059e+37 }
0x1384   : > { %v6238_v36 = vpop.eup %6237 }
0x1385   : > { %v4888_v7 = vmul.f32 %v6238_v36, %v4844_v16  ;;  %vm4893_vm4 = vweird.f32 %v6238_v36 }
0x1386   : > { %vm4894_vm6 = vmor %vm4892_vm5, %vm4893_vm4 }
0x1387   : > { %v4889_v44 = vsub.f32 1.0, %v4888_v7 }
0x1389   : > { %v4890_v24 = vmul.f32 %v6238_v36, %v4889_v44 }
0x138b   : > { %v4891_v62 = vadd.f32 %v6238_v36, %v4890_v24 }
0x138d   : > { %v4895_v61 = vsel %vm4894_vm6, %v6238_v36, %v4891_v62 }
0x138e   : > { %v4900_v21 = vsel %vm4897_vm7, %v4899_v2, %v4895_v61 }
0x138f   : > { %v4904_v52 = vmul.f32 %v4900_v21, %v9793_v6  ;;  %v6275_v6 = vld [vmem:[%s9973_s9] ss:$0 sm:$0xff] }
0x1391   : > { %4981 = vmatmul.f32.vlgmr.msrb.gmra.mxu1 %v4904_v52 }
0x13b3   : > { %v4922_v17 = vpop.f32.mrf.mxu3 }
0x13b4   : > { %5711 = vmatmul.msk.f32.vlgmr.msrb.gmra.mxu2 %vm2454_vm14, %v4922_v17 }
0x13b5   : > { %v4942_v47 = vpop.f32.mrf.mxu1 }
0x13bc   : > { %5712 = vmatmul.msk.f32.gmra.mxu2 %vm2454_vm14, %v4942_v47 }
0x13bd   : > { %v4962_v40 = vpop.f32.mrf.mxu3 }
0x13c4   : > { %5713 = vmatmul.msk.f32.gmra.mxu2 %vm2454_vm14, %v4962_v40 }
0x13c5   : > { %v5059_v14 = vpop.f32.mrf.mxu3 }
0x13c6   : > { %v5060_v8 = vadd.f32 %v6275_v6, %v5059_v14 }
0x13c8   : > { %5155 = vrot.lane.b32.xlu0 %v5060_v8, %s6376_s13 }
0x13cd   : > { %v5062_v19 = vpop.f32.mrf.mxu3 }
0x13ce   : > { %v5063_v23 = vadd.f32 %v6275_v6, %v5062_v19 }
0x13d0   : > { %5157 = vrot.lane.b32.xlu1 %v5063_v23, %s6376_s13 }
0x13d5   : > { %v5065_v37 = vpop.f32.mrf.mxu3 }
0x13d6   : > { %v5066_v22 = vadd.f32 %v6275_v6, %v5065_v37 }
0x13d8   : > { %5159 = vrot.lane.b32.xlu2 %v5066_v22, %s6376_s13 }
0x13dd   : > { %v5068_v18 = vpop.f32.mrf.mxu3 }
0x13de   : > { %v9843_v63 = vadd.f32 %v6275_v6, %v5068_v18 }
0x13e0   : > { %5161 = vrot.lane.b32.xlu0 %v9843_v63, %s6376_s13 }
0x140e   : > { %v4982_v38 = vpop.f32.mrf.mxu1 }
0x140f   : > { %5714 = vmatmul.msk.f32.gmra.mxu2 %vm2454_vm14, %v4982_v38 }
0x1437   : > { %v5018_v41 = vpop.f32.mrf.mxu2 }
0x1438   : > { %v9854_v39 = vadd.f32 %v9851_v45, %v5018_v41 }
0x143a   : > { %v5071_v9 = vadd.f32 %v5060_v8, %v9854_v39  ;;  %v5156_v27 = vpop.permute.xlu0 %5155  ;;  %v5160_v8 = vpop.permute.xlu2 %5159 }
0x143c   : > { %v5719_v30 = vmul.f32 -1.442695, %v5071_v9 }
0x143e   : > { %6239 = vpow2.f32 %v5719_v30 }
0x143f   : > { %v5021_v15 = vpop.f32.mrf.mxu2 }
0x1440   : > { %v9858_v32 = vadd.f32 %v9851_v45, %v5021_v15 }
0x1442   : > { %v5072_v43 = vadd.f32 %v5063_v23, %v9858_v32  ;;  %v5158_v2 = vpop.permute.xlu1 %5157 }
0x1444   : > { %v6240_v12 = vpop.eup %6239  ;;  %v5720_v25 = vmul.f32 -1.442695, %v5072_v43 }
0x1445   : > { %v5087_v29 = vadd.f32 1.0, %v6240_v12 }
0x1446   : > { %6241 = vpow2.f32 %v5720_v25 }
0x1447   : > { %6243 = vrcp.f32 %v5087_v29  ;;  %v5024_v53 = vpop.f32.mrf.mxu2  ;;  %v5102_v50 = vand.u32 2147483648, %v5087_v29  ;;  %v5100_v46 = vand.u32 2147483647, %v5087_v29  ;;  %vm5096_vm9 = vweird.f32 %v5087_v29 }
0x1448   : > { %v9862_v55 = vadd.f32 %v9851_v45, %v5024_v53 }
0x1449   : > { %v5103_v51 = vor.u32 1.1754944e-38, %v5102_v50  ;;  %vm5101_vm11 = vcmp.eq.f32.partialorder %v5100_v46, 8.507059e+37 }
0x144a   : > { %v5073_v3 = vadd.f32 %v5066_v22, %v9862_v55 }
0x144c   : > { %v6242_v34 = vpop.eup %6241  ;;  %v5721_v33 = vmul.f32 -1.442695, %v5073_v3 }
0x144d   : > { %v6244_v5 = vpop.eup %6243  ;;  %v5088_v28 = vadd.f32 1.0, %v6242_v34 }
0x144e   : > { %v5092_v57 = vmul.f32 %v6244_v5, %v5087_v29  ;;  %6245 = vpow2.f32 %v5721_v33  ;;  %vm5097_vm8 = vweird.f32 %v6244_v5 }
0x144f   : > { %6247 = vrcp.f32 %v5088_v28  ;;  %vm5098_vm10 = vmor %vm5096_vm9, %vm5097_vm8  ;;  %v5117_v16 = vand.u32 2147483648, %v5088_v28  ;;  %v5115_v7 = vand.u32 2147483647, %v5088_v28  ;;  %vm5111_vm13 = vweird.f32 %v5088_v28 }
0x1450   : > { %v5093_v35 = vsub.f32 1.0, %v5092_v57 }
0x1451   : > { %v5118_v24 = vor.u32 1.1754944e-38, %v5117_v16  ;;  %vm5116_vm1 = vcmp.eq.f32.partialorder %v5115_v7, 8.507059e+37 }
0x1452   : > { %v5094_v1 = vmul.f32 %v6244_v5, %v5093_v35 }
0x1454   : > { %v6246_v26 = vpop.eup %6245  ;;  %v5095_v54 = vadd.f32 %v6244_v5, %v5094_v1 }
0x1455   : > { %v6248_v10 = vpop.eup %6247  ;;  %v5089_v4 = vadd.f32 1.0, %v6246_v26 }
0x1456   : > { %v5099_v13 = vsel %vm5098_vm10, %v6244_v5, %v5095_v54  ;;  %v5107_v60 = vmul.f32 %v6248_v10, %v5088_v28  ;;  %vm5112_vm12 = vweird.f32 %v6248_v10 }
0x1457   : > { %v9865_v31 = vsel %vm5101_vm11, %v5103_v51, %v5099_v13  ;;  %6249 = vrcp.f32 %v5089_v4  ;;  %vm5113_vm15 = vmor %vm5111_vm13, %vm5112_vm12  ;;  %v5132_v0 = vand.u32 2147483648, %v5089_v4  ;;  %v5130_v47 = vand.u32 2147483647, %v5089_v4 }
0x1458   : > { %v5167_v49 = vmul.f32 %v5156_v27, %v9865_v31  ;;  %v5108_v58 = vsub.f32 1.0, %v5107_v60  ;;  %vm5126_vm3 = vweird.f32 %v5089_v4  ;;  %v5195_v7 = vsub.f32 1.0, %v9865_v31 }
0x1459   : > { %v5133_v14 = vor.u32 1.1754944e-38, %v5132_v0  ;;  %vm5131_vm4 = vcmp.eq.f32.partialorder %v5130_v47, 8.507059e+37 }
0x145a   : > { %v5109_v36 = vmul.f32 %v6248_v10, %v5108_v58  ;;  %5175 = vrot.lane.b32.xlu0 %v5167_v49, %s6376_s13 }
0x145c   : > { %v5110_v44 = vadd.f32 %v6248_v10, %v5109_v36 }
0x145d   : > { %v6250_v42 = vpop.eup %6249 }
0x145e   : > { %v5114_v59 = vsel %vm5113_vm15, %v6248_v10, %v5110_v44  ;;  %v5122_v62 = vmul.f32 %v6250_v42, %v5089_v4  ;;  %vm5127_vm2 = vweird.f32 %v6250_v42 }
0x145f   : > { %v9869_v61 = vsel %vm5116_vm1, %v5118_v24, %v5114_v59  ;;  %vm5128_vm0 = vmor %vm5126_vm3, %vm5127_vm2 }
0x1460   : > { %v5168_v21 = vmul.f32 %v5158_v2, %v9869_v61  ;;  %v5123_v52 = vsub.f32 1.0, %v5122_v62  ;;  %v5220_v13 = vmul.f32 %v9869_v61, %v9632_v20  ;;  %v5219_v20 = vmul.f32 %v9865_v31, %v9620_v11 }
0x1462   : > { %5177 = vrot.lane.b32.xlu1 %v5168_v21, %s6376_s13  ;;  %v5124_v17 = vmul.f32 %v6250_v42, %v5123_v52 }
0x1464   : > { %v5125_v40 = vadd.f32 %v6250_v42, %v5124_v17 }
0x1466   : > { %v5129_v6 = vsel %vm5128_vm0, %v6250_v42, %v5125_v40 }
0x1467   : > { %v5134_v19 = vsel %vm5131_vm4, %v5133_v14, %v5129_v6 }
0x1468   : > { %v5169_v23 = vmul.f32 %v5160_v8, %v5134_v19  ;;  %v5197_v27 = vsub.f32 1.0, %v5134_v19  ;;  %v5221_v58 = vmul.f32 %v5134_v19, %v9625_v56 }
0x146a   : > { %5179 = vrot.lane.b32.xlu2 %v5169_v23, %s6376_s13 }
0x1492   : > { %v5027_v37 = vpop.f32.mrf.mxu2 }
0x1493   : > { %v5028_v22 = vadd.f32 %v9851_v45, %v5027_v37  ;;  %v5162_v45 = vpop.permute.xlu0 %5161 }
0x1495   : > { %v5074_v18 = vadd.f32 %v9843_v63, %v5028_v22 }
0x1497   : > { %v5722_v38 = vmul.f32 -1.442695, %v5074_v18 }
0x1499   : > { %6251 = vpow2.f32 %v5722_v38 }
0x149f   : > { %v6252_v41 = vpop.eup %6251 }
0x14a0   : > { %v5090_v9 = vadd.f32 1.0, %v6252_v41 }
0x14a2   : > { %6253 = vrcp.f32 %v5090_v9  ;;  %v5147_v12 = vand.u32 2147483648, %v5090_v9  ;;  %v5145_v29 = vand.u32 2147483647, %v5090_v9  ;;  %vm5141_vm6 = vweird.f32 %v5090_v9 }
0x14a4   : > { %v5148_v3 = vor.u32 1.1754944e-38, %v5147_v12  ;;  %vm5146_vm8 = vcmp.eq.f32.partialorder %v5145_v29, 8.507059e+37 }
0x14a8   : > { %v6254_v30 = vpop.eup %6253 }
0x14a9   : > { %v5137_v15 = vmul.f32 %v6254_v30, %v5090_v9  ;;  %vm5142_vm5 = vweird.f32 %v6254_v30 }
0x14aa   : > { %vm5143_vm7 = vmor %vm5141_vm6, %vm5142_vm5 }
0x14ab   : > { %v5138_v43 = vsub.f32 1.0, %v5137_v15 }
0x14ad   : > { %v5139_v25 = vmul.f32 %v6254_v30, %v5138_v43 }
0x14af   : > { %v5140_v53 = vadd.f32 %v6254_v30, %v5139_v25 }
0x14b1   : > { %v5144_v34 = vsel %vm5143_vm7, %v6254_v30, %v5140_v53 }
0x14b2   : > { %v9876_v63 = vsel %vm5146_vm8, %v5148_v3, %v5144_v34 }
0x14b3   : > { %v5170_v33 = vmul.f32 %v5162_v45, %v9876_v63 }
0x14b5   : > { %5181 = vrot.lane.b32.xlu0 %v5170_v33, %s6376_s13  ;;  %s5732_s13 = sshll.u32 %s6461_s21, 5 }
0x14b6   : > { %s5285_s14 = scalar_lea.hbm %s9975_s11, %s5732_s13 }
0x14b7   : > { %s5288_s30 = sshll.u32 %s5285_s14, 4  ;;  %s5289_s30 = int_to_ptr.hbm [resolvable:$true] %s5288_s30 }
0x14b8   : > { %s6291_s0 = sshra.s32 %s5289_s30, 4  ;;  %s6292_s0 = int_to_ptr.hbm [resolvable:$true] %s6291_s0 }
0x14b9   : > { %s6293_s1 = scalar_lea.hbm %s6292_s0, 32  ;;  %p6298_p0 = scmp.lt.s32.totalorder %s6292_s0, %s9975_s11 }
0x14ba   : > { %p6294_p11 = scmp.ne.s32.totalorder %s6292_s0, %s6293_s1  ;;  %p6299_p1 = scmp.lt.s32.totalorder %s6297_s3, %s6293_s1 }
0x14bc   : > { %p6295_p12 = pnand %p6294_p11, %p6478_p5  ;;  %p6300_p2 = por %p6299_p1, %p6298_p0 }
0x14be   : > { %p6296_p13 = pneg %p6295_p12 }
0x14c0   : > { %p6301_p3 = pnand %p6300_p2, %p6296_p13 }
0x14c4   : > { %v5180_v5 = vpop.permute.xlu2 %5179 }
0x14c5   : > { %v5189_v28 = vadd.f32 %v5180_v5, %v9862_v55 }
0x14c7   : > { %6255 = vtanh.f32 %v5189_v28 }
0x14cc   : > { %v5176_v57 = vpop.permute.xlu0 %5175 }
0x14cd   : > { %v6256_v35 = vpop.eup %6255  ;;  %v5187_v50 = vadd.f32 %v5176_v57, %v9854_v39  ;;  %v5196_v39 = vsub.f32 1.0, %v9869_v61 }
0x14ce   : > { %5207 = vrot.lane.b32.xlu0 %v6256_v35, %s10198_s15 }
0x14cf   : > { %6257 = vtanh.f32 %v5187_v50 }
0x14d4   : > { %v5178_v1 = vpop.permute.xlu1 %5177 }
0x14d5   : > { %v6258_v46 = vpop.eup %6257  ;;  %v5188_v26 = vadd.f32 %v5178_v1, %v9858_v32 }
0x14d6   : > { %5203 = vrot.lane.b32.xlu1 %v6258_v46, %s10198_s15 }
0x14d7   : > { %6259 = vtanh.f32 %v5188_v26 }
0x14dd   : > { %v6260_v54 = vpop.eup %6259 }
0x14de   : > { %5205 = vrot.lane.b32.xlu2 %v6260_v54, %s10198_s15 }
0x1527   : > { %v5182_v10 = vpop.permute.xlu0 %5181 }
0x1528   : > { %v5190_v55 = vadd.f32 %v5182_v10, %v5028_v22 }
0x152a   : > { %6261 = vtanh.f32 %v5190_v55 }
0x1530   : > { %v6262_v51 = vpop.eup %6261 }
0x1531   : > { %5209 = vrot.lane.b32.xlu1 %v6262_v51, %s10198_s15 }
0x1538   : > { %v5206_v4 = vpop.permute.xlu2 %5205 }
0x1539   : > { %v5216_v32 = vmul.f32 %v5206_v4, %v5196_v39 }
0x153b   : > { %v5224_v60 = vadd.f32 %v5220_v13, %v5216_v32 }
0x153d   : > { %5233 = vrot.lane.b32.xlu0 %v5224_v60, %s10198_s15 }
0x1540   : > { %v5208_v49 = vpop.permute.xlu0 %5207 }
0x1541   : > { %v5217_v16 = vmul.f32 %v5208_v49, %v5197_v27 }
0x1543   : > { %v5225_v36 = vadd.f32 %v5221_v58, %v5217_v16 }
0x1545   : > { %5235 = vrot.lane.b32.xlu1 %v5225_v36, %s10198_s15 }
0x1548   : > { %v5204_v44 = vpop.permute.xlu1 %5203 }
0x1549   : > { %v5215_v42 = vmul.f32 %v5204_v44, %v5195_v7 }
0x154b   : > { %v5223_v24 = vadd.f32 %v5219_v20, %v5215_v42 }
0x154d   : > { %5231 = vrot.lane.b32.xlu2 %v5223_v24, %s10198_s15 }
0x154e   : > { %6304 = shalt.err (!%p6301_p3)
}
0x154f   : > { %s6378_s25 = smov 128   ;;  %s6379_s22 = smov 8   ;;  %v5198_v11 = vsub.f32 1.0, %v9876_v63  ;;  %v5222_v31 = vmul.f32 %v9876_v63, %v9637_v48 }
0x1550   : > { %5743 = dma.vmem_to_hbm [thread:$0]  (%p6478_p5), %s5287_s24, 512, %s5289_s30, %s5257_s12, %s6378_s25, %s6378_s25, %s6379_s22  }
0x1551   : > { %s10569_s0 = sshll.u32 %s9769_s16, 5  ;;  %s10570_s2 = smov 96  }
0x1552   : > { %s402_s1 = scalar_lea.vmem [#allocation2], %s10569_s0  ;;  %s5268_s5 = scalar_lea.hbm %s9974_s10, %s5732_s13 }
0x1553   : > { %s5269_s15 = sshll.u32 %s402_s1, 4  ;;  %s5271_s29 = sshll.u32 %s5268_s5, 4  ;;  %s5270_s15 = int_to_ptr.vmem [resolvable:$true] %s5269_s15  ;;  %s5272_s29 = int_to_ptr.hbm [resolvable:$true] %s5271_s29 }
0x1554   : > { %s5252_s14 = scalar_lea.sflag [#allocation3], %s9769_s16  ;;  %s6319_s24 = sshra.s32 %s5272_s29, 4  ;;  %s6320_s24 = int_to_ptr.hbm [resolvable:$true] %s6319_s24 }
0x1555   : > { %s6321_s30 = scalar_lea.hbm %s6320_s24, 32  ;;  %s6325_s0 = scalar_lea.hbm %s9974_s10, 64 }
0x1556   : > { %p6322_p4 = scmp.ne.s32.totalorder %s6320_s24, %s6321_s30  ;;  %p6326_p9 = scmp.lt.s32.totalorder %s6320_s24, %s9974_s10 }
0x1557   : > { %p6327_p10 = scmp.lt.s32.totalorder %s6325_s0, %s6321_s30 }
0x1558   : > { %p6323_p7 = pnand %p6322_p4, %p6478_p5 }
0x1559   : > { %p6328_p11 = por %p6327_p10, %p6326_p9 }
0x155a   : > { %p6324_p8 = pneg %p6323_p7 }
0x155c   : > { %p6329_p12 = pnand %p6328_p11, %p6324_p8 }
0x15a3   : > { %v5210_v56 = vpop.permute.xlu1 %5209 }
0x15a4   : > { %v5218_v59 = vmul.f32 %v5210_v56, %v5198_v11 }
0x15a6   : > { %v5226_v62 = vadd.f32 %v5222_v31, %v5218_v59 }
0x15a7   : > { %v5232_v2 = vpop.permute.xlu2 %5231 }
0x15a8   : > { %5243 = vst.msk [vmem:[%s402_s1] sm:$0xff] %vm2454_vm14, %v5232_v2  ;;  %5237 = vrot.lane.b32.xlu2 %v5226_v62, %s10570_s2 }
0x15af   : > { %v5234_v61 = vpop.permute.xlu0 %5233 }
0x15b0   : > { %5244 = vst.msk [vmem:[%s402_s1 + $0x8] sm:$0xff] %vm2454_vm14, %v5234_v61 }
0x15b7   : > { %v5236_v21 = vpop.permute.xlu1 %5235 }
0x15b8   : > { %5245 = vst.msk [vmem:[%s402_s1 + $0x10] sm:$0xff] %vm2454_vm14, %v5236_v21 }
0x1602   : > { %v5238_v48 = vpop.permute.xlu2 %5237 }
0x1603   : > { %5246 = vst.msk [vmem:[%s402_s1 + $0x18] sm:$0xff] %vm2454_vm14, %v5238_v48 }
0x1604   : > { %6332 = shalt.err (!%p6329_p12)
}
0x1605   : > { %5742 = dma.vmem_to_hbm [thread:$0]  (%p6478_p5), %s5270_s15, 512, %s5272_s29, %s5252_s14, %s6378_s25, %s6378_s25, %s6379_s22  }
0x1606 PF: > { %p5753_p13 = scmp.ge.s32.totalorder %s6371_s20, 2  ;;  %s5303_s16 = sand.u32 1, %s6359_s17  }
0x1607   : > { %s5304_s1 = scalar_lea.sflag [#allocation3], %s5303_s16 }
0x1608   : > { %p5747_p0 = pnand %p5753_p13, %p6482_p6 }
0x160a   : > { %p5748_p1 = pneg %p5747_p0 }
0x160c   : > { %6350 = dma.done.wait (%p5748_p1), %s5304_s1, 512  }
0x160d   : > { %6352 = vsyncadd (%p5748_p1), %s5304_s1, 4294966784  ;;  %s5314_s3 = scalar_lea.sflag [#allocation5], %s5303_s16 }
0x160e   : > { %6354 = dma.done.wait (%p5748_p1), %s5314_s3, 512  }
0x160f   : > { %6356 = vsyncadd (%p5748_p1), %s5314_s3, 4294966784  ;;  %p25_p5 = scmp.ge.s32.totalorder %s6465_s23, 4   ;;  %s10571_s17 = smov %s6363_s18 }
0x1610   : > { %s10572_s18 = smov %s6367_s19  ;;  %s10573_s19 = smov %s6476_s26 }
0x1611   : > { %s10574_s20 = smov %s6465_s23  ;;  %27 = sbr.rel (!%p25_p5) target bundleno = 12 (0xc), region = 115 }
0x1616   :  { %5320 = vsyncpa [#allocation3], 1 }
0x1617   :  { %5322 = vsyncpa [#allocation3 + $0x1], 1 }
0x1618   :  { %5323 = vsyncpa [#allocation5], 1 }
0x1619   :  { %5325 = vsyncpa [#allocation5 + $0x1], 1 }

</bundles_post_ra>
